<compile_context>
chip_gen: v6e
topology: v6e:2x2x1
jax: 0.10.0
libtpu: 0.0.40
codegen_flags: <defaults>
</compile_context>

<pallas_src>
from functools import partial

import jax
import jax.numpy as jnp
from jax.experimental import pallas as pl
from jax.experimental.pallas import tpu as pltpu


# Padded (lane-dense) channel widths carried end-to-end.
C1P = 128   # conv1 out channels (20 real)
C2P = 128   # conv2 out channels (50 real)
F1P = 512   # fc1 out features   (500 real)
NCP = 128   # fc2 out features   (num_classes real)


# ----------------------------- Pallas kernels ------------------------------

def _conv_pool_kernel(a_ref, w_ref, b_ref, o_ref):
    """Fused conv-as-GEMM (BN folded into w/b) + ReLU + 2x2 max pool.

    a_ref: [4, TP, K] bf16 -- im2col rows grouped by pool-window position.
    w_ref: [K, N]     bf16 -- conv weights with BN affine folded in.
    b_ref: [1, N]     f32  -- conv bias with BN affine folded in.
    o_ref: [TP, N]         -- pooled activations (lane-dense, N % 128 == 0).
    """
    w = w_ref[...]
    b = b_ref[...]

    def window(i):
        y = jnp.dot(a_ref[i], w, preferred_element_type=jnp.float32)
        return jnp.maximum(y + b, 0.0)            # bias + ReLU in f32

    o = jnp.maximum(jnp.maximum(window(0), window(1)),
                    jnp.maximum(window(2), window(3)))
    o_ref[...] = o.astype(o_ref.dtype)


def _fc_tail_kernel(x_ref, w1_ref, b1_ref, w2_ref, b2_ref, o_ref):
    """Fused fc1 + ReLU + fc2; the [TB, F1P] intermediate stays in VMEM."""
    h = jnp.dot(x_ref[...], w1_ref[...], preferred_element_type=jnp.float32)
    h = jnp.maximum(h + b1_ref[...], 0.0)
    o = jnp.dot(h.astype(w2_ref.dtype), w2_ref[...],
                preferred_element_type=jnp.float32)
    o_ref[...] = (o + b2_ref[...]).astype(o_ref.dtype)


# ----------------------------- kernel wrappers ------------------------------

def _row_tile(num_rows, bytes_per_row, budget=1 << 21):
    """Rows per grid tile, keeping the input slab under ~2 MiB per buffer."""
    cap = max(8, budget // max(int(bytes_per_row), 1))
    if num_rows <= cap:
        return num_rows
    cap = min(cap, num_rows)
    cap -= cap % 8
    t = cap
    while t >= 8:
        if num_rows % t == 0:
            return t
        t -= 8
    return num_rows   # fallback: single block


def conv_pool_gemm(a, w, b):
    """relu(A @ W + b) followed by a 2x2 max pool over the window axis.

    a: [4, P, K] bf16 (window-grouped im2col rows), w: [K, N] bf16,
    b: [1, N] f32  ->  [P, N] bf16 pooled activations.
    """
    _, P, K = a.shape
    N = w.shape[1]
    TP = _row_tile(P, 4 * K * a.dtype.itemsize)
    grid = (P // TP,)
    return pl.pallas_call(
        _conv_pool_kernel,
        out_shape=jax.ShapeDtypeStruct((P, N), jnp.bfloat16),
        grid_spec=pltpu.PrefetchScalarGridSpec(
            num_scalar_prefetch=0,
            grid=grid,
            in_specs=[pl.BlockSpec((4, TP, K), lambda i: (0, i, 0)),
                      pl.BlockSpec((K, N), lambda i: (0, 0)),
                      pl.BlockSpec((1, N), lambda i: (0, 0))],
            out_specs=pl.BlockSpec((TP, N), lambda i: (i, 0)),
        ),
        compiler_params=pltpu.CompilerParams(
            dimension_semantics=("parallel",)),
    )(a, w, b)


def fc_tail(x, w1, b1, w2, b2):
    """logits = fc2(relu(fc1(x))) with padded (lane-dense) feature dims."""
    B, K1 = x.shape
    F1 = w1.shape[1]
    NC = w2.shape[1]
    TB = _row_tile(B, K1 * x.dtype.itemsize)
    grid = (B // TB,)
    return pl.pallas_call(
        _fc_tail_kernel,
        out_shape=jax.ShapeDtypeStruct((B, NC), jnp.float32),
        grid_spec=pltpu.PrefetchScalarGridSpec(
            num_scalar_prefetch=0,
            grid=grid,
            in_specs=[pl.BlockSpec((TB, K1), lambda i: (i, 0)),
                      pl.BlockSpec((K1, F1), lambda i: (0, 0)),
                      pl.BlockSpec((1, F1), lambda i: (0, 0)),
                      pl.BlockSpec((F1, NC), lambda i: (0, 0)),
                      pl.BlockSpec((1, NC), lambda i: (0, 0))],
            out_specs=pl.BlockSpec((TB, NC), lambda i: (i, 0)),
        ),
        compiler_params=pltpu.CompilerParams(
            dimension_semantics=("parallel",)),
    )(x, w1, b1, w2, b2)


# ------------------------------- JAX glue -----------------------------------

def im2col_pool_grouped(x_nhwc, kh, kw):
    """Valid-conv patch extraction, rows grouped by 2x2 pool-window position.

    Returns A[4, B*Hp*Wp, kh*kw*C]; row p of window-slab wi holds the conv
    patch for pooled cell p = (b, ip, jp) at window offset (wi // 2, wi % 2).
    Column ordering is (kh, kw, cin), matching the weight-matrix row order.
    """
    B, H, W, C = x_nhwc.shape
    Ho, Wo = H - kh + 1, W - kw + 1
    Hp, Wp = Ho // 2, Wo // 2
    cols = []
    for di in range(kh):
        for dj in range(kw):
            cols.append(x_nhwc[:, di:di + Ho, dj:dj + Wo, :])
    patches = jnp.stack(cols, axis=3)                       # [B, Ho, Wo, kh*kw, C]
    patches = patches.reshape(B, Hp, 2, Wp, 2, kh * kw * C)
    patches = patches.transpose(2, 4, 0, 1, 3, 5)           # [2, 2, B, Hp, Wp, K]
    a = patches.reshape(4, B * Hp * Wp, kh * kw * C)
    return a, (B, Hp, Wp)


def init_lenet_params(key, num_classes=10):
    """Raw parameters in PyTorch layouts (conv OIHW, linear [out, in])."""
    ks = jax.random.split(key, 8)
    f32 = jnp.float32
    return {
        'conv1_w': 0.1 * jax.random.normal(ks[0], (20, 1, 5, 5), f32),
        'conv1_b': 0.1 * jax.random.normal(ks[1], (20,), f32),
        'conv2_w': 0.1 * jax.random.normal(ks[2], (50, 20, 5, 5), f32),
        'conv2_b': 0.1 * jax.random.normal(ks[3], (50,), f32),
        'fc1_w': 0.05 * jax.random.normal(ks[4], (500, 50 * 4 * 4), f32),
        'fc1_b': 0.05 * jax.random.normal(ks[5], (500,), f32),
        'fc2_w': 0.05 * jax.random.normal(ks[6], (num_classes, 500), f32),
        'fc2_b': 0.05 * jax.random.normal(ks[7], (num_classes,), f32),
        # BatchNorm inference parameters / running statistics.
        'bn1_gamma': jnp.ones((20,), f32), 'bn1_beta': jnp.zeros((20,), f32),
        'bn1_mean': jnp.zeros((20,), f32), 'bn1_var': jnp.ones((20,), f32),
        'bn2_gamma': jnp.ones((50,), f32), 'bn2_beta': jnp.zeros((50,), f32),
        'bn2_mean': jnp.zeros((50,), f32), 'bn2_var': jnp.ones((50,), f32),
    }


def prepare_params(raw, num_classes=10, eps=1e-5):
    """Fold BN into conv weights, reorder/pad everything to lane-dense bf16."""
    f32, bf16 = jnp.float32, jnp.bfloat16

    def bn_fold(pfx):
        scale = raw[f'{pfx}_gamma'] / jnp.sqrt(raw[f'{pfx}_var'] + eps)
        shift = raw[f'{pfx}_beta'] - raw[f'{pfx}_mean'] * scale
        return scale, shift

    s1, t1 = bn_fold('bn1')
    s2, t2 = bn_fold('bn2')

    # conv1 + bn1 -> [25, C1P] weight matrix (row order = (kh, kw, cin)).
    w1 = raw['conv1_w'] * s1[:, None, None, None]            # [20, 1, 5, 5]
    b1 = raw['conv1_b'] * s1 + t1
    w1m = jnp.transpose(w1, (2, 3, 1, 0)).reshape(25, 20)
    w1m = jnp.pad(w1m, ((0, 0), (0, C1P - 20)))
    b1p = jnp.pad(b1, (0, C1P - 20)).reshape(1, C1P)

    # conv2 + bn2 -> [25 * C1P, C2P] (input channels padded to match conv1 out).
    w2 = raw['conv2_w'] * s2[:, None, None, None]            # [50, 20, 5, 5]
    b2 = raw['conv2_b'] * s2 + t2
    w2p = jnp.pad(w2, ((0, C2P - 50), (0, C1P - 20), (0, 0), (0, 0)))
    w2m = jnp.transpose(w2p, (2, 3, 1, 0)).reshape(25 * C1P, C2P)
    b2p = jnp.pad(b2, (0, C2P - 50)).reshape(1, C2P)

    # fc1: torch flattens NCHW (feature = c*16 + h*4 + w); our activation is
    # NHWC-padded (feature = (h*4 + w)*C2P + c) -> absorb the reorder here.
    wf1 = raw['fc1_w'].reshape(500, 50, 4, 4)                # [out, c, h, w]
    wf1 = jnp.transpose(wf1, (2, 3, 1, 0))                   # [h, w, c, out]
    wf1 = jnp.pad(wf1, ((0, 0), (0, 0), (0, C2P - 50), (0, 0)))
    wf1 = wf1.reshape(4 * 4 * C2P, 500)
    wf1 = jnp.pad(wf1, ((0, 0), (0, F1P - 500)))             # [2048, 512]
    bf1 = jnp.pad(raw['fc1_b'], (0, F1P - 500)).reshape(1, F1P)

    # fc2: [num_classes, 500] -> [F1P, NCP]
    wf2 = jnp.pad(raw['fc2_w'].T, ((0, F1P - 500), (0, NCP - num_classes)))
    bf2 = jnp.pad(raw['fc2_b'], (0, NCP - num_classes)).reshape(1, NCP)

    return {
        'w1': w1m.astype(bf16), 'b1': b1p.astype(f32),
        'w2': w2m.astype(bf16), 'b2': b2p.astype(f32),
        'wf1': wf1.astype(bf16), 'bf1': bf1.astype(f32),
        'wf2': wf2.astype(bf16), 'bf2': bf2.astype(f32),
    }


@partial(jax.jit, static_argnames=("num_classes",))
def lenet_forward(params, x_nchw, num_classes=10):
    B = x_nchw.shape[0]
    x = jnp.transpose(x_nchw, (0, 2, 3, 1)).astype(jnp.bfloat16)   # [B,28,28,1]

    # conv1 + bn1 + relu + pool  -> [B, 12, 12, C1P]
    a1, (_, Hp1, Wp1) = im2col_pool_grouped(x, 5, 5)               # [4, B*144, 25]
    h1 = conv_pool_gemm(a1, params['w1'], params['b1'])            # [B*144, C1P]
    h1 = h1.reshape(B, Hp1, Wp1, C1P)

    # conv2 + bn2 + relu + pool  -> [B, 4, 4, C2P]
    a2, (_, Hp2, Wp2) = im2col_pool_grouped(h1, 5, 5)              # [4, B*16, 3200]
    h2 = conv_pool_gemm(a2, params['w2'], params['b2'])            # [B*16, C2P]

    # Flatten (the torch NCHW view(B,-1) reorder is folded into wf1).
    feats = h2.reshape(B, Hp2 * Wp2 * C2P)                         # [B, 2048]

    # fc1 + relu + fc2 fused in one kernel.
    logits = fc_tail(feats, params['wf1'], params['bf1'],
                     params['wf2'], params['bf2'])                 # [B, NCP] f32
    return logits[:, :num_classes]


if __name__ == "__main__":
    key = jax.random.PRNGKey(0)
    pkey, xkey = jax.random.split(key)

    raw = init_lenet_params(pkey, num_classes=10)
    params = prepare_params(raw, num_classes=10)

    # LeNet expects 1x28x28 inputs (fc1 requires the 50*4*4 flattened features).
    x = jax.random.normal(xkey, (2, 1, 28, 28), jnp.float32)

    logits = lenet_forward(params, x)
    jax.block_until_ready(logits)

    assert logits.shape == (2, 10), logits.shape
    assert logits.dtype == jnp.float32
    print("KERNEL_OK")
</pallas_src>

<mosaic_0001>
module attributes {stable_mosaic.version = 11 : i64} {
  func.func @_conv_pool_kernel(%arg0: i32, %arg1: memref<4x288x25xbf16, #tpu.memory_space<vmem>>, %arg2: memref<25x128xbf16, #tpu.memory_space<vmem>>, %arg3: memref<1x128xf32, #tpu.memory_space<vmem>>, %arg4: memref<288x128xbf16, #tpu.memory_space<vmem>>) attributes {dimension_semantics = [#tpu.dimension_semantics<parallel>], iteration_bounds = array<i64: 1>, scalar_prefetch = 0 : i64, scratch_operands = 0 : i64, tpu.core_type = #tpu.core_type<tc>, window_params = [{transform_indices = @transform_0, window_bounds = array<i64: 4, 288, 25>}, {pipeline_mode = #tpu.pipeline_mode<synchronous>, transform_indices = @transform_1, window_bounds = array<i64: 25, 128>}, {pipeline_mode = #tpu.pipeline_mode<synchronous>, transform_indices = @transform_2, window_bounds = array<i64: 1, 128>}, {transform_indices = @transform_3, window_bounds = array<i64: 288, 128>}]} {
    %c0 = arith.constant 0 : index
    %c0_0 = arith.constant 0 : index
    %0 = vector.load %arg2[%c0, %c0_0] : memref<25x128xbf16, #tpu.memory_space<vmem>>, vector<25x128xbf16>
    %c0_1 = arith.constant 0 : index
    %c0_2 = arith.constant 0 : index
    %1 = vector.load %arg3[%c0_1, %c0_2] : memref<1x128xf32, #tpu.memory_space<vmem>>, vector<1x128xf32>
    %c0_3 = arith.constant 0 : index
    %c0_4 = arith.constant 0 : index
    %c0_5 = arith.constant 0 : index
    %2 = vector.load %arg1[%c0_3, %c0_4, %c0_5] : memref<4x288x25xbf16, #tpu.memory_space<vmem>>, vector<1x288x25xbf16>
    %3 = vector.shape_cast %2 : vector<1x288x25xbf16> to vector<288x25xbf16>
    %cst = arith.constant dense<0.000000e+00> : vector<288x128xf32>
    %4 = tpu.matmul %3, %0, %cst {dimension_numbers = #tpu.dot_dimension_numbers<[1], [0], [0], [1], [0, 0, 1, 1], [], []>} : vector<288x25xbf16>, vector<25x128xbf16>, vector<288x128xf32> -> vector<288x128xf32>
    %5 = vector.broadcast %1 : vector<1x128xf32> to vector<288x128xf32>
    %6 = arith.addf %4, %5 : vector<288x128xf32>
    %cst_6 = arith.constant 0.000000e+00 : f32
    %7 = vector.broadcast %cst_6 : f32 to vector<288x128xf32>
    %8 = arith.maximumf %6, %7 : vector<288x128xf32>
    %c1 = arith.constant 1 : index
    %c0_7 = arith.constant 0 : index
    %c0_8 = arith.constant 0 : index
    %9 = vector.load %arg1[%c1, %c0_7, %c0_8] : memref<4x288x25xbf16, #tpu.memory_space<vmem>>, vector<1x288x25xbf16>
    %10 = vector.shape_cast %9 : vector<1x288x25xbf16> to vector<288x25xbf16>
    %cst_9 = arith.constant dense<0.000000e+00> : vector<288x128xf32>
    %11 = tpu.matmul %10, %0, %cst_9 {dimension_numbers = #tpu.dot_dimension_numbers<[1], [0], [0], [1], [0, 0, 1, 1], [], []>} : vector<288x25xbf16>, vector<25x128xbf16>, vector<288x128xf32> -> vector<288x128xf32>
    %12 = vector.broadcast %1 : vector<1x128xf32> to vector<288x128xf32>
    %13 = arith.addf %11, %12 : vector<288x128xf32>
    %cst_10 = arith.constant 0.000000e+00 : f32
    %14 = vector.broadcast %cst_10 : f32 to vector<288x128xf32>
    %15 = arith.maximumf %13, %14 : vector<288x128xf32>
    %16 = arith.maximumf %8, %15 : vector<288x128xf32>
    %c2 = arith.constant 2 : index
    %c0_11 = arith.constant 0 : index
    %c0_12 = arith.constant 0 : index
    %17 = vector.load %arg1[%c2, %c0_11, %c0_12] : memref<4x288x25xbf16, #tpu.memory_space<vmem>>, vector<1x288x25xbf16>
    %18 = vector.shape_cast %17 : vector<1x288x25xbf16> to vector<288x25xbf16>
    %cst_13 = arith.constant dense<0.000000e+00> : vector<288x128xf32>
    %19 = tpu.matmul %18, %0, %cst_13 {dimension_numbers = #tpu.dot_dimension_numbers<[1], [0], [0], [1], [0, 0, 1, 1], [], []>} : vector<288x25xbf16>, vector<25x128xbf16>, vector<288x128xf32> -> vector<288x128xf32>
    %20 = vector.broadcast %1 : vector<1x128xf32> to vector<288x128xf32>
    %21 = arith.addf %19, %20 : vector<288x128xf32>
    %cst_14 = arith.constant 0.000000e+00 : f32
    %22 = vector.broadcast %cst_14 : f32 to vector<288x128xf32>
    %23 = arith.maximumf %21, %22 : vector<288x128xf32>
    %c3 = arith.constant 3 : index
    %c0_15 = arith.constant 0 : index
    %c0_16 = arith.constant 0 : index
    %24 = vector.load %arg1[%c3, %c0_15, %c0_16] : memref<4x288x25xbf16, #tpu.memory_space<vmem>>, vector<1x288x25xbf16>
    %25 = vector.shape_cast %24 : vector<1x288x25xbf16> to vector<288x25xbf16>
    %cst_17 = arith.constant dense<0.000000e+00> : vector<288x128xf32>
    %26 = tpu.matmul %25, %0, %cst_17 {dimension_numbers = #tpu.dot_dimension_numbers<[1], [0], [0], [1], [0, 0, 1, 1], [], []>} : vector<288x25xbf16>, vector<25x128xbf16>, vector<288x128xf32> -> vector<288x128xf32>
    %27 = vector.broadcast %1 : vector<1x128xf32> to vector<288x128xf32>
    %28 = arith.addf %26, %27 : vector<288x128xf32>
    %cst_18 = arith.constant 0.000000e+00 : f32
    %29 = vector.broadcast %cst_18 : f32 to vector<288x128xf32>
    %30 = arith.maximumf %28, %29 : vector<288x128xf32>
    %31 = arith.maximumf %23, %30 : vector<288x128xf32>
    %32 = arith.maximumf %16, %31 : vector<288x128xf32>
    %33 = arith.truncf %32 : vector<288x128xf32> to vector<288x128xbf16>
    %c0_19 = arith.constant 0 : index
    %c0_20 = arith.constant 0 : index
    %34 = vector.load %arg4[%c0_19, %c0_20] : memref<288x128xbf16, #tpu.memory_space<vmem>>, vector<288x128xbf16>
    tpu.vector_store %arg4[%c0_19, %c0_20], %33 {strides = array<i32>} : memref<288x128xbf16, #tpu.memory_space<vmem>>, vector<288x128xbf16>,
    return
  }
  func.func @transform_0(%arg0: i32) -> (i32, i32, i32) {
    %c0_i32 = arith.constant 0 : i32
    %c0_i32_0 = arith.constant 0 : i32
    %c0_i32_1 = arith.constant 0 : i32
    return %c0_i32, %arg0, %c0_i32_0 : i32, i32, i32
  }
  func.func @transform_1(%arg0: i32) -> (i32, i32) {
    %c0_i32 = arith.constant 0 : i32
    %c0_i32_0 = arith.constant 0 : i32
    %c0_i32_1 = arith.constant 0 : i32
    return %c0_i32, %c0_i32_0 : i32, i32
  }
  func.func @transform_2(%arg0: i32) -> (i32, i32) {
    %c0_i32 = arith.constant 0 : i32
    %c0_i32_0 = arith.constant 0 : i32
    %c0_i32_1 = arith.constant 0 : i32
    return %c0_i32, %c0_i32_0 : i32, i32
  }
  func.func @transform_3(%arg0: i32) -> (i32, i32) {
    %c0_i32 = arith.constant 0 : i32
    %c0_i32_0 = arith.constant 0 : i32
    return %arg0, %c0_i32 : i32, i32
  }
}

module attributes {stable_mosaic.version = 11 : i64} {
  func.func @_conv_pool_kernel(%arg0: i32, %arg1: memref<4x32x3200xbf16, #tpu.memory_space<vmem>>, %arg2: memref<3200x128xbf16, #tpu.memory_space<vmem>>, %arg3: memref<1x128xf32, #tpu.memory_space<vmem>>, %arg4: memref<32x128xbf16, #tpu.memory_space<vmem>>) attributes {dimension_semantics = [#tpu.dimension_semantics<parallel>], iteration_bounds = array<i64: 1>, scalar_prefetch = 0 : i64, scratch_operands = 0 : i64, tpu.core_type = #tpu.core_type<tc>, window_params = [{transform_indices = @transform_0, window_bounds = array<i64: 4, 32, 3200>}, {pipeline_mode = #tpu.pipeline_mode<synchronous>, transform_indices = @transform_1, window_bounds = array<i64: 3200, 128>}, {pipeline_mode = #tpu.pipeline_mode<synchronous>, transform_indices = @transform_2, window_bounds = array<i64: 1, 128>}, {transform_indices = @transform_3, window_bounds = array<i64: 32, 128>}]} {
    %c0 = arith.constant 0 : index
    %c0_0 = arith.constant 0 : index
    %0 = vector.load %arg2[%c0, %c0_0] : memref<3200x128xbf16, #tpu.memory_space<vmem>>, vector<3200x128xbf16>
    %c0_1 = arith.constant 0 : index
    %c0_2 = arith.constant 0 : index
    %1 = vector.load %arg3[%c0_1, %c0_2] : memref<1x128xf32, #tpu.memory_space<vmem>>, vector<1x128xf32>
    %c0_3 = arith.constant 0 : index
    %c0_4 = arith.constant 0 : index
    %c0_5 = arith.constant 0 : index
    %2 = vector.load %arg1[%c0_3, %c0_4, %c0_5] : memref<4x32x3200xbf16, #tpu.memory_space<vmem>>, vector<1x32x3200xbf16>
    %3 = vector.shape_cast %2 : vector<1x32x3200xbf16> to vector<32x3200xbf16>
    %cst = arith.constant dense<0.000000e+00> : vector<32x128xf32>
    %4 = tpu.matmul %3, %0, %cst {dimension_numbers = #tpu.dot_dimension_numbers<[1], [0], [0], [1], [0, 0, 1, 1], [], []>} : vector<32x3200xbf16>, vector<3200x128xbf16>, vector<32x128xf32> -> vector<32x128xf32>
    %5 = vector.broadcast %1 : vector<1x128xf32> to vector<32x128xf32>
    %6 = arith.addf %4, %5 : vector<32x128xf32>
    %cst_6 = arith.constant 0.000000e+00 : f32
    %7 = vector.broadcast %cst_6 : f32 to vector<32x128xf32>
    %8 = arith.maximumf %6, %7 : vector<32x128xf32>
    %c1 = arith.constant 1 : index
    %c0_7 = arith.constant 0 : index
    %c0_8 = arith.constant 0 : index
    %9 = vector.load %arg1[%c1, %c0_7, %c0_8] : memref<4x32x3200xbf16, #tpu.memory_space<vmem>>, vector<1x32x3200xbf16>
    %10 = vector.shape_cast %9 : vector<1x32x3200xbf16> to vector<32x3200xbf16>
    %cst_9 = arith.constant dense<0.000000e+00> : vector<32x128xf32>
    %11 = tpu.matmul %10, %0, %cst_9 {dimension_numbers = #tpu.dot_dimension_numbers<[1], [0], [0], [1], [0, 0, 1, 1], [], []>} : vector<32x3200xbf16>, vector<3200x128xbf16>, vector<32x128xf32> -> vector<32x128xf32>
    %12 = vector.broadcast %1 : vector<1x128xf32> to vector<32x128xf32>
    %13 = arith.addf %11, %12 : vector<32x128xf32>
    %cst_10 = arith.constant 0.000000e+00 : f32
    %14 = vector.broadcast %cst_10 : f32 to vector<32x128xf32>
    %15 = arith.maximumf %13, %14 : vector<32x128xf32>
    %16 = arith.maximumf %8, %15 : vector<32x128xf32>
    %c2 = arith.constant 2 : index
    %c0_11 = arith.constant 0 : index
    %c0_12 = arith.constant 0 : index
    %17 = vector.load %arg1[%c2, %c0_11, %c0_12] : memref<4x32x3200xbf16, #tpu.memory_space<vmem>>, vector<1x32x3200xbf16>
    %18 = vector.shape_cast %17 : vector<1x32x3200xbf16> to vector<32x3200xbf16>
    %cst_13 = arith.constant dense<0.000000e+00> : vector<32x128xf32>
    %19 = tpu.matmul %18, %0, %cst_13 {dimension_numbers = #tpu.dot_dimension_numbers<[1], [0], [0], [1], [0, 0, 1, 1], [], []>} : vector<32x3200xbf16>, vector<3200x128xbf16>, vector<32x128xf32> -> vector<32x128xf32>
    %20 = vector.broadcast %1 : vector<1x128xf32> to vector<32x128xf32>
    %21 = arith.addf %19, %20 : vector<32x128xf32>
    %cst_14 = arith.constant 0.000000e+00 : f32
    %22 = vector.broadcast %cst_14 : f32 to vector<32x128xf32>
    %23 = arith.maximumf %21, %22 : vector<32x128xf32>
    %c3 = arith.constant 3 : index
    %c0_15 = arith.constant 0 : index
    %c0_16 = arith.constant 0 : index
    %24 = vector.load %arg1[%c3, %c0_15, %c0_16] : memref<4x32x3200xbf16, #tpu.memory_space<vmem>>, vector<1x32x3200xbf16>
    %25 = vector.shape_cast %24 : vector<1x32x3200xbf16> to vector<32x3200xbf16>
    %cst_17 = arith.constant dense<0.000000e+00> : vector<32x128xf32>
    %26 = tpu.matmul %25, %0, %cst_17 {dimension_numbers = #tpu.dot_dimension_numbers<[1], [0], [0], [1], [0, 0, 1, 1], [], []>} : vector<32x3200xbf16>, vector<3200x128xbf16>, vector<32x128xf32> -> vector<32x128xf32>
    %27 = vector.broadcast %1 : vector<1x128xf32> to vector<32x128xf32>
    %28 = arith.addf %26, %27 : vector<32x128xf32>
    %cst_18 = arith.constant 0.000000e+00 : f32
    %29 = vector.broadcast %cst_18 : f32 to vector<32x128xf32>
    %30 = arith.maximumf %28, %29 : vector<32x128xf32>
    %31 = arith.maximumf %23, %30 : vector<32x128xf32>
    %32 = arith.maximumf %16, %31 : vector<32x128xf32>
    %33 = arith.truncf %32 : vector<32x128xf32> to vector<32x128xbf16>
    %c0_19 = arith.constant 0 : index
    %c0_20 = arith.constant 0 : index
    %34 = vector.load %arg4[%c0_19, %c0_20] : memref<32x128xbf16, #tpu.memory_space<vmem>>, vector<32x128xbf16>
    tpu.vector_store %arg4[%c0_19, %c0_20], %33 {strides = array<i32>} : memref<32x128xbf16, #tpu.memory_space<vmem>>, vector<32x128xbf16>,
    return
  }
  func.func @transform_0(%arg0: i32) -> (i32, i32, i32) {
    %c0_i32 = arith.constant 0 : i32
    %c0_i32_0 = arith.constant 0 : i32
    %c0_i32_1 = arith.constant 0 : i32
    return %c0_i32, %arg0, %c0_i32_0 : i32, i32, i32
  }
  func.func @transform_1(%arg0: i32) -> (i32, i32) {
    %c0_i32 = arith.constant 0 : i32
    %c0_i32_0 = arith.constant 0 : i32
    %c0_i32_1 = arith.constant 0 : i32
    return %c0_i32, %c0_i32_0 : i32, i32
  }
  func.func @transform_2(%arg0: i32) -> (i32, i32) {
    %c0_i32 = arith.constant 0 : i32
    %c0_i32_0 = arith.constant 0 : i32
    %c0_i32_1 = arith.constant 0 : i32
    return %c0_i32, %c0_i32_0 : i32, i32
  }
  func.func @transform_3(%arg0: i32) -> (i32, i32) {
    %c0_i32 = arith.constant 0 : i32
    %c0_i32_0 = arith.constant 0 : i32
    return %arg0, %c0_i32 : i32, i32
  }
}

module attributes {stable_mosaic.version = 11 : i64} {
  func.func @_fc_tail_kernel(%arg0: i32, %arg1: memref<2x2048xbf16, #tpu.memory_space<vmem>>, %arg2: memref<2048x512xbf16, #tpu.memory_space<vmem>>, %arg3: memref<1x512xf32, #tpu.memory_space<vmem>>, %arg4: memref<512x128xbf16, #tpu.memory_space<vmem>>, %arg5: memref<1x128xf32, #tpu.memory_space<vmem>>, %arg6: memref<2x128xf32, #tpu.memory_space<vmem>>) attributes {dimension_semantics = [#tpu.dimension_semantics<parallel>], iteration_bounds = array<i64: 1>, scalar_prefetch = 0 : i64, scratch_operands = 0 : i64, tpu.core_type = #tpu.core_type<tc>, window_params = [{transform_indices = @transform_0, window_bounds = array<i64: 2, 2048>}, {pipeline_mode = #tpu.pipeline_mode<synchronous>, transform_indices = @transform_1, window_bounds = array<i64: 2048, 512>}, {pipeline_mode = #tpu.pipeline_mode<synchronous>, transform_indices = @transform_2, window_bounds = array<i64: 1, 512>}, {pipeline_mode = #tpu.pipeline_mode<synchronous>, transform_indices = @transform_3, window_bounds = array<i64: 512, 128>}, {pipeline_mode = #tpu.pipeline_mode<synchronous>, transform_indices = @transform_4, window_bounds = array<i64: 1, 128>}, {transform_indices = @transform_5, window_bounds = array<i64: 2, 128>}]} {
    %c0 = arith.constant 0 : index
    %c0_0 = arith.constant 0 : index
    %0 = vector.load %arg1[%c0, %c0_0] : memref<2x2048xbf16, #tpu.memory_space<vmem>>, vector<2x2048xbf16>
    %c0_1 = arith.constant 0 : index
    %c0_2 = arith.constant 0 : index
    %1 = vector.load %arg2[%c0_1, %c0_2] : memref<2048x512xbf16, #tpu.memory_space<vmem>>, vector<2048x512xbf16>
    %cst = arith.constant dense<0.000000e+00> : vector<2x512xf32>
    %2 = tpu.matmul %0, %1, %cst {dimension_numbers = #tpu.dot_dimension_numbers<[1], [0], [0], [1], [0, 0, 1, 1], [], []>} : vector<2x2048xbf16>, vector<2048x512xbf16>, vector<2x512xf32> -> vector<2x512xf32>
    %c0_3 = arith.constant 0 : index
    %c0_4 = arith.constant 0 : index
    %3 = vector.load %arg3[%c0_3, %c0_4] : memref<1x512xf32, #tpu.memory_space<vmem>>, vector<1x512xf32>
    %4 = vector.broadcast %3 : vector<1x512xf32> to vector<2x512xf32>
    %5 = arith.addf %2, %4 : vector<2x512xf32>
    %cst_5 = arith.constant 0.000000e+00 : f32
    %6 = vector.broadcast %cst_5 : f32 to vector<2x512xf32>
    %7 = arith.maximumf %5, %6 : vector<2x512xf32>
    %8 = arith.truncf %7 : vector<2x512xf32> to vector<2x512xbf16>
    %c0_6 = arith.constant 0 : index
    %c0_7 = arith.constant 0 : index
    %9 = vector.load %arg4[%c0_6, %c0_7] : memref<512x128xbf16, #tpu.memory_space<vmem>>, vector<512x128xbf16>
    %cst_8 = arith.constant dense<0.000000e+00> : vector<2x128xf32>
    %10 = tpu.matmul %8, %9, %cst_8 {dimension_numbers = #tpu.dot_dimension_numbers<[1], [0], [0], [1], [0, 0, 1, 1], [], []>} : vector<2x512xbf16>, vector<512x128xbf16>, vector<2x128xf32> -> vector<2x128xf32>
    %c0_9 = arith.constant 0 : index
    %c0_10 = arith.constant 0 : index
    %11 = vector.load %arg5[%c0_9, %c0_10] : memref<1x128xf32, #tpu.memory_space<vmem>>, vector<1x128xf32>
    %12 = vector.broadcast %11 : vector<1x128xf32> to vector<2x128xf32>
    %13 = arith.addf %10, %12 : vector<2x128xf32>
    %c0_11 = arith.constant 0 : index
    %c0_12 = arith.constant 0 : index
    %14 = vector.load %arg6[%c0_11, %c0_12] : memref<2x128xf32, #tpu.memory_space<vmem>>, vector<2x128xf32>
    tpu.vector_store %arg6[%c0_11, %c0_12], %13 {strides = array<i32>} : memref<2x128xf32, #tpu.memory_space<vmem>>, vector<2x128xf32>,
    return
  }
  func.func @transform_0(%arg0: i32) -> (i32, i32) {
    %c0_i32 = arith.constant 0 : i32
    %c0_i32_0 = arith.constant 0 : i32
    return %arg0, %c0_i32 : i32, i32
  }
  func.func @transform_1(%arg0: i32) -> (i32, i32) {
    %c0_i32 = arith.constant 0 : i32
    %c0_i32_0 = arith.constant 0 : i32
    %c0_i32_1 = arith.constant 0 : i32
    return %c0_i32, %c0_i32_0 : i32, i32
  }
  func.func @transform_2(%arg0: i32) -> (i32, i32) {
    %c0_i32 = arith.constant 0 : i32
    %c0_i32_0 = arith.constant 0 : i32
    %c0_i32_1 = arith.constant 0 : i32
    return %c0_i32, %c0_i32_0 : i32, i32
  }
  func.func @transform_3(%arg0: i32) -> (i32, i32) {
    %c0_i32 = arith.constant 0 : i32
    %c0_i32_0 = arith.constant 0 : i32
    %c0_i32_1 = arith.constant 0 : i32
    return %c0_i32, %c0_i32_0 : i32, i32
  }
  func.func @transform_4(%arg0: i32) -> (i32, i32) {
    %c0_i32 = arith.constant 0 : i32
    %c0_i32_0 = arith.constant 0 : i32
    %c0_i32_1 = arith.constant 0 : i32
    return %c0_i32, %c0_i32_0 : i32, i32
  }
  func.func @transform_5(%arg0: i32) -> (i32, i32) {
    %c0_i32 = arith.constant 0 : i32
    %c0_i32_0 = arith.constant 0 : i32
    return %arg0, %c0_i32 : i32, i32
  }
}

</mosaic_0001>

<bundles_post_ra>
// kernel: lenet_forward.3
= control target key start
LH: loop header
LB: loop body
LE: loop exit
PB: predicated region body
PF: predicated region fallthrough
CT: control target
= control target key end

     0   :  { %vm218_vm0 = vcmask 1043456   ;;  %vm219_vm1 = vcmask 1044480   ;;  %v2662_v1 = vmov 65535   ;;  %vm163_vm2 = vcmask 203776   ;;  %s3279_s1 = inlined_call_operand.vmem [shape: bf16[25,128], index: 1, kind: input, shape index: {}]   ;;  %s3280_s0 = inlined_call_operand.vmem [shape: bf16[4,288,25], index: 0, kind: input, shape index: {}]   ;;  %s3281_s2 = inlined_call_operand.vmem [shape: f32[1,128], index: 2, kind: input, shape index: {}]   ;;  %s3282_s3 = inlined_call_operand.vmem [shape: bf16[288,128], index: 3, kind: output, shape index: {}]  }
   0x1   :  { %v2587_v0 = vld [vmem:[%s3279_s1 + $0x8] sm:$0x1f]   ;;  %v220_v2 = vsel %vm218_vm0, 4294967295, %v2662_v1  ;;  %v2589_v4 = vld [vmem:[%s3280_s0] sm:$0xff]   ;;  %v2590_v7 = vld [vmem:[%s3280_s0 + $0x90] sm:$0xff]  }
   0x2   :  { %v221_v3 = vsel %vm219_vm1, %v220_v2, 0  ;;  %v2588_v6 = vld [vmem:[%s3279_s1] sm:$0xff]   ;;  %2430 = vmatprep.mubr.msk.bf16.mxu0 %vm163_vm2, %v2589_v4  ;;  %2470 = vmatprep.mubr.msk.bf16.mxu1 %vm163_vm2, %v2590_v7  ;;  %v2591_v8 = vld [vmem:[%s3280_s0 + $0x8] sm:$0xff]   ;;  %v2592_v9 = vld [vmem:[%s3280_s0 + $0x98] sm:$0xff]  }
   0x3   :  { %v223_v5 = vand.u32 %v2587_v0, %v221_v3  ;;  %v2593_v10 = vld [vmem:[%s3280_s0 + $0x10] sm:$0xff]   ;;  %v2594_v11 = vld [vmem:[%s3280_s0 + $0xa0] sm:$0xff]   ;;  %v2595_v12 = vld [vmem:[%s3280_s0 + $0x18] sm:$0xff]  }
   0x4   :  { %v2596_v13 = vld [vmem:[%s3280_s0 + $0xa8] sm:$0xff]   ;;  %v2597_v14 = vld [vmem:[%s3280_s0 + $0x20] sm:$0xff]   ;;  %v2598_v15 = vld [vmem:[%s3280_s0 + $0xb0] sm:$0xff]  }
   0x5   :  { %2426 = vmatprep.subr.bf16.mxu0 %v223_v5  ;;  %2466 = vmatprep.subr.bf16.mxu1 %v223_v5  ;;  %v2599_v16 = vld [vmem:[%s3280_s0 + $0x28] sm:$0xff]   ;;  %v2600_v17 = vld [vmem:[%s3280_s0 + $0xb8] sm:$0xff]   ;;  %v2601_v18 = vld [vmem:[%s3280_s0 + $0x30] sm:$0xff]  }
   0x6   :  { %2427 = vmatpush3.bf16.msra.mxu0 %v223_v5  ;;  %2467 = vmatpush3.bf16.msra.mxu1 %v223_v5  ;;  %v2602_v19 = vld [vmem:[%s3280_s0 + $0xc0] sm:$0xff]   ;;  %v2603_v20 = vld [vmem:[%s3280_s0 + $0x38] sm:$0xff]   ;;  %v2604_v21 = vld [vmem:[%s3280_s0 + $0xc8] sm:$0xff]  }
   0x7   :  { %2428 = vmatprep.subr.bf16.mxu0 %v2588_v6  ;;  %2468 = vmatprep.subr.bf16.mxu1 %v2588_v6  ;;  %v2605_v22 = vld [vmem:[%s3280_s0 + $0x40] sm:$0xff]   ;;  %v2606_v23 = vld [vmem:[%s3280_s0 + $0xd0] sm:$0xff]   ;;  %v2607_v24 = vld [vmem:[%s3280_s0 + $0x48] sm:$0xff]  }
   0x8   :  { %v2608_v25 = vld [vmem:[%s3280_s0 + $0xd8] sm:$0xff]   ;;  %v2609_v26 = vld [vmem:[%s3280_s0 + $0x50] sm:$0xff]   ;;  %v2610_v27 = vld [vmem:[%s3280_s0 + $0xe0] sm:$0xff]  }
   0x9   :  { %v2611_v28 = vld [vmem:[%s3280_s0 + $0x58] sm:$0xff]   ;;  %v2612_v29 = vld [vmem:[%s3280_s0 + $0xe8] sm:$0xff]   ;;  %v2613_v30 = vld [vmem:[%s3280_s0 + $0x60] sm:$0xff]  }
   0xa   :  { %2429 = vmatpush3.bf16.msra.mxu0 %v2588_v6  ;;  %2469 = vmatpush3.bf16.msra.mxu1 %v2588_v6  ;;  %v2614_v31 = vld [vmem:[%s3280_s0 + $0xf0] sm:$0xff]   ;;  %v2615_v32 = vld [vmem:[%s3280_s0 + $0x68] sm:$0xff]   ;;  %v2616_v33 = vld [vmem:[%s3280_s0 + $0xf8] sm:$0xff]  }
   0xb   :  { %2506 = vmatprep.subr.bf16.mxu0 %v223_v5  ;;  %2546 = vmatprep.subr.bf16.mxu1 %v223_v5  ;;  %v2617_v34 = vld [vmem:[%s3280_s0 + $0x70] sm:$0xff]   ;;  %v2618_v35 = vld [vmem:[%s3280_s0 + $0x100] sm:$0xff]   ;;  %v2619_v36 = vld [vmem:[%s3280_s0 + $0x78] sm:$0xff]  }
   0xc   :  { %v2620_v37 = vld [vmem:[%s3280_s0 + $0x108] sm:$0xff]   ;;  %v2621_v38 = vld [vmem:[%s3280_s0 + $0x80] sm:$0xff]   ;;  %v2622_v39 = vld [vmem:[%s3280_s0 + $0x110] sm:$0xff]  }
   0xd   :  { %2431 = vmatmul.mubr.msk.bf16.vlgmr.msra.gmra.mxu0 %vm163_vm2, %v2591_v8  ;;  %2471 = vmatmul.mubr.msk.bf16.vlgmr.msra.gmra.mxu1 %vm163_vm2, %v2592_v9  ;;  %v2623_v40 = vld [vmem:[%s3280_s0 + $0x88] sm:$0xff]   ;;  %v2624_v41 = vld [vmem:[%s3280_s0 + $0x118] sm:$0xff]   ;;  %v2625_v42 = vld [vmem:[%s3280_s0 + $0x120] sm:$0xff]  }
   0xe   :  { %2507 = vmatpush3.bf16.msra.mxu0 %v223_v5  ;;  %2547 = vmatpush3.bf16.msra.mxu1 %v223_v5  ;;  %v2626_v43 = vld [vmem:[%s3280_s0 + $0x1b0] sm:$0xff]   ;;  %v2627_v44 = vld [vmem:[%s3280_s0 + $0x128] sm:$0xff]   ;;  %v2628_v45 = vld [vmem:[%s3280_s0 + $0x1b8] sm:$0xff]  }
   0xf   :  { %2434 = vmatprep.mubr.msk.bf16.mxu0 %vm163_vm2, %v2593_v10  ;;  %2474 = vmatprep.mubr.msk.bf16.mxu1 %vm163_vm2, %v2594_v11  ;;  %v2629_v46 = vld [vmem:[%s3280_s0 + $0x130] sm:$0xff]   ;;  %v2630_v47 = vld [vmem:[%s3280_s0 + $0x1c0] sm:$0xff]   ;;  %v2631_v48 = vld [vmem:[%s3280_s0 + $0x138] sm:$0xff]  }
  0x10   :  { %2508 = vmatprep.subr.bf16.mxu0 %v2588_v6  ;;  %2548 = vmatprep.subr.bf16.mxu1 %v2588_v6  ;;  %v2632_v49 = vld [vmem:[%s3280_s0 + $0x1c8] sm:$0xff]   ;;  %v2633_v50 = vld [vmem:[%s3280_s0 + $0x140] sm:$0xff]   ;;  %v2634_v51 = vld [vmem:[%s3280_s0 + $0x1d0] sm:$0xff]  }
  0x11   :  { %v2635_v52 = vld [vmem:[%s3280_s0 + $0x148] sm:$0xff]   ;;  %v2636_v53 = vld [vmem:[%s3280_s0 + $0x1d8] sm:$0xff]   ;;  %v2637_v54 = vld [vmem:[%s3280_s0 + $0x150] sm:$0xff]  }
  0x12   :  { %2509 = vmatpush3.bf16.msra.mxu0 %v2588_v6  ;;  %2549 = vmatpush3.bf16.msra.mxu1 %v2588_v6  ;;  %v2638_v55 = vld [vmem:[%s3280_s0 + $0x1e0] sm:$0xff]   ;;  %v2639_v56 = vld [vmem:[%s3280_s0 + $0x158] sm:$0xff]   ;;  %v2640_v57 = vld [vmem:[%s3280_s0 + $0x1e8] sm:$0xff]  }
  0x13   :  { %v2641_v58 = vld [vmem:[%s3280_s0 + $0x160] sm:$0xff]   ;;  %v2642_v59 = vld [vmem:[%s3280_s0 + $0x1f0] sm:$0xff]   ;;  %v2643_v60 = vld [vmem:[%s3280_s0 + $0x168] sm:$0xff]  }
  0x14   :  { %v2644_v61 = vld [vmem:[%s3280_s0 + $0x1f8] sm:$0xff]   ;;  %v2645_v62 = vld [vmem:[%s3280_s0 + $0x170] sm:$0xff]   ;;  %v2646_v63 = vld [vmem:[%s3280_s0 + $0x200] sm:$0xff]  }
  0x15   :  { %2435 = vmatmul.mubr.msk.bf16.gmra.mxu0 %vm163_vm2, %v2595_v12  ;;  %2475 = vmatmul.mubr.msk.bf16.gmra.mxu1 %vm163_vm2, %v2596_v13  ;;  %v2647_v0 = vld [vmem:[%s3280_s0 + $0x178] sm:$0xff]   ;;  %v2648_v1 = vld [vmem:[%s3280_s0 + $0x208] sm:$0xff]   ;;  %v2649_v2 = vld [vmem:[%s3280_s0 + $0x180] sm:$0xff]  }
  0x16   :  { %2438 = vmatprep.mubr.msk.bf16.mxu0 %vm163_vm2, %v2597_v14  ;;  %2478 = vmatprep.mubr.msk.bf16.mxu1 %vm163_vm2, %v2598_v15  ;;  %v2650_v3 = vld [vmem:[%s3280_s0 + $0x210] sm:$0xff]   ;;  %v2651_v4 = vld [vmem:[%s3280_s0 + $0x188] sm:$0xff]   ;;  %v2652_v5 = vld [vmem:[%s3280_s0 + $0x218] sm:$0xff]  }
  0x17   :  { %v2653_v6 = vld [vmem:[%s3280_s0 + $0x190] sm:$0xff]   ;;  %v2654_v7 = vld [vmem:[%s3280_s0 + $0x220] sm:$0xff]   ;;  %v2655_v8 = vld [vmem:[%s3280_s0 + $0x198] sm:$0xff]  }
  0x18   :  { %v2656_v9 = vld [vmem:[%s3280_s0 + $0x228] sm:$0xff]   ;;  %v2657_v10 = vld [vmem:[%s3280_s0 + $0x1a0] sm:$0xff]   ;;  %v2658_v11 = vld [vmem:[%s3280_s0 + $0x230] sm:$0xff]  }
  0x19   :  { %v2659_v12 = vld [vmem:[%s3280_s0 + $0x1a8] sm:$0xff]   ;;  %v2660_v13 = vld [vmem:[%s3280_s0 + $0x238] sm:$0xff]   ;;  %v2980_v14 = vld [vmem:[%s3281_s2] ss:$0 sm:$0xff] }
  0x1d   :  { %2439 = vmatmul.mubr.msk.bf16.gmra.mxu0 %vm163_vm2, %v2599_v16  ;;  %2479 = vmatmul.mubr.msk.bf16.gmra.mxu1 %vm163_vm2, %v2600_v17 }
  0x1e   :  { %2442 = vmatprep.mubr.msk.bf16.mxu0 %vm163_vm2, %v2601_v18  ;;  %2482 = vmatprep.mubr.msk.bf16.mxu1 %vm163_vm2, %v2602_v19 }
  0x25   :  { %2443 = vmatmul.mubr.msk.bf16.gmra.mxu0 %vm163_vm2, %v2603_v20  ;;  %2483 = vmatmul.mubr.msk.bf16.gmra.mxu1 %vm163_vm2, %v2604_v21 }
  0x26   :  { %2446 = vmatprep.mubr.msk.bf16.mxu0 %vm163_vm2, %v2605_v22  ;;  %2486 = vmatprep.mubr.msk.bf16.mxu1 %vm163_vm2, %v2606_v23 }
  0x2d   :  { %2447 = vmatmul.mubr.msk.bf16.gmra.mxu0 %vm163_vm2, %v2607_v24  ;;  %2487 = vmatmul.mubr.msk.bf16.gmra.mxu1 %vm163_vm2, %v2608_v25 }
  0x2e   :  { %2450 = vmatprep.mubr.msk.bf16.mxu0 %vm163_vm2, %v2609_v26  ;;  %2490 = vmatprep.mubr.msk.bf16.mxu1 %vm163_vm2, %v2610_v27 }
  0x35   :  { %2451 = vmatmul.mubr.msk.bf16.gmra.mxu0 %vm163_vm2, %v2611_v28  ;;  %2491 = vmatmul.mubr.msk.bf16.gmra.mxu1 %vm163_vm2, %v2612_v29 }
  0x36   :  { %2454 = vmatprep.mubr.msk.bf16.mxu0 %vm163_vm2, %v2613_v30  ;;  %2494 = vmatprep.mubr.msk.bf16.mxu1 %vm163_vm2, %v2614_v31 }
  0x3d   :  { %2455 = vmatmul.mubr.msk.bf16.gmra.mxu0 %vm163_vm2, %v2615_v32  ;;  %2495 = vmatmul.mubr.msk.bf16.gmra.mxu1 %vm163_vm2, %v2616_v33 }
  0x3e   :  { %2458 = vmatprep.mubr.msk.bf16.mxu0 %vm163_vm2, %v2617_v34  ;;  %2498 = vmatprep.mubr.msk.bf16.mxu1 %vm163_vm2, %v2618_v35 }
  0x45   :  { %2459 = vmatmul.mubr.msk.bf16.gmra.mxu0 %vm163_vm2, %v2619_v36  ;;  %2499 = vmatmul.mubr.msk.bf16.gmra.mxu1 %vm163_vm2, %v2620_v37 }
  0x46   :  { %2462 = vmatprep.mubr.msk.bf16.mxu0 %vm163_vm2, %v2621_v38  ;;  %2502 = vmatprep.mubr.msk.bf16.mxu1 %vm163_vm2, %v2622_v39 }
  0x4d   :  { %2463 = vmatmul.mubr.msk.bf16.gmra.mxu0 %vm163_vm2, %v2623_v40  ;;  %2503 = vmatmul.mubr.msk.bf16.gmra.mxu1 %vm163_vm2, %v2624_v41 }
  0x4e   :  { %2510 = vmatprep.mubr.msk.bf16.mxu0 %vm163_vm2, %v2625_v42  ;;  %2550 = vmatprep.mubr.msk.bf16.mxu1 %vm163_vm2, %v2626_v43 }
  0x55   :  { %2511 = vmatmul.mubr.msk.bf16.vlgmr.msra.gmra.mxu0 %vm163_vm2, %v2627_v44  ;;  %2551 = vmatmul.mubr.msk.bf16.vlgmr.msra.gmra.mxu1 %vm163_vm2, %v2628_v45 }
  0x56   :  { %2514 = vmatprep.mubr.msk.bf16.mxu0 %vm163_vm2, %v2629_v46  ;;  %2554 = vmatprep.mubr.msk.bf16.mxu1 %vm163_vm2, %v2630_v47 }
  0x5d   :  { %2515 = vmatmul.mubr.msk.bf16.gmra.mxu0 %vm163_vm2, %v2631_v48  ;;  %2555 = vmatmul.mubr.msk.bf16.gmra.mxu1 %vm163_vm2, %v2632_v49 }
  0x5e   :  { %2518 = vmatprep.mubr.msk.bf16.mxu0 %vm163_vm2, %v2633_v50  ;;  %2558 = vmatprep.mubr.msk.bf16.mxu1 %vm163_vm2, %v2634_v51 }
  0x65   :  { %2519 = vmatmul.mubr.msk.bf16.gmra.mxu0 %vm163_vm2, %v2635_v52  ;;  %2559 = vmatmul.mubr.msk.bf16.gmra.mxu1 %vm163_vm2, %v2636_v53 }
  0x66   :  { %2522 = vmatprep.mubr.msk.bf16.mxu0 %vm163_vm2, %v2637_v54  ;;  %2562 = vmatprep.mubr.msk.bf16.mxu1 %vm163_vm2, %v2638_v55 }
  0x6d   :  { %2523 = vmatmul.mubr.msk.bf16.gmra.mxu0 %vm163_vm2, %v2639_v56  ;;  %2563 = vmatmul.mubr.msk.bf16.gmra.mxu1 %vm163_vm2, %v2640_v57 }
  0x6e   :  { %2526 = vmatprep.mubr.msk.bf16.mxu0 %vm163_vm2, %v2641_v58  ;;  %2566 = vmatprep.mubr.msk.bf16.mxu1 %vm163_vm2, %v2642_v59 }
  0x75   :  { %2527 = vmatmul.mubr.msk.bf16.gmra.mxu0 %vm163_vm2, %v2643_v60  ;;  %2567 = vmatmul.mubr.msk.bf16.gmra.mxu1 %vm163_vm2, %v2644_v61 }
  0x76   :  { %2530 = vmatprep.mubr.msk.bf16.mxu0 %vm163_vm2, %v2645_v62  ;;  %2570 = vmatprep.mubr.msk.bf16.mxu1 %vm163_vm2, %v2646_v63 }
  0x7d   :  { %2531 = vmatmul.mubr.msk.bf16.gmra.mxu0 %vm163_vm2, %v2647_v0  ;;  %2571 = vmatmul.mubr.msk.bf16.gmra.mxu1 %vm163_vm2, %v2648_v1 }
  0x7e   :  { %2534 = vmatprep.mubr.msk.bf16.mxu0 %vm163_vm2, %v2649_v2  ;;  %2574 = vmatprep.mubr.msk.bf16.mxu1 %vm163_vm2, %v2650_v3 }
  0x85   :  { %2535 = vmatmul.mubr.msk.bf16.gmra.mxu0 %vm163_vm2, %v2651_v4  ;;  %2575 = vmatmul.mubr.msk.bf16.gmra.mxu1 %vm163_vm2, %v2652_v5 }
  0x86   :  { %2538 = vmatprep.mubr.msk.bf16.mxu0 %vm163_vm2, %v2653_v6  ;;  %2578 = vmatprep.mubr.msk.bf16.mxu1 %vm163_vm2, %v2654_v7 }
  0x8d   :  { %2539 = vmatmul.mubr.msk.bf16.gmra.mxu0 %vm163_vm2, %v2655_v8  ;;  %2579 = vmatmul.mubr.msk.bf16.gmra.mxu1 %vm163_vm2, %v2656_v9 }
  0x8e   :  { %2542 = vmatprep.mubr.msk.bf16.mxu0 %vm163_vm2, %v2657_v10  ;;  %2582 = vmatprep.mubr.msk.bf16.mxu1 %vm163_vm2, %v2658_v11 }
  0x95   :  { %2543 = vmatmul.mubr.msk.bf16.gmra.mxu0 %vm163_vm2, %v2659_v12  ;;  %2583 = vmatmul.mubr.msk.bf16.gmra.mxu1 %vm163_vm2, %v2660_v13 }
  0xcd   :  { %v2432_v15 = vpop.f32.mrf.mxu0  ;;  %v2472_v16 = vpop.f32.mrf.mxu1 }
  0xce   :  { %v268_v17 = vadd.f32 %v2432_v15, %v2980_v14  ;;  %v662_v18 = vadd.f32 %v2472_v16, %v2980_v14 }
  0xcf   :  { %v259_v19 = vpop.f32.mrf.mxu0  ;;  %v653_v20 = vpop.f32.mrf.mxu1 }
  0xd0   :  { %v404_v21 = vmax.f32 %v268_v17, 0.0  ;;  %v798_v22 = vmax.f32 %v662_v18, 0.0  ;;  %v260_v23 = vadd.f32 %v2980_v14, %v259_v19  ;;  %v654_v24 = vadd.f32 %v2980_v14, %v653_v20 }
  0xd1   :  { %v2433_v25 = vpop.f32.mrf.mxu0  ;;  %v2473_v26 = vpop.f32.mrf.mxu1 }
  0xd2   :  { %v2986_v27 = vmax.f32 %v404_v21, %v798_v22  ;;  %v402_v28 = vmax.f32 %v260_v23, 0.0  ;;  %v796_v29 = vmax.f32 %v654_v24, 0.0  ;;  %v271_v30 = vadd.f32 %v2433_v25, %v2980_v14 }
  0xd3   :  { %v665_v31 = vadd.f32 %v2473_v26, %v2980_v14  ;;  %v262_v32 = vpop.f32.mrf.mxu0  ;;  %v656_v33 = vpop.f32.mrf.mxu1 }
  0xd4   :  { %v2990_v34 = vmax.f32 %v402_v28, %v796_v29  ;;  %v405_v35 = vmax.f32 %v271_v30, 0.0  ;;  %v263_v36 = vadd.f32 %v2980_v14, %v262_v32  ;;  %v657_v37 = vadd.f32 %v2980_v14, %v656_v33 }
  0xd5   :  { %v799_v38 = vmax.f32 %v665_v31, 0.0  ;;  %v2436_v39 = vpop.f32.mrf.mxu0  ;;  %v2476_v40 = vpop.f32.mrf.mxu1 }
  0xd6   :  { %v403_v41 = vmax.f32 %v263_v36, 0.0  ;;  %v797_v42 = vmax.f32 %v657_v37, 0.0  ;;  %v284_v43 = vadd.f32 %v2436_v39, %v2980_v14  ;;  %v678_v44 = vadd.f32 %v2476_v40, %v2980_v14 }
  0xd7   :  { %v2996_v45 = vmax.f32 %v405_v35, %v799_v38  ;;  %v275_v46 = vpop.f32.mrf.mxu0  ;;  %v669_v47 = vpop.f32.mrf.mxu1 }
  0xd8   :  { %v2998_v48 = vmax.f32 %v403_v41, %v797_v42  ;;  %v408_v49 = vmax.f32 %v284_v43, 0.0  ;;  %v802_v50 = vmax.f32 %v678_v44, 0.0  ;;  %v276_v51 = vadd.f32 %v2980_v14, %v275_v46 }
  0xd9   :  { %v670_v52 = vadd.f32 %v2980_v14, %v669_v47  ;;  %v2437_v53 = vpop.f32.mrf.mxu0  ;;  %v2477_v54 = vpop.f32.mrf.mxu1 }
  0xda   :  { %v3002_v55 = vmax.f32 %v408_v49, %v802_v50  ;;  %v406_v56 = vmax.f32 %v276_v51, 0.0  ;;  %v287_v57 = vadd.f32 %v2437_v53, %v2980_v14  ;;  %v681_v58 = vadd.f32 %v2477_v54, %v2980_v14 }
  0xdb   :  { %v800_v59 = vmax.f32 %v670_v52, 0.0  ;;  %v278_v60 = vpop.f32.mrf.mxu0  ;;  %v672_v61 = vpop.f32.mrf.mxu1 }
  0xdc   :  { %v409_v62 = vmax.f32 %v287_v57, 0.0  ;;  %v803_v63 = vmax.f32 %v681_v58, 0.0  ;;  %v279_v0 = vadd.f32 %v2980_v14, %v278_v60  ;;  %v673_v1 = vadd.f32 %v2980_v14, %v672_v61 }
  0xdd   :  { %v3008_v2 = vmax.f32 %v406_v56, %v800_v59  ;;  %v2440_v3 = vpop.f32.mrf.mxu0  ;;  %v2480_v4 = vpop.f32.mrf.mxu1 }
  0xde   :  { %v3010_v5 = vmax.f32 %v409_v62, %v803_v63  ;;  %v407_v6 = vmax.f32 %v279_v0, 0.0  ;;  %v801_v7 = vmax.f32 %v673_v1, 0.0  ;;  %v300_v8 = vadd.f32 %v2440_v3, %v2980_v14 }
  0xdf   :  { %v694_v9 = vadd.f32 %v2480_v4, %v2980_v14  ;;  %v291_v10 = vpop.f32.mrf.mxu0  ;;  %v685_v11 = vpop.f32.mrf.mxu1 }
  0xe0   :  { %v3014_v12 = vmax.f32 %v407_v6, %v801_v7  ;;  %v412_v13 = vmax.f32 %v300_v8, 0.0  ;;  %v292_v15 = vadd.f32 %v2980_v14, %v291_v10  ;;  %v686_v16 = vadd.f32 %v2980_v14, %v685_v11 }
  0xe1   :  { %v806_v17 = vmax.f32 %v694_v9, 0.0  ;;  %v2441_v18 = vpop.f32.mrf.mxu0  ;;  %v2481_v19 = vpop.f32.mrf.mxu1 }
  0xe2   :  { %v410_v20 = vmax.f32 %v292_v15, 0.0  ;;  %v804_v21 = vmax.f32 %v686_v16, 0.0  ;;  %v303_v22 = vadd.f32 %v2441_v18, %v2980_v14  ;;  %v697_v23 = vadd.f32 %v2481_v19, %v2980_v14 }
  0xe3   :  { %v3020_v24 = vmax.f32 %v412_v13, %v806_v17  ;;  %v294_v25 = vpop.f32.mrf.mxu0  ;;  %v688_v26 = vpop.f32.mrf.mxu1 }
  0xe4   :  { %v3022_v28 = vmax.f32 %v410_v20, %v804_v21  ;;  %v413_v29 = vmax.f32 %v303_v22, 0.0  ;;  %v807_v30 = vmax.f32 %v697_v23, 0.0  ;;  %v295_v31 = vadd.f32 %v2980_v14, %v294_v25 }
  0xe5   :  { %v689_v32 = vadd.f32 %v2980_v14, %v688_v26  ;;  %v2444_v33 = vpop.f32.mrf.mxu0  ;;  %v2484_v35 = vpop.f32.mrf.mxu1 }
  0xe6   :  { %v3026_v36 = vmax.f32 %v413_v29, %v807_v30  ;;  %v411_v37 = vmax.f32 %v295_v31, 0.0  ;;  %v316_v38 = vadd.f32 %v2444_v33, %v2980_v14  ;;  %v710_v39 = vadd.f32 %v2484_v35, %v2980_v14 }
  0xe7   :  { %v805_v40 = vmax.f32 %v689_v32, 0.0  ;;  %v307_v41 = vpop.f32.mrf.mxu0  ;;  %v701_v42 = vpop.f32.mrf.mxu1 }
  0xe8   :  { %v416_v43 = vmax.f32 %v316_v38, 0.0  ;;  %v810_v44 = vmax.f32 %v710_v39, 0.0  ;;  %v308_v46 = vadd.f32 %v2980_v14, %v307_v41  ;;  %v702_v47 = vadd.f32 %v2980_v14, %v701_v42 }
  0xe9   :  { %v3032_v49 = vmax.f32 %v411_v37, %v805_v40  ;;  %v2445_v50 = vpop.f32.mrf.mxu0  ;;  %v2485_v51 = vpop.f32.mrf.mxu1 }
  0xea   :  { %v3034_v52 = vmax.f32 %v416_v43, %v810_v44  ;;  %v414_v53 = vmax.f32 %v308_v46, 0.0  ;;  %v808_v54 = vmax.f32 %v702_v47, 0.0  ;;  %v319_v56 = vadd.f32 %v2445_v50, %v2980_v14 }
  0xeb   :  { %v713_v57 = vadd.f32 %v2485_v51, %v2980_v14  ;;  %v310_v58 = vpop.f32.mrf.mxu0  ;;  %v704_v59 = vpop.f32.mrf.mxu1 }
  0xec   :  { %v3038_v60 = vmax.f32 %v414_v53, %v808_v54  ;;  %v417_v61 = vmax.f32 %v319_v56, 0.0  ;;  %v311_v62 = vadd.f32 %v2980_v14, %v310_v58  ;;  %v705_v63 = vadd.f32 %v2980_v14, %v704_v59 }
  0xed   :  { %v811_v0 = vmax.f32 %v713_v57, 0.0  ;;  %v2448_v1 = vpop.f32.mrf.mxu0  ;;  %v2488_v3 = vpop.f32.mrf.mxu1 }
  0xee   :  { %v415_v4 = vmax.f32 %v311_v62, 0.0  ;;  %v809_v6 = vmax.f32 %v705_v63, 0.0  ;;  %v332_v7 = vadd.f32 %v2448_v1, %v2980_v14  ;;  %v726_v8 = vadd.f32 %v2488_v3, %v2980_v14 }
  0xef   :  { %v3044_v9 = vmax.f32 %v417_v61, %v811_v0  ;;  %v323_v10 = vpop.f32.mrf.mxu0  ;;  %v717_v11 = vpop.f32.mrf.mxu1 }
  0xf0   :  { %v3046_v13 = vmax.f32 %v415_v4, %v809_v6  ;;  %v420_v15 = vmax.f32 %v332_v7, 0.0  ;;  %v814_v16 = vmax.f32 %v726_v8, 0.0  ;;  %v324_v17 = vadd.f32 %v2980_v14, %v323_v10 }
  0xf1   :  { %v718_v18 = vadd.f32 %v2980_v14, %v717_v11  ;;  %v2449_v19 = vpop.f32.mrf.mxu0  ;;  %v2489_v20 = vpop.f32.mrf.mxu1 }
  0xf2   :  { %v3050_v21 = vmax.f32 %v420_v15, %v814_v16  ;;  %v418_v22 = vmax.f32 %v324_v17, 0.0  ;;  %v335_v23 = vadd.f32 %v2449_v19, %v2980_v14  ;;  %v729_v25 = vadd.f32 %v2489_v20, %v2980_v14 }
  0xf3   :  { %v812_v26 = vmax.f32 %v718_v18, 0.0  ;;  %v326_v29 = vpop.f32.mrf.mxu0  ;;  %v720_v30 = vpop.f32.mrf.mxu1 }
  0xf4   :  { %v421_v31 = vmax.f32 %v335_v23, 0.0  ;;  %v815_v32 = vmax.f32 %v729_v25, 0.0  ;;  %v327_v33 = vadd.f32 %v2980_v14, %v326_v29  ;;  %v721_v35 = vadd.f32 %v2980_v14, %v720_v30 }
  0xf5   :  { %v3056_v37 = vmax.f32 %v418_v22, %v812_v26  ;;  %v2452_v38 = vpop.f32.mrf.mxu0  ;;  %v2492_v39 = vpop.f32.mrf.mxu1 }
  0xf6   :  { %v3058_v40 = vmax.f32 %v421_v31, %v815_v32  ;;  %v419_v41 = vmax.f32 %v327_v33, 0.0  ;;  %v813_v42 = vmax.f32 %v721_v35, 0.0  ;;  %v348_v43 = vadd.f32 %v2452_v38, %v2980_v14 }
  0xf7   :  { %v742_v44 = vadd.f32 %v2492_v39, %v2980_v14  ;;  %v339_v46 = vpop.f32.mrf.mxu0  ;;  %v733_v47 = vpop.f32.mrf.mxu1 }
  0xf8   :  { %v3062_v50 = vmax.f32 %v419_v41, %v813_v42  ;;  %v424_v51 = vmax.f32 %v348_v43, 0.0  ;;  %v340_v53 = vadd.f32 %v2980_v14, %v339_v46  ;;  %v734_v54 = vadd.f32 %v2980_v14, %v733_v47 }
  0xf9   :  { %v818_v56 = vmax.f32 %v742_v44, 0.0  ;;  %v2453_v57 = vpop.f32.mrf.mxu0  ;;  %v2493_v58 = vpop.f32.mrf.mxu1 }
  0xfa   :  { %v422_v59 = vmax.f32 %v340_v53, 0.0  ;;  %v816_v61 = vmax.f32 %v734_v54, 0.0  ;;  %v351_v62 = vadd.f32 %v2453_v57, %v2980_v14  ;;  %v745_v63 = vadd.f32 %v2493_v58, %v2980_v14 }
  0xfb   :  { %v3068_v0 = vmax.f32 %v424_v51, %v818_v56  ;;  %v342_v1 = vpop.f32.mrf.mxu0  ;;  %v736_v3 = vpop.f32.mrf.mxu1 }
  0xfc   :  { %v3070_v4 = vmax.f32 %v422_v59, %v816_v61  ;;  %v425_v6 = vmax.f32 %v351_v62, 0.0  ;;  %v819_v7 = vmax.f32 %v745_v63, 0.0  ;;  %v343_v8 = vadd.f32 %v2980_v14, %v342_v1 }
  0xfd   :  { %v737_v10 = vadd.f32 %v2980_v14, %v736_v3  ;;  %v2456_v11 = vpop.f32.mrf.mxu0  ;;  %v2496_v15 = vpop.f32.mrf.mxu1 }
  0xfe   :  { %v3074_v16 = vmax.f32 %v425_v6, %v819_v7  ;;  %v423_v17 = vmax.f32 %v343_v8, 0.0  ;;  %v364_v18 = vadd.f32 %v2456_v11, %v2980_v14  ;;  %v758_v19 = vadd.f32 %v2496_v15, %v2980_v14 }
  0xff   :  { %v817_v20 = vmax.f32 %v737_v10, 0.0  ;;  %v355_v22 = vpop.f32.mrf.mxu0  ;;  %v749_v23 = vpop.f32.mrf.mxu1 }
 0x100   :  { %v428_v25 = vmax.f32 %v364_v18, 0.0  ;;  %v822_v26 = vmax.f32 %v758_v19, 0.0  ;;  %v356_v29 = vadd.f32 %v2980_v14, %v355_v22  ;;  %v750_v30 = vadd.f32 %v2980_v14, %v749_v23 }
 0x101   :  { %v3080_v31 = vmax.f32 %v423_v17, %v817_v20  ;;  %v2457_v32 = vpop.f32.mrf.mxu0  ;;  %v2497_v33 = vpop.f32.mrf.mxu1 }
 0x102   :  { %v3082_v35 = vmax.f32 %v428_v25, %v822_v26  ;;  %v426_v38 = vmax.f32 %v356_v29, 0.0  ;;  %v820_v39 = vmax.f32 %v750_v30, 0.0  ;;  %v367_v41 = vadd.f32 %v2457_v32, %v2980_v14 }
 0x103   :  { %v761_v42 = vadd.f32 %v2497_v33, %v2980_v14  ;;  %v358_v43 = vpop.f32.mrf.mxu0  ;;  %v752_v44 = vpop.f32.mrf.mxu1 }
 0x104   :  { %v3086_v46 = vmax.f32 %v426_v38, %v820_v39  ;;  %v429_v47 = vmax.f32 %v367_v41, 0.0  ;;  %v359_v51 = vadd.f32 %v2980_v14, %v358_v43  ;;  %v753_v53 = vadd.f32 %v2980_v14, %v752_v44 }
 0x105   :  { %v823_v54 = vmax.f32 %v761_v42, 0.0  ;;  %v2460_v56 = vpop.f32.mrf.mxu0  ;;  %v2500_v57 = vpop.f32.mrf.mxu1 }
 0x106   :  { %v427_v58 = vmax.f32 %v359_v51, 0.0  ;;  %v821_v59 = vmax.f32 %v753_v53, 0.0  ;;  %v380_v61 = vadd.f32 %v2460_v56, %v2980_v14  ;;  %v774_v62 = vadd.f32 %v2500_v57, %v2980_v14 }
 0x107   :  { %v3092_v63 = vmax.f32 %v429_v47, %v823_v54  ;;  %v371_v1 = vpop.f32.mrf.mxu0  ;;  %v765_v3 = vpop.f32.mrf.mxu1 }
 0x108   :  { %v3094_v6 = vmax.f32 %v427_v58, %v821_v59  ;;  %v432_v7 = vmax.f32 %v380_v61, 0.0  ;;  %v826_v8 = vmax.f32 %v774_v62, 0.0  ;;  %v372_v10 = vadd.f32 %v2980_v14, %v371_v1 }
 0x109   :  { %v766_v11 = vadd.f32 %v2980_v14, %v765_v3  ;;  %v2461_v15 = vpop.f32.mrf.mxu0  ;;  %v2501_v17 = vpop.f32.mrf.mxu1 }
 0x10a   :  { %v3098_v18 = vmax.f32 %v432_v7, %v826_v8  ;;  %v430_v19 = vmax.f32 %v372_v10, 0.0  ;;  %v383_v20 = vadd.f32 %v2461_v15, %v2980_v14  ;;  %v777_v22 = vadd.f32 %v2501_v17, %v2980_v14 }
 0x10b   :  { %v824_v23 = vmax.f32 %v766_v11, 0.0  ;;  %v374_v25 = vpop.f32.mrf.mxu0  ;;  %v768_v26 = vpop.f32.mrf.mxu1 }
 0x10c   :  { %v433_v29 = vmax.f32 %v383_v20, 0.0  ;;  %v827_v30 = vmax.f32 %v777_v22, 0.0  ;;  %v375_v32 = vadd.f32 %v2980_v14, %v374_v25  ;;  %v769_v33 = vadd.f32 %v2980_v14, %v768_v26 }
 0x10d   :  { %v3104_v38 = vmax.f32 %v430_v19, %v824_v23  ;;  %v2464_v39 = vpop.f32.mrf.mxu0  ;;  %v2504_v41 = vpop.f32.mrf.mxu1 }
 0x10e   :  { %v3106_v42 = vmax.f32 %v433_v29, %v827_v30  ;;  %v431_v43 = vmax.f32 %v375_v32, 0.0  ;;  %v825_v44 = vmax.f32 %v769_v33, 0.0  ;;  %v396_v47 = vadd.f32 %v2464_v39, %v2980_v14 }
 0x10f   :  { %v790_v51 = vadd.f32 %v2504_v41, %v2980_v14  ;;  %v387_v53 = vpop.f32.mrf.mxu0  ;;  %v781_v54 = vpop.f32.mrf.mxu1 }
 0x110   :  { %v3110_v56 = vmax.f32 %v431_v43, %v825_v44  ;;  %v436_v57 = vmax.f32 %v396_v47, 0.0  ;;  %v388_v58 = vadd.f32 %v2980_v14, %v387_v53  ;;  %v782_v59 = vadd.f32 %v2980_v14, %v781_v54 }
 0x111   :  { %v830_v61 = vmax.f32 %v790_v51, 0.0  ;;  %v2465_v62 = vpop.f32.mrf.mxu0  ;;  %v2505_v1 = vpop.f32.mrf.mxu1 }
 0x112   :  { %v434_v3 = vmax.f32 %v388_v58, 0.0  ;;  %v828_v7 = vmax.f32 %v782_v59, 0.0  ;;  %v399_v8 = vadd.f32 %v2465_v62, %v2980_v14  ;;  %v793_v10 = vadd.f32 %v2505_v1, %v2980_v14 }
 0x113   :  { %v3116_v11 = vmax.f32 %v436_v57, %v830_v61  ;;  %v390_v15 = vpop.f32.mrf.mxu0  ;;  %v784_v17 = vpop.f32.mrf.mxu1 }
 0x114   :  { %v3118_v19 = vmax.f32 %v434_v3, %v828_v7  ;;  %v437_v20 = vmax.f32 %v399_v8, 0.0  ;;  %v831_v22 = vmax.f32 %v793_v10, 0.0  ;;  %v391_v23 = vadd.f32 %v2980_v14, %v390_v15 }
 0x115   :  { %v785_v25 = vadd.f32 %v2980_v14, %v784_v17  ;;  %v2512_v26 = vpop.f32.mrf.mxu0  ;;  %v2552_v29 = vpop.f32.mrf.mxu1 }
 0x116   :  { %v3122_v30 = vmax.f32 %v437_v20, %v831_v22  ;;  %v435_v32 = vmax.f32 %v391_v23, 0.0  ;;  %v1092_v33 = vadd.f32 %v2512_v26, %v2980_v14  ;;  %v1486_v39 = vadd.f32 %v2552_v29, %v2980_v14 }
 0x117   :  { %v829_v41 = vmax.f32 %v785_v25, 0.0  ;;  %v1083_v43 = vpop.f32.mrf.mxu0  ;;  %v1477_v44 = vpop.f32.mrf.mxu1 }
 0x118   :  { %v1084_v47 = vadd.f32 %v2980_v14, %v1083_v43  ;;  %v1478_v51 = vadd.f32 %v2980_v14, %v1477_v44  ;;  %v1228_v54 = vmax.f32 %v1092_v33, 0.0  ;;  %v1622_v57 = vmax.f32 %v1486_v39, 0.0 }
 0x119   :  { %v3128_v53 = vmax.f32 %v435_v32, %v829_v41  ;;  %v2513_v58 = vpop.f32.mrf.mxu0  ;;  %v2553_v59 = vpop.f32.mrf.mxu1 }
 0x11a   :  { %v1095_v61 = vadd.f32 %v2513_v58, %v2980_v14  ;;  %v1226_v62 = vmax.f32 %v1084_v47, 0.0  ;;  %v1620_v1 = vmax.f32 %v1478_v51, 0.0  ;;  %v1489_v3 = vadd.f32 %v2553_v59, %v2980_v14 }
 0x11b   :  { %v1086_v7 = vpop.f32.mrf.mxu0  ;;  %v1480_v8 = vpop.f32.mrf.mxu1  ;;  %v1658_v17 = vmax.f32 %v1228_v54, %v1622_v57 }
 0x11c   :  { %v1229_v10 = vmax.f32 %v1095_v61, 0.0  ;;  %v1087_v15 = vadd.f32 %v2980_v14, %v1086_v7  ;;  %v1623_v20 = vmax.f32 %v1489_v3, 0.0  ;;  %v1481_v22 = vadd.f32 %v2980_v14, %v1480_v8 }
 0x11d   :  { %v2516_v23 = vpop.f32.mrf.mxu0  ;;  %v2556_v25 = vpop.f32.mrf.mxu1  ;;  %v1656_v33 = vmax.f32 %v1226_v62, %v1620_v1  ;;  %v1694_v57 = vmax.f32 %v2986_v27, %v1658_v17 }
 0x11e   :  { %v1227_v26 = vmax.f32 %v1087_v15, 0.0  ;;  %v1108_v29 = vadd.f32 %v2516_v23, %v2980_v14  ;;  %v1502_v32 = vadd.f32 %v2556_v25, %v2980_v14  ;;  %v1659_v39 = vmax.f32 %v1229_v10, %v1623_v20 }
 0x11f   :  { %v1621_v41 = vmax.f32 %v1481_v22, 0.0  ;;  %v1099_v43 = vpop.f32.mrf.mxu0  ;;  %v1493_v44 = vpop.f32.mrf.mxu1  ;;  %v1692_v1 = vmax.f32 %v2990_v34, %v1656_v33 }
 0x120   :  { %v1232_v47 = vmax.f32 %v1108_v29, 0.0  ;;  %v1626_v51 = vmax.f32 %v1502_v32, 0.0  ;;  %v1100_v58 = vadd.f32 %v2980_v14, %v1099_v43  ;;  %v1494_v54 = vadd.f32 %v2980_v14, %v1493_v44 }
 0x121   :  { %v1695_v59 = vmax.f32 %v2996_v45, %v1659_v39  ;;  %v1657_v61 = vmax.f32 %v1227_v26, %v1621_v41  ;;  %v2517_v3 = vpop.f32.mrf.mxu0  ;;  %v2557_v7 = vpop.f32.mrf.mxu1 }
 0x122   :  { %v1230_v8 = vmax.f32 %v1100_v58, 0.0  ;;  %v1624_v15 = vmax.f32 %v1494_v54, 0.0  ;;  %v1111_v62 = vadd.f32 %v2517_v3, %v2980_v14  ;;  %v1505_v22 = vadd.f32 %v2557_v7, %v2980_v14 }
 0x123   :  { %v2247_v10 = vpack.c.bf16 %v1695_v59, %v1694_v57  ;;  %v1693_v20 = vmax.f32 %v2998_v48, %v1657_v61  ;;  %v1102_v23 = vpop.f32.mrf.mxu0  ;;  %v1496_v25 = vpop.f32.mrf.mxu1  ;;  %v1662_v29 = vmax.f32 %v1232_v47, %v1626_v51 }
 0x124   :  { %v1233_v27 = vmax.f32 %v1111_v62, 0.0  ;;  %v1103_v45 = vadd.f32 %v2980_v14, %v1102_v23  ;;  %v1627_v26 = vmax.f32 %v1505_v22, 0.0  ;;  %v1497_v32 = vadd.f32 %v2980_v14, %v1496_v25 }
 0x125   :  { %2329 = vst [vmem:[%s3282_s3 + $0x8] sm:$0xff] %v2247_v10   ;;  %v2242_v17 = vpack.c.bf16 %v1693_v20, %v1692_v1  ;;  %v2520_v34 = vpop.f32.mrf.mxu0  ;;  %v2560_v33 = vpop.f32.mrf.mxu1  ;;  %v1660_v39 = vmax.f32 %v1230_v8, %v1624_v15  ;;  %v1698_v54 = vmax.f32 %v3002_v55, %v1662_v29 }
 0x126   :  { %v1231_v48 = vmax.f32 %v1103_v45, 0.0  ;;  %v1124_v41 = vadd.f32 %v2520_v34, %v2980_v14  ;;  %v1518_v43 = vadd.f32 %v2560_v33, %v2980_v14  ;;  %v1663_v44 = vmax.f32 %v1233_v27, %v1627_v26 }
 0x127   :  { %2243 = vst [vmem:[%s3282_s3] sm:$0xff] %v2242_v17   ;;  %v1625_v47 = vmax.f32 %v1497_v32, 0.0  ;;  %v1115_v51 = vpop.f32.mrf.mxu0  ;;  %v1509_v58 = vpop.f32.mrf.mxu1  ;;  %v1696_v1 = vmax.f32 %v3008_v2, %v1660_v39 }
 0x128   :  { %v1116_v57 = vadd.f32 %v2980_v14, %v1115_v51  ;;  %v1510_v59 = vadd.f32 %v2980_v14, %v1509_v58  ;;  %v1699_v61 = vmax.f32 %v3010_v5, %v1663_v44  ;;  %v1236_v7 = vmax.f32 %v1124_v41, 0.0 }
 0x129   :  { %v1661_v3 = vmax.f32 %v1231_v48, %v1625_v47  ;;  %v1630_v8 = vmax.f32 %v1518_v43, 0.0  ;;  %v2521_v15 = vpop.f32.mrf.mxu0  ;;  %v2561_v62 = vpop.f32.mrf.mxu1 }
 0x12a   :  { %v1234_v10 = vmax.f32 %v1116_v57, 0.0  ;;  %v1127_v20 = vadd.f32 %v2521_v15, %v2980_v14  ;;  %v2257_v22 = vpack.c.bf16 %v1699_v61, %v1698_v54  ;;  %v1628_v55 = vmax.f32 %v1510_v59, 0.0 }
 0x12b   :  { %v1697_v23 = vmax.f32 %v3014_v12, %v1661_v3  ;;  %v1521_v25 = vadd.f32 %v2561_v62, %v2980_v14  ;;  %v1118_v29 = vpop.f32.mrf.mxu0  ;;  %v1512_v27 = vpop.f32.mrf.mxu1  ;;  %v1666_v2 = vmax.f32 %v1236_v7, %v1630_v8 }
 0x12c   :  { %v1237_v45 = vmax.f32 %v1127_v20, 0.0  ;;  %v1119_v5 = vadd.f32 %v2980_v14, %v1118_v29  ;;  %2331 = vst [vmem:[%s3282_s3 + $0x18] sm:$0xff] %v2257_v22   ;;  %v1513_v32 = vadd.f32 %v2980_v14, %v1512_v27  ;;  %v1664_v41 = vmax.f32 %v1234_v10, %v1628_v55 }
 0x12d   :  { %v2252_v17 = vpack.c.bf16 %v1697_v23, %v1696_v1  ;;  %v1631_v26 = vmax.f32 %v1521_v25, 0.0  ;;  %v2524_v34 = vpop.f32.mrf.mxu0  ;;  %v2564_v33 = vpop.f32.mrf.mxu1  ;;  %v1702_v61 = vmax.f32 %v3020_v24, %v1666_v2 }
 0x12e   :  { %v1235_v12 = vmax.f32 %v1119_v5, 0.0  ;;  %v1140_v39 = vadd.f32 %v2524_v34, %v2980_v14  ;;  %v1534_v48 = vadd.f32 %v2564_v33, %v2980_v14  ;;  %v1629_v44 = vmax.f32 %v1513_v32, 0.0 }
 0x12f   :  { %2330 = vst [vmem:[%s3282_s3 + $0x10] sm:$0xff] %v2252_v17   ;;  %v1667_v43 = vmax.f32 %v1237_v45, %v1631_v26  ;;  %v1131_v47 = vpop.f32.mrf.mxu0  ;;  %v1525_v51 = vpop.f32.mrf.mxu1  ;;  %v1700_v20 = vmax.f32 %v3022_v28, %v1664_v41 }
 0x130   :  { %v1240_v58 = vmax.f32 %v1140_v39, 0.0  ;;  %v1634_v54 = vmax.f32 %v1534_v48, 0.0  ;;  %v1132_v57 = vadd.f32 %v2980_v14, %v1131_v47  ;;  %v1526_v59 = vadd.f32 %v2980_v14, %v1525_v51 }
 0x131   :  { %v1703_v3 = vmax.f32 %v3026_v36, %v1667_v43  ;;  %v1665_v7 = vmax.f32 %v1235_v12, %v1629_v44  ;;  %v2525_v8 = vpop.f32.mrf.mxu0  ;;  %v2565_v15 = vpop.f32.mrf.mxu1 }
 0x132   :  { %v1238_v62 = vmax.f32 %v1132_v57, 0.0  ;;  %v1632_v1 = vmax.f32 %v1526_v59, 0.0  ;;  %v1143_v10 = vadd.f32 %v2525_v8, %v2980_v14  ;;  %v1537_v55 = vadd.f32 %v2565_v15, %v2980_v14 }
 0x133   :  { %v2267_v22 = vpack.c.bf16 %v1703_v3, %v1702_v61  ;;  %v1701_v23 = vmax.f32 %v3032_v49, %v1665_v7  ;;  %v1134_v25 = vpop.f32.mrf.mxu0  ;;  %v1528_v29 = vpop.f32.mrf.mxu1  ;;  %v1670_v27 = vmax.f32 %v1240_v58, %v1634_v54 }
 0x134   :  { %v1241_v24 = vmax.f32 %v1143_v10, 0.0  ;;  %v1135_v36 = vadd.f32 %v2980_v14, %v1134_v25  ;;  %v1635_v5 = vmax.f32 %v1537_v55, 0.0  ;;  %v1529_v17 = vadd.f32 %v2980_v14, %v1528_v29 }
 0x135   :  { %2333 = vst [vmem:[%s3282_s3 + $0x28] sm:$0xff] %v2267_v22   ;;  %v2262_v45 = vpack.c.bf16 %v1701_v23, %v1700_v20  ;;  %v2528_v28 = vpop.f32.mrf.mxu0  ;;  %v2568_v2 = vpop.f32.mrf.mxu1  ;;  %v1668_v26 = vmax.f32 %v1238_v62, %v1632_v1  ;;  %v1706_v41 = vmax.f32 %v3034_v52, %v1670_v27 }
 0x136   :  { %v1239_v49 = vmax.f32 %v1135_v36, 0.0  ;;  %v1156_v32 = vadd.f32 %v2528_v28, %v2980_v14  ;;  %v1550_v34 = vadd.f32 %v2568_v2, %v2980_v14  ;;  %v1671_v33 = vmax.f32 %v1241_v24, %v1635_v5 }
 0x137   :  { %2332 = vst [vmem:[%s3282_s3 + $0x20] sm:$0xff] %v2262_v45   ;;  %v1633_v12 = vmax.f32 %v1529_v17, 0.0  ;;  %v1147_v39 = vpop.f32.mrf.mxu0  ;;  %v1541_v48 = vpop.f32.mrf.mxu1  ;;  %v1704_v61 = vmax.f32 %v3038_v60, %v1668_v26 }
 0x138   :  { %v1148_v43 = vadd.f32 %v2980_v14, %v1147_v39  ;;  %v1542_v44 = vadd.f32 %v2980_v14, %v1541_v48  ;;  %v1707_v47 = vmax.f32 %v3044_v9, %v1671_v33  ;;  %v1244_v58 = vmax.f32 %v1156_v32, 0.0 }
 0x139   :  { %v1669_v51 = vmax.f32 %v1239_v49, %v1633_v12  ;;  %v1638_v54 = vmax.f32 %v1550_v34, 0.0  ;;  %v2529_v57 = vpop.f32.mrf.mxu0  ;;  %v2569_v59 = vpop.f32.mrf.mxu1 }
 0x13a   :  { %v1242_v3 = vmax.f32 %v1148_v43, 0.0  ;;  %v1159_v7 = vadd.f32 %v2529_v57, %v2980_v14  ;;  %v2277_v8 = vpack.c.bf16 %v1707_v47, %v1706_v41  ;;  %v1636_v52 = vmax.f32 %v1542_v44, 0.0 }
 0x13b   :  { %v1705_v15 = vmax.f32 %v3046_v13, %v1669_v51  ;;  %v1553_v62 = vadd.f32 %v2569_v59, %v2980_v14  ;;  %v1150_v1 = vpop.f32.mrf.mxu0  ;;  %v1544_v10 = vpop.f32.mrf.mxu1  ;;  %v1674_v60 = vmax.f32 %v1244_v58, %v1638_v54 }
 0x13c   :  { %v1245_v20 = vmax.f32 %v1159_v7, 0.0  ;;  %v1151_v9 = vadd.f32 %v2980_v14, %v1150_v1  ;;  %2335 = vst [vmem:[%s3282_s3 + $0x38] sm:$0xff] %v2277_v8   ;;  %v1545_v55 = vadd.f32 %v2980_v14, %v1544_v10  ;;  %v1672_v36 = vmax.f32 %v1242_v3, %v1636_v52 }
 0x13d   :  { %v2272_v22 = vpack.c.bf16 %v1705_v15, %v1704_v61  ;;  %v1639_v23 = vmax.f32 %v1553_v62, 0.0  ;;  %v2532_v25 = vpop.f32.mrf.mxu0  ;;  %v2572_v29 = vpop.f32.mrf.mxu1  ;;  %v1710_v34 = vmax.f32 %v3050_v21, %v1674_v60 }
 0x13e   :  { %v1243_v13 = vmax.f32 %v1151_v9, 0.0  ;;  %v1172_v27 = vadd.f32 %v2532_v25, %v2980_v14  ;;  %v1566_v24 = vadd.f32 %v2572_v29, %v2980_v14  ;;  %v1637_v5 = vmax.f32 %v1545_v55, 0.0 }
 0x13f   :  { %2334 = vst [vmem:[%s3282_s3 + $0x30] sm:$0xff] %v2272_v22   ;;  %v1675_v45 = vmax.f32 %v1245_v20, %v1639_v23  ;;  %v1163_v17 = vpop.f32.mrf.mxu0  ;;  %v1557_v28 = vpop.f32.mrf.mxu1  ;;  %v1708_v47 = vmax.f32 %v3056_v37, %v1672_v36 }
 0x140   :  { %v1248_v2 = vmax.f32 %v1172_v27, 0.0  ;;  %v1642_v26 = vmax.f32 %v1566_v24, 0.0  ;;  %v1164_v49 = vadd.f32 %v2980_v14, %v1163_v17  ;;  %v1558_v32 = vadd.f32 %v2980_v14, %v1557_v28 }
 0x141   :  { %v1711_v33 = vmax.f32 %v3058_v40, %v1675_v45  ;;  %v1673_v12 = vmax.f32 %v1243_v13, %v1637_v5  ;;  %v2533_v39 = vpop.f32.mrf.mxu0  ;;  %v2573_v48 = vpop.f32.mrf.mxu1 }
 0x142   :  { %v1246_v41 = vmax.f32 %v1164_v49, 0.0  ;;  %v1640_v43 = vmax.f32 %v1558_v32, 0.0  ;;  %v1175_v44 = vadd.f32 %v2533_v39, %v2980_v14  ;;  %v1569_v54 = vadd.f32 %v2573_v48, %v2980_v14 }
 0x143   :  { %v2287_v51 = vpack.c.bf16 %v1711_v33, %v1710_v34  ;;  %v1709_v58 = vmax.f32 %v3062_v50, %v1673_v12  ;;  %v1166_v57 = vpop.f32.mrf.mxu0  ;;  %v1560_v59 = vpop.f32.mrf.mxu1  ;;  %v1678_v61 = vmax.f32 %v1248_v2, %v1642_v26 }
 0x144   :  { %v1249_v21 = vmax.f32 %v1175_v44, 0.0  ;;  %v1167_v40 = vadd.f32 %v2980_v14, %v1166_v57  ;;  %v1643_v7 = vmax.f32 %v1569_v54, 0.0  ;;  %v1561_v8 = vadd.f32 %v2980_v14, %v1560_v59 }
 0x145   :  { %2337 = vst [vmem:[%s3282_s3 + $0x48] sm:$0xff] %v2287_v51   ;;  %v2282_v3 = vpack.c.bf16 %v1709_v58, %v1708_v47  ;;  %v2536_v37 = vpop.f32.mrf.mxu0  ;;  %v2576_v15 = vpop.f32.mrf.mxu1  ;;  %v1676_v52 = vmax.f32 %v1246_v41, %v1640_v43  ;;  %v1714_v60 = vmax.f32 %v3068_v0, %v1678_v61 }
 0x146   :  { %v1247_v50 = vmax.f32 %v1167_v40, 0.0  ;;  %v1188_v62 = vadd.f32 %v2536_v37, %v2980_v14  ;;  %v1582_v1 = vadd.f32 %v2576_v15, %v2980_v14  ;;  %v1679_v10 = vmax.f32 %v1249_v21, %v1643_v7 }
 0x147   :  { %2336 = vst [vmem:[%s3282_s3 + $0x40] sm:$0xff] %v2282_v3   ;;  %v1641_v20 = vmax.f32 %v1561_v8, 0.0  ;;  %v1179_v9 = vpop.f32.mrf.mxu0  ;;  %v1573_v22 = vpop.f32.mrf.mxu1  ;;  %v1712_v45 = vmax.f32 %v3070_v4, %v1676_v52 }
 0x148   :  { %v1180_v23 = vadd.f32 %v2980_v14, %v1179_v9  ;;  %v1574_v55 = vadd.f32 %v2980_v14, %v1573_v22  ;;  %v1715_v25 = vmax.f32 %v3074_v16, %v1679_v10  ;;  %v1252_v13 = vmax.f32 %v1188_v62, 0.0  ;;  %v2661_v62 = vld [vmem:[%s3281_s2] ss:$0 sm:$0xff] }
 0x149   :  { %v1677_v29 = vmax.f32 %v1247_v50, %v1641_v20  ;;  %v1646_v27 = vmax.f32 %v1582_v1, 0.0  ;;  %v2537_v24 = vpop.f32.mrf.mxu0  ;;  %v2577_v36 = vpop.f32.mrf.mxu1 }
 0x14a   :  { %v1250_v5 = vmax.f32 %v1180_v23, 0.0  ;;  %v1191_v17 = vadd.f32 %v2537_v24, %v2980_v14  ;;  %v2297_v28 = vpack.c.bf16 %v1715_v25, %v1714_v60  ;;  %v1644_v0 = vmax.f32 %v1574_v55, 0.0 }
 0x14b   :  { %v1713_v2 = vmax.f32 %v3080_v31, %v1677_v29  ;;  %v1585_v26 = vadd.f32 %v2577_v36, %v2980_v14  ;;  %v1182_v49 = vpop.f32.mrf.mxu0  ;;  %v1576_v32 = vpop.f32.mrf.mxu1  ;;  %v1682_v4 = vmax.f32 %v1252_v13, %v1646_v27 }
 0x14c   :  { %v1253_v34 = vmax.f32 %v1191_v17, 0.0  ;;  %v1183_v16 = vadd.f32 %v2980_v14, %v1182_v49  ;;  %2339 = vst [vmem:[%s3282_s3 + $0x58] sm:$0xff] %v2297_v28   ;;  %v1577_v39 = vadd.f32 %v2980_v14, %v1576_v32  ;;  %v1680_v47 = vmax.f32 %v1250_v5, %v1644_v0 }
 0x14d   :  { %v2292_v33 = vpack.c.bf16 %v1713_v2, %v1712_v45  ;;  %v1647_v12 = vmax.f32 %v1585_v26, 0.0  ;;  %v2540_v48 = vpop.f32.mrf.mxu0  ;;  %v2580_v41 = vpop.f32.mrf.mxu1  ;;  %v1718_v3 = vmax.f32 %v3082_v35, %v1682_v4 }
 0x14e   :  { %v1251_v31 = vmax.f32 %v1183_v16, 0.0  ;;  %v1204_v43 = vadd.f32 %v2540_v48, %v2980_v14  ;;  %v1598_v44 = vadd.f32 %v2580_v41, %v2980_v14  ;;  %v1645_v58 = vmax.f32 %v1577_v39, 0.0 }
 0x14f   :  { %2338 = vst [vmem:[%s3282_s3 + $0x50] sm:$0xff] %v2292_v33   ;;  %v1683_v51 = vmax.f32 %v1253_v34, %v1647_v12  ;;  %v1195_v54 = vpop.f32.mrf.mxu0  ;;  %v1589_v57 = vpop.f32.mrf.mxu1  ;;  %v1716_v10 = vmax.f32 %v3086_v46, %v1680_v47 }
 0x150   :  { %v1256_v59 = vmax.f32 %v1204_v43, 0.0  ;;  %v1650_v61 = vmax.f32 %v1598_v44, 0.0  ;;  %v1196_v21 = vadd.f32 %v2980_v14, %v1195_v54  ;;  %v1590_v40 = vadd.f32 %v2980_v14, %v1589_v57 }
 0x151   :  { %v1719_v7 = vmax.f32 %v3092_v63, %v1683_v51  ;;  %v1681_v8 = vmax.f32 %v1251_v31, %v1645_v58  ;;  %v2541_v37 = vpop.f32.mrf.mxu0  ;;  %v2581_v15 = vpop.f32.mrf.mxu1 }
 0x152   :  { %v1254_v52 = vmax.f32 %v1196_v21, 0.0  ;;  %v1648_v50 = vmax.f32 %v1590_v40, 0.0  ;;  %v1207_v1 = vadd.f32 %v2661_v62, %v2541_v37  ;;  %v1601_v14 = vadd.f32 %v2661_v62, %v2581_v15 }
 0x153   :  { %v2307_v20 = vpack.c.bf16 %v1719_v7, %v1718_v3  ;;  %v1717_v9 = vmax.f32 %v3094_v6, %v1681_v8  ;;  %v1198_v22 = vpop.f32.mrf.mxu0  ;;  %v1592_v35 = vpop.f32.mrf.mxu1  ;;  %v1686_v60 = vmax.f32 %v1256_v59, %v1650_v61 }
 0x154   :  { %v1257_v63 = vmax.f32 %v1207_v1, 0.0  ;;  %v1199_v23 = vadd.f32 %v2661_v62, %v1198_v22  ;;  %v1651_v25 = vmax.f32 %v1601_v14, 0.0  ;;  %v1593_v29 = vadd.f32 %v2661_v62, %v1592_v35 }
 0x155   :  { %2341 = vst [vmem:[%s3282_s3 + $0x68] sm:$0xff] %v2307_v20   ;;  %v2302_v55 = vpack.c.bf16 %v1717_v9, %v1716_v10  ;;  %v2544_v13 = vpop.f32.mrf.mxu0  ;;  %v2584_v27 = vpop.f32.mrf.mxu1  ;;  %v1684_v24 = vmax.f32 %v1254_v52, %v1648_v50  ;;  %v1722_v2 = vmax.f32 %v3098_v18, %v1686_v60 }
 0x156   :  { %v1255_v46 = vmax.f32 %v1199_v23, 0.0  ;;  %v1220_v36 = vadd.f32 %v2661_v62, %v2544_v13  ;;  %v1614_v45 = vadd.f32 %v2661_v62, %v2584_v27  ;;  %v1687_v6 = vmax.f32 %v1257_v63, %v1651_v25 }
 0x157   :  { %2340 = vst [vmem:[%s3282_s3 + $0x60] sm:$0xff] %v2302_v55   ;;  %v1649_v5 = vmax.f32 %v1593_v29, 0.0  ;;  %v1211_v17 = vpop.f32.mrf.mxu0  ;;  %v1605_v28 = vpop.f32.mrf.mxu1  ;;  %v1720_v12 = vmax.f32 %v3104_v38, %v1684_v24 }
 0x158   :  { %v1212_v0 = vadd.f32 %v2661_v62, %v1211_v17  ;;  %v1606_v26 = vadd.f32 %v2661_v62, %v1605_v28  ;;  %v1723_v49 = vmax.f32 %v3106_v42, %v1687_v6  ;;  %v1260_v34 = vmax.f32 %v1220_v36, 0.0 }
 0x159   :  { %v1685_v32 = vmax.f32 %v1255_v46, %v1649_v5  ;;  %v1654_v16 = vmax.f32 %v1614_v45, 0.0  ;;  %v2545_v33 = vpop.f32.mrf.mxu0  ;;  %v2585_v4 = vpop.f32.mrf.mxu1 }
 0x15a   :  { %v1258_v39 = vmax.f32 %v1212_v0, 0.0  ;;  %v1223_v48 = vadd.f32 %v2661_v62, %v2545_v33  ;;  %v2317_v41 = vpack.c.bf16 %v1723_v49, %v1722_v2  ;;  %v1652_v43 = vmax.f32 %v1606_v26, 0.0 }
 0x15b   :  { %v1721_v31 = vmax.f32 %v3110_v56, %v1685_v32  ;;  %v1617_v44 = vadd.f32 %v2661_v62, %v2585_v4  ;;  %v1214_v47 = vpop.f32.mrf.mxu0  ;;  %v1608_v18 = vpop.f32.mrf.mxu1  ;;  %v1690_v54 = vmax.f32 %v1260_v34, %v1654_v16 }
 0x15c   :  { %v1261_v51 = vmax.f32 %v1223_v48, 0.0  ;;  %v1215_v58 = vadd.f32 %v2661_v62, %v1214_v47  ;;  %2343 = vst [vmem:[%s3282_s3 + $0x78] sm:$0xff] %v2317_v41   ;;  %v1609_v59 = vadd.f32 %v2661_v62, %v1608_v18  ;;  %v1688_v56 = vmax.f32 %v1258_v39, %v1652_v43 }
 0x15d   :  { %v2312_v42 = vpack.c.bf16 %v1721_v31, %v1720_v12  ;;  %v1655_v57 = vmax.f32 %v1617_v44, 0.0  ;;  %v1726_v40 = vmax.f32 %v3116_v11, %v1690_v54 }
 0x15e   :  { %v1259_v38 = vmax.f32 %v1215_v58, 0.0  ;;  %v1653_v21 = vmax.f32 %v1609_v59, 0.0  ;;  %v1724_v8 = vmax.f32 %v3118_v19, %v1688_v56 }
 0x15f   :  { %2342 = vst [vmem:[%s3282_s3 + $0x70] sm:$0xff] %v2312_v42   ;;  %v1691_v61 = vmax.f32 %v1261_v51, %v1655_v57 }
 0x160   :  { %v1689_v7 = vmax.f32 %v1259_v38, %v1653_v21 }
 0x161   :  { %v1727_v3 = vmax.f32 %v3122_v30, %v1691_v61 }
 0x162   :  { %v1725_v15 = vmax.f32 %v3128_v53, %v1689_v7 }
 0x163   :  { %v2327_v37 = vpack.c.bf16 %v1727_v3, %v1726_v40 }
 0x164   :  { %v2322_v52 = vpack.c.bf16 %v1725_v15, %v1724_v8 }
 0x165   :  { %2345 = vst [vmem:[%s3282_s3 + $0x88] sm:$0xff] %v2327_v37  }
 0x166   :  { %2344 = vst [vmem:[%s3282_s3 + $0x80] sm:$0xff] %v2322_v52  }

// kernel: lenet_forward.5
= control target key start
LH: loop header
LB: loop body
LE: loop exit
PB: predicated region body
PF: predicated region fallthrough
CT: control target
= control target key end

     0   :  { %v538_v36 = vlaneseq  ;;  %v5672_v37 = vmov 1966171168   ;;  %s7502_s0 = inlined_call_operand.vmem [shape: bf16[2,2048], index: 0, kind: input, shape index: {}]   ;;  %s7503_s1 = inlined_call_operand.vmem [shape: bf16[2048,512], index: 1, kind: input, shape index: {}]   ;;  %s7504_s2 = inlined_call_operand.vmem [shape: f32[1,512], index: 2, kind: input, shape index: {}]   ;;  %s7505_s3 = inlined_call_operand.vmem [shape: bf16[512,128], index: 3, kind: input, shape index: {}]   ;;  %s7506_s4 = inlined_call_operand.vmem [shape: f32[1,128], index: 4, kind: input, shape index: {}]   ;;  %s7507_s5 = inlined_call_operand.hbm [shape: f32[2,128], index: 5, kind: output, shape index: {}]  }
   0x1   :  { %v4847_v0 = vld [vmem:[%s7503_s1 + $0xe4] ss:$16 sps:$4 sm:$0xff]   ;;  %v4851_v2 = vld [vmem:[%s7503_s1 + $0xe0] ss:$16 sps:$4 sm:$0xff]   ;;  %v562_v38 = vunpack.c.l.s4 %v5672_v37 }
   0x2   :  { %v4849_v1 = vld [vmem:[%s7503_s1 + $0x2e4] ss:$16 sps:$4 sm:$0xff]   ;;  %3234 = vmatprep.subr.bf16.mxu0 %v4847_v0  ;;  %v4852_v3 = vld [vmem:[%s7503_s1 + $0x2e0] ss:$16 sps:$4 sm:$0xff]   ;;  %v5821_v42 = vshrl.u32 %v538_v36, 7 }
   0x3   :  { %3275 = vmatprep.subr.bf16.mxu1 %v4849_v1  ;;  %v4853_v4 = vld [vmem:[%s7503_s1 + $0xc4] ss:$16 sps:$4 sm:$0xff]   ;;  %3235 = vmatpush1.bf16.msra.mxu0 %v4851_v2  ;;  %v4857_v6 = vld [vmem:[%s7503_s1 + $0xc0] ss:$16 sps:$4 sm:$0xff]   ;;  %v563_v43 = vunpack.c.0.s8 %v562_v38 }
   0x4   :  { %3276 = vmatpush1.bf16.msra.mxu1 %v4852_v3  ;;  %v4855_v5 = vld [vmem:[%s7503_s1 + $0x2c4] ss:$16 sps:$4 sm:$0xff]   ;;  %3236 = vmatprep.subr.bf16.mxu0 %v4853_v4  ;;  %v4858_v7 = vld [vmem:[%s7503_s1 + $0x2c0] ss:$16 sps:$4 sm:$0xff]  }
   0x5   :  { %3277 = vmatprep.subr.bf16.mxu1 %v4855_v5  ;;  %v4859_v8 = vld [vmem:[%s7503_s1 + $0xa4] ss:$16 sps:$4 sm:$0xff]   ;;  %v4863_v10 = vld [vmem:[%s7503_s1 + $0xa0] ss:$16 sps:$4 sm:$0xff]   ;;  %v5839_v49 = vsub.s32 %v563_v43, %v5821_v42 }
   0x6   :  { %v4861_v9 = vld [vmem:[%s7503_s1 + $0x2a4] ss:$16 sps:$4 sm:$0xff]   ;;  %v4864_v11 = vld [vmem:[%s7503_s1 + $0x2a0] ss:$16 sps:$4 sm:$0xff]  }
   0x7   :  { %3237 = vmatpush1.bf16.msra.mxu0 %v4857_v6  ;;  %v4865_v12 = vld [vmem:[%s7503_s1 + $0x84] ss:$16 sps:$4 sm:$0xff]   ;;  %v4869_v14 = vld [vmem:[%s7503_s1 + $0x80] ss:$16 sps:$4 sm:$0xff]  }
   0x8   :  { %3278 = vmatpush1.bf16.msra.mxu1 %v4858_v7  ;;  %3238 = vmatprep.subr.bf16.mxu0 %v4859_v8  ;;  %v4867_v13 = vld [vmem:[%s7503_s1 + $0x284] ss:$16 sps:$4 sm:$0xff]   ;;  %v4870_v15 = vld [vmem:[%s7503_s1 + $0x280] ss:$16 sps:$4 sm:$0xff]  }
   0x9   :  { %3279 = vmatprep.subr.bf16.mxu1 %v4861_v9  ;;  %v4871_v16 = vld [vmem:[%s7503_s1 + $0x64] ss:$16 sps:$4 sm:$0xff]   ;;  %v4875_v18 = vld [vmem:[%s7503_s1 + $0x60] ss:$16 sps:$4 sm:$0xff]  }
   0xa   :  { %v4873_v17 = vld [vmem:[%s7503_s1 + $0x264] ss:$16 sps:$4 sm:$0xff]   ;;  %v4876_v19 = vld [vmem:[%s7503_s1 + $0x260] ss:$16 sps:$4 sm:$0xff]  }
   0xb   :  { %3239 = vmatpush1.bf16.msra.mxu0 %v4863_v10  ;;  %v4877_v20 = vld [vmem:[%s7503_s1 + $0x44] ss:$16 sps:$4 sm:$0xff]   ;;  %v4881_v22 = vld [vmem:[%s7503_s1 + $0x40] ss:$16 sps:$4 sm:$0xff]  }
   0xc   :  { %3280 = vmatpush1.bf16.msra.mxu1 %v4864_v11  ;;  %3240 = vmatprep.subr.bf16.mxu0 %v4865_v12  ;;  %v4879_v21 = vld [vmem:[%s7503_s1 + $0x244] ss:$16 sps:$4 sm:$0xff]   ;;  %v4882_v23 = vld [vmem:[%s7503_s1 + $0x240] ss:$16 sps:$4 sm:$0xff]  }
   0xd   :  { %3281 = vmatprep.subr.bf16.mxu1 %v4867_v13  ;;  %v4883_v24 = vld [vmem:[%s7503_s1 + $0x24] ss:$16 sps:$4 sm:$0xff]   ;;  %v4887_v26 = vld [vmem:[%s7503_s1 + $0x20] ss:$16 sps:$4 sm:$0xff]  }
   0xe   :  { %v4885_v25 = vld [vmem:[%s7503_s1 + $0x224] ss:$16 sps:$4 sm:$0xff]   ;;  %v4888_v27 = vld [vmem:[%s7503_s1 + $0x220] ss:$16 sps:$4 sm:$0xff]  }
   0xf   :  { %3241 = vmatpush1.bf16.msra.mxu0 %v4869_v14  ;;  %v4889_v28 = vld [vmem:[%s7503_s1 + $0x4] ss:$16 sps:$4 sm:$0xff]   ;;  %v4893_v30 = vld [vmem:[%s7503_s1] ss:$16 sps:$4 sm:$0xff]  }
  0x10   :  { %3282 = vmatpush1.bf16.msra.mxu1 %v4870_v15  ;;  %3242 = vmatprep.subr.bf16.mxu0 %v4871_v16  ;;  %v4891_v29 = vld [vmem:[%s7503_s1 + $0x204] ss:$16 sps:$4 sm:$0xff]   ;;  %v4894_v31 = vld [vmem:[%s7503_s1 + $0x200] ss:$16 sps:$4 sm:$0xff]  }
  0x11   :  { %3283 = vmatprep.subr.bf16.mxu1 %v4873_v17  ;;  %v4895_v32 = vld [vmem:[%s7503_s1 + $0x1e4] ss:$16 sps:$4 sm:$0xff]   ;;  %v4899_v34 = vld [vmem:[%s7503_s1 + $0x1e0] ss:$16 sps:$4 sm:$0xff]  }
  0x12   :  { %v4897_v33 = vld [vmem:[%s7503_s1 + $0x3e4] ss:$16 sps:$4 sm:$0xff]   ;;  %v4900_v35 = vld [vmem:[%s7503_s1 + $0x3e0] ss:$16 sps:$4 sm:$0xff]  }
  0x13   :  { %3243 = vmatpush1.bf16.msra.mxu0 %v4875_v18  ;;  %v4901_v39 = vld [vmem:[%s7503_s1 + $0x1c4] ss:$16 sps:$4 sm:$0xff]   ;;  %v4905_v41 = vld [vmem:[%s7503_s1 + $0x1c0] ss:$16 sps:$4 sm:$0xff]  }
  0x14   :  { %3284 = vmatpush1.bf16.msra.mxu1 %v4876_v19  ;;  %3244 = vmatprep.subr.bf16.mxu0 %v4877_v20  ;;  %v4903_v40 = vld [vmem:[%s7503_s1 + $0x3c4] ss:$16 sps:$4 sm:$0xff]   ;;  %v4906_v44 = vld [vmem:[%s7503_s1 + $0x3c0] ss:$16 sps:$4 sm:$0xff]  }
  0x15   :  { %3285 = vmatprep.subr.bf16.mxu1 %v4879_v21  ;;  %v4907_v45 = vld [vmem:[%s7503_s1 + $0x1a4] ss:$16 sps:$4 sm:$0xff]   ;;  %v4911_v47 = vld [vmem:[%s7503_s1 + $0x1a0] ss:$16 sps:$4 sm:$0xff]  }
  0x16   :  { %v4909_v46 = vld [vmem:[%s7503_s1 + $0x3a4] ss:$16 sps:$4 sm:$0xff]   ;;  %v4912_v48 = vld [vmem:[%s7503_s1 + $0x3a0] ss:$16 sps:$4 sm:$0xff]  }
  0x17   :  { %3245 = vmatpush1.bf16.msra.mxu0 %v4881_v22  ;;  %v4913_v50 = vld [vmem:[%s7503_s1 + $0x184] ss:$16 sps:$4 sm:$0xff]   ;;  %v4917_v53 = vld [vmem:[%s7503_s1 + $0x180] ss:$16 sps:$4 sm:$0xff]  }
  0x18   :  { %3286 = vmatpush1.bf16.msra.mxu1 %v4882_v23  ;;  %3246 = vmatprep.subr.bf16.mxu0 %v4883_v24  ;;  %v4915_v51 = vld [vmem:[%s7503_s1 + $0x384] ss:$16 sps:$4 sm:$0xff]   ;;  %v4918_v55 = vld [vmem:[%s7503_s1 + $0x380] ss:$16 sps:$4 sm:$0xff]  }
  0x19   :  { %3287 = vmatprep.subr.bf16.mxu1 %v4885_v25  ;;  %v22_v52 = vld [vmem:[%s7502_s0] sm:$0xff] }
  0x1a   :  { %v567_v54 = vrot.slane %v22_v52, %v5839_v49  ;;  %v4919_v56 = vld [vmem:[%s7503_s1 + $0x164] ss:$16 sps:$4 sm:$0xff]   ;;  %v4923_v59 = vld [vmem:[%s7503_s1 + $0x160] ss:$16 sps:$4 sm:$0xff]   ;;  %v560_v1 = vcombine.high %v22_v52, %v22_v52 }
  0x1b   :  { %3247 = vmatpush1.bf16.msra.mxu0 %v4887_v26  ;;  %v4921_v57 = vld [vmem:[%s7503_s1 + $0x364] ss:$16 sps:$4 sm:$0xff]   ;;  %v4924_v61 = vld [vmem:[%s7503_s1 + $0x360] ss:$16 sps:$4 sm:$0xff]  }
  0x1c   :  { %3288 = vmatpush1.bf16.msra.mxu1 %v4888_v27  ;;  %3248 = vmatprep.subr.bf16.mxu0 %v4889_v28  ;;  %v575_v58 = vcombine.high %v567_v54, %v567_v54  ;;  %v4925_v62 = vld [vmem:[%s7503_s1 + $0x144] ss:$16 sps:$4 sm:$0xff]   ;;  %v4929_v2 = vld [vmem:[%s7503_s1 + $0x140] ss:$16 sps:$4 sm:$0xff]   ;;  %v5897_v6 = vrot.slane %v560_v1, %v5839_v49  ;;  %v5917_v13 = vrot.slane %v567_v54, %v5839_v49 }
  0x1d   :  { %3289 = vmatprep.subr.bf16.mxu1 %v4891_v29  ;;  %v4927_v63 = vld [vmem:[%s7503_s1 + $0x344] ss:$16 sps:$4 sm:$0xff]   ;;  %v4930_v3 = vld [vmem:[%s7503_s1 + $0x340] ss:$16 sps:$4 sm:$0xff]  }
  0x1e   :  { %v5867_v60 = vrot.slane %v575_v58, %v5839_v49  ;;  %v4931_v4 = vld [vmem:[%s7503_s1 + $0x124] ss:$16 sps:$4 sm:$0xff]   ;;  %v4935_v7 = vld [vmem:[%s7503_s1 + $0x120] ss:$16 sps:$4 sm:$0xff]   ;;  %v576_v11 = vcombine.high %v5897_v6, %v5897_v6  ;;  %v5933_v18 = vcombine.high %v5917_v13, %v5917_v13 }
  0x1f   :  { %3249 = vmatpush1.bf16.msra.mxu0 %v4893_v30  ;;  %v4933_v5 = vld [vmem:[%s7503_s1 + $0x324] ss:$16 sps:$4 sm:$0xff]   ;;  %v4936_v8 = vld [vmem:[%s7503_s1 + $0x320] ss:$16 sps:$4 sm:$0xff]  }
  0x20   :  { %3290 = vmatpush1.bf16.msra.mxu1 %v4894_v31  ;;  %3250 = vmatprep.subr.bf16.mxu0 %v4895_v32  ;;  %v5880_v0 = vcombine.high %v5867_v60, %v5867_v60  ;;  %v4937_v9 = vld [vmem:[%s7503_s1 + $0x104] ss:$16 sps:$4 sm:$0xff]   ;;  %v4941_v12 = vld [vmem:[%s7503_s1 + $0x100] ss:$16 sps:$4 sm:$0xff]   ;;  %v5929_v17 = vrot.slane %v576_v11, %v5839_v49 }
  0x21   :  { %3291 = vmatprep.subr.bf16.mxu1 %v4897_v33  ;;  %3266 = vmatprep.mubr.bf16.mxu0 %v5867_v60  ;;  %v4939_v10 = vld [vmem:[%s7503_s1 + $0x304] ss:$16 sps:$4 sm:$0xff]   ;;  %v4942_v14 = vld [vmem:[%s7503_s1 + $0x300] ss:$16 sps:$4 sm:$0xff]  }
  0x22   :  { %3307 = vmatprep.mubr.bf16.mxu1 %v5880_v0  ;;  %v4945_v15 = vld [vmem:[%s7503_s1 + $0x4e4] ss:$16 sps:$4 sm:$0xff]   ;;  %v4943_v19 = vld [vmem:[%s7503_s1 + $0x4e0] ss:$16 sps:$4 sm:$0xff]   ;;  %v5949_v23 = vcombine.high %v5929_v17, %v5929_v17 }
  0x23   :  { %3251 = vmatpush2.bf16.msra.mxu0 %v4899_v34  ;;  %v4948_v16 = vld [vmem:[%s7503_s1 + $0x6e4] ss:$16 sps:$4 sm:$0xff]   ;;  %v4946_v20 = vld [vmem:[%s7503_s1 + $0x6e0] ss:$16 sps:$4 sm:$0xff]  }
  0x24   :  { %3292 = vmatpush2.bf16.msra.mxu1 %v4900_v35  ;;  %3252 = vmatprep.subr.bf16.mxu0 %v4901_v39  ;;  %v4951_v21 = vld [vmem:[%s7503_s1 + $0x4c4] ss:$16 sps:$4 sm:$0xff]   ;;  %v4949_v24 = vld [vmem:[%s7503_s1 + $0x4c0] ss:$16 sps:$4 sm:$0xff]  }
  0x25   :  { %3293 = vmatprep.subr.bf16.mxu1 %v4903_v40  ;;  %v4954_v22 = vld [vmem:[%s7503_s1 + $0x6c4] ss:$16 sps:$4 sm:$0xff]   ;;  %v4952_v25 = vld [vmem:[%s7503_s1 + $0x6c0] ss:$16 sps:$4 sm:$0xff]  }
  0x26   :  { %v4957_v26 = vld [vmem:[%s7503_s1 + $0x4a4] ss:$16 sps:$4 sm:$0xff]   ;;  %v4955_v28 = vld [vmem:[%s7503_s1 + $0x4a0] ss:$16 sps:$4 sm:$0xff]  }
  0x27   :  { %3253 = vmatpush2.bf16.msra.mxu0 %v4905_v41  ;;  %v4960_v27 = vld [vmem:[%s7503_s1 + $0x6a4] ss:$16 sps:$4 sm:$0xff]   ;;  %v4958_v29 = vld [vmem:[%s7503_s1 + $0x6a0] ss:$16 sps:$4 sm:$0xff]  }
  0x28   :  { %3294 = vmatpush2.bf16.msra.mxu1 %v4906_v44  ;;  %3254 = vmatprep.subr.bf16.mxu0 %v4907_v45  ;;  %v4963_v30 = vld [vmem:[%s7503_s1 + $0x484] ss:$16 sps:$4 sm:$0xff]   ;;  %v4961_v32 = vld [vmem:[%s7503_s1 + $0x480] ss:$16 sps:$4 sm:$0xff]  }
  0x29   :  { %3295 = vmatprep.subr.bf16.mxu1 %v4909_v46  ;;  %v4966_v31 = vld [vmem:[%s7503_s1 + $0x684] ss:$16 sps:$4 sm:$0xff]   ;;  %v4964_v33 = vld [vmem:[%s7503_s1 + $0x680] ss:$16 sps:$4 sm:$0xff]  }
  0x2a   :  { %v4969_v34 = vld [vmem:[%s7503_s1 + $0x464] ss:$16 sps:$4 sm:$0xff]   ;;  %v4967_v36 = vld [vmem:[%s7503_s1 + $0x460] ss:$16 sps:$4 sm:$0xff]  }
  0x2b   :  { %3255 = vmatpush2.bf16.msra.mxu0 %v4911_v47  ;;  %v4972_v35 = vld [vmem:[%s7503_s1 + $0x664] ss:$16 sps:$4 sm:$0xff]   ;;  %v4970_v37 = vld [vmem:[%s7503_s1 + $0x660] ss:$16 sps:$4 sm:$0xff]  }
  0x2c   :  { %3296 = vmatpush2.bf16.msra.mxu1 %v4912_v48  ;;  %3256 = vmatprep.subr.bf16.mxu0 %v4913_v50  ;;  %v4975_v38 = vld [vmem:[%s7503_s1 + $0x444] ss:$16 sps:$4 sm:$0xff]   ;;  %v4973_v40 = vld [vmem:[%s7503_s1 + $0x440] ss:$16 sps:$4 sm:$0xff]  }
  0x2d   :  { %3297 = vmatprep.subr.bf16.mxu1 %v4915_v51  ;;  %v4978_v39 = vld [vmem:[%s7503_s1 + $0x644] ss:$16 sps:$4 sm:$0xff]   ;;  %v4976_v41 = vld [vmem:[%s7503_s1 + $0x640] ss:$16 sps:$4 sm:$0xff]  }
  0x2e   :  { %v4981_v43 = vld [vmem:[%s7503_s1 + $0x424] ss:$16 sps:$4 sm:$0xff]   ;;  %v4979_v45 = vld [vmem:[%s7503_s1 + $0x420] ss:$16 sps:$4 sm:$0xff]  }
  0x2f   :  { %3257 = vmatpush2.bf16.msra.mxu0 %v4917_v53  ;;  %v4984_v44 = vld [vmem:[%s7503_s1 + $0x624] ss:$16 sps:$4 sm:$0xff]   ;;  %v4982_v46 = vld [vmem:[%s7503_s1 + $0x620] ss:$16 sps:$4 sm:$0xff]  }
  0x30   :  { %3298 = vmatpush2.bf16.msra.mxu1 %v4918_v55  ;;  %3258 = vmatprep.subr.bf16.mxu0 %v4919_v56  ;;  %v4987_v47 = vld [vmem:[%s7503_s1 + $0x404] ss:$16 sps:$4 sm:$0xff]   ;;  %v4985_v50 = vld [vmem:[%s7503_s1 + $0x400] ss:$16 sps:$4 sm:$0xff]  }
  0x31   :  { %3299 = vmatprep.subr.bf16.mxu1 %v4921_v57  ;;  %v4990_v48 = vld [vmem:[%s7503_s1 + $0x604] ss:$16 sps:$4 sm:$0xff]   ;;  %v4988_v51 = vld [vmem:[%s7503_s1 + $0x600] ss:$16 sps:$4 sm:$0xff]  }
  0x32   :  { %v4993_v52 = vld [vmem:[%s7503_s1 + $0x5e4] ss:$16 sps:$4 sm:$0xff]   ;;  %v4991_v54 = vld [vmem:[%s7503_s1 + $0x5e0] ss:$16 sps:$4 sm:$0xff]  }
  0x33   :  { %3259 = vmatpush2.bf16.msra.mxu0 %v4923_v59  ;;  %v4996_v53 = vld [vmem:[%s7503_s1 + $0x7e4] ss:$16 sps:$4 sm:$0xff]   ;;  %v4994_v55 = vld [vmem:[%s7503_s1 + $0x7e0] ss:$16 sps:$4 sm:$0xff]  }
  0x34   :  { %3300 = vmatpush2.bf16.msra.mxu1 %v4924_v61  ;;  %3260 = vmatprep.subr.bf16.mxu0 %v4925_v62  ;;  %v4999_v56 = vld [vmem:[%s7503_s1 + $0x5c4] ss:$16 sps:$4 sm:$0xff]   ;;  %v4997_v58 = vld [vmem:[%s7503_s1 + $0x5c0] ss:$16 sps:$4 sm:$0xff]  }
  0x35   :  { %3301 = vmatprep.subr.bf16.mxu1 %v4927_v63  ;;  %v5002_v57 = vld [vmem:[%s7503_s1 + $0x7c4] ss:$16 sps:$4 sm:$0xff]   ;;  %v5000_v59 = vld [vmem:[%s7503_s1 + $0x7c0] ss:$16 sps:$4 sm:$0xff]  }
  0x36   :  { %v5005_v61 = vld [vmem:[%s7503_s1 + $0x5a4] ss:$16 sps:$4 sm:$0xff]   ;;  %v5003_v63 = vld [vmem:[%s7503_s1 + $0x5a0] ss:$16 sps:$4 sm:$0xff]  }
  0x37   :  { %3261 = vmatpush2.bf16.msra.mxu0 %v4929_v2  ;;  %v5008_v62 = vld [vmem:[%s7503_s1 + $0x7a4] ss:$16 sps:$4 sm:$0xff]   ;;  %v5006_v1 = vld [vmem:[%s7503_s1 + $0x7a0] ss:$16 sps:$4 sm:$0xff]  }
  0x38   :  { %3302 = vmatpush2.bf16.msra.mxu1 %v4930_v3  ;;  %3262 = vmatprep.subr.bf16.mxu0 %v4931_v4  ;;  %v5011_v2 = vld [vmem:[%s7503_s1 + $0x584] ss:$16 sps:$4 sm:$0xff]   ;;  %v5009_v4 = vld [vmem:[%s7503_s1 + $0x580] ss:$16 sps:$4 sm:$0xff]  }
  0x39   :  { %3303 = vmatprep.subr.bf16.mxu1 %v4933_v5  ;;  %v5014_v3 = vld [vmem:[%s7503_s1 + $0x784] ss:$16 sps:$4 sm:$0xff]   ;;  %v5012_v5 = vld [vmem:[%s7503_s1 + $0x780] ss:$16 sps:$4 sm:$0xff]  }
  0x3a   :  { %v5023_v11 = vld [vmem:[%s7503_s1 + $0x544] ss:$16 sps:$4 sm:$0xff]  }
  0x3b   :  { %3263 = vmatpush2.bf16.msra.mxu0 %v4935_v7  ;;  %v5017_v7 = vld [vmem:[%s7503_s1 + $0x564] ss:$16 sps:$4 sm:$0xff]  }
  0x3c   :  { %3304 = vmatpush2.bf16.msra.mxu1 %v4936_v8  ;;  %3264 = vmatprep.subr.bf16.mxu0 %v4937_v9  ;;  %v5020_v8 = vld [vmem:[%s7503_s1 + $0x764] ss:$16 sps:$4 sm:$0xff]   ;;  %v5015_v9 = vld [vmem:[%s7503_s1 + $0x560] ss:$16 sps:$4 sm:$0xff]  }
  0x3d   :  { %3305 = vmatprep.subr.bf16.mxu1 %v4939_v10  ;;  %v5018_v10 = vld [vmem:[%s7503_s1 + $0x760] ss:$16 sps:$4 sm:$0xff]  }
  0x3f   :  { %3265 = vmatpush2.bf16.msra.mxu0 %v4941_v12  ;;  %v5026_v12 = vld [vmem:[%s7503_s1 + $0x744] ss:$16 sps:$4 sm:$0xff]  }
  0x40   :  { %3306 = vmatpush2.bf16.msra.mxu1 %v4942_v14  ;;  %3316 = vmatprep.subr.bf16.mxu0 %v4945_v15  ;;  %v5021_v14 = vld [vmem:[%s7503_s1 + $0x540] ss:$16 sps:$4 sm:$0xff]  }
  0x41   :  { %3357 = vmatprep.subr.bf16.mxu1 %v4948_v16  ;;  %v5024_v15 = vld [vmem:[%s7503_s1 + $0x740] ss:$16 sps:$4 sm:$0xff]   ;;  %v5029_v16 = vld [vmem:[%s7503_s1 + $0x524] ss:$16 sps:$4 sm:$0xff]  }
  0x42   :  { %3267 = vmatmul.mubr.bf16.vlgmr.msra.gmra.mxu0 %v5917_v13 }
  0x43   :  { %3308 = vmatmul.mubr.bf16.vlgmr.msra.gmra.mxu1 %v5933_v18  ;;  %3317 = vmatpush1.bf16.msra.mxu0 %v4943_v19  ;;  %v5032_v19 = vld [vmem:[%s7503_s1 + $0x724] ss:$16 sps:$4 sm:$0xff]  }
  0x44   :  { %3358 = vmatpush1.bf16.msra.mxu1 %v4946_v20  ;;  %3318 = vmatprep.subr.bf16.mxu0 %v4951_v21  ;;  %v5027_v20 = vld [vmem:[%s7503_s1 + $0x520] ss:$16 sps:$4 sm:$0xff]  }
  0x45   :  { %3359 = vmatprep.subr.bf16.mxu1 %v4954_v22  ;;  %3348 = vmatprep.mubr.bf16.mxu0 %v5929_v17  ;;  %v5030_v21 = vld [vmem:[%s7503_s1 + $0x720] ss:$16 sps:$4 sm:$0xff]   ;;  %v5035_v22 = vld [vmem:[%s7503_s1 + $0x504] ss:$16 sps:$4 sm:$0xff]  }
  0x46   :  { %3389 = vmatprep.mubr.bf16.mxu1 %v5949_v23 }
  0x47   :  { %3319 = vmatpush1.bf16.msra.mxu0 %v4949_v24  ;;  %v5038_v24 = vld [vmem:[%s7503_s1 + $0x704] ss:$16 sps:$4 sm:$0xff]  }
  0x48   :  { %3360 = vmatpush1.bf16.msra.mxu1 %v4952_v25  ;;  %3320 = vmatprep.subr.bf16.mxu0 %v4957_v26  ;;  %v5033_v25 = vld [vmem:[%s7503_s1 + $0x500] ss:$16 sps:$4 sm:$0xff]   ;;  %v6128_v26 = vrot.slane %v5897_v6, %v5839_v49 }
  0x49   :  { %3361 = vmatprep.subr.bf16.mxu1 %v4960_v27  ;;  %v5036_v27 = vld [vmem:[%s7503_s1 + $0x700] ss:$16 sps:$4 sm:$0xff]  }
  0x4a   :  { %v6141_v6 = vcombine.high %v6128_v26, %v6128_v26 }
  0x4b   :  { %3321 = vmatpush1.bf16.msra.mxu0 %v4955_v28  ;;  %v5042_v28 = vld [vmem:[%s7503_s1 + $0x8e4] ss:$16 sps:$4 sm:$0xff]  }
  0x4c   :  { %3362 = vmatpush1.bf16.msra.mxu1 %v4958_v29  ;;  %3322 = vmatprep.subr.bf16.mxu0 %v4963_v30  ;;  %v5045_v29 = vld [vmem:[%s7503_s1 + $0xae4] ss:$16 sps:$4 sm:$0xff]   ;;  %v5040_v30 = vld [vmem:[%s7503_s1 + $0x8e0] ss:$16 sps:$4 sm:$0xff]  }
  0x4d   :  { %3363 = vmatprep.subr.bf16.mxu1 %v4966_v31  ;;  %v5043_v31 = vld [vmem:[%s7503_s1 + $0xae0] ss:$16 sps:$4 sm:$0xff]  }
  0x4f   :  { %3323 = vmatpush1.bf16.msra.mxu0 %v4961_v32  ;;  %v6152_v32 = vld [vmem:[%s7502_s0 + $0x8] sm:$0xff] }
  0x50   :  { %3364 = vmatpush1.bf16.msra.mxu1 %v4964_v33  ;;  %3324 = vmatprep.subr.bf16.mxu0 %v4969_v34  ;;  %v5048_v33 = vld [vmem:[%s7503_s1 + $0x8c4] ss:$16 sps:$4 sm:$0xff]  }
  0x51   :  { %3365 = vmatprep.subr.bf16.mxu1 %v4972_v35  ;;  %v5051_v34 = vld [vmem:[%s7503_s1 + $0xac4] ss:$16 sps:$4 sm:$0xff]   ;;  %v6162_v35 = vrot.slane %v6152_v32, %v5839_v49 }
  0x53   :  { %3325 = vmatpush1.bf16.msra.mxu0 %v4967_v36  ;;  %v624_v36 = vcombine.high %v6162_v35, %v6162_v35 }
  0x54   :  { %3366 = vmatpush1.bf16.msra.mxu1 %v4970_v37  ;;  %3326 = vmatprep.subr.bf16.mxu0 %v4975_v38  ;;  %v5046_v37 = vld [vmem:[%s7503_s1 + $0x8c0] ss:$16 sps:$4 sm:$0xff]  }
  0x55   :  { %3367 = vmatprep.subr.bf16.mxu1 %v4978_v39  ;;  %v5049_v38 = vld [vmem:[%s7503_s1 + $0xac0] ss:$16 sps:$4 sm:$0xff]   ;;  %v5054_v39 = vld [vmem:[%s7503_s1 + $0x8a4] ss:$16 sps:$4 sm:$0xff]  }
  0x57   :  { %3327 = vmatpush1.bf16.msra.mxu0 %v4973_v40  ;;  %v5057_v40 = vld [vmem:[%s7503_s1 + $0xaa4] ss:$16 sps:$4 sm:$0xff]  }
  0x58   :  { %3368 = vmatpush1.bf16.msra.mxu1 %v4976_v41  ;;  %3328 = vmatprep.subr.bf16.mxu0 %v4981_v43  ;;  %v6181_v41 = vrot.slane %v624_v36, %v5839_v49  ;;  %v5118_v36 = vld [vmem:[%s7503_s1 + $0x940] ss:$16 sps:$4 sm:$0xff]  }
  0x59   :  { %3369 = vmatprep.subr.bf16.mxu1 %v4984_v44  ;;  %v5052_v44 = vld [vmem:[%s7503_s1 + $0x8a0] ss:$16 sps:$4 sm:$0xff]  }
  0x5a   :  { %v6186_v43 = vcombine.high %v6181_v41, %v6181_v41 }
  0x5b   :  { %3329 = vmatpush1.bf16.msra.mxu0 %v4979_v45  ;;  %v5055_v45 = vld [vmem:[%s7503_s1 + $0xaa0] ss:$16 sps:$4 sm:$0xff]  }
  0x5c   :  { %3370 = vmatpush1.bf16.msra.mxu1 %v4982_v46  ;;  %3330 = vmatprep.subr.bf16.mxu0 %v4987_v47  ;;  %v5060_v46 = vld [vmem:[%s7503_s1 + $0x884] ss:$16 sps:$4 sm:$0xff]  }
  0x5d   :  { %3371 = vmatprep.subr.bf16.mxu1 %v4990_v48  ;;  %v5063_v47 = vld [vmem:[%s7503_s1 + $0xa84] ss:$16 sps:$4 sm:$0xff]   ;;  %v5058_v48 = vld [vmem:[%s7503_s1 + $0x880] ss:$16 sps:$4 sm:$0xff]  }
  0x5f   :  { %3331 = vmatpush1.bf16.msra.mxu0 %v4985_v50  ;;  %v5061_v50 = vld [vmem:[%s7503_s1 + $0xa80] ss:$16 sps:$4 sm:$0xff]  }
  0x60   :  { %3372 = vmatpush1.bf16.msra.mxu1 %v4988_v51  ;;  %3332 = vmatprep.subr.bf16.mxu0 %v4993_v52  ;;  %v5066_v51 = vld [vmem:[%s7503_s1 + $0x864] ss:$16 sps:$4 sm:$0xff]  }
  0x61   :  { %3373 = vmatprep.subr.bf16.mxu1 %v4996_v53  ;;  %v5069_v52 = vld [vmem:[%s7503_s1 + $0xa64] ss:$16 sps:$4 sm:$0xff]   ;;  %v5064_v53 = vld [vmem:[%s7503_s1 + $0x860] ss:$16 sps:$4 sm:$0xff]  }
  0x63   :  { %3333 = vmatpush2.bf16.msra.mxu0 %v4991_v54  ;;  %v5067_v54 = vld [vmem:[%s7503_s1 + $0xa60] ss:$16 sps:$4 sm:$0xff]  }
  0x64   :  { %3374 = vmatpush2.bf16.msra.mxu1 %v4994_v55  ;;  %3334 = vmatprep.subr.bf16.mxu0 %v4999_v56  ;;  %v5072_v55 = vld [vmem:[%s7503_s1 + $0x844] ss:$16 sps:$4 sm:$0xff]  }
  0x65   :  { %3375 = vmatprep.subr.bf16.mxu1 %v5002_v57  ;;  %v5075_v56 = vld [vmem:[%s7503_s1 + $0xa44] ss:$16 sps:$4 sm:$0xff]   ;;  %v5070_v57 = vld [vmem:[%s7503_s1 + $0x840] ss:$16 sps:$4 sm:$0xff]  }
  0x67   :  { %3335 = vmatpush2.bf16.msra.mxu0 %v4997_v58  ;;  %v5073_v58 = vld [vmem:[%s7503_s1 + $0xa40] ss:$16 sps:$4 sm:$0xff]  }
  0x68   :  { %3376 = vmatpush2.bf16.msra.mxu1 %v5000_v59  ;;  %3336 = vmatprep.subr.bf16.mxu0 %v5005_v61  ;;  %v5078_v59 = vld [vmem:[%s7503_s1 + $0x824] ss:$16 sps:$4 sm:$0xff]  }
  0x69   :  { %3377 = vmatprep.subr.bf16.mxu1 %v5008_v62  ;;  %v5081_v61 = vld [vmem:[%s7503_s1 + $0xa24] ss:$16 sps:$4 sm:$0xff]   ;;  %v5076_v62 = vld [vmem:[%s7503_s1 + $0x820] ss:$16 sps:$4 sm:$0xff]  }
  0x6b   :  { %3337 = vmatpush2.bf16.msra.mxu0 %v5003_v63  ;;  %v5079_v63 = vld [vmem:[%s7503_s1 + $0xa20] ss:$16 sps:$4 sm:$0xff]  }
  0x6c   :  { %3378 = vmatpush2.bf16.msra.mxu1 %v5006_v1  ;;  %3338 = vmatprep.subr.bf16.mxu0 %v5011_v2  ;;  %v5084_v1 = vld [vmem:[%s7503_s1 + $0x804] ss:$16 sps:$4 sm:$0xff]  }
  0x6d   :  { %3379 = vmatprep.subr.bf16.mxu1 %v5014_v3  ;;  %v5087_v2 = vld [vmem:[%s7503_s1 + $0xa04] ss:$16 sps:$4 sm:$0xff]   ;;  %v5082_v3 = vld [vmem:[%s7503_s1 + $0x800] ss:$16 sps:$4 sm:$0xff]  }
  0x6f   :  { %3339 = vmatpush2.bf16.msra.mxu0 %v5009_v4  ;;  %v5085_v4 = vld [vmem:[%s7503_s1 + $0xa00] ss:$16 sps:$4 sm:$0xff]  }
  0x70   :  { %3380 = vmatpush2.bf16.msra.mxu1 %v5012_v5  ;;  %3340 = vmatprep.subr.bf16.mxu0 %v5017_v7  ;;  %v5090_v5 = vld [vmem:[%s7503_s1 + $0x9e4] ss:$16 sps:$4 sm:$0xff]  }
  0x71   :  { %3381 = vmatprep.subr.bf16.mxu1 %v5020_v8  ;;  %v5093_v7 = vld [vmem:[%s7503_s1 + $0xbe4] ss:$16 sps:$4 sm:$0xff]   ;;  %v5088_v8 = vld [vmem:[%s7503_s1 + $0x9e0] ss:$16 sps:$4 sm:$0xff]  }
  0x73   :  { %3341 = vmatpush2.bf16.msra.mxu0 %v5015_v9  ;;  %v5091_v9 = vld [vmem:[%s7503_s1 + $0xbe0] ss:$16 sps:$4 sm:$0xff]  }
  0x74   :  { %3382 = vmatpush2.bf16.msra.mxu1 %v5018_v10  ;;  %3342 = vmatprep.subr.bf16.mxu0 %v5023_v11  ;;  %v5096_v10 = vld [vmem:[%s7503_s1 + $0x9c4] ss:$16 sps:$4 sm:$0xff]  }
  0x75   :  { %3383 = vmatprep.subr.bf16.mxu1 %v5026_v12  ;;  %v5099_v11 = vld [vmem:[%s7503_s1 + $0xbc4] ss:$16 sps:$4 sm:$0xff]   ;;  %v5094_v12 = vld [vmem:[%s7503_s1 + $0x9c0] ss:$16 sps:$4 sm:$0xff]  }
  0x77   :  { %3343 = vmatpush2.bf16.msra.mxu0 %v5021_v14  ;;  %v5097_v14 = vld [vmem:[%s7503_s1 + $0xbc0] ss:$16 sps:$4 sm:$0xff]  }
  0x78   :  { %3384 = vmatpush2.bf16.msra.mxu1 %v5024_v15  ;;  %3344 = vmatprep.subr.bf16.mxu0 %v5029_v16  ;;  %v5102_v15 = vld [vmem:[%s7503_s1 + $0x9a4] ss:$16 sps:$4 sm:$0xff]  }
  0x79   :  { %3385 = vmatprep.subr.bf16.mxu1 %v5032_v19  ;;  %v5105_v16 = vld [vmem:[%s7503_s1 + $0xba4] ss:$16 sps:$4 sm:$0xff]   ;;  %v5100_v19 = vld [vmem:[%s7503_s1 + $0x9a0] ss:$16 sps:$4 sm:$0xff]  }
  0x7b   :  { %3345 = vmatpush2.bf16.msra.mxu0 %v5027_v20  ;;  %v5103_v20 = vld [vmem:[%s7503_s1 + $0xba0] ss:$16 sps:$4 sm:$0xff]  }
  0x7c   :  { %3386 = vmatpush2.bf16.msra.mxu1 %v5030_v21  ;;  %3346 = vmatprep.subr.bf16.mxu0 %v5035_v22  ;;  %v5108_v21 = vld [vmem:[%s7503_s1 + $0x984] ss:$16 sps:$4 sm:$0xff]  }
  0x7d   :  { %3387 = vmatprep.subr.bf16.mxu1 %v5038_v24  ;;  %v5111_v22 = vld [vmem:[%s7503_s1 + $0xb84] ss:$16 sps:$4 sm:$0xff]   ;;  %v5106_v24 = vld [vmem:[%s7503_s1 + $0x980] ss:$16 sps:$4 sm:$0xff]  }
  0x7f   :  { %3347 = vmatpush2.bf16.msra.mxu0 %v5033_v25  ;;  %v5109_v25 = vld [vmem:[%s7503_s1 + $0xb80] ss:$16 sps:$4 sm:$0xff]  }
  0x80   :  { %3388 = vmatpush2.bf16.msra.mxu1 %v5036_v27  ;;  %3398 = vmatprep.subr.bf16.mxu0 %v5042_v28  ;;  %v5114_v27 = vld [vmem:[%s7503_s1 + $0x964] ss:$16 sps:$4 sm:$0xff]  }
  0x81   :  { %3439 = vmatprep.subr.bf16.mxu1 %v5045_v29  ;;  %v5117_v28 = vld [vmem:[%s7503_s1 + $0xb64] ss:$16 sps:$4 sm:$0xff]   ;;  %v5112_v29 = vld [vmem:[%s7503_s1 + $0x960] ss:$16 sps:$4 sm:$0xff]  }
  0x82   :  { %3349 = vmatmul.mubr.bf16.vlgmr.msra.gmra.mxu0 %v6128_v26 }
  0x83   :  { %3390 = vmatmul.mubr.bf16.vlgmr.msra.gmra.mxu1 %v6141_v6  ;;  %3399 = vmatpush1.bf16.msra.mxu0 %v5040_v30  ;;  %v5115_v30 = vld [vmem:[%s7503_s1 + $0xb60] ss:$16 sps:$4 sm:$0xff]  }
  0x84   :  { %3440 = vmatpush1.bf16.msra.mxu1 %v5043_v31  ;;  %3400 = vmatprep.subr.bf16.mxu0 %v5048_v33  ;;  %v5120_v31 = vld [vmem:[%s7503_s1 + $0x944] ss:$16 sps:$4 sm:$0xff]  }
  0x85   :  { %3441 = vmatprep.subr.bf16.mxu1 %v5051_v34  ;;  %3430 = vmatprep.mubr.bf16.mxu0 %v6181_v41  ;;  %v5123_v33 = vld [vmem:[%s7503_s1 + $0xb44] ss:$16 sps:$4 sm:$0xff]   ;;  %v609_v34 = vcombine.high %v6152_v32, %v6152_v32 }
  0x86   :  { %3471 = vmatprep.mubr.bf16.mxu1 %v6186_v43  ;;  %v5129_v32 = vld [vmem:[%s7503_s1 + $0xb24] ss:$16 sps:$4 sm:$0xff]  }
  0x87   :  { %3401 = vmatpush1.bf16.msra.mxu0 %v5046_v37  ;;  %v5121_v37 = vld [vmem:[%s7503_s1 + $0xb40] ss:$16 sps:$4 sm:$0xff]  }
  0x88   :  { %3442 = vmatpush1.bf16.msra.mxu1 %v5049_v38  ;;  %3402 = vmatprep.subr.bf16.mxu0 %v5054_v39  ;;  %v5126_v38 = vld [vmem:[%s7503_s1 + $0x924] ss:$16 sps:$4 sm:$0xff]   ;;  %v6336_v39 = vrot.slane %v609_v34, %v5839_v49  ;;  %v5187_v34 = vld [vmem:[%s7503_s1 + $0xfe0] ss:$16 sps:$4 sm:$0xff]  }
  0x89   :  { %3443 = vmatprep.subr.bf16.mxu1 %v5057_v40  ;;  %v5124_v40 = vld [vmem:[%s7503_s1 + $0x920] ss:$16 sps:$4 sm:$0xff]  }
  0x8b   :  { %3403 = vmatpush1.bf16.msra.mxu0 %v5052_v44  ;;  %v5127_v44 = vld [vmem:[%s7503_s1 + $0xb20] ss:$16 sps:$4 sm:$0xff]  }
  0x8c   :  { %3444 = vmatpush1.bf16.msra.mxu1 %v5055_v45  ;;  %3404 = vmatprep.subr.bf16.mxu0 %v5060_v46  ;;  %v5132_v45 = vld [vmem:[%s7503_s1 + $0x904] ss:$16 sps:$4 sm:$0xff]  }
  0x8d   :  { %3445 = vmatprep.subr.bf16.mxu1 %v5063_v47  ;;  %v5135_v46 = vld [vmem:[%s7503_s1 + $0xb04] ss:$16 sps:$4 sm:$0xff]   ;;  %v625_v47 = vcombine.high %v6336_v39, %v6336_v39 }
  0x8f   :  { %3405 = vmatpush1.bf16.msra.mxu0 %v5058_v48  ;;  %v5130_v48 = vld [vmem:[%s7503_s1 + $0x900] ss:$16 sps:$4 sm:$0xff]  }
  0x90   :  { %3446 = vmatpush1.bf16.msra.mxu1 %v5061_v50  ;;  %3406 = vmatprep.subr.bf16.mxu0 %v5066_v51  ;;  %v6357_v50 = vrot.slane %v6162_v35, %v5839_v49  ;;  %v5133_v51 = vld [vmem:[%s7503_s1 + $0xb00] ss:$16 sps:$4 sm:$0xff]  }
  0x91   :  { %3447 = vmatprep.subr.bf16.mxu1 %v5069_v52  ;;  %v5138_v52 = vld [vmem:[%s7503_s1 + $0xce4] ss:$16 sps:$4 sm:$0xff]  }
  0x92   :  { %v6373_v35 = vcombine.high %v6357_v50, %v6357_v50 }
  0x93   :  { %3407 = vmatpush1.bf16.msra.mxu0 %v5064_v53  ;;  %v5141_v53 = vld [vmem:[%s7503_s1 + $0xee4] ss:$16 sps:$4 sm:$0xff]  }
  0x94   :  { %3448 = vmatpush1.bf16.msra.mxu1 %v5067_v54  ;;  %3408 = vmatprep.subr.bf16.mxu0 %v5072_v55  ;;  %v6369_v54 = vrot.slane %v625_v47, %v5839_v49  ;;  %v5136_v55 = vld [vmem:[%s7503_s1 + $0xce0] ss:$16 sps:$4 sm:$0xff]   ;;  %v5204_v47 = vld [vmem:[%s7503_s1 + $0xd84] ss:$16 sps:$4 sm:$0xff]  }
  0x95   :  { %3449 = vmatprep.subr.bf16.mxu1 %v5075_v56  ;;  %v5139_v56 = vld [vmem:[%s7503_s1 + $0xee0] ss:$16 sps:$4 sm:$0xff]  }
  0x97   :  { %3409 = vmatpush1.bf16.msra.mxu0 %v5070_v57  ;;  %v5144_v57 = vld [vmem:[%s7503_s1 + $0xcc4] ss:$16 sps:$4 sm:$0xff]  }
  0x98   :  { %3450 = vmatpush1.bf16.msra.mxu1 %v5073_v58  ;;  %3410 = vmatprep.subr.bf16.mxu0 %v5078_v59  ;;  %v5147_v58 = vld [vmem:[%s7503_s1 + $0xec4] ss:$16 sps:$4 sm:$0xff]   ;;  %v6389_v59 = vcombine.high %v6369_v54, %v6369_v54 }
  0x99   :  { %3451 = vmatprep.subr.bf16.mxu1 %v5081_v61  ;;  %v5142_v61 = vld [vmem:[%s7503_s1 + $0xcc0] ss:$16 sps:$4 sm:$0xff]  }
  0x9b   :  { %3411 = vmatpush1.bf16.msra.mxu0 %v5076_v62  ;;  %v5145_v62 = vld [vmem:[%s7503_s1 + $0xec0] ss:$16 sps:$4 sm:$0xff]  }
  0x9c   :  { %3452 = vmatpush1.bf16.msra.mxu1 %v5079_v63  ;;  %3412 = vmatprep.subr.bf16.mxu0 %v5084_v1  ;;  %v5150_v63 = vld [vmem:[%s7503_s1 + $0xca4] ss:$16 sps:$4 sm:$0xff]  }
  0x9d   :  { %3453 = vmatprep.subr.bf16.mxu1 %v5087_v2  ;;  %v5153_v1 = vld [vmem:[%s7503_s1 + $0xea4] ss:$16 sps:$4 sm:$0xff]   ;;  %v5148_v2 = vld [vmem:[%s7503_s1 + $0xca0] ss:$16 sps:$4 sm:$0xff]  }
  0x9f   :  { %3413 = vmatpush1.bf16.msra.mxu0 %v5082_v3  ;;  %v5151_v3 = vld [vmem:[%s7503_s1 + $0xea0] ss:$16 sps:$4 sm:$0xff]  }
  0xa0   :  { %3454 = vmatpush1.bf16.msra.mxu1 %v5085_v4  ;;  %3414 = vmatprep.subr.bf16.mxu0 %v5090_v5  ;;  %v5156_v4 = vld [vmem:[%s7503_s1 + $0xc84] ss:$16 sps:$4 sm:$0xff]  }
  0xa1   :  { %3455 = vmatprep.subr.bf16.mxu1 %v5093_v7  ;;  %v5159_v5 = vld [vmem:[%s7503_s1 + $0xe84] ss:$16 sps:$4 sm:$0xff]   ;;  %v5154_v7 = vld [vmem:[%s7503_s1 + $0xc80] ss:$16 sps:$4 sm:$0xff]  }
  0xa3   :  { %3415 = vmatpush2.bf16.msra.mxu0 %v5088_v8  ;;  %v5157_v8 = vld [vmem:[%s7503_s1 + $0xe80] ss:$16 sps:$4 sm:$0xff]  }
  0xa4   :  { %3456 = vmatpush2.bf16.msra.mxu1 %v5091_v9  ;;  %3416 = vmatprep.subr.bf16.mxu0 %v5096_v10  ;;  %v5162_v9 = vld [vmem:[%s7503_s1 + $0xc64] ss:$16 sps:$4 sm:$0xff]  }
  0xa5   :  { %3457 = vmatprep.subr.bf16.mxu1 %v5099_v11  ;;  %v5165_v10 = vld [vmem:[%s7503_s1 + $0xe64] ss:$16 sps:$4 sm:$0xff]   ;;  %v5160_v11 = vld [vmem:[%s7503_s1 + $0xc60] ss:$16 sps:$4 sm:$0xff]  }
  0xa7   :  { %3417 = vmatpush2.bf16.msra.mxu0 %v5094_v12  ;;  %v5163_v12 = vld [vmem:[%s7503_s1 + $0xe60] ss:$16 sps:$4 sm:$0xff]  }
  0xa8   :  { %3458 = vmatpush2.bf16.msra.mxu1 %v5097_v14  ;;  %3418 = vmatprep.subr.bf16.mxu0 %v5102_v15  ;;  %v5168_v14 = vld [vmem:[%s7503_s1 + $0xc44] ss:$16 sps:$4 sm:$0xff]  }
  0xa9   :  { %3459 = vmatprep.subr.bf16.mxu1 %v5105_v16  ;;  %v5171_v15 = vld [vmem:[%s7503_s1 + $0xe44] ss:$16 sps:$4 sm:$0xff]   ;;  %v5166_v16 = vld [vmem:[%s7503_s1 + $0xc40] ss:$16 sps:$4 sm:$0xff]  }
  0xab   :  { %3419 = vmatpush2.bf16.msra.mxu0 %v5100_v19  ;;  %v5169_v19 = vld [vmem:[%s7503_s1 + $0xe40] ss:$16 sps:$4 sm:$0xff]  }
  0xac   :  { %3460 = vmatpush2.bf16.msra.mxu1 %v5103_v20  ;;  %3420 = vmatprep.subr.bf16.mxu0 %v5108_v21  ;;  %v5174_v20 = vld [vmem:[%s7503_s1 + $0xc24] ss:$16 sps:$4 sm:$0xff]  }
  0xad   :  { %3461 = vmatprep.subr.bf16.mxu1 %v5111_v22  ;;  %v5177_v21 = vld [vmem:[%s7503_s1 + $0xe24] ss:$16 sps:$4 sm:$0xff]   ;;  %v5172_v22 = vld [vmem:[%s7503_s1 + $0xc20] ss:$16 sps:$4 sm:$0xff]  }
  0xaf   :  { %3421 = vmatpush2.bf16.msra.mxu0 %v5106_v24  ;;  %v5175_v24 = vld [vmem:[%s7503_s1 + $0xe20] ss:$16 sps:$4 sm:$0xff]  }
  0xb0   :  { %3462 = vmatpush2.bf16.msra.mxu1 %v5109_v25  ;;  %3422 = vmatprep.subr.bf16.mxu0 %v5114_v27  ;;  %v5180_v25 = vld [vmem:[%s7503_s1 + $0xc04] ss:$16 sps:$4 sm:$0xff]  }
  0xb1   :  { %3463 = vmatprep.subr.bf16.mxu1 %v5117_v28  ;;  %v5183_v27 = vld [vmem:[%s7503_s1 + $0xe04] ss:$16 sps:$4 sm:$0xff]   ;;  %v5178_v28 = vld [vmem:[%s7503_s1 + $0xc00] ss:$16 sps:$4 sm:$0xff]  }
  0xb3   :  { %3423 = vmatpush2.bf16.msra.mxu0 %v5112_v29  ;;  %v5181_v29 = vld [vmem:[%s7503_s1 + $0xe00] ss:$16 sps:$4 sm:$0xff]  }
  0xb4   :  { %3464 = vmatpush2.bf16.msra.mxu1 %v5115_v30  ;;  %3424 = vmatprep.subr.bf16.mxu0 %v5120_v31  ;;  %v5186_v30 = vld [vmem:[%s7503_s1 + $0xde4] ss:$16 sps:$4 sm:$0xff]  }
  0xb5   :  { %3465 = vmatprep.subr.bf16.mxu1 %v5123_v33  ;;  %v5189_v31 = vld [vmem:[%s7503_s1 + $0xfe4] ss:$16 sps:$4 sm:$0xff]   ;;  %v5184_v33 = vld [vmem:[%s7503_s1 + $0xde0] ss:$16 sps:$4 sm:$0xff]  }
  0xb7   :  { %3425 = vmatpush2.bf16.msra.mxu0 %v5118_v36  ;;  %v5192_v36 = vld [vmem:[%s7503_s1 + $0xdc4] ss:$16 sps:$4 sm:$0xff]  }
  0xb8   :  { %3466 = vmatpush2.bf16.msra.mxu1 %v5121_v37  ;;  %3426 = vmatprep.subr.bf16.mxu0 %v5126_v38  ;;  %v5195_v37 = vld [vmem:[%s7503_s1 + $0xfc4] ss:$16 sps:$4 sm:$0xff]   ;;  %v5190_v38 = vld [vmem:[%s7503_s1 + $0xdc0] ss:$16 sps:$4 sm:$0xff]  }
  0xb9   :  { %3467 = vmatprep.subr.bf16.mxu1 %v5129_v32  ;;  %v5193_v32 = vld [vmem:[%s7503_s1 + $0xfc0] ss:$16 sps:$4 sm:$0xff]  }
  0xbb   :  { %3427 = vmatpush2.bf16.msra.mxu0 %v5124_v40  ;;  %v5198_v40 = vld [vmem:[%s7503_s1 + $0xda4] ss:$16 sps:$4 sm:$0xff]  }
  0xbc   :  { %3468 = vmatpush2.bf16.msra.mxu1 %v5127_v44  ;;  %3428 = vmatprep.subr.bf16.mxu0 %v5132_v45  ;;  %v5201_v44 = vld [vmem:[%s7503_s1 + $0xfa4] ss:$16 sps:$4 sm:$0xff]   ;;  %v5196_v45 = vld [vmem:[%s7503_s1 + $0xda0] ss:$16 sps:$4 sm:$0xff]  }
  0xbd   :  { %3469 = vmatprep.subr.bf16.mxu1 %v5135_v46  ;;  %v5199_v46 = vld [vmem:[%s7503_s1 + $0xfa0] ss:$16 sps:$4 sm:$0xff]  }
  0xbf   :  { %3429 = vmatpush2.bf16.msra.mxu0 %v5130_v48  ;;  %v5207_v48 = vld [vmem:[%s7503_s1 + $0xf84] ss:$16 sps:$4 sm:$0xff]  }
  0xc0   :  { %3470 = vmatpush2.bf16.msra.mxu1 %v5133_v51  ;;  %3480 = vmatprep.subr.bf16.mxu0 %v5138_v52  ;;  %v5202_v51 = vld [vmem:[%s7503_s1 + $0xd80] ss:$16 sps:$4 sm:$0xff]  }
  0xc1   :  { %3521 = vmatprep.subr.bf16.mxu1 %v5141_v53  ;;  %v5205_v52 = vld [vmem:[%s7503_s1 + $0xf80] ss:$16 sps:$4 sm:$0xff]   ;;  %v5210_v53 = vld [vmem:[%s7503_s1 + $0xd64] ss:$16 sps:$4 sm:$0xff]  }
  0xc2   :  { %3431 = vmatmul.mubr.bf16.vlgmr.msra.gmra.mxu0 %v6357_v50 }
  0xc3   :  { %3472 = vmatmul.mubr.bf16.vlgmr.msra.gmra.mxu1 %v6373_v35  ;;  %3481 = vmatpush1.bf16.msra.mxu0 %v5136_v55  ;;  %v5213_v55 = vld [vmem:[%s7503_s1 + $0xf64] ss:$16 sps:$4 sm:$0xff]  }
  0xc4   :  { %3522 = vmatpush1.bf16.msra.mxu1 %v5139_v56  ;;  %3482 = vmatprep.subr.bf16.mxu0 %v5144_v57  ;;  %v5208_v56 = vld [vmem:[%s7503_s1 + $0xd60] ss:$16 sps:$4 sm:$0xff]  }
  0xc5   :  { %3523 = vmatprep.subr.bf16.mxu1 %v5147_v58  ;;  %3512 = vmatprep.mubr.bf16.mxu0 %v6369_v54  ;;  %v5211_v57 = vld [vmem:[%s7503_s1 + $0xf60] ss:$16 sps:$4 sm:$0xff]   ;;  %v5216_v58 = vld [vmem:[%s7503_s1 + $0xd44] ss:$16 sps:$4 sm:$0xff]  }
  0xc6   :  { %3553 = vmatprep.mubr.bf16.mxu1 %v6389_v59 }
  0xc7   :  { %3483 = vmatpush1.bf16.msra.mxu0 %v5142_v61  ;;  %v5219_v61 = vld [vmem:[%s7503_s1 + $0xf44] ss:$16 sps:$4 sm:$0xff]  }
  0xc8   :  { %3524 = vmatpush1.bf16.msra.mxu1 %v5145_v62  ;;  %3484 = vmatprep.subr.bf16.mxu0 %v5150_v63  ;;  %v5214_v62 = vld [vmem:[%s7503_s1 + $0xd40] ss:$16 sps:$4 sm:$0xff]  }
  0xc9   :  { %3525 = vmatprep.subr.bf16.mxu1 %v5153_v1  ;;  %v5217_v63 = vld [vmem:[%s7503_s1 + $0xf40] ss:$16 sps:$4 sm:$0xff]   ;;  %v5222_v1 = vld [vmem:[%s7503_s1 + $0xd24] ss:$16 sps:$4 sm:$0xff]  }
  0xcb   :  { %3485 = vmatpush1.bf16.msra.mxu0 %v5148_v2  ;;  %v5225_v2 = vld [vmem:[%s7503_s1 + $0xf24] ss:$16 sps:$4 sm:$0xff]  }
  0xcc   :  { %3526 = vmatpush1.bf16.msra.mxu1 %v5151_v3  ;;  %3486 = vmatprep.subr.bf16.mxu0 %v5156_v4  ;;  %v5220_v3 = vld [vmem:[%s7503_s1 + $0xd20] ss:$16 sps:$4 sm:$0xff]  }
  0xcd   :  { %3527 = vmatprep.subr.bf16.mxu1 %v5159_v5  ;;  %v5223_v4 = vld [vmem:[%s7503_s1 + $0xf20] ss:$16 sps:$4 sm:$0xff]   ;;  %v5228_v5 = vld [vmem:[%s7503_s1 + $0xd04] ss:$16 sps:$4 sm:$0xff]  }
  0xcf   :  { %3487 = vmatpush1.bf16.msra.mxu0 %v5154_v7  ;;  %v5231_v7 = vld [vmem:[%s7503_s1 + $0xf04] ss:$16 sps:$4 sm:$0xff]  }
  0xd0   :  { %3528 = vmatpush1.bf16.msra.mxu1 %v5157_v8  ;;  %3488 = vmatprep.subr.bf16.mxu0 %v5162_v9  ;;  %v5226_v8 = vld [vmem:[%s7503_s1 + $0xd00] ss:$16 sps:$4 sm:$0xff]  }
  0xd1   :  { %3529 = vmatprep.subr.bf16.mxu1 %v5165_v10  ;;  %v5229_v9 = vld [vmem:[%s7503_s1 + $0xf00] ss:$16 sps:$4 sm:$0xff]   ;;  %v6571_v10 = vrot.slane %v6336_v39, %v5839_v49  ;;  %v544_v49 = vsub.s32 1, %v5821_v42 }
  0xd3   :  { %3489 = vmatpush1.bf16.msra.mxu0 %v5160_v11  ;;  %v536_v11 = vld [vmem:[%s7504_s2] sm:$0xf]  ;;  %v6586_v39 = vcombine.high %v6571_v10, %v6571_v10 }
  0xd4   :  { %3530 = vmatpush1.bf16.msra.mxu1 %v5163_v12  ;;  %3490 = vmatprep.subr.bf16.mxu0 %v5168_v14  ;;  %v540_v12 = vsub.s32 0, %v5821_v42  ;;  %v5235_v14 = vld [vmem:[%s7503_s1 + $0xec] ss:$16 sps:$4 sm:$0xff]  }
  0xd5   :  { %3531 = vmatprep.subr.bf16.mxu1 %v5171_v15  ;;  %v5238_v15 = vld [vmem:[%s7503_s1 + $0x2ec] ss:$16 sps:$4 sm:$0xff]  }
  0xd7   :  { %3491 = vmatpush1.bf16.msra.mxu0 %v5166_v16  ;;  %v5233_v16 = vld [vmem:[%s7503_s1 + $0xe8] ss:$16 sps:$4 sm:$0xff]  }
  0xd8   :  { %3532 = vmatpush1.bf16.msra.mxu1 %v5169_v19  ;;  %3492 = vmatprep.subr.bf16.mxu0 %v5174_v20  ;;  %v541_v19 = vrot.slane %v536_v11, %v540_v12  ;;  %v5236_v20 = vld [vmem:[%s7503_s1 + $0x2e8] ss:$16 sps:$4 sm:$0xff]   ;;  %v5286_v12 = vld [vmem:[%s7503_s1 + $0x3ec] ss:$16 sps:$4 sm:$0xff]  }
  0xd9   :  { %3533 = vmatprep.subr.bf16.mxu1 %v5177_v21  ;;  %v5241_v21 = vld [vmem:[%s7503_s1 + $0xcc] ss:$16 sps:$4 sm:$0xff]  }
  0xdb   :  { %3493 = vmatpush1.bf16.msra.mxu0 %v5172_v22  ;;  %v5244_v22 = vld [vmem:[%s7503_s1 + $0x2cc] ss:$16 sps:$4 sm:$0xff]  }
  0xdc   :  { %3534 = vmatpush1.bf16.msra.mxu1 %v5175_v24  ;;  %3494 = vmatprep.subr.bf16.mxu0 %v5180_v25  ;;  %v545_v24 = vrot.slane %v536_v11, %v544_v49  ;;  %v5283_v11 = vld [vmem:[%s7503_s1 + $0x1ec] ss:$16 sps:$4 sm:$0xff]  }
  0xdd   :  { %3535 = vmatprep.subr.bf16.mxu1 %v5183_v27  ;;  %v5289_v49 = vld [vmem:[%s7503_s1 + $0x1cc] ss:$16 sps:$4 sm:$0xff]  }
  0xdf   :  { %3495 = vmatpush1.bf16.msra.mxu0 %v5178_v28  ;;  %v5239_v28 = vld [vmem:[%s7503_s1 + $0xc8] ss:$16 sps:$4 sm:$0xff]  }
  0xe0   :  { %3536 = vmatpush1.bf16.msra.mxu1 %v5181_v29  ;;  %3496 = vmatprep.subr.bf16.mxu0 %v5186_v30  ;;  %v5242_v29 = vld [vmem:[%s7503_s1 + $0x2c8] ss:$16 sps:$4 sm:$0xff]  }
  0xe1   :  { %3537 = vmatprep.subr.bf16.mxu1 %v5189_v31 }
  0xe3   :  { %3497 = vmatpush2.bf16.msra.mxu0 %v5184_v33 }
  0xe4   :  { %3538 = vmatpush2.bf16.msra.mxu1 %v5187_v34  ;;  %3498 = vmatprep.subr.bf16.mxu0 %v5192_v36  ;;  %v5247_v34 = vld [vmem:[%s7503_s1 + $0xac] ss:$16 sps:$4 sm:$0xff]  }
  0xe5   :  { %3539 = vmatprep.subr.bf16.mxu1 %v5195_v37  ;;  %v5250_v36 = vld [vmem:[%s7503_s1 + $0x2ac] ss:$16 sps:$4 sm:$0xff]  }
  0xe7   :  { %3499 = vmatpush2.bf16.msra.mxu0 %v5190_v38 }
  0xe8   :  { %3540 = vmatpush2.bf16.msra.mxu1 %v5193_v32  ;;  %3500 = vmatprep.subr.bf16.mxu0 %v5198_v40  ;;  %v5245_v32 = vld [vmem:[%s7503_s1 + $0xa8] ss:$16 sps:$4 sm:$0xff]  }
  0xe9   :  { %3541 = vmatprep.subr.bf16.mxu1 %v5201_v44  ;;  %v5248_v40 = vld [vmem:[%s7503_s1 + $0x2a8] ss:$16 sps:$4 sm:$0xff]  }
  0xeb   :  { %3501 = vmatpush2.bf16.msra.mxu0 %v5196_v45 }
  0xec   :  { %3542 = vmatpush2.bf16.msra.mxu1 %v5199_v46  ;;  %3502 = vmatprep.subr.bf16.mxu0 %v5204_v47 }
  0xed   :  { %3543 = vmatprep.subr.bf16.mxu1 %v5207_v48 }
  0xef   :  { %3503 = vmatpush2.bf16.msra.mxu0 %v5202_v51  ;;  %v5253_v51 = vld [vmem:[%s7503_s1 + $0x8c] ss:$16 sps:$4 sm:$0xff]  }
  0xf0   :  { %3544 = vmatpush2.bf16.msra.mxu1 %v5205_v52  ;;  %3504 = vmatprep.subr.bf16.mxu0 %v5210_v53  ;;  %v5254_v52 = vld [vmem:[%s7503_s1 + $0x288] ss:$16 sps:$4 sm:$0xff]   ;;  %v5259_v53 = vld [vmem:[%s7503_s1 + $0x6c] ss:$16 sps:$4 sm:$0xff]  }
  0xf1   :  { %3545 = vmatprep.subr.bf16.mxu1 %v5213_v55  ;;  %v5262_v55 = vld [vmem:[%s7503_s1 + $0x26c] ss:$16 sps:$4 sm:$0xff]  }
  0xf3   :  { %3505 = vmatpush2.bf16.msra.mxu0 %v5208_v56  ;;  %v5257_v56 = vld [vmem:[%s7503_s1 + $0x68] ss:$16 sps:$4 sm:$0xff]  }
  0xf4   :  { %3546 = vmatpush2.bf16.msra.mxu1 %v5211_v57  ;;  %3506 = vmatprep.subr.bf16.mxu0 %v5216_v58  ;;  %v5260_v57 = vld [vmem:[%s7503_s1 + $0x268] ss:$16 sps:$4 sm:$0xff]   ;;  %v5265_v58 = vld [vmem:[%s7503_s1 + $0x4c] ss:$16 sps:$4 sm:$0xff]  }
  0xf5   :  { %3547 = vmatprep.subr.bf16.mxu1 %v5219_v61  ;;  %v5268_v61 = vld [vmem:[%s7503_s1 + $0x24c] ss:$16 sps:$4 sm:$0xff]  }
  0xf7   :  { %3507 = vmatpush2.bf16.msra.mxu0 %v5214_v62  ;;  %v5263_v62 = vld [vmem:[%s7503_s1 + $0x48] ss:$16 sps:$4 sm:$0xff]  }
  0xf8   :  { %3548 = vmatpush2.bf16.msra.mxu1 %v5217_v63  ;;  %3508 = vmatprep.subr.bf16.mxu0 %v5222_v1  ;;  %v5266_v63 = vld [vmem:[%s7503_s1 + $0x248] ss:$16 sps:$4 sm:$0xff]   ;;  %v5271_v1 = vld [vmem:[%s7503_s1 + $0x2c] ss:$16 sps:$4 sm:$0xff]  }
  0xf9   :  { %3549 = vmatprep.subr.bf16.mxu1 %v5225_v2  ;;  %v5274_v2 = vld [vmem:[%s7503_s1 + $0x22c] ss:$16 sps:$4 sm:$0xff]  }
  0xfb   :  { %3509 = vmatpush2.bf16.msra.mxu0 %v5220_v3  ;;  %v5269_v3 = vld [vmem:[%s7503_s1 + $0x28] ss:$16 sps:$4 sm:$0xff]  }
  0xfc   :  { %3550 = vmatpush2.bf16.msra.mxu1 %v5223_v4  ;;  %3510 = vmatprep.subr.bf16.mxu0 %v5228_v5  ;;  %v5272_v4 = vld [vmem:[%s7503_s1 + $0x228] ss:$16 sps:$4 sm:$0xff]   ;;  %v5277_v5 = vld [vmem:[%s7503_s1 + $0xc] ss:$16 sps:$4 sm:$0xff]  }
  0xfd   :  { %3551 = vmatprep.subr.bf16.mxu1 %v5231_v7  ;;  %v5280_v7 = vld [vmem:[%s7503_s1 + $0x20c] ss:$16 sps:$4 sm:$0xff]  }
  0xff   :  { %3511 = vmatpush2.bf16.msra.mxu0 %v5226_v8  ;;  %v5275_v8 = vld [vmem:[%s7503_s1 + $0x8] ss:$16 sps:$4 sm:$0xff]  }
 0x100   :  { %3552 = vmatpush2.bf16.msra.mxu1 %v5229_v9  ;;  %3562 = vmatprep.subr.bf16.mxu0 %v5235_v14  ;;  %v5278_v9 = vld [vmem:[%s7503_s1 + $0x208] ss:$16 sps:$4 sm:$0xff]  }
 0x101   :  { %3603 = vmatprep.subr.bf16.mxu1 %v5238_v15  ;;  %v5281_v14 = vld [vmem:[%s7503_s1 + $0x1e8] ss:$16 sps:$4 sm:$0xff]  }
 0x102   :  { %v3268_v25 = vpop.f32.mrf.mxu0  ;;  %3513 = vmatmul.mubr.bf16.vlgmr.msra.gmra.mxu0 %v6571_v10  ;;  %v5284_v15 = vld [vmem:[%s7503_s1 + $0x3e8] ss:$16 sps:$4 sm:$0xff]  }
 0x103   :  { %v3309_v27 = vpop.f32.mrf.mxu1  ;;  %3554 = vmatmul.mubr.bf16.vlgmr.msra.gmra.mxu1 %v6586_v39  ;;  %v3269_v30 = vadd.f32 %v3268_v25, %v541_v19  ;;  %3563 = vmatpush1.bf16.msra.mxu0 %v5233_v16  ;;  %v5292_v16 = vld [vmem:[%s7503_s1 + $0x3cc] ss:$16 sps:$4 sm:$0xff]   ;;  %v5287_v19 = vld [vmem:[%s7503_s1 + $0x1c8] ss:$16 sps:$4 sm:$0xff]  }
 0x104   :  { %3604 = vmatpush1.bf16.msra.mxu1 %v5236_v20  ;;  %v3270_v31 = vpop.f32.mrf.mxu0  ;;  %3564 = vmatprep.subr.bf16.mxu0 %v5241_v21  ;;  %v5290_v20 = vld [vmem:[%s7503_s1 + $0x3c8] ss:$16 sps:$4 sm:$0xff]   ;;  %v5295_v21 = vld [vmem:[%s7503_s1 + $0x1ac] ss:$16 sps:$4 sm:$0xff]  }
 0x105   :  { %v3311_v33 = vpop.f32.mrf.mxu1  ;;  %3605 = vmatprep.subr.bf16.mxu1 %v5244_v22  ;;  %v6614_v37 = vadd.f32 %v3309_v27, %v3269_v30  ;;  %v3271_v38 = vadd.f32 %v3270_v31, %v545_v24  ;;  %3594 = vmatprep.mubr.bf16.mxu0 %v5867_v60  ;;  %v5256_v60 = vld [vmem:[%s7503_s1 + $0x28c] ss:$16 sps:$4 sm:$0xff]   ;;  %v5293_v24 = vld [vmem:[%s7503_s1 + $0x1a8] ss:$16 sps:$4 sm:$0xff]  }
 0x106   :  { %3635 = vmatprep.mubr.bf16.mxu1 %v5880_v0  ;;  %v3272_v44 = vpop.f32.mrf.mxu0  ;;  %v5251_v0 = vld [vmem:[%s7503_s1 + $0x88] ss:$16 sps:$4 sm:$0xff]   ;;  %v5298_v22 = vld [vmem:[%s7503_s1 + $0x3ac] ss:$16 sps:$4 sm:$0xff]  }
 0x107   :  { %v3313_v45 = vpop.f32.mrf.mxu1  ;;  %v6624_v46 = vadd.f32 %v3311_v33, %v3271_v38  ;;  %3565 = vmatpush1.bf16.msra.mxu0 %v5239_v28  ;;  %v5296_v25 = vld [vmem:[%s7503_s1 + $0x3a8] ss:$16 sps:$4 sm:$0xff]   ;;  %v5301_v27 = vld [vmem:[%s7503_s1 + $0x18c] ss:$16 sps:$4 sm:$0xff]  }
 0x108   :  { %3606 = vmatpush1.bf16.msra.mxu1 %v5242_v29  ;;  %v3273_v47 = vpop.f32.mrf.mxu0  ;;  %3566 = vmatprep.subr.bf16.mxu0 %v5247_v34  ;;  %v5304_v28 = vld [vmem:[%s7503_s1 + $0x38c] ss:$16 sps:$4 sm:$0xff]   ;;  %v5299_v29 = vld [vmem:[%s7503_s1 + $0x188] ss:$16 sps:$4 sm:$0xff]  }
 0x109   :  { %v3314_v48 = vpop.f32.mrf.mxu1  ;;  %3607 = vmatprep.subr.bf16.mxu1 %v5250_v36  ;;  %v5302_v30 = vld [vmem:[%s7503_s1 + $0x388] ss:$16 sps:$4 sm:$0xff]   ;;  %v5307_v31 = vld [vmem:[%s7503_s1 + $0x16c] ss:$16 sps:$4 sm:$0xff]  }
 0x10a   :  { %v5310_v33 = vld [vmem:[%s7503_s1 + $0x36c] ss:$16 sps:$4 sm:$0xff]   ;;  %v5305_v34 = vld [vmem:[%s7503_s1 + $0x168] ss:$16 sps:$4 sm:$0xff]  }
 0x10b   :  { %3567 = vmatpush1.bf16.msra.mxu0 %v5245_v32  ;;  %v5308_v36 = vld [vmem:[%s7503_s1 + $0x368] ss:$16 sps:$4 sm:$0xff]   ;;  %v5313_v38 = vld [vmem:[%s7503_s1 + $0x14c] ss:$16 sps:$4 sm:$0xff]  }
 0x10c   :  { %3608 = vmatpush1.bf16.msra.mxu1 %v5248_v40  ;;  %3568 = vmatprep.subr.bf16.mxu0 %v5253_v51  ;;  %v5316_v32 = vld [vmem:[%s7503_s1 + $0x34c] ss:$16 sps:$4 sm:$0xff]   ;;  %v5311_v40 = vld [vmem:[%s7503_s1 + $0x148] ss:$16 sps:$4 sm:$0xff]  }
 0x10d   :  { %3609 = vmatprep.subr.bf16.mxu1 %v5256_v60  ;;  %v5314_v44 = vld [vmem:[%s7503_s1 + $0x348] ss:$16 sps:$4 sm:$0xff]   ;;  %v5319_v45 = vld [vmem:[%s7503_s1 + $0x12c] ss:$16 sps:$4 sm:$0xff]  }
 0x10e   :  { %v5322_v47 = vld [vmem:[%s7503_s1 + $0x32c] ss:$16 sps:$4 sm:$0xff]   ;;  %v5317_v48 = vld [vmem:[%s7503_s1 + $0x128] ss:$16 sps:$4 sm:$0xff]  }
 0x10f   :  { %3569 = vmatpush1.bf16.msra.mxu0 %v5251_v0  ;;  %v5320_v51 = vld [vmem:[%s7503_s1 + $0x328] ss:$16 sps:$4 sm:$0xff]   ;;  %v5325_v60 = vld [vmem:[%s7503_s1 + $0x10c] ss:$16 sps:$4 sm:$0xff]  }
 0x110   :  { %3610 = vmatpush1.bf16.msra.mxu1 %v5254_v52  ;;  %3570 = vmatprep.subr.bf16.mxu0 %v5259_v53  ;;  %v5328_v0 = vld [vmem:[%s7503_s1 + $0x30c] ss:$16 sps:$4 sm:$0xff]   ;;  %v5323_v52 = vld [vmem:[%s7503_s1 + $0x108] ss:$16 sps:$4 sm:$0xff]  }
 0x111   :  { %3611 = vmatprep.subr.bf16.mxu1 %v5262_v55  ;;  %v5326_v53 = vld [vmem:[%s7503_s1 + $0x308] ss:$16 sps:$4 sm:$0xff]   ;;  %v5331_v55 = vld [vmem:[%s7503_s1 + $0x4ec] ss:$16 sps:$4 sm:$0xff]  }
 0x113   :  { %3571 = vmatpush1.bf16.msra.mxu0 %v5257_v56  ;;  %v5334_v56 = vld [vmem:[%s7503_s1 + $0x6ec] ss:$16 sps:$4 sm:$0xff]  }
 0x114   :  { %3612 = vmatpush1.bf16.msra.mxu1 %v5260_v57  ;;  %3572 = vmatprep.subr.bf16.mxu0 %v5265_v58  ;;  %v5329_v57 = vld [vmem:[%s7503_s1 + $0x4e8] ss:$16 sps:$4 sm:$0xff]  }
 0x115   :  { %3613 = vmatprep.subr.bf16.mxu1 %v5268_v61  ;;  %v5332_v58 = vld [vmem:[%s7503_s1 + $0x6e8] ss:$16 sps:$4 sm:$0xff]   ;;  %v5337_v61 = vld [vmem:[%s7503_s1 + $0x4cc] ss:$16 sps:$4 sm:$0xff]  }
 0x117   :  { %3573 = vmatpush1.bf16.msra.mxu0 %v5263_v62  ;;  %v5340_v62 = vld [vmem:[%s7503_s1 + $0x6cc] ss:$16 sps:$4 sm:$0xff]  }
 0x118   :  { %3614 = vmatpush1.bf16.msra.mxu1 %v5266_v63  ;;  %3574 = vmatprep.subr.bf16.mxu0 %v5271_v1  ;;  %v5335_v63 = vld [vmem:[%s7503_s1 + $0x4c8] ss:$16 sps:$4 sm:$0xff]  }
 0x119   :  { %3615 = vmatprep.subr.bf16.mxu1 %v5274_v2  ;;  %v5338_v1 = vld [vmem:[%s7503_s1 + $0x6c8] ss:$16 sps:$4 sm:$0xff]  }
 0x11b   :  { %3575 = vmatpush1.bf16.msra.mxu0 %v5269_v3 }
 0x11c   :  { %3616 = vmatpush1.bf16.msra.mxu1 %v5272_v4  ;;  %3576 = vmatprep.subr.bf16.mxu0 %v5277_v5 }
 0x11d   :  { %3617 = vmatprep.subr.bf16.mxu1 %v5280_v7 }
 0x11f   :  { %3577 = vmatpush1.bf16.msra.mxu0 %v5275_v8  ;;  %v5343_v8 = vld [vmem:[%s7503_s1 + $0x4ac] ss:$16 sps:$4 sm:$0xff]  }
 0x120   :  { %3618 = vmatpush1.bf16.msra.mxu1 %v5278_v9  ;;  %3578 = vmatprep.subr.bf16.mxu0 %v5283_v11  ;;  %v5346_v9 = vld [vmem:[%s7503_s1 + $0x6ac] ss:$16 sps:$4 sm:$0xff]  }
 0x121   :  { %3619 = vmatprep.subr.bf16.mxu1 %v5286_v12 }
 0x123   :  { %3579 = vmatpush2.bf16.msra.mxu0 %v5281_v14 }
 0x124   :  { %3620 = vmatpush2.bf16.msra.mxu1 %v5284_v15  ;;  %3580 = vmatprep.subr.bf16.mxu0 %v5289_v49 }
 0x125   :  { %3621 = vmatprep.subr.bf16.mxu1 %v5292_v16  ;;  %v5349_v16 = vld [vmem:[%s7503_s1 + $0x48c] ss:$16 sps:$4 sm:$0xff]  }
 0x127   :  { %3581 = vmatpush2.bf16.msra.mxu0 %v5287_v19  ;;  %v5350_v19 = vld [vmem:[%s7503_s1 + $0x688] ss:$16 sps:$4 sm:$0xff]  }
 0x128   :  { %3622 = vmatpush2.bf16.msra.mxu1 %v5290_v20  ;;  %3582 = vmatprep.subr.bf16.mxu0 %v5295_v21  ;;  %v5355_v20 = vld [vmem:[%s7503_s1 + $0x46c] ss:$16 sps:$4 sm:$0xff]  }
 0x129   :  { %3623 = vmatprep.subr.bf16.mxu1 %v5298_v22  ;;  %v5358_v21 = vld [vmem:[%s7503_s1 + $0x66c] ss:$16 sps:$4 sm:$0xff]   ;;  %v5353_v22 = vld [vmem:[%s7503_s1 + $0x468] ss:$16 sps:$4 sm:$0xff]  }
 0x12b   :  { %3583 = vmatpush2.bf16.msra.mxu0 %v5293_v24  ;;  %v5356_v24 = vld [vmem:[%s7503_s1 + $0x668] ss:$16 sps:$4 sm:$0xff]  }
 0x12c   :  { %3624 = vmatpush2.bf16.msra.mxu1 %v5296_v25  ;;  %3584 = vmatprep.subr.bf16.mxu0 %v5301_v27  ;;  %v5361_v25 = vld [vmem:[%s7503_s1 + $0x44c] ss:$16 sps:$4 sm:$0xff]  }
 0x12d   :  { %3625 = vmatprep.subr.bf16.mxu1 %v5304_v28  ;;  %v5364_v27 = vld [vmem:[%s7503_s1 + $0x64c] ss:$16 sps:$4 sm:$0xff]   ;;  %v5359_v28 = vld [vmem:[%s7503_s1 + $0x448] ss:$16 sps:$4 sm:$0xff]  }
 0x12f   :  { %3585 = vmatpush2.bf16.msra.mxu0 %v5299_v29  ;;  %v5362_v29 = vld [vmem:[%s7503_s1 + $0x648] ss:$16 sps:$4 sm:$0xff]  }
 0x130   :  { %3626 = vmatpush2.bf16.msra.mxu1 %v5302_v30  ;;  %3586 = vmatprep.subr.bf16.mxu0 %v5307_v31  ;;  %v5367_v30 = vld [vmem:[%s7503_s1 + $0x42c] ss:$16 sps:$4 sm:$0xff]  }
 0x131   :  { %3627 = vmatprep.subr.bf16.mxu1 %v5310_v33  ;;  %v5370_v31 = vld [vmem:[%s7503_s1 + $0x62c] ss:$16 sps:$4 sm:$0xff]   ;;  %v5365_v33 = vld [vmem:[%s7503_s1 + $0x428] ss:$16 sps:$4 sm:$0xff]  }
 0x133   :  { %3587 = vmatpush2.bf16.msra.mxu0 %v5305_v34  ;;  %v5368_v34 = vld [vmem:[%s7503_s1 + $0x628] ss:$16 sps:$4 sm:$0xff]  }
 0x134   :  { %3628 = vmatpush2.bf16.msra.mxu1 %v5308_v36  ;;  %3588 = vmatprep.subr.bf16.mxu0 %v5313_v38  ;;  %v5373_v36 = vld [vmem:[%s7503_s1 + $0x40c] ss:$16 sps:$4 sm:$0xff]  }
 0x135   :  { %3629 = vmatprep.subr.bf16.mxu1 %v5316_v32  ;;  %v5376_v38 = vld [vmem:[%s7503_s1 + $0x60c] ss:$16 sps:$4 sm:$0xff]   ;;  %v5371_v32 = vld [vmem:[%s7503_s1 + $0x408] ss:$16 sps:$4 sm:$0xff]  }
 0x137   :  { %3589 = vmatpush2.bf16.msra.mxu0 %v5311_v40  ;;  %v5374_v40 = vld [vmem:[%s7503_s1 + $0x608] ss:$16 sps:$4 sm:$0xff]  }
 0x138   :  { %3630 = vmatpush2.bf16.msra.mxu1 %v5314_v44  ;;  %3590 = vmatprep.subr.bf16.mxu0 %v5319_v45  ;;  %v5379_v44 = vld [vmem:[%s7503_s1 + $0x5ec] ss:$16 sps:$4 sm:$0xff]  }
 0x139   :  { %3631 = vmatprep.subr.bf16.mxu1 %v5322_v47  ;;  %v5382_v45 = vld [vmem:[%s7503_s1 + $0x7ec] ss:$16 sps:$4 sm:$0xff]   ;;  %v5377_v47 = vld [vmem:[%s7503_s1 + $0x5e8] ss:$16 sps:$4 sm:$0xff]  }
 0x13b   :  { %3591 = vmatpush2.bf16.msra.mxu0 %v5317_v48  ;;  %v5380_v48 = vld [vmem:[%s7503_s1 + $0x7e8] ss:$16 sps:$4 sm:$0xff]  }
 0x13c   :  { %3632 = vmatpush2.bf16.msra.mxu1 %v5320_v51  ;;  %3592 = vmatprep.subr.bf16.mxu0 %v5325_v60  ;;  %v5385_v51 = vld [vmem:[%s7503_s1 + $0x5cc] ss:$16 sps:$4 sm:$0xff]  }
 0x13d   :  { %3633 = vmatprep.subr.bf16.mxu1 %v5328_v0  ;;  %v5388_v60 = vld [vmem:[%s7503_s1 + $0x7cc] ss:$16 sps:$4 sm:$0xff]  }
 0x13f   :  { %3593 = vmatpush2.bf16.msra.mxu0 %v5323_v52 }
 0x140   :  { %3634 = vmatpush2.bf16.msra.mxu1 %v5326_v53  ;;  %3644 = vmatprep.subr.bf16.mxu0 %v5331_v55 }
 0x141   :  { %3685 = vmatprep.subr.bf16.mxu1 %v5334_v56 }
 0x142   :  { %v3350_v2 = vpop.f32.mrf.mxu0  ;;  %3595 = vmatmul.mubr.bf16.vlgmr.msra.gmra.mxu0 %v5917_v13 }
 0x143   :  { %v3391_v3 = vpop.f32.mrf.mxu1  ;;  %3636 = vmatmul.mubr.bf16.vlgmr.msra.gmra.mxu1 %v5933_v18  ;;  %v3351_v4 = vadd.f32 %v3350_v2, %v6614_v37  ;;  %3645 = vmatpush1.bf16.msra.mxu0 %v5329_v57  ;;  %v5341_v18 = vld [vmem:[%s7503_s1 + $0x4a8] ss:$16 sps:$4 sm:$0xff]  }
 0x144   :  { %3686 = vmatpush1.bf16.msra.mxu1 %v5332_v58  ;;  %v3352_v5 = vpop.f32.mrf.mxu0  ;;  %3646 = vmatprep.subr.bf16.mxu0 %v5337_v61  ;;  %v5344_v37 = vld [vmem:[%s7503_s1 + $0x6a8] ss:$16 sps:$4 sm:$0xff]  }
 0x145   :  { %v3393_v7 = vpop.f32.mrf.mxu1  ;;  %3687 = vmatprep.subr.bf16.mxu1 %v5340_v62  ;;  %v6815_v11 = vadd.f32 %v3391_v3, %v3351_v4  ;;  %v3353_v13 = vadd.f32 %v3352_v5, %v6624_v46  ;;  %3676 = vmatprep.mubr.bf16.mxu0 %v5929_v17  ;;  %v5352_v17 = vld [vmem:[%s7503_s1 + $0x68c] ss:$16 sps:$4 sm:$0xff]  }
 0x146   :  { %3717 = vmatprep.mubr.bf16.mxu1 %v5949_v23  ;;  %v3354_v12 = vpop.f32.mrf.mxu0  ;;  %v5347_v23 = vld [vmem:[%s7503_s1 + $0x488] ss:$16 sps:$4 sm:$0xff]  }
 0x147   :  { %v3395_v14 = vpop.f32.mrf.mxu1  ;;  %v6826_v15 = vadd.f32 %v3393_v7, %v3353_v13  ;;  %3647 = vmatpush1.bf16.msra.mxu0 %v5335_v63 }
 0x148   :  { %3688 = vmatpush1.bf16.msra.mxu1 %v5338_v1  ;;  %v3355_v49 = vpop.f32.mrf.mxu0  ;;  %3648 = vmatprep.subr.bf16.mxu0 %v5343_v8 }
 0x149   :  { %v3396_v46 = vpop.f32.mrf.mxu1  ;;  %3689 = vmatprep.subr.bf16.mxu1 %v5346_v9 }
 0x14b   :  { %3649 = vmatpush1.bf16.msra.mxu0 %v5341_v18 }
 0x14c   :  { %3690 = vmatpush1.bf16.msra.mxu1 %v5344_v37  ;;  %3650 = vmatprep.subr.bf16.mxu0 %v5349_v16 }
 0x14d   :  { %3691 = vmatprep.subr.bf16.mxu1 %v5352_v17 }
 0x14f   :  { %3651 = vmatpush1.bf16.msra.mxu0 %v5347_v23 }
 0x150   :  { %3692 = vmatpush1.bf16.msra.mxu1 %v5350_v19  ;;  %3652 = vmatprep.subr.bf16.mxu0 %v5355_v20 }
 0x151   :  { %3693 = vmatprep.subr.bf16.mxu1 %v5358_v21 }
 0x153   :  { %3653 = vmatpush1.bf16.msra.mxu0 %v5353_v22 }
 0x154   :  { %3694 = vmatpush1.bf16.msra.mxu1 %v5356_v24  ;;  %3654 = vmatprep.subr.bf16.mxu0 %v5361_v25 }
 0x155   :  { %3695 = vmatprep.subr.bf16.mxu1 %v5364_v27 }
 0x157   :  { %3655 = vmatpush1.bf16.msra.mxu0 %v5359_v28 }
 0x158   :  { %3696 = vmatpush1.bf16.msra.mxu1 %v5362_v29  ;;  %3656 = vmatprep.subr.bf16.mxu0 %v5367_v30 }
 0x159   :  { %3697 = vmatprep.subr.bf16.mxu1 %v5370_v31 }
 0x15b   :  { %3657 = vmatpush1.bf16.msra.mxu0 %v5365_v33 }
 0x15c   :  { %3698 = vmatpush1.bf16.msra.mxu1 %v5368_v34  ;;  %3658 = vmatprep.subr.bf16.mxu0 %v5373_v36 }
 0x15d   :  { %3699 = vmatprep.subr.bf16.mxu1 %v5376_v38 }
 0x15f   :  { %3659 = vmatpush1.bf16.msra.mxu0 %v5371_v32 }
 0x160   :  { %3700 = vmatpush1.bf16.msra.mxu1 %v5374_v40  ;;  %3660 = vmatprep.subr.bf16.mxu0 %v5379_v44 }
 0x161   :  { %3701 = vmatprep.subr.bf16.mxu1 %v5382_v45 }
 0x162   :  { %10 = vsyncpa [#allocation3], 0  ;;  %v5383_v0 = vld [vmem:[%s7503_s1 + $0x5c8] ss:$16 sps:$4 sm:$0xff]   ;;  %v5391_v53 = vld [vmem:[%s7503_s1 + $0x5ac] ss:$16 sps:$4 sm:$0xff]  }
 0x163   :  { %3661 = vmatpush2.bf16.msra.mxu0 %v5377_v47  ;;  %v5386_v52 = vld [vmem:[%s7503_s1 + $0x7c8] ss:$16 sps:$4 sm:$0xff]   ;;  %v5394_v55 = vld [vmem:[%s7503_s1 + $0x7ac] ss:$16 sps:$4 sm:$0xff]   ;;  %s5673_s27 = smov [#allocation2]  }
 0x164   :  { %3702 = vmatpush2.bf16.msra.mxu1 %v5380_v48  ;;  %3662 = vmatprep.subr.bf16.mxu0 %v5385_v51  ;;  %v5389_v56 = vld [vmem:[%s7503_s1 + $0x5a8] ss:$16 sps:$4 sm:$0xff]   ;;  %v5397_v58 = vld [vmem:[%s7503_s1 + $0x58c] ss:$16 sps:$4 sm:$0xff]   ;;  %s4248_s28 = sshll.u32 %s5673_s27, 4  ;;  %s4249_s28 = int_to_ptr.vmem [resolvable:$true] %s4248_s28 }
 0x165   :  { %3703 = vmatprep.subr.bf16.mxu1 %v5388_v60  ;;  %v5392_v57 = vld [vmem:[%s7503_s1 + $0x7a8] ss:$16 sps:$4 sm:$0xff]   ;;  %v5400_v61 = vld [vmem:[%s7503_s1 + $0x78c] ss:$16 sps:$4 sm:$0xff]   ;;  %s5650_s29 = scalar_lea.vmem %s4249_s28, 32  ;;  %p5655_p1 = scmp.lt.s32.totalorder %s4249_s28, %s4249_s28 }
 0x166   :  { %v5395_v62 = vld [vmem:[%s7503_s1 + $0x588] ss:$16 sps:$4 sm:$0xff]   ;;  %v5403_v1 = vld [vmem:[%s7503_s1 + $0x56c] ss:$16 sps:$4 sm:$0xff]   ;;  %p5651_p0 = scmp.ne.s32.totalorder %s4249_s28, %s5650_s29  ;;  %p5656_p2 = scmp.lt.s32.totalorder %s5650_s29, %s5650_s29 }
 0x167   :  { %3663 = vmatpush2.bf16.msra.mxu0 %v5383_v0  ;;  %v5398_v63 = vld [vmem:[%s7503_s1 + $0x788] ss:$16 sps:$4 sm:$0xff]   ;;  %v5406_v2 = vld [vmem:[%s7503_s1 + $0x76c] ss:$16 sps:$4 sm:$0xff]  }
 0x168   :  { %3704 = vmatpush2.bf16.msra.mxu1 %v5386_v52  ;;  %3664 = vmatprep.subr.bf16.mxu0 %v5391_v53  ;;  %v5401_v3 = vld [vmem:[%s7503_s1 + $0x568] ss:$16 sps:$4 sm:$0xff]   ;;  %v5409_v5 = vld [vmem:[%s7503_s1 + $0x54c] ss:$16 sps:$4 sm:$0xff]   ;;  %p5657_p3 = por %p5656_p2, %p5655_p1 }
 0x169   :  { %3705 = vmatprep.subr.bf16.mxu1 %v5394_v55  ;;  %v5404_v4 = vld [vmem:[%s7503_s1 + $0x768] ss:$16 sps:$4 sm:$0xff]   ;;  %v5412_v7 = vld [vmem:[%s7503_s1 + $0x74c] ss:$16 sps:$4 sm:$0xff]  }
 0x16a   :  { %v5407_v8 = vld [vmem:[%s7503_s1 + $0x548] ss:$16 sps:$4 sm:$0xff]   ;;  %v5415_v13 = vld [vmem:[%s7503_s1 + $0x52c] ss:$16 sps:$4 sm:$0xff]   ;;  %p5658_p4 = pnand %p5657_p3, %p5651_p0 }
 0x16b   :  { %3665 = vmatpush2.bf16.msra.mxu0 %v5389_v56  ;;  %v5410_v9 = vld [vmem:[%s7503_s1 + $0x748] ss:$16 sps:$4 sm:$0xff]   ;;  %v5418_v18 = vld [vmem:[%s7503_s1 + $0x72c] ss:$16 sps:$4 sm:$0xff]  }
 0x16c   :  { %3706 = vmatpush2.bf16.msra.mxu1 %v5392_v57  ;;  %3666 = vmatprep.subr.bf16.mxu0 %v5397_v58  ;;  %v5413_v37 = vld [vmem:[%s7503_s1 + $0x528] ss:$16 sps:$4 sm:$0xff]   ;;  %v5421_v14 = vld [vmem:[%s7503_s1 + $0x50c] ss:$16 sps:$4 sm:$0xff]  }
 0x16d   :  { %3707 = vmatprep.subr.bf16.mxu1 %v5400_v61  ;;  %v5416_v12 = vld [vmem:[%s7503_s1 + $0x728] ss:$16 sps:$4 sm:$0xff]   ;;  %v5424_v49 = vld [vmem:[%s7503_s1 + $0x70c] ss:$16 sps:$4 sm:$0xff]  }
 0x16e   :  { %v5419_v46 = vld [vmem:[%s7503_s1 + $0x508] ss:$16 sps:$4 sm:$0xff]   ;;  %v5427_v17 = vld [vmem:[%s7503_s1 + $0x8ec] ss:$16 sps:$4 sm:$0xff]  }
 0x16f   :  { %3667 = vmatpush2.bf16.msra.mxu0 %v5395_v62  ;;  %v5422_v16 = vld [vmem:[%s7503_s1 + $0x708] ss:$16 sps:$4 sm:$0xff]   ;;  %v5430_v23 = vld [vmem:[%s7503_s1 + $0xaec] ss:$16 sps:$4 sm:$0xff]  }
 0x170   :  { %3708 = vmatpush2.bf16.msra.mxu1 %v5398_v63  ;;  %3668 = vmatprep.subr.bf16.mxu0 %v5403_v1  ;;  %v5425_v19 = vld [vmem:[%s7503_s1 + $0x8e8] ss:$16 sps:$4 sm:$0xff]   ;;  %v5433_v21 = vld [vmem:[%s7503_s1 + $0x8cc] ss:$16 sps:$4 sm:$0xff]  }
 0x171   :  { %3709 = vmatprep.subr.bf16.mxu1 %v5406_v2  ;;  %v5428_v20 = vld [vmem:[%s7503_s1 + $0xae8] ss:$16 sps:$4 sm:$0xff]   ;;  %v5436_v22 = vld [vmem:[%s7503_s1 + $0xacc] ss:$16 sps:$4 sm:$0xff]  }
 0x172   :  { %v5431_v28 = vld [vmem:[%s7503_s1 + $0x8c8] ss:$16 sps:$4 sm:$0xff]   ;;  %v5451_v48 = vld [vmem:[%s7503_s1 + $0x86c] ss:$16 sps:$4 sm:$0xff]  }
 0x173   :  { %3669 = vmatpush2.bf16.msra.mxu0 %v5401_v3  ;;  %v5434_v29 = vld [vmem:[%s7503_s1 + $0xac8] ss:$16 sps:$4 sm:$0xff]   ;;  %v5454_v51 = vld [vmem:[%s7503_s1 + $0xa6c] ss:$16 sps:$4 sm:$0xff]  }
 0x174   :  { %3710 = vmatpush2.bf16.msra.mxu1 %v5404_v4  ;;  %3670 = vmatprep.subr.bf16.mxu0 %v5409_v5  ;;  %v5437_v32 = vld [vmem:[%s7503_s1 + $0x8a8] ss:$16 sps:$4 sm:$0xff]   ;;  %v5457_v52 = vld [vmem:[%s7503_s1 + $0x84c] ss:$16 sps:$4 sm:$0xff]  }
 0x175   :  { %3711 = vmatprep.subr.bf16.mxu1 %v5412_v7  ;;  %v5440_v40 = vld [vmem:[%s7503_s1 + $0xaa8] ss:$16 sps:$4 sm:$0xff]   ;;  %v5460_v53 = vld [vmem:[%s7503_s1 + $0xa4c] ss:$16 sps:$4 sm:$0xff]  }
 0x176   :  { %v5443_v45 = vld [vmem:[%s7503_s1 + $0x888] ss:$16 sps:$4 sm:$0xff]   ;;  %v5463_v57 = vld [vmem:[%s7503_s1 + $0x82c] ss:$16 sps:$4 sm:$0xff]  }
 0x177   :  { %3671 = vmatpush2.bf16.msra.mxu0 %v5407_v8  ;;  %v5446_v47 = vld [vmem:[%s7503_s1 + $0xa88] ss:$16 sps:$4 sm:$0xff]   ;;  %v5466_v58 = vld [vmem:[%s7503_s1 + $0xa2c] ss:$16 sps:$4 sm:$0xff]  }
 0x178   :  { %3712 = vmatpush2.bf16.msra.mxu1 %v5410_v9  ;;  %3672 = vmatprep.subr.bf16.mxu0 %v5415_v13  ;;  %v5449_v60 = vld [vmem:[%s7503_s1 + $0x868] ss:$16 sps:$4 sm:$0xff]   ;;  %v5469_v63 = vld [vmem:[%s7503_s1 + $0x80c] ss:$16 sps:$4 sm:$0xff]  }
 0x179   :  { %3713 = vmatprep.subr.bf16.mxu1 %v5418_v18  ;;  %v5452_v0 = vld [vmem:[%s7503_s1 + $0xa68] ss:$16 sps:$4 sm:$0xff]   ;;  %v5472_v1 = vld [vmem:[%s7503_s1 + $0xa0c] ss:$16 sps:$4 sm:$0xff]  }
 0x17a   :  { %v5455_v55 = vld [vmem:[%s7503_s1 + $0x848] ss:$16 sps:$4 sm:$0xff]   ;;  %v5475_v4 = vld [vmem:[%s7503_s1 + $0x9ec] ss:$16 sps:$4 sm:$0xff]  }
 0x17b   :  { %3673 = vmatpush2.bf16.msra.mxu0 %v5413_v37  ;;  %v5458_v56 = vld [vmem:[%s7503_s1 + $0xa48] ss:$16 sps:$4 sm:$0xff]   ;;  %v5478_v5 = vld [vmem:[%s7503_s1 + $0xbec] ss:$16 sps:$4 sm:$0xff]  }
 0x17c   :  { %3714 = vmatpush2.bf16.msra.mxu1 %v5416_v12  ;;  %3674 = vmatprep.subr.bf16.mxu0 %v5421_v14  ;;  %v5461_v61 = vld [vmem:[%s7503_s1 + $0x828] ss:$16 sps:$4 sm:$0xff]   ;;  %v5481_v9 = vld [vmem:[%s7503_s1 + $0x9cc] ss:$16 sps:$4 sm:$0xff]  }
 0x17d   :  { %3715 = vmatprep.subr.bf16.mxu1 %v5424_v49  ;;  %v5464_v62 = vld [vmem:[%s7503_s1 + $0xa28] ss:$16 sps:$4 sm:$0xff]   ;;  %v5484_v13 = vld [vmem:[%s7503_s1 + $0xbcc] ss:$16 sps:$4 sm:$0xff]  }
 0x17e   :  { %v5467_v2 = vld [vmem:[%s7503_s1 + $0x808] ss:$16 sps:$4 sm:$0xff]   ;;  %v5487_v12 = vld [vmem:[%s7503_s1 + $0x9ac] ss:$16 sps:$4 sm:$0xff]  }
 0x17f   :  { %3675 = vmatpush2.bf16.msra.mxu0 %v5419_v46  ;;  %v5470_v3 = vld [vmem:[%s7503_s1 + $0xa08] ss:$16 sps:$4 sm:$0xff]   ;;  %v5490_v14 = vld [vmem:[%s7503_s1 + $0xbac] ss:$16 sps:$4 sm:$0xff]  }
 0x180   :  { %3716 = vmatpush2.bf16.msra.mxu1 %v5422_v16  ;;  %3726 = vmatprep.subr.bf16.mxu0 %v5427_v17  ;;  %v5473_v7 = vld [vmem:[%s7503_s1 + $0x9e8] ss:$16 sps:$4 sm:$0xff]   ;;  %v5493_v16 = vld [vmem:[%s7503_s1 + $0x98c] ss:$16 sps:$4 sm:$0xff]  }
 0x181   :  { %3767 = vmatprep.subr.bf16.mxu1 %v5430_v23  ;;  %v5476_v8 = vld [vmem:[%s7503_s1 + $0xbe8] ss:$16 sps:$4 sm:$0xff]   ;;  %v5496_v17 = vld [vmem:[%s7503_s1 + $0xb8c] ss:$16 sps:$4 sm:$0xff]  }
 0x182   :  { %v3432_v24 = vpop.f32.mrf.mxu0  ;;  %3677 = vmatmul.mubr.bf16.vlgmr.msra.gmra.mxu0 %v6128_v26  ;;  %v5439_v26 = vld [vmem:[%s7503_s1 + $0x8ac] ss:$16 sps:$4 sm:$0xff]   ;;  %v5479_v18 = vld [vmem:[%s7503_s1 + $0x9c8] ss:$16 sps:$4 sm:$0xff]  }
 0x183   :  { %v3473_v25 = vpop.f32.mrf.mxu1  ;;  %3718 = vmatmul.mubr.bf16.vlgmr.msra.gmra.mxu1 %v6141_v6  ;;  %v3433_v27 = vadd.f32 %v3432_v24, %v6815_v11  ;;  %3727 = vmatpush1.bf16.msra.mxu0 %v5425_v19  ;;  %v5442_v6 = vld [vmem:[%s7503_s1 + $0xaac] ss:$16 sps:$4 sm:$0xff]   ;;  %v5482_v37 = vld [vmem:[%s7503_s1 + $0xbc8] ss:$16 sps:$4 sm:$0xff]  }
 0x184   :  { %3768 = vmatpush1.bf16.msra.mxu1 %v5428_v20  ;;  %v3434_v30 = vpop.f32.mrf.mxu0  ;;  %3728 = vmatprep.subr.bf16.mxu0 %v5433_v21  ;;  %v5485_v49 = vld [vmem:[%s7503_s1 + $0x9a8] ss:$16 sps:$4 sm:$0xff]   ;;  %v5499_v20 = vld [vmem:[%s7503_s1 + $0x96c] ss:$16 sps:$4 sm:$0xff]  }
 0x185   :  { %v3475_v31 = vpop.f32.mrf.mxu1  ;;  %3769 = vmatprep.subr.bf16.mxu1 %v5436_v22  ;;  %v7017_v11 = vadd.f32 %v3473_v25, %v3433_v27  ;;  %v3435_v33 = vadd.f32 %v3434_v30, %v6826_v15  ;;  %3758 = vmatprep.mubr.bf16.mxu0 %v6181_v41  ;;  %v5445_v41 = vld [vmem:[%s7503_s1 + $0x88c] ss:$16 sps:$4 sm:$0xff]   ;;  %v5488_v46 = vld [vmem:[%s7503_s1 + $0xba8] ss:$16 sps:$4 sm:$0xff]  }
 0x186   :  { %3799 = vmatprep.mubr.bf16.mxu1 %v6186_v43  ;;  %v3436_v34 = vpop.f32.mrf.mxu0  ;;  %v5448_v43 = vld [vmem:[%s7503_s1 + $0xa8c] ss:$16 sps:$4 sm:$0xff]   ;;  %v5491_v23 = vld [vmem:[%s7503_s1 + $0x988] ss:$16 sps:$4 sm:$0xff]  }
 0x187   :  { %v3477_v36 = vpop.f32.mrf.mxu1  ;;  %v7022_v38 = vadd.f32 %v3475_v31, %v3435_v33  ;;  %3729 = vmatpush1.bf16.msra.mxu0 %v5431_v28  ;;  %v5494_v19 = vld [vmem:[%s7503_s1 + $0xb88] ss:$16 sps:$4 sm:$0xff]   ;;  %v5502_v21 = vld [vmem:[%s7503_s1 + $0xb6c] ss:$16 sps:$4 sm:$0xff]  }
 0x188   :  { %3770 = vmatpush1.bf16.msra.mxu1 %v5434_v29  ;;  %v3437_v44 = vpop.f32.mrf.mxu0  ;;  %3730 = vmatprep.subr.bf16.mxu0 %v5439_v26  ;;  %v5497_v22 = vld [vmem:[%s7503_s1 + $0x968] ss:$16 sps:$4 sm:$0xff]   ;;  %v5505_v25 = vld [vmem:[%s7503_s1 + $0x94c] ss:$16 sps:$4 sm:$0xff]  }
 0x189   :  { %v3478_v15 = vpop.f32.mrf.mxu1  ;;  %3771 = vmatprep.subr.bf16.mxu1 %v5442_v6  ;;  %v5500_v24 = vld [vmem:[%s7503_s1 + $0xb68] ss:$16 sps:$4 sm:$0xff]   ;;  %v5508_v27 = vld [vmem:[%s7503_s1 + $0xb4c] ss:$16 sps:$4 sm:$0xff]  }
 0x18a   :  { %v5503_v28 = vld [vmem:[%s7503_s1 + $0x948] ss:$16 sps:$4 sm:$0xff]   ;;  %v5511_v30 = vld [vmem:[%s7503_s1 + $0x92c] ss:$16 sps:$4 sm:$0xff]  }
 0x18b   :  { %3731 = vmatpush1.bf16.msra.mxu0 %v5437_v32  ;;  %v5506_v29 = vld [vmem:[%s7503_s1 + $0xb48] ss:$16 sps:$4 sm:$0xff]   ;;  %v5514_v31 = vld [vmem:[%s7503_s1 + $0xb2c] ss:$16 sps:$4 sm:$0xff]  }
 0x18c   :  { %3772 = vmatpush1.bf16.msra.mxu1 %v5440_v40  ;;  %3732 = vmatprep.subr.bf16.mxu0 %v5445_v41  ;;  %v5509_v26 = vld [vmem:[%s7503_s1 + $0x928] ss:$16 sps:$4 sm:$0xff]   ;;  %v5517_v33 = vld [vmem:[%s7503_s1 + $0x90c] ss:$16 sps:$4 sm:$0xff]  }
 0x18d   :  { %3773 = vmatprep.subr.bf16.mxu1 %v5448_v43  ;;  %v5512_v6 = vld [vmem:[%s7503_s1 + $0xb28] ss:$16 sps:$4 sm:$0xff]   ;;  %v5520_v34 = vld [vmem:[%s7503_s1 + $0xb0c] ss:$16 sps:$4 sm:$0xff]  }
 0x18e   :  { %v5515_v36 = vld [vmem:[%s7503_s1 + $0x908] ss:$16 sps:$4 sm:$0xff]   ;;  %v5523_v40 = vld [vmem:[%s7503_s1 + $0xcec] ss:$16 sps:$4 sm:$0xff]  }
 0x18f   :  { %3733 = vmatpush1.bf16.msra.mxu0 %v5443_v45  ;;  %v5518_v32 = vld [vmem:[%s7503_s1 + $0xb08] ss:$16 sps:$4 sm:$0xff]   ;;  %v5526_v44 = vld [vmem:[%s7503_s1 + $0xeec] ss:$16 sps:$4 sm:$0xff]  }
 0x190   :  { %3774 = vmatpush1.bf16.msra.mxu1 %v5446_v47  ;;  %3734 = vmatprep.subr.bf16.mxu0 %v5451_v48  ;;  %v5521_v15 = vld [vmem:[%s7503_s1 + $0xce8] ss:$16 sps:$4 sm:$0xff]   ;;  %v5529_v43 = vld [vmem:[%s7503_s1 + $0xccc] ss:$16 sps:$4 sm:$0xff]  }
 0x191   :  { %3775 = vmatprep.subr.bf16.mxu1 %v5454_v51  ;;  %v5524_v41 = vld [vmem:[%s7503_s1 + $0xee8] ss:$16 sps:$4 sm:$0xff]   ;;  %v5532_v45 = vld [vmem:[%s7503_s1 + $0xecc] ss:$16 sps:$4 sm:$0xff]  }
 0x193   :  { %3735 = vmatpush1.bf16.msra.mxu0 %v5449_v60  ;;  %v5527_v60 = vld [vmem:[%s7503_s1 + $0xcc8] ss:$16 sps:$4 sm:$0xff]  }
 0x194   :  { %3776 = vmatpush1.bf16.msra.mxu1 %v5452_v0  ;;  %3736 = vmatprep.subr.bf16.mxu0 %v5457_v52  ;;  %v5530_v0 = vld [vmem:[%s7503_s1 + $0xec8] ss:$16 sps:$4 sm:$0xff]  }
 0x195   :  { %3777 = vmatprep.subr.bf16.mxu1 %v5460_v53 }
 0x197   :  { %3737 = vmatpush1.bf16.msra.mxu0 %v5455_v55 }
 0x198   :  { %3778 = vmatpush1.bf16.msra.mxu1 %v5458_v56  ;;  %3738 = vmatprep.subr.bf16.mxu0 %v5463_v57  ;;  %v5533_v57 = vld [vmem:[%s7503_s1 + $0xca8] ss:$16 sps:$4 sm:$0xff]  }
 0x199   :  { %3779 = vmatprep.subr.bf16.mxu1 %v5466_v58  ;;  %v5536_v58 = vld [vmem:[%s7503_s1 + $0xea8] ss:$16 sps:$4 sm:$0xff]  }
 0x19b   :  { %3739 = vmatpush1.bf16.msra.mxu0 %v5461_v61 }
 0x19c   :  { %3780 = vmatpush1.bf16.msra.mxu1 %v5464_v62  ;;  %3740 = vmatprep.subr.bf16.mxu0 %v5469_v63  ;;  %v5539_v63 = vld [vmem:[%s7503_s1 + $0xc88] ss:$16 sps:$4 sm:$0xff]  }
 0x19d   :  { %3781 = vmatprep.subr.bf16.mxu1 %v5472_v1  ;;  %v5542_v1 = vld [vmem:[%s7503_s1 + $0xe88] ss:$16 sps:$4 sm:$0xff]  }
 0x19f   :  { %3741 = vmatpush1.bf16.msra.mxu0 %v5467_v2  ;;  %v5547_v2 = vld [vmem:[%s7503_s1 + $0xc6c] ss:$16 sps:$4 sm:$0xff]  }
 0x1a0   :  { %3782 = vmatpush1.bf16.msra.mxu1 %v5470_v3  ;;  %3742 = vmatprep.subr.bf16.mxu0 %v5475_v4  ;;  %v5550_v3 = vld [vmem:[%s7503_s1 + $0xe6c] ss:$16 sps:$4 sm:$0xff]   ;;  %v5545_v4 = vld [vmem:[%s7503_s1 + $0xc68] ss:$16 sps:$4 sm:$0xff]  }
 0x1a1   :  { %3783 = vmatprep.subr.bf16.mxu1 %v5478_v5  ;;  %v5548_v5 = vld [vmem:[%s7503_s1 + $0xe68] ss:$16 sps:$4 sm:$0xff]  }
 0x1a3   :  { %3743 = vmatpush2.bf16.msra.mxu0 %v5473_v7  ;;  %v5553_v7 = vld [vmem:[%s7503_s1 + $0xc4c] ss:$16 sps:$4 sm:$0xff]  }
 0x1a4   :  { %3784 = vmatpush2.bf16.msra.mxu1 %v5476_v8  ;;  %3744 = vmatprep.subr.bf16.mxu0 %v5481_v9  ;;  %v5556_v8 = vld [vmem:[%s7503_s1 + $0xe4c] ss:$16 sps:$4 sm:$0xff]   ;;  %v5551_v9 = vld [vmem:[%s7503_s1 + $0xc48] ss:$16 sps:$4 sm:$0xff]  }
 0x1a5   :  { %3785 = vmatprep.subr.bf16.mxu1 %v5484_v13  ;;  %v5554_v13 = vld [vmem:[%s7503_s1 + $0xe48] ss:$16 sps:$4 sm:$0xff]  }
 0x1a7   :  { %3745 = vmatpush2.bf16.msra.mxu0 %v5479_v18  ;;  %v5559_v18 = vld [vmem:[%s7503_s1 + $0xc2c] ss:$16 sps:$4 sm:$0xff]  }
 0x1a8   :  { %3786 = vmatpush2.bf16.msra.mxu1 %v5482_v37  ;;  %3746 = vmatprep.subr.bf16.mxu0 %v5487_v12  ;;  %v5562_v37 = vld [vmem:[%s7503_s1 + $0xe2c] ss:$16 sps:$4 sm:$0xff]   ;;  %v5557_v12 = vld [vmem:[%s7503_s1 + $0xc28] ss:$16 sps:$4 sm:$0xff]  }
 0x1a9   :  { %3787 = vmatprep.subr.bf16.mxu1 %v5490_v14  ;;  %v5560_v14 = vld [vmem:[%s7503_s1 + $0xe28] ss:$16 sps:$4 sm:$0xff]  }
 0x1ab   :  { %3747 = vmatpush2.bf16.msra.mxu0 %v5485_v49  ;;  %v5565_v49 = vld [vmem:[%s7503_s1 + $0xc0c] ss:$16 sps:$4 sm:$0xff]  }
 0x1ac   :  { %3788 = vmatpush2.bf16.msra.mxu1 %v5488_v46  ;;  %3748 = vmatprep.subr.bf16.mxu0 %v5493_v16  ;;  %v5568_v46 = vld [vmem:[%s7503_s1 + $0xe0c] ss:$16 sps:$4 sm:$0xff]   ;;  %v5563_v16 = vld [vmem:[%s7503_s1 + $0xc08] ss:$16 sps:$4 sm:$0xff]  }
 0x1ad   :  { %3789 = vmatprep.subr.bf16.mxu1 %v5496_v17  ;;  %v5566_v17 = vld [vmem:[%s7503_s1 + $0xe08] ss:$16 sps:$4 sm:$0xff]  }
 0x1af   :  { %3749 = vmatpush2.bf16.msra.mxu0 %v5491_v23  ;;  %v5571_v23 = vld [vmem:[%s7503_s1 + $0xdec] ss:$16 sps:$4 sm:$0xff]  }
 0x1b0   :  { %3790 = vmatpush2.bf16.msra.mxu1 %v5494_v19  ;;  %3750 = vmatprep.subr.bf16.mxu0 %v5499_v20  ;;  %v5574_v19 = vld [vmem:[%s7503_s1 + $0xfec] ss:$16 sps:$4 sm:$0xff]   ;;  %v5569_v20 = vld [vmem:[%s7503_s1 + $0xde8] ss:$16 sps:$4 sm:$0xff]  }
 0x1b1   :  { %3791 = vmatprep.subr.bf16.mxu1 %v5502_v21  ;;  %v5572_v21 = vld [vmem:[%s7503_s1 + $0xfe8] ss:$16 sps:$4 sm:$0xff]  }
 0x1b3   :  { %3751 = vmatpush2.bf16.msra.mxu0 %v5497_v22  ;;  %v5577_v22 = vld [vmem:[%s7503_s1 + $0xdcc] ss:$16 sps:$4 sm:$0xff]  }
 0x1b4   :  { %3792 = vmatpush2.bf16.msra.mxu1 %v5500_v24  ;;  %3752 = vmatprep.subr.bf16.mxu0 %v5505_v25  ;;  %v5580_v24 = vld [vmem:[%s7503_s1 + $0xfcc] ss:$16 sps:$4 sm:$0xff]   ;;  %v5575_v25 = vld [vmem:[%s7503_s1 + $0xdc8] ss:$16 sps:$4 sm:$0xff]  }
 0x1b5   :  { %3793 = vmatprep.subr.bf16.mxu1 %v5508_v27  ;;  %v5578_v27 = vld [vmem:[%s7503_s1 + $0xfc8] ss:$16 sps:$4 sm:$0xff]  }
 0x1b7   :  { %3753 = vmatpush2.bf16.msra.mxu0 %v5503_v28  ;;  %v5583_v28 = vld [vmem:[%s7503_s1 + $0xdac] ss:$16 sps:$4 sm:$0xff]  }
 0x1b8   :  { %3794 = vmatpush2.bf16.msra.mxu1 %v5506_v29  ;;  %3754 = vmatprep.subr.bf16.mxu0 %v5511_v30  ;;  %v5586_v29 = vld [vmem:[%s7503_s1 + $0xfac] ss:$16 sps:$4 sm:$0xff]   ;;  %v5581_v30 = vld [vmem:[%s7503_s1 + $0xda8] ss:$16 sps:$4 sm:$0xff]  }
 0x1b9   :  { %3795 = vmatprep.subr.bf16.mxu1 %v5514_v31  ;;  %v5584_v31 = vld [vmem:[%s7503_s1 + $0xfa8] ss:$16 sps:$4 sm:$0xff]  }
 0x1bb   :  { %3755 = vmatpush2.bf16.msra.mxu0 %v5509_v26  ;;  %v5589_v26 = vld [vmem:[%s7503_s1 + $0xd8c] ss:$16 sps:$4 sm:$0xff]  }
 0x1bc   :  { %3796 = vmatpush2.bf16.msra.mxu1 %v5512_v6  ;;  %3756 = vmatprep.subr.bf16.mxu0 %v5517_v33  ;;  %v5592_v6 = vld [vmem:[%s7503_s1 + $0xf8c] ss:$16 sps:$4 sm:$0xff]   ;;  %v5587_v33 = vld [vmem:[%s7503_s1 + $0xd88] ss:$16 sps:$4 sm:$0xff]  }
 0x1bd   :  { %3797 = vmatprep.subr.bf16.mxu1 %v5520_v34  ;;  %v5590_v34 = vld [vmem:[%s7503_s1 + $0xf88] ss:$16 sps:$4 sm:$0xff]  }
 0x1bf   :  { %3757 = vmatpush2.bf16.msra.mxu0 %v5515_v36  ;;  %v5595_v36 = vld [vmem:[%s7503_s1 + $0xd6c] ss:$16 sps:$4 sm:$0xff]  }
 0x1c0   :  { %3798 = vmatpush2.bf16.msra.mxu1 %v5518_v32  ;;  %3808 = vmatprep.subr.bf16.mxu0 %v5523_v40  ;;  %v5598_v32 = vld [vmem:[%s7503_s1 + $0xf6c] ss:$16 sps:$4 sm:$0xff]   ;;  %v5593_v40 = vld [vmem:[%s7503_s1 + $0xd68] ss:$16 sps:$4 sm:$0xff]  }
 0x1c1   :  { %3849 = vmatprep.subr.bf16.mxu1 %v5526_v44  ;;  %v5596_v44 = vld [vmem:[%s7503_s1 + $0xf68] ss:$16 sps:$4 sm:$0xff]  }
 0x1c2   :  { %v3514_v47 = vpop.f32.mrf.mxu0  ;;  %3759 = vmatmul.mubr.bf16.vlgmr.msra.gmra.mxu0 %v6357_v50  ;;  %v5535_v50 = vld [vmem:[%s7503_s1 + $0xcac] ss:$16 sps:$4 sm:$0xff]  }
 0x1c3   :  { %v3555_v48 = vpop.f32.mrf.mxu1  ;;  %3800 = vmatmul.mubr.bf16.vlgmr.msra.gmra.mxu1 %v6373_v35  ;;  %v3515_v51 = vadd.f32 %v3514_v47, %v7017_v11  ;;  %3809 = vmatpush1.bf16.msra.mxu0 %v5521_v15  ;;  %v5538_v35 = vld [vmem:[%s7503_s1 + $0xeac] ss:$16 sps:$4 sm:$0xff]  }
 0x1c4   :  { %3850 = vmatpush1.bf16.msra.mxu1 %v5524_v41  ;;  %v7213_v52 = vpop.f32.mrf.mxu0  ;;  %3810 = vmatprep.subr.bf16.mxu0 %v5529_v43  ;;  %v5601_v15 = vld [vmem:[%s7503_s1 + $0xd4c] ss:$16 sps:$4 sm:$0xff]   ;;  %v5599_v43 = vld [vmem:[%s7503_s1 + $0xd48] ss:$16 sps:$4 sm:$0xff]  }
 0x1c5   :  { %v7215_v53 = vpop.f32.mrf.mxu1  ;;  %3851 = vmatprep.subr.bf16.mxu1 %v5532_v45  ;;  %v7223_v11 = vadd.f32 %v3555_v48, %v3515_v51  ;;  %3840 = vmatprep.mubr.bf16.mxu0 %v6369_v54  ;;  %v5541_v54 = vld [vmem:[%s7503_s1 + $0xc8c] ss:$16 sps:$4 sm:$0xff]   ;;  %v5602_v45 = vld [vmem:[%s7503_s1 + $0xf48] ss:$16 sps:$4 sm:$0xff]   ;;  %v3517_v51 = vadd.f32 %v7213_v52, %v7022_v38 }
 0x1c6   :  { %3881 = vmatprep.mubr.bf16.mxu1 %v6389_v59  ;;  %v3518_v55 = vpop.f32.mrf.mxu0  ;;  %v5544_v59 = vld [vmem:[%s7503_s1 + $0xe8c] ss:$16 sps:$4 sm:$0xff]  }
 0x1c7   :  { %v3559_v56 = vpop.f32.mrf.mxu1  ;;  %3811 = vmatpush1.bf16.msra.mxu0 %v5527_v60  ;;  %v5604_v41 = vld [vmem:[%s7503_s1 + $0xf4c] ss:$16 sps:$4 sm:$0xff]   ;;  %v5605_v60 = vld [vmem:[%s7503_s1 + $0xd28] ss:$16 sps:$4 sm:$0xff]   ;;  %v3558_v52 = vadd.f32 %v7215_v53, %v3517_v51  ;;  %v552_v53 = vsub.s32 3, %v5821_v42 }
 0x1c8   :  { %3852 = vmatpush1.bf16.msra.mxu1 %v5530_v0  ;;  %v3519_v61 = vpop.f32.mrf.mxu0  ;;  %3812 = vmatprep.subr.bf16.mxu0 %v5535_v50  ;;  %v5607_v47 = vld [vmem:[%s7503_s1 + $0xd2c] ss:$16 sps:$4 sm:$0xff]   ;;  %v5608_v0 = vld [vmem:[%s7503_s1 + $0xf28] ss:$16 sps:$4 sm:$0xff]   ;;  %v548_v56 = vsub.s32 2, %v5821_v42 }
 0x1c9   :  { %v3560_v62 = vpop.f32.mrf.mxu1  ;;  %3853 = vmatprep.subr.bf16.mxu1 %v5538_v35  ;;  %v5610_v48 = vld [vmem:[%s7503_s1 + $0xf2c] ss:$16 sps:$4 sm:$0xff]   ;;  %v5611_v35 = vld [vmem:[%s7503_s1 + $0xd08] ss:$16 sps:$4 sm:$0xff]   ;;  %v5649_v61 = vld [vmem:[%s7504_s2] sm:$0xf] }
 0x1ca   :  { %v5613_v50 = vld [vmem:[%s7503_s1 + $0xd0c] ss:$16 sps:$4 sm:$0xff]   ;;  %v5614_v55 = vld [vmem:[%s7503_s1 + $0xf08] ss:$16 sps:$4 sm:$0xff]   ;;  %v549_v62 = vrot.slane %v5649_v61, %v548_v56  ;;  %v5648_v56 = vld [vmem:[%s7505_s3 + $0x80] sm:$0xff]  }
 0x1cb   :  { %3813 = vmatpush1.bf16.msra.mxu0 %v5533_v57  ;;  %v5616_v38 = vld [vmem:[%s7503_s1 + $0xf0c] ss:$16 sps:$4 sm:$0xff]  }
 0x1cc   :  { %3854 = vmatpush1.bf16.msra.mxu1 %v5536_v58  ;;  %3814 = vmatprep.subr.bf16.mxu0 %v5541_v54  ;;  %v5617_v57 = vld [vmem:[%s7505_s3 + $0x78] sm:$0xff]   ;;  %v3891_v58 = vmax.f32 %v3558_v52, 0.0 }
 0x1cd   :  { %3855 = vmatprep.subr.bf16.mxu1 %v5544_v59  ;;  %v5618_v54 = vld [vmem:[%s7505_s3 + $0x38] sm:$0xff]   ;;  %v5619_v59 = vld [vmem:[%s7505_s3 + $0x70] sm:$0xff]  }
 0x1cf   :  { %3815 = vmatpush1.bf16.msra.mxu0 %v5539_v63  ;;  %v3895_v63 = vpack.c.bf16 %v3891_v58, %v3891_v58 }
 0x1d0   :  { %3856 = vmatpush1.bf16.msra.mxu1 %v5542_v1  ;;  %3816 = vmatprep.subr.bf16.mxu0 %v5547_v2  ;;  %v553_v1 = vrot.slane %v5649_v61, %v552_v53 }
 0x1d1   :  { %3857 = vmatprep.subr.bf16.mxu1 %v5550_v3 }
 0x1d3   :  { %3817 = vmatpush1.bf16.msra.mxu0 %v5545_v4  ;;  %v5620_v4 = vld [vmem:[%s7505_s3 + $0x30] sm:$0xff]  }
 0x1d4   :  { %3858 = vmatpush1.bf16.msra.mxu1 %v5548_v5  ;;  %3818 = vmatprep.subr.bf16.mxu0 %v5553_v7 }
 0x1d5   :  { %3859 = vmatprep.subr.bf16.mxu1 %v5556_v8  ;;  %v5621_v8 = vld [vmem:[%s7505_s3 + $0x68] sm:$0xff]  }
 0x1d7   :  { %3819 = vmatpush1.bf16.msra.mxu0 %v5551_v9 }
 0x1d8   :  { %3860 = vmatpush1.bf16.msra.mxu1 %v5554_v13  ;;  %3820 = vmatprep.subr.bf16.mxu0 %v5559_v18 }
 0x1d9   :  { %3861 = vmatprep.subr.bf16.mxu1 %v5562_v37 }
 0x1db   :  { %3821 = vmatpush1.bf16.msra.mxu0 %v5557_v12  ;;  %v5623_v12 = vld [vmem:[%s7505_s3 + $0x60] sm:$0xff]  }
 0x1dc   :  { %3862 = vmatpush1.bf16.msra.mxu1 %v5560_v14  ;;  %3822 = vmatprep.subr.bf16.mxu0 %v5565_v49 }
 0x1dd   :  { %3863 = vmatprep.subr.bf16.mxu1 %v5568_v46  ;;  %v5633_v46 = vld [vmem:[%s7505_s3 + $0xf8] sm:$0xff]  }
 0x1df   :  { %3823 = vmatpush1.bf16.msra.mxu0 %v5563_v16  ;;  %v5634_v16 = vld [vmem:[%s7505_s3 + $0xb8] sm:$0xff]  }
 0x1e0   :  { %3864 = vmatpush1.bf16.msra.mxu1 %v5566_v17  ;;  %3824 = vmatprep.subr.bf16.mxu0 %v5571_v23  ;;  %v5635_v17 = vld [vmem:[%s7505_s3 + $0xf0] sm:$0xff]   ;;  %v5624_v23 = vld [vmem:[%s7505_s3 + $0x20] sm:$0xff]  }
 0x1e1   :  { %3865 = vmatprep.subr.bf16.mxu1 %v5574_v19  ;;  %v5636_v19 = vld [vmem:[%s7505_s3 + $0xb0] sm:$0xff]  }
 0x1e3   :  { %3825 = vmatpush2.bf16.msra.mxu0 %v5569_v20  ;;  %v5625_v20 = vld [vmem:[%s7505_s3 + $0x58] sm:$0xff]  }
 0x1e4   :  { %3866 = vmatpush2.bf16.msra.mxu1 %v5572_v21  ;;  %3826 = vmatprep.subr.bf16.mxu0 %v5577_v22  ;;  %v5637_v21 = vld [vmem:[%s7505_s3 + $0xe8] sm:$0xff]   ;;  %v5626_v22 = vld [vmem:[%s7505_s3 + $0x18] sm:$0xff]  }
 0x1e5   :  { %3867 = vmatprep.subr.bf16.mxu1 %v5580_v24  ;;  %v5638_v24 = vld [vmem:[%s7505_s3 + $0xa8] sm:$0xff]  }
 0x1e7   :  { %3827 = vmatpush2.bf16.msra.mxu0 %v5575_v25  ;;  %v5627_v25 = vld [vmem:[%s7505_s3 + $0x50] sm:$0xff]  }
 0x1e8   :  { %3868 = vmatpush2.bf16.msra.mxu1 %v5578_v27  ;;  %3828 = vmatprep.subr.bf16.mxu0 %v5583_v28  ;;  %v5639_v27 = vld [vmem:[%s7505_s3 + $0xe0] sm:$0xff]   ;;  %v5628_v28 = vld [vmem:[%s7505_s3 + $0x10] sm:$0xff]  }
 0x1e9   :  { %3869 = vmatprep.subr.bf16.mxu1 %v5586_v29  ;;  %v5640_v29 = vld [vmem:[%s7505_s3 + $0xa0] sm:$0xff]  }
 0x1eb   :  { %3829 = vmatpush2.bf16.msra.mxu0 %v5581_v30  ;;  %v5629_v30 = vld [vmem:[%s7505_s3 + $0x48] sm:$0xff]  }
 0x1ec   :  { %3870 = vmatpush2.bf16.msra.mxu1 %v5584_v31  ;;  %3830 = vmatprep.subr.bf16.mxu0 %v5589_v26  ;;  %v5641_v31 = vld [vmem:[%s7505_s3 + $0xd8] sm:$0xff]   ;;  %v5630_v26 = vld [vmem:[%s7505_s3 + $0x8] sm:$0xff]  }
 0x1ed   :  { %3871 = vmatprep.subr.bf16.mxu1 %v5592_v6  ;;  %v5642_v6 = vld [vmem:[%s7505_s3 + $0x98] sm:$0xff]  }
 0x1ef   :  { %3831 = vmatpush2.bf16.msra.mxu0 %v5587_v33  ;;  %v5631_v33 = vld [vmem:[%s7505_s3 + $0x40] sm:$0xff]  }
 0x1f0   :  { %3872 = vmatpush2.bf16.msra.mxu1 %v5590_v34  ;;  %3832 = vmatprep.subr.bf16.mxu0 %v5595_v36  ;;  %v5632_v34 = vld [vmem:[%s7505_s3] sm:$0xff]   ;;  %v3890_v36 = vmax.f32 %v7223_v11, 0.0  ;;  %v5645_v11 = vld [vmem:[%s7505_s3 + $0xc8] sm:$0xff]  }
 0x1f1   :  { %3873 = vmatprep.subr.bf16.mxu1 %v5598_v32 }
 0x1f2   :  { %v3894_v32 = vpack.c.bf16 %v3890_v36, %v3890_v36 }
 0x1f3   :  { %3833 = vmatpush2.bf16.msra.mxu0 %v5593_v40  ;;  %v5643_v40 = vld [vmem:[%s7505_s3 + $0xd0] sm:$0xff]  }
 0x1f4   :  { %3874 = vmatpush2.bf16.msra.mxu1 %v5596_v44  ;;  %3834 = vmatprep.subr.bf16.mxu0 %v5601_v15  ;;  %v5644_v44 = vld [vmem:[%s7505_s3 + $0x90] sm:$0xff]  }
 0x1f5   :  { %3875 = vmatprep.subr.bf16.mxu1 %v5604_v41 }
 0x1f7   :  { %3835 = vmatpush2.bf16.msra.mxu0 %v5599_v43 }
 0x1f8   :  { %3876 = vmatpush2.bf16.msra.mxu1 %v5602_v45  ;;  %3836 = vmatprep.subr.bf16.mxu0 %v5607_v47 }
 0x1f9   :  { %3877 = vmatprep.subr.bf16.mxu1 %v5610_v48 }
 0x1fb   :  { %3837 = vmatpush2.bf16.msra.mxu0 %v5605_v60  ;;  %v5646_v60 = vld [vmem:[%s7505_s3 + $0x88] sm:$0xff]  }
 0x1fc   :  { %3878 = vmatpush2.bf16.msra.mxu1 %v5608_v0  ;;  %3838 = vmatprep.subr.bf16.mxu0 %v5613_v50 }
 0x1fd   :  { %3879 = vmatprep.subr.bf16.mxu1 %v5616_v38 }
 0x1ff   :  { %3839 = vmatpush2.bf16.msra.mxu0 %v5611_v35 }
 0x200   :  { %3880 = vmatpush2.bf16.msra.mxu1 %v5614_v55  ;;  %4801 = vmatprep.subr.bf16.mxu0 %v5617_v57  ;;  %v5647_v55 = vld [vmem:[%s7505_s3 + $0xc0] sm:$0xff]  }
 0x201   :  { %4823 = vmatprep.subr.bf16.mxu1 %v5633_v46 }
 0x202   :  { %v3596_v2 = vpop.f32.mrf.mxu0  ;;  %3841 = vmatmul.mubr.bf16.vlgmr.msra.gmra.mxu0 %v6571_v10 }
 0x203   :  { %v3637_v42 = vpop.f32.mrf.mxu1  ;;  %3882 = vmatmul.mubr.bf16.vlgmr.msra.gmra.mxu1 %v6586_v39  ;;  %v3597_v3 = vadd.f32 %v3596_v2, %v549_v62  ;;  %4802 = vmatpush3.bf16.msra.mxu0 %v5618_v54  ;;  %v5622_v39 = vld [vmem:[%s7505_s3 + $0x28] sm:$0xff]  }
 0x204   :  { %4193 = vmatprep.mubr.bf16.mxu0 %v3895_v63  ;;  %v3598_v5 = vpop.f32.mrf.mxu0  ;;  %4803 = vmatprep.subr.bf16.mxu0 %v5619_v59 }
 0x205   :  { %v3639_v7 = vpop.f32.mrf.mxu1  ;;  %v3638_v9 = vadd.f32 %v3637_v42, %v3597_v3  ;;  %v3599_v13 = vadd.f32 %v3598_v5, %v553_v1  ;;  %4824 = vmatpush3.bf16.msra.mxu1 %v5634_v16 }
 0x206   :  { %v3600_v18 = vpop.f32.mrf.mxu0  ;;  %4825 = vmatprep.subr.bf16.mxu1 %v5635_v17 }
 0x207   :  { %v3641_v10 = vpop.f32.mrf.mxu1  ;;  %v3640_v37 = vadd.f32 %v3639_v7, %v3599_v13  ;;  %4804 = vmatpush3.bf16.msra.mxu0 %v5620_v4 }
 0x208   :  { %v3601_v14 = vpop.f32.mrf.mxu0  ;;  %4805 = vmatprep.subr.bf16.mxu0 %v5621_v8 }
 0x209   :  { %v3642_v49 = vpop.f32.mrf.mxu1  ;;  %4826 = vmatpush3.bf16.msra.mxu1 %v5636_v19 }
 0x20a   :  { %4827 = vmatprep.subr.bf16.mxu1 %v5637_v21 }
 0x20b   :  { %4806 = vmatpush3.bf16.msra.mxu0 %v5622_v39 }
 0x20c   :  { %4807 = vmatprep.subr.bf16.mxu0 %v5623_v12 }
 0x20d   :  { %4828 = vmatpush3.bf16.msra.mxu1 %v5638_v24  ;;  %v4768_v24 = vld [vmem:[%s7506_s4] ss:$0 sm:$0xff] }
 0x20e   :  { %4829 = vmatprep.subr.bf16.mxu1 %v5639_v27 }
 0x20f   :  { %4808 = vmatpush3.bf16.msra.mxu0 %v5624_v23 }
 0x210   :  { %4809 = vmatprep.subr.bf16.mxu0 %v5625_v20 }
 0x211   :  { %4830 = vmatpush3.bf16.msra.mxu1 %v5640_v29 }
 0x212   :  { %4831 = vmatprep.subr.bf16.mxu1 %v5641_v31 }
 0x213   :  { %4810 = vmatpush3.bf16.msra.mxu0 %v5626_v22 }
 0x214   :  { %4811 = vmatprep.subr.bf16.mxu0 %v5627_v25 }
 0x215   :  { %4832 = vmatpush3.bf16.msra.mxu1 %v5642_v6 }
 0x216   :  { %4833 = vmatprep.subr.bf16.mxu1 %v5643_v40 }
 0x217   :  { %4812 = vmatpush3.bf16.msra.mxu0 %v5628_v28 }
 0x218   :  { %4813 = vmatprep.subr.bf16.mxu0 %v5629_v30 }
 0x219   :  { %4834 = vmatpush3.bf16.msra.mxu1 %v5644_v44 }
 0x21a   :  { %4835 = vmatprep.subr.bf16.mxu1 %v5645_v11 }
 0x21b   :  { %4814 = vmatpush3.bf16.msra.mxu0 %v5630_v26 }
 0x21c   :  { %4815 = vmatprep.subr.bf16.mxu0 %v5631_v33 }
 0x21d   :  { %4836 = vmatpush3.bf16.msra.mxu1 %v5646_v60 }
 0x21e   :  { %4837 = vmatprep.subr.bf16.mxu1 %v5647_v55 }
 0x21f   :  { %4816 = vmatpush3.bf16.msra.mxu0 %v5632_v34 }
 0x221   :  { %4838 = vmatpush3.bf16.msra.mxu1 %v5648_v56 }
 0x222   :  { %4194 = vmatmul.mubr.bf16.vlgmr.msra.gmra.mxu0 %v3894_v32 }
 0x242   :  { %v3678_v15 = vpop.f32.mrf.mxu0 }
 0x243   :  { %v3719_v41 = vpop.f32.mrf.mxu1  ;;  %v3679_v43 = vadd.f32 %v3678_v15, %v3638_v9 }
 0x244   :  { %v3680_v45 = vpop.f32.mrf.mxu0 }
 0x245   :  { %v3721_v47 = vpop.f32.mrf.mxu1  ;;  %v3720_v48 = vadd.f32 %v3719_v41, %v3679_v43  ;;  %v3681_v51 = vadd.f32 %v3680_v45, %v3640_v37 }
 0x246   :  { %v3682_v0 = vpop.f32.mrf.mxu0 }
 0x247   :  { %v3723_v50 = vpop.f32.mrf.mxu1  ;;  %v3722_v38 = vadd.f32 %v3721_v47, %v3681_v51 }
 0x248   :  { %v3683_v52 = vpop.f32.mrf.mxu0 }
 0x249   :  { %v3724_v35 = vpop.f32.mrf.mxu1 }
 0x282   :  { %v3760_v57 = vpop.f32.mrf.mxu0 }
 0x283   :  { %v3801_v58 = vpop.f32.mrf.mxu1  ;;  %v3761_v53 = vadd.f32 %v3760_v57, %v3720_v48 }
 0x284   :  { %v3762_v61 = vpop.f32.mrf.mxu0 }
 0x285   :  { %v3803_v62 = vpop.f32.mrf.mxu1  ;;  %v3802_v54 = vadd.f32 %v3801_v58, %v3761_v53  ;;  %v3763_v42 = vadd.f32 %v3762_v61, %v3722_v38 }
 0x286   :  { %v3764_v59 = vpop.f32.mrf.mxu0 }
 0x287   :  { %v3805_v63 = vpop.f32.mrf.mxu1  ;;  %v3804_v5 = vadd.f32 %v3803_v62, %v3763_v42 }
 0x288   :  { %v3765_v1 = vpop.f32.mrf.mxu0 }
 0x289   :  { %v3806_v2 = vpop.f32.mrf.mxu1 }
 0x2c2   :  { %v3842_v3 = vpop.f32.mrf.mxu0 }
 0x2c3   :  { %v3883_v4 = vpop.f32.mrf.mxu1  ;;  %v3843_v7 = vadd.f32 %v3842_v3, %v3802_v54 }
 0x2c4   :  { %v3844_v8 = vpop.f32.mrf.mxu0 }
 0x2c5   :  { %v3885_v9 = vpop.f32.mrf.mxu1  ;;  %v3884_v13 = vadd.f32 %v3883_v4, %v3843_v7  ;;  %v3845_v18 = vadd.f32 %v3844_v8, %v3804_v5 }
 0x2c6   :  { %v3846_v10 = vpop.f32.mrf.mxu0 }
 0x2c7   :  { %v3887_v37 = vpop.f32.mrf.mxu1  ;;  %v3886_v39 = vadd.f32 %v3885_v9, %v3845_v18  ;;  %v3892_v12 = vmax.f32 %v3884_v13, 0.0 }
 0x2c8   :  { %v3847_v14 = vpop.f32.mrf.mxu0 }
 0x2c9   :  { %v3888_v49 = vpop.f32.mrf.mxu1  ;;  %v3893_v46 = vmax.f32 %v3886_v39, 0.0  ;;  %v3896_v17 = vpack.c.bf16 %v3892_v12, %v3892_v12 }
 0x2cb   :  { %v3897_v16 = vpack.c.bf16 %v3893_v46, %v3893_v46 }
 0x2cd   :  { %4233 = vmatprep.mubr.bf16.mxu1 %v3897_v16 }
 0x2ce   :  { %4234 = vmatmul.mubr.bf16.vlgmr.msra.gmra.mxu1 %v3896_v17 }
 0x2e2   :  { %v4817_v23 = vpop.f32.mrf.mxu0 }
 0x2e4   :  { %v4818_v19 = vpop.f32.mrf.mxu0 }
 0x2e5   :  { %v4819_v20 = vadd.f32 %v4818_v19, %v4817_v23 }
 0x2e6   :  { %v4820_v21 = vpop.f32.mrf.mxu0 }
 0x2e7   :  { %v4196_v28 = vadd.f32 %v4819_v20, %v4768_v24 }
 0x2e8   :  { %v4821_v22 = vpop.f32.mrf.mxu0 }
 0x38e   :  { %v4839_v25 = vpop.f32.mrf.mxu1 }
 0x390   :  { %v4840_v27 = vpop.f32.mrf.mxu1 }
 0x391   :  { %v4841_v29 = vadd.f32 %v4840_v27, %v4839_v25 }
 0x392   :  { %v4842_v30 = vpop.f32.mrf.mxu1 }
 0x393   :  { %v4236_v31 = vadd.f32 %v4841_v29, %v4196_v28 }
 0x394   :  { %v4843_v26 = vpop.f32.mrf.mxu1 }
 0x395   :  { %4241 = vst [vmem:[#allocation2] sm:$0x3] %v4236_v31 }
 0x396   :  { %5661 = shalt.err (!%p5658_p4)
}
 0x397   :  { %4251 = dma.vmem_to_hbm [thread:$0]  %s4249_s28, 32, %s7507_s5, [#allocation3]  }
 0x398   :  { %5670 = dma.done.wait [#allocation3], 32  }
 0x399   :  { %5671 = vsyncadd [#allocation3], 4294967264 }
 0x39a   :  { %4255 = vsyncpa [#allocation3], 1 }

// kernel: lenet_forward.4
= control target key start
LH: loop header
LB: loop body
LE: loop exit
PB: predicated region body
PF: predicated region fallthrough
CT: control target
= control target key end

     0   :  { %s12014_s1 = inlined_call_operand.vmem [shape: bf16[3200,128], index: 1, kind: input, shape index: {}]   ;;  %s12015_s0 = inlined_call_operand.vmem [shape: bf16[4,32,3200], index: 0, kind: input, shape index: {}]   ;;  %s12016_s2 = inlined_call_operand.vmem [shape: f32[1,128], index: 2, kind: input, shape index: {}]   ;;  %s12017_s3 = inlined_call_operand.vmem [shape: bf16[32,128], index: 3, kind: output, shape index: {}]  }
   0x1   :  { %v7481_v0 = vld [vmem:[%s12014_s1 + $0x78] sm:$0xff]   ;;  %v7485_v4 = vld [vmem:[%s12014_s1 + $0x70] sm:$0xff]   ;;  %v7489_v8 = vld [vmem:[%s12014_s1 + $0x68] sm:$0xff]  }
   0x2   :  { %v7482_v1 = vld [vmem:[%s12014_s1 + $0x38] sm:$0xff]   ;;  %6017 = vmatprep.subr.bf16.mxu0 %v7481_v0  ;;  %v7486_v5 = vld [vmem:[%s12014_s1 + $0x30] sm:$0xff]   ;;  %v7490_v9 = vld [vmem:[%s12014_s1 + $0x28] sm:$0xff]  }
   0x3   :  { %v7483_v2 = vld [vmem:[%s12014_s1 + $0xf8] sm:$0xff]   ;;  %6018 = vmatpush3.bf16.msra.mxu0 %v7482_v1  ;;  %v7487_v6 = vld [vmem:[%s12014_s1 + $0xf0] sm:$0xff]   ;;  %v7491_v10 = vld [vmem:[%s12014_s1 + $0xe8] sm:$0xff]  }
   0x4   :  { %v7484_v3 = vld [vmem:[%s12014_s1 + $0xb8] sm:$0xff]   ;;  %6045 = vmatprep.subr.bf16.mxu1 %v7483_v2  ;;  %6019 = vmatprep.subr.bf16.mxu0 %v7485_v4  ;;  %v7488_v7 = vld [vmem:[%s12014_s1 + $0xb0] sm:$0xff]   ;;  %v7492_v11 = vld [vmem:[%s12014_s1 + $0xa8] sm:$0xff]  }
   0x5   :  { %6046 = vmatpush3.bf16.msra.mxu1 %v7484_v3  ;;  %v7493_v12 = vld [vmem:[%s12014_s1 + $0x60] sm:$0xff]   ;;  %v7497_v16 = vld [vmem:[%s12014_s1 + $0x58] sm:$0xff]   ;;  %v7501_v20 = vld [vmem:[%s12014_s1 + $0x50] sm:$0xff]  }
   0x6   :  { %6047 = vmatprep.subr.bf16.mxu1 %v7487_v6  ;;  %v7494_v13 = vld [vmem:[%s12014_s1 + $0x20] sm:$0xff]   ;;  %v7498_v17 = vld [vmem:[%s12014_s1 + $0x18] sm:$0xff]   ;;  %v7502_v21 = vld [vmem:[%s12014_s1 + $0x10] sm:$0xff]  }
   0x7   :  { %6020 = vmatpush3.bf16.msra.mxu0 %v7486_v5  ;;  %v7495_v14 = vld [vmem:[%s12014_s1 + $0xe0] sm:$0xff]   ;;  %v7499_v18 = vld [vmem:[%s12014_s1 + $0xd8] sm:$0xff]   ;;  %v7503_v22 = vld [vmem:[%s12014_s1 + $0xd0] sm:$0xff]  }
   0x8   :  { %6021 = vmatprep.subr.bf16.mxu0 %v7489_v8  ;;  %v7496_v15 = vld [vmem:[%s12014_s1 + $0xa0] sm:$0xff]   ;;  %v7500_v19 = vld [vmem:[%s12014_s1 + $0x98] sm:$0xff]   ;;  %v7504_v23 = vld [vmem:[%s12014_s1 + $0x90] sm:$0xff]  }
   0x9   :  { %6048 = vmatpush3.bf16.msra.mxu1 %v7488_v7  ;;  %v7505_v24 = vld [vmem:[%s12014_s1 + $0x48] sm:$0xff]   ;;  %v7509_v28 = vld [vmem:[%s12014_s1 + $0x40] sm:$0xff]   ;;  %v7516_v34 = vld [vmem:[%s12014_s1 + $0x178] sm:$0xff]  }
   0xa   :  { %6049 = vmatprep.subr.bf16.mxu1 %v7491_v10  ;;  %v7506_v25 = vld [vmem:[%s12014_s1 + $0x8] sm:$0xff]   ;;  %v7510_v29 = vld [vmem:[%s12014_s1] sm:$0xff]   ;;  %v7520_v37 = vld [vmem:[%s12014_s1 + $0x138] sm:$0xff]  }
   0xb   :  { %6022 = vmatpush3.bf16.msra.mxu0 %v7490_v9  ;;  %v7507_v26 = vld [vmem:[%s12014_s1 + $0xc8] sm:$0xff]   ;;  %v7511_v30 = vld [vmem:[%s12014_s1 + $0xc0] sm:$0xff]   ;;  %v7521_v38 = vld [vmem:[%s12014_s1 + $0x1f8] sm:$0xff]  }
   0xc   :  { %6023 = vmatprep.subr.bf16.mxu0 %v7493_v12  ;;  %v7508_v27 = vld [vmem:[%s12014_s1 + $0x88] sm:$0xff]   ;;  %v7512_v31 = vld [vmem:[%s12015_s0] ss:$100 sps:$4 sm:$0xff]   ;;  %v7522_v39 = vld [vmem:[%s12014_s1 + $0x1b8] sm:$0xff]  }
   0xd   :  { %6050 = vmatpush3.bf16.msra.mxu1 %v7492_v11  ;;  %v7514_v32 = vld [vmem:[%s12015_s0 + $0x4] ss:$100 sps:$4 sm:$0xff]   ;;  %v7519_v36 = vld [vmem:[%s12015_s0 + $0xc] ss:$100 sps:$4 sm:$0xff]   ;;  %v7535_v52 = vld [vmem:[%s12014_s1 + $0x158] sm:$0xff]  }
   0xe   :  { %6051 = vmatprep.subr.bf16.mxu1 %v7495_v14  ;;  %v7515_v33 = vld [vmem:[%s12014_s1 + $0x80] sm:$0xff]   ;;  %1958 = vmatprep.mubr.bf16.mxu0 %v7514_v32  ;;  %v7517_v35 = vld [vmem:[%s12015_s0 + $0x8] ss:$100 sps:$4 sm:$0xff]   ;;  %v7523_v40 = vld [vmem:[%s12014_s1 + $0x170] sm:$0xff]  }
   0xf   :  { %6024 = vmatpush3.bf16.msra.mxu0 %v7494_v13  ;;  %2007 = vmatprep.mubr.bf16.mxu1 %v7519_v36  ;;  %v7524_v41 = vld [vmem:[%s12014_s1 + $0x130] sm:$0xff]   ;;  %v7527_v44 = vld [vmem:[%s12014_s1 + $0x168] sm:$0xff]   ;;  %v7531_v48 = vld [vmem:[%s12014_s1 + $0x160] sm:$0xff]  }
  0x10   :  { %6025 = vmatprep.subr.bf16.mxu0 %v7497_v16  ;;  %v7525_v42 = vld [vmem:[%s12014_s1 + $0x1f0] sm:$0xff]   ;;  %v7528_v45 = vld [vmem:[%s12014_s1 + $0x128] sm:$0xff]   ;;  %v7532_v49 = vld [vmem:[%s12014_s1 + $0x120] sm:$0xff]  }
  0x11   :  { %6052 = vmatpush3.bf16.msra.mxu1 %v7496_v15  ;;  %v7526_v43 = vld [vmem:[%s12014_s1 + $0x1b0] sm:$0xff]   ;;  %v7529_v46 = vld [vmem:[%s12014_s1 + $0x1e8] sm:$0xff]   ;;  %v7533_v50 = vld [vmem:[%s12014_s1 + $0x1e0] sm:$0xff]  }
  0x12   :  { %6053 = vmatprep.subr.bf16.mxu1 %v7499_v18  ;;  %v7530_v47 = vld [vmem:[%s12014_s1 + $0x1a8] sm:$0xff]   ;;  %v7534_v51 = vld [vmem:[%s12014_s1 + $0x1a0] sm:$0xff]   ;;  %v7536_v53 = vld [vmem:[%s12014_s1 + $0x118] sm:$0xff]  }
  0x13   :  { %6026 = vmatpush3.bf16.msra.mxu0 %v7498_v17  ;;  %v7537_v54 = vld [vmem:[%s12015_s0 + $0xcc] ss:$100 sps:$4 sm:$0xff]   ;;  %v7539_v55 = vld [vmem:[%s12014_s1 + $0x1d8] sm:$0xff]   ;;  %v7553_v4 = vld [vmem:[%s12014_s1 + $0x140] sm:$0xff]  }
  0x14   :  { %6027 = vmatprep.subr.bf16.mxu0 %v7501_v20  ;;  %v7540_v56 = vld [vmem:[%s12015_s0 + $0xc8] ss:$100 sps:$4 sm:$0xff]   ;;  %v7541_v57 = vld [vmem:[%s12014_s1 + $0x198] sm:$0xff]   ;;  %v7544_v59 = vld [vmem:[%s12014_s1 + $0x150] sm:$0xff]  }
  0x15   :  { %6054 = vmatpush3.bf16.msra.mxu1 %v7500_v19  ;;  %v7542_v58 = vld [vmem:[%s12015_s0 + $0xd4] ss:$100 sps:$4 sm:$0xff]   ;;  %v7549_v0 = vld [vmem:[%s12014_s1 + $0x148] sm:$0xff]   ;;  %v7554_v5 = vld [vmem:[%s12014_s1 + $0x100] sm:$0xff]  }
  0x16   :  { %6055 = vmatprep.subr.bf16.mxu1 %v7503_v22  ;;  %v7545_v60 = vld [vmem:[%s12015_s0 + $0xd0] ss:$100 sps:$4 sm:$0xff]   ;;  %v7550_v1 = vld [vmem:[%s12014_s1 + $0x108] sm:$0xff]   ;;  %v7555_v6 = vld [vmem:[%s12014_s1 + $0x1c0] sm:$0xff]  }
  0x17   :  { %6028 = vmatpush3.bf16.msra.mxu0 %v7502_v21  ;;  %v7546_v61 = vld [vmem:[%s12014_s1 + $0x110] sm:$0xff]   ;;  %v7551_v2 = vld [vmem:[%s12014_s1 + $0x1c8] sm:$0xff]   ;;  %v7559_v9 = vld [vmem:[%s12014_s1 + $0x180] sm:$0xff]  }
  0x18   :  { %6029 = vmatprep.subr.bf16.mxu0 %v7505_v24  ;;  %v7547_v62 = vld [vmem:[%s12014_s1 + $0x1d0] sm:$0xff]   ;;  %v7552_v3 = vld [vmem:[%s12014_s1 + $0x188] sm:$0xff]   ;;  %v7560_v10 = vld [vmem:[%s12014_s1 + $0x278] sm:$0xff]  }
  0x19   :  { %6056 = vmatpush3.bf16.msra.mxu1 %v7504_v23  ;;  %v7548_v63 = vld [vmem:[%s12014_s1 + $0x190] sm:$0xff]   ;;  %v7561_v11 = vld [vmem:[%s12015_s0 + $0x18] ss:$100 sps:$4 sm:$0xff]   ;;  %v7574_v22 = vld [vmem:[%s12014_s1 + $0x268] sm:$0xff]  }
  0x1a   :  { %6057 = vmatprep.subr.bf16.mxu1 %v7507_v26  ;;  %v7556_v7 = vld [vmem:[%s12015_s0 + $0x10] ss:$100 sps:$4 sm:$0xff]   ;;  %v7563_v12 = vld [vmem:[%s12015_s0 + $0x1c] ss:$100 sps:$4 sm:$0xff]   ;;  %v7575_v23 = vld [vmem:[%s12015_s0 + $0xe4] ss:$100 sps:$4 sm:$0xff]  }
  0x1b   :  { %6030 = vmatpush3.bf16.msra.mxu0 %v7506_v25  ;;  %v7558_v8 = vld [vmem:[%s12015_s0 + $0x14] ss:$100 sps:$4 sm:$0xff]   ;;  %v7570_v19 = vld [vmem:[%s12015_s0 + $0xdc] ss:$100 sps:$4 sm:$0xff]   ;;  %v7577_v24 = vld [vmem:[%s12014_s1 + $0x228] sm:$0xff]  }
  0x1c   :  { %6031 = vmatprep.subr.bf16.mxu0 %v7509_v28  ;;  %v7564_v13 = vld [vmem:[%s12014_s1 + $0x238] sm:$0xff]   ;;  %v7567_v16 = vld [vmem:[%s12014_s1 + $0x270] sm:$0xff]   ;;  %v7578_v25 = vld [vmem:[%s12015_s0 + $0xe0] ss:$100 sps:$4 sm:$0xff]  }
  0x1d   :  { %6058 = vmatpush3.bf16.msra.mxu1 %v7508_v27  ;;  %v7565_v14 = vld [vmem:[%s12014_s1 + $0x2f8] sm:$0xff]   ;;  %v7568_v17 = vld [vmem:[%s12014_s1 + $0x230] sm:$0xff]   ;;  %v7579_v26 = vld [vmem:[%s12014_s1 + $0x2e8] sm:$0xff]  }
  0x1e   :  { %6059 = vmatprep.subr.bf16.mxu1 %v7511_v30  ;;  %v7566_v15 = vld [vmem:[%s12014_s1 + $0x2b8] sm:$0xff]   ;;  %v7569_v18 = vld [vmem:[%s12014_s1 + $0x2f0] sm:$0xff]   ;;  %v7580_v27 = vld [vmem:[%s12014_s1 + $0x2a8] sm:$0xff]  }
  0x1f   :  { %6032 = vmatpush3.bf16.msra.mxu0 %v7510_v29  ;;  %v7572_v20 = vld [vmem:[%s12014_s1 + $0x2b0] sm:$0xff]   ;;  %v7573_v21 = vld [vmem:[%s12015_s0 + $0xd8] ss:$100 sps:$4 sm:$0xff]   ;;  %v7581_v28 = vld [vmem:[%s12014_s1 + $0x260] sm:$0xff]  }
  0x20   :  { %6073 = vmatprep.subr.bf16.mxu0 %v7516_v34  ;;  %v7582_v29 = vld [vmem:[%s12014_s1 + $0x220] sm:$0xff]   ;;  %v7585_v32 = vld [vmem:[%s12014_s1 + $0x258] sm:$0xff]   ;;  %v7589_v36 = vld [vmem:[%s12014_s1 + $0x250] sm:$0xff]  }
  0x21   :  { %6060 = vmatpush3.bf16.msra.mxu1 %v7515_v33  ;;  %v7583_v30 = vld [vmem:[%s12014_s1 + $0x2e0] sm:$0xff]   ;;  %v7586_v33 = vld [vmem:[%s12014_s1 + $0x218] sm:$0xff]  }
  0x22   :  { %1959 = vmatmul.mubr.bf16.vlgmr.msra.gmra.mxu0 %v7512_v31  ;;  %6101 = vmatprep.subr.bf16.mxu1 %v7521_v38  ;;  %v7584_v31 = vld [vmem:[%s12014_s1 + $0x2a0] sm:$0xff]   ;;  %v7587_v34 = vld [vmem:[%s12014_s1 + $0x2d8] sm:$0xff]   ;;  %v7591_v38 = vld [vmem:[%s12014_s1 + $0x2d0] sm:$0xff]  }
  0x23   :  { %6074 = vmatpush3.bf16.msra.mxu0 %v7520_v37  ;;  %1966 = vmatprep.mubr.bf16.mxu0 %v7537_v54  ;;  %v7590_v37 = vld [vmem:[%s12014_s1 + $0x210] sm:$0xff]   ;;  %v7609_v54 = vld [vmem:[%s12014_s1 + $0x3f8] sm:$0xff]  }
  0x24   :  { %2008 = vmatmul.mubr.bf16.vlgmr.msra.gmra.mxu1 %v7517_v35  ;;  %6075 = vmatprep.subr.bf16.mxu0 %v7523_v40  ;;  %v7588_v35 = vld [vmem:[%s12014_s1 + $0x298] sm:$0xff]   ;;  %v7593_v40 = vld [vmem:[%s12014_s1 + $0x248] sm:$0xff]  }
  0x25   :  { %6102 = vmatpush3.bf16.msra.mxu1 %v7522_v39  ;;  %2015 = vmatprep.mubr.bf16.mxu1 %v7542_v58  ;;  %v7592_v39 = vld [vmem:[%s12014_s1 + $0x290] sm:$0xff]  }
  0x26   :  { %6103 = vmatprep.subr.bf16.mxu1 %v7525_v42  ;;  %v7595_v42 = vld [vmem:[%s12014_s1 + $0x2c8] sm:$0xff]   ;;  %v7613_v58 = vld [vmem:[%s12014_s1 + $0x3f0] sm:$0xff]  }
  0x27   :  { %6076 = vmatpush3.bf16.msra.mxu0 %v7524_v41  ;;  %v7594_v41 = vld [vmem:[%s12014_s1 + $0x208] sm:$0xff]  }
  0x28   :  { %6077 = vmatprep.subr.bf16.mxu0 %v7527_v44  ;;  %v7597_v44 = vld [vmem:[%s12014_s1 + $0x240] sm:$0xff]  }
  0x29   :  { %6104 = vmatpush3.bf16.msra.mxu1 %v7526_v43  ;;  %v7596_v43 = vld [vmem:[%s12014_s1 + $0x288] sm:$0xff]  }
  0x2a   :  { %6105 = vmatprep.subr.bf16.mxu1 %v7529_v46  ;;  %1967 = vmatmul.mubr.bf16.gmra.mxu0 %v7540_v56  ;;  %v7599_v46 = vld [vmem:[%s12014_s1 + $0x2c0] sm:$0xff]   ;;  %v7611_v56 = vld [vmem:[%s12014_s1 + $0x370] sm:$0xff]  }
  0x2b   :  { %6078 = vmatpush3.bf16.msra.mxu0 %v7528_v45  ;;  %2056 = vmatprep.mubr.bf16.mxu0 %v7558_v8  ;;  %v7598_v45 = vld [vmem:[%s12014_s1 + $0x200] sm:$0xff]   ;;  %v7629_v8 = vld [vmem:[%s12014_s1 + $0x358] sm:$0xff]  }
  0x2c   :  { %6079 = vmatprep.subr.bf16.mxu0 %v7531_v48  ;;  %2016 = vmatmul.mubr.bf16.gmra.mxu1 %v7545_v60  ;;  %v7602_v48 = vld [vmem:[%s12015_s0 + $0x24] ss:$100 sps:$4 sm:$0xff]   ;;  %v7616_v60 = vld [vmem:[%s12014_s1 + $0x3b0] sm:$0xff]  }
  0x2d   :  { %6106 = vmatpush3.bf16.msra.mxu1 %v7530_v47  ;;  %2105 = vmatprep.mubr.bf16.mxu1 %v7563_v12  ;;  %v7600_v47 = vld [vmem:[%s12015_s0 + $0x20] ss:$100 sps:$4 sm:$0xff]   ;;  %v7633_v12 = vld [vmem:[%s12014_s1 + $0x350] sm:$0xff]  }
  0x2e   :  { %6107 = vmatprep.subr.bf16.mxu1 %v7533_v50  ;;  %v7604_v50 = vld [vmem:[%s12014_s1 + $0x378] sm:$0xff]  }
  0x2f   :  { %6080 = vmatpush3.bf16.msra.mxu0 %v7532_v49  ;;  %v7603_v49 = vld [vmem:[%s12014_s1 + $0x280] sm:$0xff]  }
  0x30   :  { %6081 = vmatprep.subr.bf16.mxu0 %v7535_v52  ;;  %v7607_v52 = vld [vmem:[%s12015_s0 + $0x2c] ss:$100 sps:$4 sm:$0xff]  }
  0x31   :  { %6108 = vmatpush3.bf16.msra.mxu1 %v7534_v51  ;;  %v7605_v51 = vld [vmem:[%s12015_s0 + $0x28] ss:$100 sps:$4 sm:$0xff]  }
  0x32   :  { %6109 = vmatprep.subr.bf16.mxu1 %v7539_v55  ;;  %v7610_v55 = vld [vmem:[%s12014_s1 + $0x3b8] sm:$0xff]  }
  0x33   :  { %6082 = vmatpush3.bf16.msra.mxu0 %v7536_v53  ;;  %v7608_v53 = vld [vmem:[%s12014_s1 + $0x338] sm:$0xff]  }
  0x34   :  { %6083 = vmatprep.subr.bf16.mxu0 %v7544_v59  ;;  %v7614_v59 = vld [vmem:[%s12015_s0 + $0xec] ss:$100 sps:$4 sm:$0xff]  }
  0x35   :  { %6110 = vmatpush3.bf16.msra.mxu1 %v7541_v57  ;;  %v7612_v57 = vld [vmem:[%s12014_s1 + $0x330] sm:$0xff]  }
  0x36   :  { %6111 = vmatprep.subr.bf16.mxu1 %v7547_v62  ;;  %v7618_v62 = vld [vmem:[%s12014_s1 + $0x368] sm:$0xff]  }
  0x37   :  { %6084 = vmatpush3.bf16.msra.mxu0 %v7546_v61  ;;  %v7617_v61 = vld [vmem:[%s12015_s0 + $0xe8] ss:$100 sps:$4 sm:$0xff]  }
  0x38   :  { %6085 = vmatprep.subr.bf16.mxu0 %v7549_v0  ;;  %v7621_v0 = vld [vmem:[%s12014_s1 + $0x328] sm:$0xff]  }
  0x39   :  { %6112 = vmatpush3.bf16.msra.mxu1 %v7548_v63  ;;  %v7619_v63 = vld [vmem:[%s12015_s0 + $0xf4] ss:$100 sps:$4 sm:$0xff]  }
  0x3a   :  { %6113 = vmatprep.subr.bf16.mxu1 %v7551_v2  ;;  %v7623_v2 = vld [vmem:[%s12014_s1 + $0x3e8] sm:$0xff]  }
  0x3b   :  { %6086 = vmatpush3.bf16.msra.mxu0 %v7550_v1  ;;  %v7622_v1 = vld [vmem:[%s12015_s0 + $0xf0] ss:$100 sps:$4 sm:$0xff]  }
  0x3c   :  { %6087 = vmatprep.subr.bf16.mxu0 %v7553_v4  ;;  %v7625_v4 = vld [vmem:[%s12014_s1 + $0x360] sm:$0xff]  }
  0x3d   :  { %6114 = vmatpush3.bf16.msra.mxu1 %v7552_v3  ;;  %v7624_v3 = vld [vmem:[%s12014_s1 + $0x3a8] sm:$0xff]  }
  0x3e   :  { %6115 = vmatprep.subr.bf16.mxu1 %v7555_v6  ;;  %v7627_v6 = vld [vmem:[%s12014_s1 + $0x3e0] sm:$0xff]  }
  0x3f   :  { %6088 = vmatpush3.bf16.msra.mxu0 %v7554_v5  ;;  %v7626_v5 = vld [vmem:[%s12014_s1 + $0x320] sm:$0xff]  }
  0x40   :  { %6129 = vmatprep.subr.bf16.mxu0 %v7560_v10  ;;  %v7631_v10 = vld [vmem:[%s12014_s1 + $0x3d8] sm:$0xff]  }
  0x41   :  { %6116 = vmatpush3.bf16.msra.mxu1 %v7559_v9  ;;  %v7630_v9 = vld [vmem:[%s12014_s1 + $0x318] sm:$0xff]  }
  0x42   :  { %2057 = vmatmul.mubr.bf16.vlgmr.msra.gmra.mxu0 %v7556_v7  ;;  %6157 = vmatprep.subr.bf16.mxu1 %v7565_v14  ;;  %v7628_v7 = vld [vmem:[%s12014_s1 + $0x3a0] sm:$0xff]   ;;  %v7635_v14 = vld [vmem:[%s12014_s1 + $0x3d0] sm:$0xff]  }
  0x43   :  { %6130 = vmatpush3.bf16.msra.mxu0 %v7564_v13  ;;  %2064 = vmatprep.mubr.bf16.mxu0 %v7570_v19  ;;  %v7634_v13 = vld [vmem:[%s12014_s1 + $0x310] sm:$0xff]   ;;  %v7640_v19 = vld [vmem:[%s12014_s1 + $0x388] sm:$0xff]  }
  0x44   :  { %2106 = vmatmul.mubr.bf16.vlgmr.msra.gmra.mxu1 %v7561_v11  ;;  %6131 = vmatprep.subr.bf16.mxu0 %v7567_v16  ;;  %v7632_v11 = vld [vmem:[%s12014_s1 + $0x398] sm:$0xff]   ;;  %v7637_v16 = vld [vmem:[%s12014_s1 + $0x348] sm:$0xff]  }
  0x45   :  { %6158 = vmatpush3.bf16.msra.mxu1 %v7566_v15  ;;  %2113 = vmatprep.mubr.bf16.mxu1 %v7575_v23  ;;  %v7636_v15 = vld [vmem:[%s12014_s1 + $0x390] sm:$0xff]  }
  0x46   :  { %6159 = vmatprep.subr.bf16.mxu1 %v7569_v18  ;;  %v7639_v18 = vld [vmem:[%s12014_s1 + $0x3c8] sm:$0xff]   ;;  %v7644_v23 = vld [vmem:[%s12015_s0 + $0x30] ss:$100 sps:$4 sm:$0xff]  }
  0x47   :  { %6132 = vmatpush3.bf16.msra.mxu0 %v7568_v17  ;;  %v7638_v17 = vld [vmem:[%s12014_s1 + $0x308] sm:$0xff]  }
  0x48   :  { %6133 = vmatprep.subr.bf16.mxu0 %v7574_v22  ;;  %v7643_v22 = vld [vmem:[%s12014_s1 + $0x3c0] sm:$0xff]  }
  0x49   :  { %6160 = vmatpush3.bf16.msra.mxu1 %v7572_v20  ;;  %v7641_v20 = vld [vmem:[%s12014_s1 + $0x340] sm:$0xff]  }
  0x4a   :  { %2065 = vmatmul.mubr.bf16.gmra.mxu0 %v7573_v21  ;;  %6161 = vmatprep.subr.bf16.mxu1 %v7579_v26  ;;  %v7642_v21 = vld [vmem:[%s12014_s1 + $0x300] sm:$0xff]   ;;  %v7648_v26 = vld [vmem:[%s12014_s1 + $0x478] sm:$0xff]  }
  0x4b   :  { %6134 = vmatpush3.bf16.msra.mxu0 %v7577_v24  ;;  %2154 = vmatprep.mubr.bf16.mxu0 %v7602_v48  ;;  %v7646_v24 = vld [vmem:[%s12015_s0 + $0x34] ss:$100 sps:$4 sm:$0xff]  }
  0x4c   :  { %2114 = vmatmul.mubr.bf16.gmra.mxu1 %v7578_v25  ;;  %6135 = vmatprep.subr.bf16.mxu0 %v7581_v28  ;;  %v7647_v25 = vld [vmem:[%s12014_s1 + $0x380] sm:$0xff]   ;;  %v7673_v48 = vld [vmem:[%s12014_s1 + $0x458] sm:$0xff]  }
  0x4d   :  { %6162 = vmatpush3.bf16.msra.mxu1 %v7580_v27  ;;  %2203 = vmatprep.mubr.bf16.mxu1 %v7607_v52  ;;  %v7649_v27 = vld [vmem:[%s12015_s0 + $0x38] ss:$100 sps:$4 sm:$0xff]   ;;  %v7677_v52 = vld [vmem:[%s12014_s1 + $0x450] sm:$0xff]  }
  0x4e   :  { %6163 = vmatprep.subr.bf16.mxu1 %v7583_v30  ;;  %v7651_v28 = vld [vmem:[%s12015_s0 + $0x3c] ss:$100 sps:$4 sm:$0xff]  }
  0x4f   :  { %6136 = vmatpush3.bf16.msra.mxu0 %v7582_v29  ;;  %v7652_v29 = vld [vmem:[%s12014_s1 + $0x438] sm:$0xff]  }
  0x50   :  { %6137 = vmatprep.subr.bf16.mxu0 %v7585_v32  ;;  %v7653_v30 = vld [vmem:[%s12014_s1 + $0x4f8] sm:$0xff]   ;;  %v7655_v32 = vld [vmem:[%s12014_s1 + $0x470] sm:$0xff]  }
  0x51   :  { %6164 = vmatpush3.bf16.msra.mxu1 %v7584_v31  ;;  %v7654_v31 = vld [vmem:[%s12014_s1 + $0x4b8] sm:$0xff]  }
  0x52   :  { %6165 = vmatprep.subr.bf16.mxu1 %v7587_v34  ;;  %v7657_v34 = vld [vmem:[%s12014_s1 + $0x4f0] sm:$0xff]  }
  0x53   :  { %6138 = vmatpush3.bf16.msra.mxu0 %v7586_v33  ;;  %v7656_v33 = vld [vmem:[%s12014_s1 + $0x430] sm:$0xff]  }
  0x54   :  { %6139 = vmatprep.subr.bf16.mxu0 %v7589_v36  ;;  %v7660_v36 = vld [vmem:[%s12014_s1 + $0x4b0] sm:$0xff]  }
  0x55   :  { %6166 = vmatpush3.bf16.msra.mxu1 %v7588_v35  ;;  %v7658_v35 = vld [vmem:[%s12015_s0 + $0xfc] ss:$100 sps:$4 sm:$0xff]  }
  0x56   :  { %6167 = vmatprep.subr.bf16.mxu1 %v7591_v38  ;;  %v7662_v38 = vld [vmem:[%s12014_s1 + $0x468] sm:$0xff]  }
  0x57   :  { %6140 = vmatpush3.bf16.msra.mxu0 %v7590_v37  ;;  %v7661_v37 = vld [vmem:[%s12015_s0 + $0xf8] ss:$100 sps:$4 sm:$0xff]  }
  0x58   :  { %6141 = vmatprep.subr.bf16.mxu0 %v7593_v40  ;;  %v7665_v40 = vld [vmem:[%s12014_s1 + $0x428] sm:$0xff]  }
  0x59   :  { %6168 = vmatpush3.bf16.msra.mxu1 %v7592_v39  ;;  %v7663_v39 = vld [vmem:[%s12015_s0 + $0x104] ss:$100 sps:$4 sm:$0xff]  }
  0x5a   :  { %6169 = vmatprep.subr.bf16.mxu1 %v7595_v42  ;;  %v7667_v42 = vld [vmem:[%s12014_s1 + $0x4e8] sm:$0xff]  }
  0x5b   :  { %6142 = vmatpush3.bf16.msra.mxu0 %v7594_v41  ;;  %v7666_v41 = vld [vmem:[%s12015_s0 + $0x100] ss:$100 sps:$4 sm:$0xff]  }
  0x5c   :  { %6143 = vmatprep.subr.bf16.mxu0 %v7597_v44  ;;  %v7669_v44 = vld [vmem:[%s12014_s1 + $0x460] sm:$0xff]  }
  0x5d   :  { %6170 = vmatpush3.bf16.msra.mxu1 %v7596_v43  ;;  %v7668_v43 = vld [vmem:[%s12014_s1 + $0x4a8] sm:$0xff]  }
  0x5e   :  { %6171 = vmatprep.subr.bf16.mxu1 %v7599_v46  ;;  %v7671_v46 = vld [vmem:[%s12014_s1 + $0x4e0] sm:$0xff]  }
  0x5f   :  { %6144 = vmatpush3.bf16.msra.mxu0 %v7598_v45  ;;  %v7670_v45 = vld [vmem:[%s12014_s1 + $0x420] sm:$0xff]  }
  0x60   :  { %6185 = vmatprep.subr.bf16.mxu0 %v7604_v50  ;;  %v7675_v50 = vld [vmem:[%s12014_s1 + $0x4d8] sm:$0xff]  }
  0x61   :  { %6172 = vmatpush3.bf16.msra.mxu1 %v7603_v49  ;;  %v7674_v49 = vld [vmem:[%s12014_s1 + $0x418] sm:$0xff]  }
  0x62   :  { %2155 = vmatmul.mubr.bf16.vlgmr.msra.gmra.mxu0 %v7600_v47  ;;  %6213 = vmatprep.subr.bf16.mxu1 %v7609_v54  ;;  %v7672_v47 = vld [vmem:[%s12014_s1 + $0x4a0] sm:$0xff]   ;;  %v7679_v54 = vld [vmem:[%s12014_s1 + $0x4d0] sm:$0xff]  }
  0x63   :  { %6186 = vmatpush3.bf16.msra.mxu0 %v7608_v53  ;;  %2162 = vmatprep.mubr.bf16.mxu0 %v7614_v59  ;;  %v7678_v53 = vld [vmem:[%s12014_s1 + $0x410] sm:$0xff]   ;;  %v7684_v59 = vld [vmem:[%s12014_s1 + $0x488] sm:$0xff]  }
  0x64   :  { %2204 = vmatmul.mubr.bf16.vlgmr.msra.gmra.mxu1 %v7605_v51  ;;  %6187 = vmatprep.subr.bf16.mxu0 %v7611_v56  ;;  %v7676_v51 = vld [vmem:[%s12014_s1 + $0x498] sm:$0xff]   ;;  %v7681_v56 = vld [vmem:[%s12014_s1 + $0x448] sm:$0xff]  }
  0x65   :  { %6214 = vmatpush3.bf16.msra.mxu1 %v7610_v55  ;;  %2211 = vmatprep.mubr.bf16.mxu1 %v7619_v63  ;;  %v7680_v55 = vld [vmem:[%s12014_s1 + $0x490] sm:$0xff]   ;;  %v7688_v63 = vld [vmem:[%s12015_s0 + $0x40] ss:$100 sps:$4 sm:$0xff]  }
  0x66   :  { %6215 = vmatprep.subr.bf16.mxu1 %v7613_v58  ;;  %v7683_v58 = vld [vmem:[%s12014_s1 + $0x4c8] sm:$0xff]  }
  0x67   :  { %6188 = vmatpush3.bf16.msra.mxu0 %v7612_v57  ;;  %v7682_v57 = vld [vmem:[%s12014_s1 + $0x408] sm:$0xff]  }
  0x68   :  { %6189 = vmatprep.subr.bf16.mxu0 %v7618_v62  ;;  %v7687_v62 = vld [vmem:[%s12014_s1 + $0x4c0] sm:$0xff]  }
  0x69   :  { %6216 = vmatpush3.bf16.msra.mxu1 %v7616_v60  ;;  %v7685_v60 = vld [vmem:[%s12014_s1 + $0x440] sm:$0xff]  }
  0x6a   :  { %2163 = vmatmul.mubr.bf16.gmra.mxu0 %v7617_v61  ;;  %6217 = vmatprep.subr.bf16.mxu1 %v7623_v2  ;;  %v7686_v61 = vld [vmem:[%s12014_s1 + $0x400] sm:$0xff]   ;;  %v7692_v2 = vld [vmem:[%s12014_s1 + $0x578] sm:$0xff]  }
  0x6b   :  { %6190 = vmatpush3.bf16.msra.mxu0 %v7621_v0  ;;  %2252 = vmatprep.mubr.bf16.mxu0 %v7646_v24  ;;  %v7690_v0 = vld [vmem:[%s12015_s0 + $0x44] ss:$100 sps:$4 sm:$0xff]   ;;  %v7717_v24 = vld [vmem:[%s12014_s1 + $0x558] sm:$0xff]  }
  0x6c   :  { %2212 = vmatmul.mubr.bf16.gmra.mxu1 %v7622_v1  ;;  %6191 = vmatprep.subr.bf16.mxu0 %v7625_v4  ;;  %v7691_v1 = vld [vmem:[%s12014_s1 + $0x480] sm:$0xff]   ;;  %v7695_v4 = vld [vmem:[%s12015_s0 + $0x4c] ss:$100 sps:$4 sm:$0xff]  }
  0x6d   :  { %6218 = vmatpush3.bf16.msra.mxu1 %v7624_v3  ;;  %2301 = vmatprep.mubr.bf16.mxu1 %v7651_v28  ;;  %v7693_v3 = vld [vmem:[%s12015_s0 + $0x48] ss:$100 sps:$4 sm:$0xff]   ;;  %v7721_v28 = vld [vmem:[%s12014_s1 + $0x550] sm:$0xff]  }
  0x6e   :  { %6219 = vmatprep.subr.bf16.mxu1 %v7627_v6  ;;  %v7697_v6 = vld [vmem:[%s12014_s1 + $0x5f8] sm:$0xff]  }
  0x6f   :  { %6192 = vmatpush3.bf16.msra.mxu0 %v7626_v5  ;;  %v7696_v5 = vld [vmem:[%s12014_s1 + $0x538] sm:$0xff]  }
  0x70   :  { %6193 = vmatprep.subr.bf16.mxu0 %v7629_v8  ;;  %v7699_v8 = vld [vmem:[%s12014_s1 + $0x570] sm:$0xff]  }
  0x71   :  { %6220 = vmatpush3.bf16.msra.mxu1 %v7628_v7  ;;  %v7698_v7 = vld [vmem:[%s12014_s1 + $0x5b8] sm:$0xff]  }
  0x72   :  { %6221 = vmatprep.subr.bf16.mxu1 %v7631_v10  ;;  %v7701_v10 = vld [vmem:[%s12014_s1 + $0x5f0] sm:$0xff]  }
  0x73   :  { %6194 = vmatpush3.bf16.msra.mxu0 %v7630_v9  ;;  %v7700_v9 = vld [vmem:[%s12014_s1 + $0x530] sm:$0xff]  }
  0x74   :  { %6195 = vmatprep.subr.bf16.mxu0 %v7633_v12  ;;  %v7704_v12 = vld [vmem:[%s12014_s1 + $0x5b0] sm:$0xff]  }
  0x75   :  { %6222 = vmatpush3.bf16.msra.mxu1 %v7632_v11  ;;  %v7702_v11 = vld [vmem:[%s12015_s0 + $0x10c] ss:$100 sps:$4 sm:$0xff]  }
  0x76   :  { %6223 = vmatprep.subr.bf16.mxu1 %v7635_v14  ;;  %v7706_v14 = vld [vmem:[%s12014_s1 + $0x568] sm:$0xff]  }
  0x77   :  { %6196 = vmatpush3.bf16.msra.mxu0 %v7634_v13  ;;  %v7705_v13 = vld [vmem:[%s12015_s0 + $0x108] ss:$100 sps:$4 sm:$0xff]  }
  0x78   :  { %6197 = vmatprep.subr.bf16.mxu0 %v7637_v16  ;;  %v7709_v16 = vld [vmem:[%s12014_s1 + $0x528] sm:$0xff]  }
  0x79   :  { %6224 = vmatpush3.bf16.msra.mxu1 %v7636_v15  ;;  %v7707_v15 = vld [vmem:[%s12015_s0 + $0x114] ss:$100 sps:$4 sm:$0xff]  }
  0x7a   :  { %6225 = vmatprep.subr.bf16.mxu1 %v7639_v18  ;;  %v7711_v18 = vld [vmem:[%s12014_s1 + $0x5e8] sm:$0xff]  }
  0x7b   :  { %6198 = vmatpush3.bf16.msra.mxu0 %v7638_v17  ;;  %v7710_v17 = vld [vmem:[%s12015_s0 + $0x110] ss:$100 sps:$4 sm:$0xff]  }
  0x7c   :  { %6199 = vmatprep.subr.bf16.mxu0 %v7641_v20  ;;  %v7713_v20 = vld [vmem:[%s12014_s1 + $0x560] sm:$0xff]  }
  0x7d   :  { %6226 = vmatpush3.bf16.msra.mxu1 %v7640_v19  ;;  %v7712_v19 = vld [vmem:[%s12014_s1 + $0x5a8] sm:$0xff]  }
  0x7e   :  { %6227 = vmatprep.subr.bf16.mxu1 %v7643_v22  ;;  %v7715_v22 = vld [vmem:[%s12014_s1 + $0x5e0] sm:$0xff]  }
  0x7f   :  { %6200 = vmatpush3.bf16.msra.mxu0 %v7642_v21  ;;  %v7714_v21 = vld [vmem:[%s12014_s1 + $0x520] sm:$0xff]  }
  0x80   :  { %6241 = vmatprep.subr.bf16.mxu0 %v7648_v26  ;;  %v7719_v26 = vld [vmem:[%s12014_s1 + $0x5d8] sm:$0xff]  }
  0x81   :  { %6228 = vmatpush3.bf16.msra.mxu1 %v7647_v25  ;;  %v7718_v25 = vld [vmem:[%s12014_s1 + $0x518] sm:$0xff]  }
  0x82   :  { %2253 = vmatmul.mubr.bf16.vlgmr.msra.gmra.mxu0 %v7644_v23  ;;  %6269 = vmatprep.subr.bf16.mxu1 %v7653_v30  ;;  %v7716_v23 = vld [vmem:[%s12014_s1 + $0x5a0] sm:$0xff]   ;;  %v7723_v30 = vld [vmem:[%s12014_s1 + $0x5d0] sm:$0xff]  }
  0x83   :  { %6242 = vmatpush3.bf16.msra.mxu0 %v7652_v29  ;;  %2260 = vmatprep.mubr.bf16.mxu0 %v7658_v35  ;;  %v7722_v29 = vld [vmem:[%s12014_s1 + $0x510] sm:$0xff]   ;;  %v7728_v35 = vld [vmem:[%s12014_s1 + $0x588] sm:$0xff]  }
  0x84   :  { %2302 = vmatmul.mubr.bf16.vlgmr.msra.gmra.mxu1 %v7649_v27  ;;  %6243 = vmatprep.subr.bf16.mxu0 %v7655_v32  ;;  %v7720_v27 = vld [vmem:[%s12014_s1 + $0x598] sm:$0xff]   ;;  %v7725_v32 = vld [vmem:[%s12014_s1 + $0x548] sm:$0xff]  }
  0x85   :  { %6270 = vmatpush3.bf16.msra.mxu1 %v7654_v31  ;;  %2309 = vmatprep.mubr.bf16.mxu1 %v7663_v39  ;;  %v7724_v31 = vld [vmem:[%s12014_s1 + $0x590] sm:$0xff]  }
  0x86   :  { %6271 = vmatprep.subr.bf16.mxu1 %v7657_v34  ;;  %v7727_v34 = vld [vmem:[%s12014_s1 + $0x5c8] sm:$0xff]   ;;  %v7732_v39 = vld [vmem:[%s12015_s0 + $0x50] ss:$100 sps:$4 sm:$0xff]  }
  0x87   :  { %6244 = vmatpush3.bf16.msra.mxu0 %v7656_v33  ;;  %v7726_v33 = vld [vmem:[%s12014_s1 + $0x508] sm:$0xff]  }
  0x88   :  { %6245 = vmatprep.subr.bf16.mxu0 %v7662_v38  ;;  %v7731_v38 = vld [vmem:[%s12014_s1 + $0x5c0] sm:$0xff]  }
  0x89   :  { %6272 = vmatpush3.bf16.msra.mxu1 %v7660_v36  ;;  %v7729_v36 = vld [vmem:[%s12014_s1 + $0x540] sm:$0xff]  }
  0x8a   :  { %2261 = vmatmul.mubr.bf16.gmra.mxu0 %v7661_v37  ;;  %6273 = vmatprep.subr.bf16.mxu1 %v7667_v42  ;;  %v7730_v37 = vld [vmem:[%s12014_s1 + $0x500] sm:$0xff]   ;;  %v7736_v42 = vld [vmem:[%s12014_s1 + $0x638] sm:$0xff]  }
  0x8b   :  { %6246 = vmatpush3.bf16.msra.mxu0 %v7665_v40  ;;  %2350 = vmatprep.mubr.bf16.mxu0 %v7690_v0  ;;  %v7734_v40 = vld [vmem:[%s12015_s0 + $0x54] ss:$100 sps:$4 sm:$0xff]  }
  0x8c   :  { %2310 = vmatmul.mubr.bf16.gmra.mxu1 %v7666_v41  ;;  %6247 = vmatprep.subr.bf16.mxu0 %v7669_v44  ;;  %v7735_v41 = vld [vmem:[%s12014_s1 + $0x580] sm:$0xff]  }
  0x8d   :  { %6274 = vmatpush3.bf16.msra.mxu1 %v7668_v43  ;;  %2399 = vmatprep.mubr.bf16.mxu1 %v7695_v4  ;;  %v7737_v43 = vld [vmem:[%s12015_s0 + $0x58] ss:$100 sps:$4 sm:$0xff]   ;;  %v9172_v4 = vld [vmem:[%s12016_s2] ss:$0 sm:$0xff] }
  0x8e   :  { %6275 = vmatprep.subr.bf16.mxu1 %v7671_v46  ;;  %v7739_v44 = vld [vmem:[%s12015_s0 + $0x5c] ss:$100 sps:$4 sm:$0xff]   ;;  %v7740_v46 = vld [vmem:[%s12014_s1 + $0x630] sm:$0xff]  }
  0x8f   :  { %6248 = vmatpush3.bf16.msra.mxu0 %v7670_v45  ;;  %v7977_v45 = vld [vmem:[%s12014_s1 + $0x78] sm:$0xff]  }
  0x90   :  { %6249 = vmatprep.subr.bf16.mxu0 %v7673_v48  ;;  %v7743_v48 = vld [vmem:[%s12015_s0 + $0x118] ss:$100 sps:$4 sm:$0xff]  }
  0x91   :  { %6276 = vmatpush3.bf16.msra.mxu1 %v7672_v47  ;;  %v7741_v47 = vld [vmem:[%s12015_s0 + $0x11c] ss:$100 sps:$4 sm:$0xff]  }
  0x92   :  { %6277 = vmatprep.subr.bf16.mxu1 %v7675_v50  ;;  %v7978_v50 = vld [vmem:[%s12014_s1 + $0x38] sm:$0xff]  }
  0x93   :  { %6250 = vmatpush3.bf16.msra.mxu0 %v7674_v49  ;;  %v7744_v49 = vld [vmem:[%s12014_s1 + $0x628] sm:$0xff]  }
  0x94   :  { %6251 = vmatprep.subr.bf16.mxu0 %v7677_v52  ;;  %v7979_v52 = vld [vmem:[%s12014_s1 + $0x70] sm:$0xff]  }
  0x95   :  { %6278 = vmatpush3.bf16.msra.mxu1 %v7676_v51  ;;  %v7745_v51 = vld [vmem:[%s12015_s0 + $0x124] ss:$100 sps:$4 sm:$0xff]  }
  0x96   :  { %6279 = vmatprep.subr.bf16.mxu1 %v7679_v54  ;;  %v7748_v54 = vld [vmem:[%s12014_s1 + $0x620] sm:$0xff]  }
  0x97   :  { %6252 = vmatpush3.bf16.msra.mxu0 %v7678_v53 }
  0x98   :  { %6253 = vmatprep.subr.bf16.mxu0 %v7681_v56 }
  0x99   :  { %6280 = vmatpush3.bf16.msra.mxu1 %v7680_v55  ;;  %v7747_v55 = vld [vmem:[%s12015_s0 + $0x120] ss:$100 sps:$4 sm:$0xff]  }
  0x9a   :  { %6281 = vmatprep.subr.bf16.mxu1 %v7683_v58 }
  0x9b   :  { %6254 = vmatpush3.bf16.msra.mxu0 %v7682_v57  ;;  %v7980_v57 = vld [vmem:[%s12014_s1 + $0x30] sm:$0xff]  }
  0x9c   :  { %6255 = vmatprep.subr.bf16.mxu0 %v7685_v60  ;;  %v7981_v60 = vld [vmem:[%s12014_s1 + $0x68] sm:$0xff]  }
  0x9d   :  { %6282 = vmatpush3.bf16.msra.mxu1 %v7684_v59 }
  0x9e   :  { %6283 = vmatprep.subr.bf16.mxu1 %v7687_v62 }
  0x9f   :  { %6256 = vmatpush3.bf16.msra.mxu0 %v7686_v61  ;;  %v7749_v61 = vld [vmem:[%s12014_s1 + $0x618] sm:$0xff]  }
  0xa0   :  { %6297 = vmatprep.subr.bf16.mxu0 %v7692_v2 }
  0xa1   :  { %6284 = vmatpush3.bf16.msra.mxu1 %v7691_v1 }
  0xa2   :  { %2351 = vmatmul.mubr.bf16.vlgmr.msra.gmra.mxu0 %v7688_v63  ;;  %6325 = vmatprep.subr.bf16.mxu1 %v7697_v6  ;;  %v7753_v63 = vld [vmem:[%s12015_s0 + $0x60] ss:$100 sps:$4 sm:$0xff]  }
  0xa3   :  { %6298 = vmatpush3.bf16.msra.mxu0 %v7696_v5  ;;  %2358 = vmatprep.mubr.bf16.mxu0 %v7702_v11 }
  0xa4   :  { %2400 = vmatmul.mubr.bf16.vlgmr.msra.gmra.mxu1 %v7693_v3  ;;  %6299 = vmatprep.subr.bf16.mxu0 %v7699_v8  ;;  %v7982_v3 = vld [vmem:[%s12014_s1 + $0x28] sm:$0xff]  }
  0xa5   :  { %6326 = vmatpush3.bf16.msra.mxu1 %v7698_v7  ;;  %2407 = vmatprep.mubr.bf16.mxu1 %v7707_v15  ;;  %v7983_v7 = vld [vmem:[%s12014_s1 + $0x60] sm:$0xff]  }
  0xa6   :  { %6327 = vmatprep.subr.bf16.mxu1 %v7701_v10  ;;  %v7750_v10 = vld [vmem:[%s12014_s1 + $0x610] sm:$0xff]   ;;  %v7984_v15 = vld [vmem:[%s12014_s1 + $0x20] sm:$0xff]  }
  0xa7   :  { %6300 = vmatpush3.bf16.msra.mxu0 %v7700_v9  ;;  %v7757_v9 = vld [vmem:[%s12015_s0 + $0x194] ss:$100 sps:$4 sm:$0xff]  }
  0xa8   :  { %6301 = vmatprep.subr.bf16.mxu0 %v7706_v14 }
  0xa9   :  { %6328 = vmatpush3.bf16.msra.mxu1 %v7704_v12 }
  0xaa   :  { %2359 = vmatmul.mubr.bf16.gmra.mxu0 %v7705_v13  ;;  %6329 = vmatprep.subr.bf16.mxu1 %v7711_v18  ;;  %v7751_v18 = vld [vmem:[%s12014_s1 + $0x608] sm:$0xff]  }
  0xab   :  { %6302 = vmatpush3.bf16.msra.mxu0 %v7709_v16  ;;  %2448 = vmatprep.mubr.bf16.mxu0 %v7734_v40  ;;  %v7985_v16 = vld [vmem:[%s12014_s1 + $0x58] sm:$0xff]  }
  0xac   :  { %2408 = vmatmul.mubr.bf16.gmra.mxu1 %v7710_v17  ;;  %6303 = vmatprep.subr.bf16.mxu0 %v7713_v20  ;;  %v7987_v20 = vld [vmem:[%s12014_s1 + $0x50] sm:$0xff]   ;;  %v7994_v40 = vld [vmem:[%s12014_s1 + $0xb8] sm:$0xff]  }
  0xad   :  { %6330 = vmatpush3.bf16.msra.mxu1 %v7712_v19  ;;  %2497 = vmatprep.mubr.bf16.mxu1 %v7739_v44  ;;  %v7986_v19 = vld [vmem:[%s12014_s1 + $0x18] sm:$0xff]   ;;  %v7996_v44 = vld [vmem:[%s12014_s1 + $0xf0] sm:$0xff]  }
  0xae   :  { %6331 = vmatprep.subr.bf16.mxu1 %v7715_v22  ;;  %v7988_v22 = vld [vmem:[%s12014_s1 + $0x10] sm:$0xff]  }
  0xaf   :  { %6304 = vmatpush3.bf16.msra.mxu0 %v7714_v21  ;;  %v7752_v21 = vld [vmem:[%s12014_s1 + $0x600] sm:$0xff]  }
  0xb0   :  { %6305 = vmatprep.subr.bf16.mxu0 %v7717_v24 }
  0xb1   :  { %6332 = vmatpush3.bf16.msra.mxu1 %v7716_v23  ;;  %v7989_v23 = vld [vmem:[%s12014_s1 + $0x48] sm:$0xff]  }
  0xb2   :  { %6333 = vmatprep.subr.bf16.mxu1 %v7719_v26  ;;  %v7754_v26 = vld [vmem:[%s12015_s0 + $0x128] ss:$100 sps:$4 sm:$0xff]  }
  0xb3   :  { %6306 = vmatpush3.bf16.msra.mxu0 %v7718_v25  ;;  %v7990_v25 = vld [vmem:[%s12014_s1 + $0x8] sm:$0xff]  }
  0xb4   :  { %6307 = vmatprep.subr.bf16.mxu0 %v7721_v28  ;;  %v7991_v28 = vld [vmem:[%s12014_s1 + $0x40] sm:$0xff]  }
  0xb5   :  { %6334 = vmatpush3.bf16.msra.mxu1 %v7720_v27 }
  0xb6   :  { %6335 = vmatprep.subr.bf16.mxu1 %v7723_v30  ;;  %v7992_v30 = vld [vmem:[%s12014_s1 + $0xf8] sm:$0xff]  }
  0xb7   :  { %6308 = vmatpush3.bf16.msra.mxu0 %v7722_v29 }
  0xb8   :  { %6309 = vmatprep.subr.bf16.mxu0 %v7725_v32 }
  0xb9   :  { %6336 = vmatpush3.bf16.msra.mxu1 %v7724_v31 }
  0xba   :  { %6337 = vmatprep.subr.bf16.mxu1 %v7727_v34  ;;  %v7755_v34 = vld [vmem:[%s12015_s0 + $0x190] ss:$100 sps:$4 sm:$0xff]  }
  0xbb   :  { %6310 = vmatpush3.bf16.msra.mxu0 %v7726_v33  ;;  %v7763_v33 = vld [vmem:[%s12015_s0 + $0x19c] ss:$100 sps:$4 sm:$0xff]  }
  0xbc   :  { %6311 = vmatprep.subr.bf16.mxu0 %v7729_v36  ;;  %v7993_v36 = vld [vmem:[%s12014_s1] sm:$0xff]  }
  0xbd   :  { %6338 = vmatpush3.bf16.msra.mxu1 %v7728_v35 }
  0xbe   :  { %6339 = vmatprep.subr.bf16.mxu1 %v7731_v38 }
  0xbf   :  { %6312 = vmatpush3.bf16.msra.mxu0 %v7730_v37 }
  0xc0   :  { %7401 = vmatprep.subr.bf16.mxu0 %v7736_v42 }
  0xc1   :  { %6340 = vmatpush3.bf16.msra.mxu1 %v7735_v41  ;;  %v7995_v41 = vld [vmem:[%s12014_s1 + $0x178] sm:$0xff]  }
  0xc2   :  { %2449 = vmatmul.mubr.bf16.vlgmr.msra.gmra.mxu0 %v7732_v39  ;;  %6363 = vmatprep.subr.bf16.mxu1 %v7977_v45  ;;  %v7758_v39 = vld [vmem:[%s12015_s0 + $0x25c] ss:$100 sps:$4 sm:$0xff]  }
  0xc3   :  { %7402 = vmatpush3.bf16.msra.mxu0 %v7736_v42  ;;  %2456 = vmatprep.mubr.bf16.mxu0 %v7741_v47 }
  0xc4   :  { %2498 = vmatmul.mubr.bf16.vlgmr.msra.gmra.mxu1 %v7737_v43  ;;  %7403 = vmatprep.subr.bf16.mxu0 %v7740_v46 }
  0xc5   :  { %6364 = vmatpush3.bf16.msra.mxu1 %v7978_v50  ;;  %2505 = vmatprep.mubr.bf16.mxu1 %v7745_v51  ;;  %v7998_v50 = vld [vmem:[%s12014_s1 + $0xb0] sm:$0xff]  }
  0xc6   :  { %6365 = vmatprep.subr.bf16.mxu1 %v7979_v52  ;;  %v7999_v51 = vld [vmem:[%s12014_s1 + $0x170] sm:$0xff]  }
  0xc7   :  { %7404 = vmatpush3.bf16.msra.mxu0 %v7740_v46 }
  0xc8   :  { %7405 = vmatprep.subr.bf16.mxu0 %v7744_v49 }
  0xc9   :  { %6366 = vmatpush3.bf16.msra.mxu1 %v7980_v57  ;;  %v7766_v57 = vld [vmem:[%s12015_s0 + $0x1a4] ss:$100 sps:$4 sm:$0xff]  }
  0xca   :  { %2457 = vmatmul.mubr.bf16.gmra.mxu0 %v7743_v48  ;;  %6367 = vmatprep.subr.bf16.mxu1 %v7981_v60  ;;  %v7997_v48 = vld [vmem:[%s12014_s1 + $0x138] sm:$0xff]   ;;  %v8004_v60 = vld [vmem:[%s12014_s1 + $0xe0] sm:$0xff]  }
  0xcb   :  { %7406 = vmatpush3.bf16.msra.mxu0 %v7744_v49  ;;  %7417 = vmatprep.mubr.bf16.mxu0 %v7753_v63 }
  0xcc   :  { %7407 = vmatprep.subr.bf16.mxu0 %v7748_v54  ;;  %2506 = vmatmul.mubr.bf16.gmra.mxu1 %v7747_v55 }
  0xcd   :  { %6368 = vmatpush3.bf16.msra.mxu1 %v7982_v3  ;;  %2904 = vmatprep.mubr.bf16.mxu1 %v7757_v9 }
  0xce   :  { %6369 = vmatprep.subr.bf16.mxu1 %v7983_v7 }
  0xcf   :  { %7408 = vmatpush3.bf16.msra.mxu0 %v7748_v54  ;;  %v7760_v54 = vld [vmem:[%s12015_s0 + $0x258] ss:$100 sps:$4 sm:$0xff]  }
  0xd0   :  { %7409 = vmatprep.subr.bf16.mxu0 %v7749_v61 }
  0xd1   :  { %6370 = vmatpush3.bf16.msra.mxu1 %v7984_v15  ;;  %v8012_v15 = vld [vmem:[%s12014_s1 + $0xd0] sm:$0xff]  }
  0xd2   :  { %6371 = vmatprep.subr.bf16.mxu1 %v7985_v16 }
  0xd3   :  { %7410 = vmatpush3.bf16.msra.mxu0 %v7749_v61 }
  0xd4   :  { %7411 = vmatprep.subr.bf16.mxu0 %v7750_v10 }
  0xd5   :  { %6372 = vmatpush3.bf16.msra.mxu1 %v7986_v19 }
  0xd6   :  { %6373 = vmatprep.subr.bf16.mxu1 %v7987_v20  ;;  %v8013_v20 = vld [vmem:[%s12014_s1 + $0x118] sm:$0xff]  }
  0xd7   :  { %7412 = vmatpush3.bf16.msra.mxu0 %v7750_v10 }
  0xd8   :  { %7413 = vmatprep.subr.bf16.mxu0 %v7751_v18 }
  0xd9   :  { %6374 = vmatpush3.bf16.msra.mxu1 %v7988_v22  ;;  %v8014_v22 = vld [vmem:[%s12014_s1 + $0x90] sm:$0xff]  }
  0xda   :  { %6375 = vmatprep.subr.bf16.mxu1 %v7989_v23  ;;  %v8015_v23 = vld [vmem:[%s12014_s1 + $0x150] sm:$0xff]  }
  0xdb   :  { %7414 = vmatpush3.bf16.msra.mxu0 %v7751_v18 }
  0xdc   :  { %7415 = vmatprep.subr.bf16.mxu0 %v7752_v21 }
  0xdd   :  { %6376 = vmatpush3.bf16.msra.mxu1 %v7990_v25 }
  0xde   :  { %6377 = vmatprep.subr.bf16.mxu1 %v7991_v28 }
  0xdf   :  { %7416 = vmatpush3.bf16.msra.mxu0 %v7752_v21 }
  0xe0   :  { %6391 = vmatprep.subr.bf16.mxu0 %v7992_v30  ;;  %v9330_v30 = vld [vmem:[%s12014_s1 + $0x88] sm:$0xff]  }
  0xe1   :  { %6378 = vmatpush3.bf16.msra.mxu1 %v7993_v36 }
  0xe2   :  { %v6033_v53 = vpop.f32.mrf.mxu0  ;;  %7418 = vmatmul.mubr.bf16.vlgmr.msra.gmra.mxu0 %v7754_v26  ;;  %6419 = vmatprep.subr.bf16.mxu1 %v7995_v41 }
  0xe3   :  { %6392 = vmatpush3.bf16.msra.mxu0 %v7994_v40  ;;  %2953 = vmatprep.mubr.bf16.mxu0 %v7763_v33  ;;  %v9339_v33 = vld [vmem:[%s12014_s1 + $0xc0] sm:$0xff]  }
  0xe4   :  { %v6034_v56 = vpop.f32.mrf.mxu0  ;;  %v6061_v59 = vpop.f32.mrf.mxu1  ;;  %6393 = vmatprep.subr.bf16.mxu0 %v7996_v44  ;;  %2905 = vmatmul.mubr.bf16.vlgmr.msra.gmra.mxu1 %v7755_v34  ;;  %v7761_v34 = vld [vmem:[%s12015_s0 + $0x198] ss:$100 sps:$4 sm:$0xff]   ;;  %v7764_v44 = vld [vmem:[%s12015_s0 + $0x1a0] ss:$100 sps:$4 sm:$0xff]  }
  0xe5   :  { %v6035_v58 = vadd.f32 %v6034_v56, %v6033_v53  ;;  %6420 = vmatpush3.bf16.msra.mxu1 %v7997_v48  ;;  %2912 = vmatprep.mubr.bf16.mxu1 %v7758_v39  ;;  %v8000_v53 = vld [vmem:[%s12014_s1 + $0xe8] sm:$0xff]   ;;  %v8001_v56 = vld [vmem:[%s12014_s1 + $0x130] sm:$0xff]  }
  0xe6   :  { %v6036_v62 = vpop.f32.mrf.mxu0  ;;  %v6062_v0 = vpop.f32.mrf.mxu1  ;;  %6421 = vmatprep.subr.bf16.mxu1 %v7999_v51  ;;  %v8021_v39 = vld [vmem:[%s12014_s1 + $0x108] sm:$0xff]   ;;  %v8025_v51 = vld [vmem:[%s12014_s1 + $0x100] sm:$0xff]  }
  0xe7   :  { %v6063_v1 = vadd.f32 %v6062_v0, %v6061_v59  ;;  %v1961_v8 = vadd.f32 %v6035_v58, %v9172_v4  ;;  %6394 = vmatpush3.bf16.msra.mxu0 %v7998_v50  ;;  %v8002_v58 = vld [vmem:[%s12014_s1 + $0xa8] sm:$0xff]   ;;  %v8006_v0 = vld [vmem:[%s12014_s1 + $0xa0] sm:$0xff]  }
  0xe8   :  { %v6037_v2 = vpop.f32.mrf.mxu0  ;;  %v6064_v6 = vpop.f32.mrf.mxu1  ;;  %6395 = vmatprep.subr.bf16.mxu0 %v8000_v53  ;;  %v8003_v59 = vld [vmem:[%s12014_s1 + $0x168] sm:$0xff]   ;;  %v9382_v53 = vld [vmem:[%s12014_s1 + $0x1b8] sm:$0xff]  }
  0xe9   :  { %v6038_v5 = vadd.f32 %v6037_v2, %v6036_v62  ;;  %v9185_v13 = vadd.f32 %v6063_v1, %v1961_v8  ;;  %6422 = vmatpush3.bf16.msra.mxu1 %v8001_v56  ;;  %v8005_v62 = vld [vmem:[%s12014_s1 + $0x128] sm:$0xff]   ;;  %v8007_v1 = vld [vmem:[%s12014_s1 + $0x160] sm:$0xff]   ;;  %v9393_v56 = vld [vmem:[%s12014_s1 + $0x1f0] sm:$0xff]  }
  0xea   :  { %v6065_v12 = vpop.f32.mrf.mxu1  ;;  %v6039_v24 = vpop.f32.mrf.mxu0  ;;  %6423 = vmatprep.subr.bf16.mxu1 %v8003_v59  ;;  %v8009_v8 = vld [vmem:[%s12014_s1 + $0x120] sm:$0xff]   ;;  %v9405_v59 = vld [vmem:[%s12014_s1 + $0x1b0] sm:$0xff]  }
  0xeb   :  { %v1964_v11 = vadd.f32 %v6038_v5, %v9172_v4  ;;  %v6066_v14 = vadd.f32 %v6065_v12, %v6064_v6  ;;  %6396 = vmatpush3.bf16.msra.mxu0 %v8002_v58  ;;  %v8011_v12 = vld [vmem:[%s12014_s1 + $0x158] sm:$0xff]  }
  0xec   :  { %v6040_v27 = vpop.f32.mrf.mxu0  ;;  %v6067_v31 = vpop.f32.mrf.mxu1  ;;  %6397 = vmatprep.subr.bf16.mxu0 %v8004_v60  ;;  %2913 = vmatmul.mubr.bf16.gmra.mxu1 %v7760_v54  ;;  %v8027_v54 = vld [vmem:[%s12014_s1 + $0x278] sm:$0xff]   ;;  %v8031_v60 = vld [vmem:[%s12014_s1 + $0x270] sm:$0xff]  }
  0xed   :  { %v9193_v17 = vadd.f32 %v6066_v14, %v1964_v11  ;;  %v6041_v29 = vadd.f32 %v6040_v27, %v6039_v24  ;;  %6424 = vmatpush3.bf16.msra.mxu1 %v8005_v62  ;;  %3002 = vmatprep.mubr.bf16.mxu1 %v7766_v57  ;;  %v8010_v11 = vld [vmem:[%s12014_s1 + $0x98] sm:$0xff]   ;;  %v8017_v27 = vld [vmem:[%s12014_s1 + $0x110] sm:$0xff]   ;;  %v7769_v57 = vld [vmem:[%s12015_s0 + $0x260] ss:$100 sps:$4 sm:$0xff]  }
  0xee   :  { %v6042_v32 = vpop.f32.mrf.mxu0  ;;  %v6068_v37 = vpop.f32.mrf.mxu1  ;;  %6425 = vmatprep.subr.bf16.mxu1 %v8007_v1  ;;  %v8029_v58 = vld [vmem:[%s12014_s1 + $0x238] sm:$0xff]   ;;  %v7775_v62 = vld [vmem:[%s12015_s0 + $0x1ac] ss:$100 sps:$4 sm:$0xff]  }
  0xef   :  { %v1969_v35 = vadd.f32 %v6041_v29, %v9172_v4  ;;  %v6069_v42 = vadd.f32 %v6068_v37, %v6067_v31  ;;  %6398 = vmatpush3.bf16.msra.mxu0 %v8006_v0  ;;  %v8019_v31 = vld [vmem:[%s12014_s1 + $0x148] sm:$0xff]   ;;  %v8033_v0 = vld [vmem:[%s12014_s1 + $0x230] sm:$0xff]  }
  0xf0   :  { %v6043_v38 = vpop.f32.mrf.mxu0  ;;  %v6070_v45 = vpop.f32.mrf.mxu1  ;;  %v7778_v1 = vld [vmem:[%s12015_s0 + $0x1b4] ss:$100 sps:$4 sm:$0xff]  }
  0xf1   :  { %v6044_v43 = vadd.f32 %v6043_v38, %v6042_v32  ;;  %v9247_v46 = vadd.f32 %v6069_v42, %v1969_v35  ;;  %6426 = vmatpush3.bf16.msra.mxu1 %v8009_v8  ;;  %v9352_v42 = vld [vmem:[%s12014_s1 + $0x80] sm:$0xff]   ;;  %v9459_v8 = vld [vmem:[%s12014_s1 + $0x1d8] sm:$0xff]  }
  0xf2   :  { %v6071_v49 = vpop.f32.mrf.mxu1  ;;  %6427 = vmatprep.subr.bf16.mxu1 %v8011_v12  ;;  %v8043_v12 = vld [vmem:[%s12014_s1 + $0x258] sm:$0xff]  }
  0xf3   :  { %v1972_v47 = vadd.f32 %v6044_v43, %v9172_v4  ;;  %v6072_v52 = vadd.f32 %v6071_v49, %v6070_v45  ;;  %v8008_v4 = vld [vmem:[%s12014_s1 + $0xd8] sm:$0xff]   ;;  %v8023_v43 = vld [vmem:[%s12014_s1 + $0x140] sm:$0xff]  }
  0xf4   :  { %6399 = vmatprep.subr.bf16.mxu0 %v8008_v4  ;;  %v7767_v45 = vld [vmem:[%s12015_s0 + $0x264] ss:$100 sps:$4 sm:$0xff]  }
  0xf5   :  { %v9265_v55 = vadd.f32 %v6072_v52, %v1972_v47  ;;  %6400 = vmatpush3.bf16.msra.mxu0 %v8010_v11  ;;  %6428 = vmatpush3.bf16.msra.mxu1 %v8013_v20  ;;  %v9369_v47 = vld [vmem:[%s12014_s1 + $0x1f8] sm:$0xff]   ;;  %v7770_v52 = vld [vmem:[%s12015_s0 + $0x26c] ss:$100 sps:$4 sm:$0xff]   ;;  %v9441_v4 = vld [vmem:[%s12014_s1 + $0x1e0] sm:$0xff]  }
  0xf6   :  { %6401 = vmatprep.subr.bf16.mxu0 %v8012_v15  ;;  %6429 = vmatprep.subr.bf16.mxu1 %v8015_v23  ;;  %v9468_v11 = vld [vmem:[%s12014_s1 + $0x198] sm:$0xff]   ;;  %v8047_v23 = vld [vmem:[%s12014_s1 + $0x250] sm:$0xff]  }
  0xf7   :  { %v8045_v20 = vld [vmem:[%s12014_s1 + $0x218] sm:$0xff]  }
  0xf9   :  { %6402 = vmatpush3.bf16.msra.mxu0 %v8014_v22  ;;  %6430 = vmatpush3.bf16.msra.mxu1 %v8017_v27  ;;  %v9487_v22 = vld [vmem:[%s12014_s1 + $0x190] sm:$0xff]  }
  0xfa   :  { %6431 = vmatprep.subr.bf16.mxu1 %v8019_v31 }
  0xfd   :  { %6432 = vmatpush3.bf16.msra.mxu1 %v8021_v39  ;;  %v8053_v39 = vld [vmem:[%s12014_s1 + $0x208] sm:$0xff]  }
  0xfe   :  { %6433 = vmatprep.subr.bf16.mxu1 %v8023_v43 }
 0x101   :  { %6434 = vmatpush3.bf16.msra.mxu1 %v8025_v51  ;;  %v7779_v51 = vld [vmem:[%s12015_s0 + $0x274] ss:$100 sps:$4 sm:$0xff]  }
 0x102   :  { %v6089_v61 = vpop.f32.mrf.mxu0  ;;  %6475 = vmatprep.subr.bf16.mxu1 %v8027_v54  ;;  %v7776_v54 = vld [vmem:[%s12015_s0 + $0x1b0] ss:$100 sps:$4 sm:$0xff]  }
 0x104   :  { %v6090_v63 = vpop.f32.mrf.mxu0  ;;  %v6117_v3 = vpop.f32.mrf.mxu1  ;;  %3003 = vmatmul.mubr.bf16.vlgmr.msra.gmra.mxu1 %v7764_v44  ;;  %v9531_v44 = vld [vmem:[%s12014_s1 + $0x180] sm:$0xff]  }
 0x105   :  { %v6091_v2 = vadd.f32 %v6090_v63, %v6089_v61  ;;  %6476 = vmatpush3.bf16.msra.mxu1 %v8029_v58  ;;  %3010 = vmatprep.mubr.bf16.mxu1 %v7770_v52  ;;  %v9414_v61 = vld [vmem:[%s12014_s1 + $0x1e8] sm:$0xff]  }
 0x106   :  { %v6092_v5 = vpop.f32.mrf.mxu0  ;;  %v6118_v7 = vpop.f32.mrf.mxu1  ;;  %6477 = vmatprep.subr.bf16.mxu1 %v8031_v60  ;;  %v7772_v63 = vld [vmem:[%s12015_s0 + $0x268] ss:$100 sps:$4 sm:$0xff]   ;;  %v8057_v60 = vld [vmem:[%s12014_s1 + $0x200] sm:$0xff]  }
 0x107   :  { %v2059_v6 = vadd.f32 %v6091_v2, %v9185_v13  ;;  %v6119_v9 = vadd.f32 %v6118_v7, %v6117_v3  ;;  %v9432_v2 = vld [vmem:[%s12014_s1 + $0x1a8] sm:$0xff]   ;;  %v8039_v7 = vld [vmem:[%s12014_s1 + $0x260] sm:$0xff]  }
 0x108   :  { %v6093_v10 = vpop.f32.mrf.mxu0  ;;  %v6120_v13 = vpop.f32.mrf.mxu1  ;;  %v8035_v3 = vld [vmem:[%s12014_s1 + $0x268] sm:$0xff]  }
 0x109   :  { %v6094_v14 = vadd.f32 %v6093_v10, %v6092_v5  ;;  %v9307_v16 = vadd.f32 %v6119_v9, %v2059_v6  ;;  %6478 = vmatpush3.bf16.msra.mxu1 %v8033_v0  ;;  %v8037_v5 = vld [vmem:[%s12014_s1 + $0x228] sm:$0xff]   ;;  %v9450_v6 = vld [vmem:[%s12014_s1 + $0x1a0] sm:$0xff]  }
 0x10a   :  { %v6121_v19 = vpop.f32.mrf.mxu1  ;;  %v6095_v24 = vpop.f32.mrf.mxu0  ;;  %6479 = vmatprep.subr.bf16.mxu1 %v8035_v3  ;;  %v8041_v10 = vld [vmem:[%s12014_s1 + $0x220] sm:$0xff]  }
 0x10b   :  { %v2062_v18 = vadd.f32 %v6094_v14, %v9193_v17  ;;  %v6122_v21 = vadd.f32 %v6121_v19, %v6120_v13  ;;  %v8016_v17 = vld [vmem:[%s12014_s1 + $0xc8] sm:$0xff]   ;;  %v9477_v13 = vld [vmem:[%s12014_s1 + $0x1d0] sm:$0xff]  }
 0x10c   :  { %6403 = vmatprep.subr.bf16.mxu0 %v8016_v17  ;;  %v6096_v26 = vpop.f32.mrf.mxu0  ;;  %v6123_v29 = vpop.f32.mrf.mxu1  ;;  %3011 = vmatmul.mubr.bf16.gmra.mxu1 %v7772_v63 }
 0x10d   :  { %v9322_v25 = vadd.f32 %v6122_v21, %v2062_v18  ;;  %v6097_v28 = vadd.f32 %v6096_v26, %v6095_v24  ;;  %6404 = vmatpush3.bf16.msra.mxu0 %v9330_v30  ;;  %6480 = vmatpush3.bf16.msra.mxu1 %v8037_v5  ;;  %v9496_v26 = vld [vmem:[%s12014_s1 + $0x1c8] sm:$0xff]  }
 0x10e   :  { %v6098_v32 = vpop.f32.mrf.mxu0  ;;  %6405 = vmatprep.subr.bf16.mxu0 %v9339_v33  ;;  %v6124_v36 = vpop.f32.mrf.mxu1  ;;  %3100 = vmatprep.mubr.bf16.mxu1 %v7778_v1  ;;  %v9559_v1 = vld [vmem:[%s12014_s1 + $0x2b8] sm:$0xff]  }
 0x10f   :  { %v2067_v35 = vadd.f32 %v6097_v28, %v9247_v46  ;;  %v6125_v37 = vadd.f32 %v6124_v36, %v6123_v29  ;;  %6481 = vmatprep.subr.bf16.mxu1 %v8039_v7  ;;  %v8049_v29 = vld [vmem:[%s12014_s1 + $0x210] sm:$0xff]  }
 0x110   :  { %v6099_v38 = vpop.f32.mrf.mxu0  ;;  %v6126_v41 = vpop.f32.mrf.mxu1  ;;  %v9568_v7 = vld [vmem:[%s12014_s1 + $0x2f0] sm:$0xff]  }
 0x111   :  { %v6100_v40 = vadd.f32 %v6099_v38, %v6098_v32  ;;  %6406 = vmatpush3.bf16.msra.mxu0 %v9352_v42  ;;  %v9364_v46 = vadd.f32 %v6125_v37, %v2067_v35  ;;  %6482 = vmatpush3.bf16.msra.mxu1 %v8041_v10  ;;  %v8051_v35 = vld [vmem:[%s12014_s1 + $0x248] sm:$0xff]   ;;  %v9517_v37 = vld [vmem:[%s12014_s1 + $0x1c0] sm:$0xff]  }
 0x112   :  { %6447 = vmatprep.subr.bf16.mxu0 %v9369_v47  ;;  %v6127_v49 = vpop.f32.mrf.mxu1  ;;  %6483 = vmatprep.subr.bf16.mxu1 %v8043_v12 }
 0x113   :  { %v2070_v48 = vadd.f32 %v6100_v40, %v9265_v55  ;;  %v6128_v50 = vadd.f32 %v6127_v49, %v6126_v41  ;;  %v7773_v40 = vld [vmem:[%s12015_s0 + $0x1a8] ss:$100 sps:$4 sm:$0xff]  }
 0x114   :  { %2954 = vmatmul.mubr.bf16.vlgmr.msra.gmra.mxu0 %v7761_v34  ;;  %v9508_v34 = vld [vmem:[%s12014_s1 + $0x188] sm:$0xff]  }
 0x115   :  { %6448 = vmatpush3.bf16.msra.mxu0 %v9382_v53  ;;  %v9388_v55 = vadd.f32 %v6128_v50, %v2070_v48  ;;  %2961 = vmatprep.mubr.bf16.mxu0 %v7767_v45  ;;  %v8055_v45 = vld [vmem:[%s12014_s1 + $0x240] sm:$0xff]   ;;  %v9540_v50 = vld [vmem:[%s12014_s1 + $0x2f8] sm:$0xff]  }
 0x116   :  { %6449 = vmatprep.subr.bf16.mxu0 %v9393_v56  ;;  %6484 = vmatpush3.bf16.msra.mxu1 %v8045_v20  ;;  %v9595_v20 = vld [vmem:[%s12014_s1 + $0x2e8] sm:$0xff]  }
 0x117   :  { %6485 = vmatprep.subr.bf16.mxu1 %v8047_v23  ;;  %v7787_v23 = vld [vmem:[%s12015_s0 + $0x1bc] ss:$100 sps:$4 sm:$0xff]  }
 0x119   :  { %6450 = vmatpush3.bf16.msra.mxu0 %v9405_v59 }
 0x11a   :  { %6451 = vmatprep.subr.bf16.mxu0 %v9414_v61  ;;  %6486 = vmatpush3.bf16.msra.mxu1 %v8049_v29  ;;  %v9624_v29 = vld [vmem:[%s12014_s1 + $0x2e0] sm:$0xff]  }
 0x11b   :  { %6487 = vmatprep.subr.bf16.mxu1 %v8051_v35  ;;  %v9633_v35 = vld [vmem:[%s12014_s1 + $0x2a0] sm:$0xff]  }
 0x11c   :  { %2962 = vmatmul.mubr.bf16.gmra.mxu0 %v7769_v57 }
 0x11d   :  { %6452 = vmatpush3.bf16.msra.mxu0 %v9432_v2  ;;  %3051 = vmatprep.mubr.bf16.mxu0 %v7775_v62  ;;  %v7782_v62 = vld [vmem:[%s12015_s0 + $0x27c] ss:$100 sps:$4 sm:$0xff]  }
 0x11e   :  { %6453 = vmatprep.subr.bf16.mxu0 %v9441_v4  ;;  %6488 = vmatpush3.bf16.msra.mxu1 %v8053_v39  ;;  %v9651_v39 = vld [vmem:[%s12014_s1 + $0x298] sm:$0xff]  }
 0x11f   :  { %6489 = vmatprep.subr.bf16.mxu1 %v8055_v45  ;;  %v8077_v45 = vld [vmem:[%s12014_s1 + $0x318] sm:$0xff]  }
 0x121   :  { %6454 = vmatpush3.bf16.msra.mxu0 %v9450_v6 }
 0x122   :  { %6455 = vmatprep.subr.bf16.mxu0 %v9459_v8  ;;  %v6145_v9 = vpop.f32.mrf.mxu0  ;;  %6490 = vmatpush3.bf16.msra.mxu1 %v8057_v60 }
 0x124   :  { %v6146_v14 = vpop.f32.mrf.mxu0  ;;  %v6173_v18 = vpop.f32.mrf.mxu1 }
 0x125   :  { %6456 = vmatpush3.bf16.msra.mxu0 %v9468_v11  ;;  %v6147_v15 = vadd.f32 %v6146_v14, %v6145_v9  ;;  %3101 = vmatmul.mubr.bf16.vlgmr.msra.gmra.mxu1 %v7776_v54  ;;  %v8061_v14 = vld [vmem:[%s12014_s1 + $0x338] sm:$0xff]  }
 0x126   :  { %6457 = vmatprep.subr.bf16.mxu0 %v9477_v13  ;;  %v6148_v19 = vpop.f32.mrf.mxu0  ;;  %v6174_v24 = vpop.f32.mrf.mxu1  ;;  %3108 = vmatprep.mubr.bf16.mxu1 %v7782_v62  ;;  %v9687_v62 = vld [vmem:[%s12014_s1 + $0x288] sm:$0xff]  }
 0x127   :  { %v2157_v21 = vadd.f32 %v6147_v15, %v9307_v16  ;;  %v6175_v16 = vadd.f32 %v6174_v24, %v6173_v18  ;;  %v7781_v15 = vld [vmem:[%s12015_s0 + $0x270] ss:$100 sps:$4 sm:$0xff]   ;;  %v7784_v24 = vld [vmem:[%s12015_s0 + $0x278] ss:$100 sps:$4 sm:$0xff]  }
 0x128   :  { %v6149_v17 = vpop.f32.mrf.mxu0  ;;  %v6176_v28 = vpop.f32.mrf.mxu1 }
 0x129   :  { %6458 = vmatpush3.bf16.msra.mxu0 %v9487_v22  ;;  %v6150_v27 = vadd.f32 %v6149_v17, %v6148_v19  ;;  %v9502_v31 = vadd.f32 %v6175_v16, %v2157_v21  ;;  %v9583_v19 = vld [vmem:[%s12014_s1 + $0x2b0] sm:$0xff]   ;;  %v7790_v16 = vld [vmem:[%s12015_s0 + $0x1c4] ss:$100 sps:$4 sm:$0xff]  }
 0x12a   :  { %6459 = vmatprep.subr.bf16.mxu0 %v9496_v26  ;;  %v6177_v36 = vpop.f32.mrf.mxu1  ;;  %v8065_v17 = vld [vmem:[%s12014_s1 + $0x330] sm:$0xff]  }
 0x12b   :  { %v2160_v32 = vadd.f32 %v6150_v27, %v9322_v25  ;;  %v6151_v25 = vpop.f32.mrf.mxu0  ;;  %v6178_v38 = vadd.f32 %v6177_v36, %v6176_v28  ;;  %v9615_v27 = vld [vmem:[%s12014_s1 + $0x2a8] sm:$0xff]   ;;  %v8071_v36 = vld [vmem:[%s12014_s1 + $0x360] sm:$0xff]  }
 0x12c   :  { %v6179_v49 = vpop.f32.mrf.mxu1  ;;  %v8067_v28 = vld [vmem:[%s12014_s1 + $0x368] sm:$0xff]  }
 0x12d   :  { %6460 = vmatpush3.bf16.msra.mxu0 %v9508_v34  ;;  %v9526_v41 = vadd.f32 %v6178_v38, %v2160_v32  ;;  %v6152_v43 = vpop.f32.mrf.mxu0  ;;  %3109 = vmatmul.mubr.bf16.gmra.mxu1 %v7784_v24  ;;  %v8069_v32 = vld [vmem:[%s12014_s1 + $0x328] sm:$0xff]   ;;  %v8073_v38 = vld [vmem:[%s12014_s1 + $0x320] sm:$0xff]  }
 0x12e   :  { %6461 = vmatprep.subr.bf16.mxu0 %v9517_v37  ;;  %v6153_v48 = vadd.f32 %v6152_v43, %v6151_v25  ;;  %v6180_v58 = vpop.f32.mrf.mxu1  ;;  %3198 = vmatprep.mubr.bf16.mxu1 %v7790_v16  ;;  %v9642_v25 = vld [vmem:[%s12014_s1 + $0x2d8] sm:$0xff]   ;;  %v9660_v43 = vld [vmem:[%s12014_s1 + $0x2d0] sm:$0xff]   ;;  %v9709_v24 = vld [vmem:[%s12014_s1 + $0x280] sm:$0xff]  }
 0x12f   :  { %v6154_v52 = vpop.f32.mrf.mxu0  ;;  %v6181_v63 = vadd.f32 %v6180_v58, %v6179_v49  ;;  %v8079_v49 = vld [vmem:[%s12014_s1 + $0x350] sm:$0xff]   ;;  %v9720_v16 = vld [vmem:[%s12014_s1 + $0x3f8] sm:$0xff]  }
 0x130   :  { %v2165_v57 = vadd.f32 %v6153_v48, %v9364_v46  ;;  %v8059_v46 = vld [vmem:[%s12014_s1 + $0x378] sm:$0xff]   ;;  %v6182_v5 = vpop.f32.mrf.mxu1  ;;  %v9669_v48 = vld [vmem:[%s12014_s1 + $0x290] sm:$0xff]  }
 0x131   :  { %6462 = vmatpush3.bf16.msra.mxu0 %v9531_v44  ;;  %v6155_v0 = vpop.f32.mrf.mxu0  ;;  %6531 = vmatprep.subr.bf16.mxu1 %v8059_v46  ;;  %v9696_v46 = vld [vmem:[%s12014_s1 + $0x2c0] sm:$0xff]  }
 0x132   :  { %6503 = vmatprep.subr.bf16.mxu0 %v9540_v50  ;;  %v6156_v3 = vadd.f32 %v6155_v0, %v6154_v52  ;;  %v9571_v9 = vadd.f32 %v6181_v63, %v2165_v57  ;;  %v6183_v12 = vpop.f32.mrf.mxu1  ;;  %6532 = vmatpush3.bf16.msra.mxu1 %v8061_v14  ;;  %v9678_v52 = vld [vmem:[%s12014_s1 + $0x2c8] sm:$0xff]   ;;  %v8081_v57 = vld [vmem:[%s12014_s1 + $0x310] sm:$0xff]  }
 0x133   :  { %v6184_v18 = vadd.f32 %v6183_v12, %v6182_v5  ;;  %v8083_v63 = vld [vmem:[%s12014_s1 + $0x348] sm:$0xff]  }
 0x134   :  { %3052 = vmatmul.mubr.bf16.vlgmr.msra.gmra.mxu0 %v7773_v40  ;;  %v2168_v10 = vadd.f32 %v6156_v3, %v9388_v55  ;;  %v9589_v55 = vld [vmem:[%s12014_s1 + $0x370] sm:$0xff]   ;;  %v8075_v40 = vld [vmem:[%s12014_s1 + $0x358] sm:$0xff]   ;;  %v8085_v14 = vld [vmem:[%s12014_s1 + $0x308] sm:$0xff]  }
 0x135   :  { %6504 = vmatpush3.bf16.msra.mxu0 %v9559_v1  ;;  %3059 = vmatprep.mubr.bf16.mxu0 %v7779_v51 }
 0x136   :  { %6505 = vmatprep.subr.bf16.mxu0 %v9568_v7  ;;  %6533 = vmatprep.subr.bf16.mxu1 %v9589_v55  ;;  %v9598_v21 = vadd.f32 %v6184_v18, %v2168_v10 }
 0x137   :  { %6534 = vmatpush3.bf16.msra.mxu1 %v8065_v17 }
 0x138   :  { %6535 = vmatprep.subr.bf16.mxu1 %v8067_v28 }
 0x139   :  { %6506 = vmatpush3.bf16.msra.mxu0 %v9583_v19 }
 0x13a   :  { %6507 = vmatprep.subr.bf16.mxu0 %v9595_v20 }
 0x13b   :  { %6536 = vmatpush3.bf16.msra.mxu1 %v8069_v32  ;;  %v7791_v32 = vld [vmem:[%s12015_s0 + $0x284] ss:$100 sps:$4 sm:$0xff]  }
 0x13c   :  { %3060 = vmatmul.mubr.bf16.gmra.mxu0 %v7781_v15  ;;  %6537 = vmatprep.subr.bf16.mxu1 %v8071_v36  ;;  %v7785_v15 = vld [vmem:[%s12015_s0 + $0x1b8] ss:$100 sps:$4 sm:$0xff]  }
 0x13d   :  { %6508 = vmatpush3.bf16.msra.mxu0 %v9615_v27  ;;  %3149 = vmatprep.mubr.bf16.mxu0 %v7787_v23 }
 0x13e   :  { %6509 = vmatprep.subr.bf16.mxu0 %v9624_v29 }
 0x13f   :  { %6538 = vmatpush3.bf16.msra.mxu1 %v8073_v38  ;;  %v7788_v38 = vld [vmem:[%s12015_s0 + $0x1c0] ss:$100 sps:$4 sm:$0xff]  }
 0x140   :  { %6539 = vmatprep.subr.bf16.mxu1 %v8075_v40 }
 0x141   :  { %6510 = vmatpush3.bf16.msra.mxu0 %v9633_v35 }
 0x142   :  { %6511 = vmatprep.subr.bf16.mxu0 %v9642_v25  ;;  %v6201_v51 = vpop.f32.mrf.mxu0 }
 0x143   :  { %6540 = vmatpush3.bf16.msra.mxu1 %v8077_v45 }
 0x144   :  { %6541 = vmatprep.subr.bf16.mxu1 %v8079_v49  ;;  %v6202_v54 = vpop.f32.mrf.mxu0  ;;  %v6229_v60 = vpop.f32.mrf.mxu1  ;;  %v8089_v49 = vld [vmem:[%s12014_s1 + $0x300] sm:$0xff]  }
 0x145   :  { %6512 = vmatpush3.bf16.msra.mxu0 %v9651_v39  ;;  %v6203_v58 = vadd.f32 %v6202_v54, %v6201_v51  ;;  %v9739_v51 = vld [vmem:[%s12014_s1 + $0x3b8] sm:$0xff]  }
 0x146   :  { %6513 = vmatprep.subr.bf16.mxu0 %v9660_v43  ;;  %v6204_v0 = vpop.f32.mrf.mxu0  ;;  %v6230_v5 = vpop.f32.mrf.mxu1  ;;  %v8091_v54 = vld [vmem:[%s12014_s1 + $0x478] sm:$0xff]  }
 0x147   :  { %6542 = vmatpush3.bf16.msra.mxu1 %v8081_v57  ;;  %v2255_v3 = vadd.f32 %v6203_v58, %v9502_v31  ;;  %v6231_v10 = vadd.f32 %v6230_v5, %v6229_v60  ;;  %v8087_v31 = vld [vmem:[%s12014_s1 + $0x340] sm:$0xff]   ;;  %v9750_v60 = vld [vmem:[%s12014_s1 + $0x3f0] sm:$0xff]   ;;  %v8093_v5 = vld [vmem:[%s12014_s1 + $0x438] sm:$0xff]  }
 0x148   :  { %6543 = vmatprep.subr.bf16.mxu1 %v8083_v63  ;;  %v6205_v12 = vpop.f32.mrf.mxu0  ;;  %v6232_v23 = vpop.f32.mrf.mxu1 }
 0x149   :  { %6514 = vmatpush3.bf16.msra.mxu0 %v9669_v48  ;;  %v6206_v18 = vadd.f32 %v6205_v12, %v6204_v0  ;;  %v9715_v17 = vadd.f32 %v6231_v10, %v2255_v3  ;;  %v7793_v10 = vld [vmem:[%s12015_s0 + $0x280] ss:$100 sps:$4 sm:$0xff]  }
 0x14a   :  { %6515 = vmatprep.subr.bf16.mxu0 %v9678_v52  ;;  %v6233_v36 = vpop.f32.mrf.mxu1  ;;  %v6207_v40 = vpop.f32.mrf.mxu0 }
 0x14b   :  { %6544 = vmatpush3.bf16.msra.mxu1 %v8085_v14  ;;  %v2258_v28 = vadd.f32 %v6206_v18, %v9526_v41  ;;  %v6234_v45 = vadd.f32 %v6233_v36, %v6232_v23  ;;  %v7794_v41 = vld [vmem:[%s12015_s0 + $0x28c] ss:$100 sps:$4 sm:$0xff]  }
 0x14c   :  { %6545 = vmatprep.subr.bf16.mxu1 %v8087_v31  ;;  %v6208_v58 = vpop.f32.mrf.mxu0  ;;  %v6235_v0 = vpop.f32.mrf.mxu1  ;;  %v9763_v14 = vld [vmem:[%s12014_s1 + $0x3b0] sm:$0xff]   ;;  %v9772_v31 = vld [vmem:[%s12014_s1 + $0x3e8] sm:$0xff]  }
 0x14d   :  { %6516 = vmatpush3.bf16.msra.mxu0 %v9687_v62  ;;  %v9745_v57 = vadd.f32 %v6234_v45, %v2258_v28  ;;  %v6209_v63 = vadd.f32 %v6208_v58, %v6207_v40  ;;  %v7796_v36 = vld [vmem:[%s12015_s0 + $0x288] ss:$100 sps:$4 sm:$0xff]   ;;  %v8097_v40 = vld [vmem:[%s12014_s1 + $0x430] sm:$0xff]  }
 0x14e   :  { %6517 = vmatprep.subr.bf16.mxu0 %v9696_v46  ;;  %v6210_v3 = vpop.f32.mrf.mxu0  ;;  %v6236_v18 = vpop.f32.mrf.mxu1  ;;  %v8099_v58 = vld [vmem:[%s12014_s1 + $0x468] sm:$0xff]  }
 0x14f   :  { %6546 = vmatpush3.bf16.msra.mxu1 %v8089_v49  ;;  %v2263_v12 = vadd.f32 %v6209_v63, %v9571_v9  ;;  %v6237_v9 = vadd.f32 %v6236_v18, %v6235_v0  ;;  %v8105_v18 = vld [vmem:[%s12014_s1 + $0x420] sm:$0xff]  }
 0x150   :  { %6587 = vmatprep.subr.bf16.mxu1 %v8091_v54  ;;  %v6211_v23 = vpop.f32.mrf.mxu0  ;;  %v9793_v54 = vld [vmem:[%s12014_s1 + $0x3a8] sm:$0xff]  }
 0x151   :  { %6518 = vmatpush3.bf16.msra.mxu0 %v9709_v24  ;;  %v6212_v28 = vadd.f32 %v6211_v23, %v6210_v3  ;;  %v9784_v45 = vadd.f32 %v6237_v9, %v2263_v12  ;;  %v8101_v3 = vld [vmem:[%s12014_s1 + $0x428] sm:$0xff]   ;;  %v8103_v12 = vld [vmem:[%s12014_s1 + $0x460] sm:$0xff]   ;;  %v9831_v23 = vld [vmem:[%s12014_s1 + $0x398] sm:$0xff]  }
 0x152   :  { %6559 = vmatprep.subr.bf16.mxu0 %v9720_v16  ;;  %3199 = vmatmul.mubr.bf16.vlgmr.msra.gmra.mxu1 %v7788_v38  ;;  %v6238_v38 = vpop.f32.mrf.mxu1  ;;  %12117 = vst [vmem:[#allocation3_spill] sm:$0xff] %v9831_v23  ;;  %v8107_v9 = vld [vmem:[%s12014_s1 + $0x458] sm:$0xff]  }
 0x153   :  { %6588 = vmatpush3.bf16.msra.mxu1 %v8093_v5  ;;  %3206 = vmatprep.mubr.bf16.mxu1 %v7794_v41  ;;  %v2266_v49 = vadd.f32 %v6212_v28, %v9598_v21  ;;  %v7802_v41 = vld [vmem:[%s12015_s0 + $0x1d4] ss:$100 sps:$4 sm:$0xff]   ;;  %v9802_v21 = vld [vmem:[%s12014_s1 + $0x3e0] sm:$0xff]  }
 0x154   :  { %3150 = vmatmul.mubr.bf16.vlgmr.msra.gmra.mxu0 %v7785_v15  ;;  %v8095_v15 = vld [vmem:[%s12014_s1 + $0x470] sm:$0xff]   ;;  %v6239_v63 = vpop.f32.mrf.mxu1 }
 0x155   :  { %6560 = vmatpush3.bf16.msra.mxu0 %v9739_v51  ;;  %3157 = vmatprep.mubr.bf16.mxu0 %v7791_v32  ;;  %v7799_v32 = vld [vmem:[%s12015_s0 + $0x1cc] ss:$100 sps:$4 sm:$0xff]   ;;  %v6240_v0 = vadd.f32 %v6239_v63, %v6238_v38  ;;  %v9876_v63 = vld [vmem:[%s12014_s1 + $0x3c0] sm:$0xff]  }
 0x156   :  { %6561 = vmatprep.subr.bf16.mxu0 %v9750_v60  ;;  %6589 = vmatprep.subr.bf16.mxu1 %v8095_v15  ;;  %v9822_v15 = vld [vmem:[%s12014_s1 + $0x3d8] sm:$0xff]   ;;  %v9840_v28 = vld [vmem:[%s12014_s1 + $0x3d0] sm:$0xff]   ;;  %12122 = vst [vmem:[#allocation8_spill] sm:$0xff] %v9876_v63 }
 0x157   :  { %6590 = vmatpush3.bf16.msra.mxu1 %v8097_v40  ;;  %v9808_v5 = vadd.f32 %v6240_v0, %v2266_v49  ;;  %12116 = vst [vmem:[#allocation2_spill] sm:$0xff] %v9822_v15  ;;  %12118 = vst [vmem:[#allocation4_spill] sm:$0xff] %v9840_v28  ;;  %v8111_v38 = vld [vmem:[%s12014_s1 + $0x450] sm:$0xff]   ;;  %v9858_v40 = vld [vmem:[%s12014_s1 + $0x3c8] sm:$0xff]  }
 0x158   :  { %6591 = vmatprep.subr.bf16.mxu1 %v8099_v58  ;;  %12120 = vst [vmem:[#allocation6_spill] sm:$0xff] %v9858_v40  ;;  %v8113_v49 = vld [vmem:[%s12014_s1 + $0x410] sm:$0xff]   ;;  %v8115_v58 = vld [vmem:[%s12014_s1 + $0x448] sm:$0xff]  }
 0x159   :  { %6562 = vmatpush3.bf16.msra.mxu0 %v9763_v14 }
 0x15a   :  { %6563 = vmatprep.subr.bf16.mxu0 %v9772_v31  ;;  %3207 = vmatmul.mubr.bf16.gmra.mxu1 %v7796_v36  ;;  %v9849_v36 = vld [vmem:[%s12014_s1 + $0x390] sm:$0xff]  }
 0x15b   :  { %6592 = vmatpush3.bf16.msra.mxu1 %v8101_v3  ;;  %3296 = vmatprep.mubr.bf16.mxu1 %v7802_v41  ;;  %12119 = vst [vmem:[#allocation5_spill] sm:$0xff] %v9849_v36  ;;  %v9867_v41 = vld [vmem:[%s12014_s1 + $0x388] sm:$0xff]  }
 0x15c   :  { %3158 = vmatmul.mubr.bf16.gmra.mxu0 %v7793_v10  ;;  %v9813_v10 = vld [vmem:[%s12014_s1 + $0x3a0] sm:$0xff]   ;;  %6593 = vmatprep.subr.bf16.mxu1 %v8103_v12  ;;  %12121 = vst [vmem:[#allocation7_spill] sm:$0xff] %v9867_v41  ;;  %v8117_v3 = vld [vmem:[%s12014_s1 + $0x408] sm:$0xff]  }
 0x15d   :  { %6564 = vmatpush3.bf16.msra.mxu0 %v9793_v54  ;;  %3247 = vmatprep.mubr.bf16.mxu0 %v7799_v32  ;;  %v8109_v32 = vld [vmem:[%s12014_s1 + $0x418] sm:$0xff]   ;;  %v7797_v12 = vld [vmem:[%s12015_s0 + $0x1c8] ss:$100 sps:$4 sm:$0xff]  }
 0x15e   :  { %6565 = vmatprep.subr.bf16.mxu0 %v9802_v21 }
 0x15f   :  { %6594 = vmatpush3.bf16.msra.mxu1 %v8105_v18 }
 0x160   :  { %6595 = vmatprep.subr.bf16.mxu1 %v8107_v9  ;;  %v9888_v9 = vld [vmem:[%s12014_s1 + $0x380] sm:$0xff]  }
 0x161   :  { %6566 = vmatpush3.bf16.msra.mxu0 %v9813_v10  ;;  %12123 = vst [vmem:[#allocation9_spill] sm:$0xff] %v9888_v9 }
 0x162   :  { %6567 = vmatprep.subr.bf16.mxu0 %v9822_v15  ;;  %v6257_v0 = vpop.f32.mrf.mxu0 }
 0x163   :  { %6596 = vmatpush3.bf16.msra.mxu1 %v8109_v32  ;;  %v8119_v32 = vld [vmem:[%s12014_s1 + $0x440] sm:$0xff]  }
 0x164   :  { %6597 = vmatprep.subr.bf16.mxu1 %v8111_v38  ;;  %v6258_v18 = vpop.f32.mrf.mxu0 }
 0x165   :  { %6568 = vmatpush3.bf16.msra.mxu0 %v9831_v23  ;;  %v6259_v38 = vadd.f32 %v6258_v18, %v6257_v0  ;;  %v8121_v18 = vld [vmem:[%s12014_s1 + $0x400] sm:$0xff]  }
 0x166   :  { %6569 = vmatprep.subr.bf16.mxu0 %v9840_v28 }
 0x167   :  { %6598 = vmatpush3.bf16.msra.mxu1 %v8113_v49  ;;  %v6285_v49 = vpop.f32.mrf.mxu1 }
 0x168   :  { %6599 = vmatprep.subr.bf16.mxu1 %v8115_v58  ;;  %v9897_v58 = vld [vmem:[%s12014_s1 + $0x4f8] sm:$0xff]  }
 0x169   :  { %6570 = vmatpush3.bf16.msra.mxu0 %v9849_v36  ;;  %12124 = vst [vmem:[#allocation10_spill] sm:$0xff] %v9897_v58  ;;  %v6286_v0 = vpop.f32.mrf.mxu1  ;;  %v9916_v36 = vld [vmem:[%s12014_s1 + $0x4b8] sm:$0xff]  }
 0x16a   :  { %6571 = vmatprep.subr.bf16.mxu0 %v9858_v40  ;;  %v7806_v40 = vld [vmem:[%s12015_s0 + $0x29c] ss:$100 sps:$4 sm:$0xff]   ;;  %12125 = vst [vmem:[#allocation11_spill] sm:$0xff] %v9916_v36 }
 0x16b   :  { %6600 = vmatpush3.bf16.msra.mxu1 %v8117_v3  ;;  %v6260_v3 = vpop.f32.mrf.mxu0 }
 0x16c   :  { %6601 = vmatprep.subr.bf16.mxu1 %v8119_v32  ;;  %v2353_v32 = vadd.f32 %v6259_v38, %v9715_v17  ;;  %v8123_v17 = vld [vmem:[%s12014_s1 + $0x578] sm:$0xff]  }
 0x16d   :  { %6572 = vmatpush3.bf16.msra.mxu0 %v9867_v41  ;;  %v6287_v41 = vadd.f32 %v6286_v0, %v6285_v49  ;;  %v9927_v0 = vld [vmem:[%s12014_s1 + $0x4f0] sm:$0xff]  }
 0x16e   :  { %6573 = vmatprep.subr.bf16.mxu0 %v9876_v63  ;;  %v7803_v63 = vld [vmem:[%s12015_s0 + $0x294] ss:$100 sps:$4 sm:$0xff]   ;;  %12126 = vst [vmem:[#allocation12_spill] sm:$0xff] %v9927_v0 }
 0x16f   :  { %6602 = vmatpush3.bf16.msra.mxu1 %v8121_v18  ;;  %v9922_v49 = vadd.f32 %v6287_v41, %v2353_v32  ;;  %v7805_v41 = vld [vmem:[%s12015_s0 + $0x290] ss:$100 sps:$4 sm:$0xff]  }
 0x170   :  { %6643 = vmatprep.subr.bf16.mxu1 %v8123_v17  ;;  %v8125_v17 = vld [vmem:[%s12014_s1 + $0x538] sm:$0xff]  }
 0x171   :  { %6574 = vmatpush3.bf16.msra.mxu0 %v9888_v9  ;;  %v7800_v9 = vld [vmem:[%s12015_s0 + $0x1d0] ss:$100 sps:$4 sm:$0xff]  }
 0x172   :  { %6615 = vmatprep.subr.bf16.mxu0 %v9897_v58  ;;  %v6261_v58 = vpop.f32.mrf.mxu0  ;;  %3297 = vmatmul.mubr.bf16.vlgmr.msra.gmra.mxu1 %v7800_v9 }
 0x173   :  { %v6262_v38 = vadd.f32 %v6261_v58, %v6260_v3  ;;  %6644 = vmatpush3.bf16.msra.mxu1 %v8125_v17  ;;  %3304 = vmatprep.mubr.bf16.mxu1 %v7806_v40  ;;  %v9940_v3 = vld [vmem:[%s12014_s1 + $0x4b0] sm:$0xff]   ;;  %v7811_v40 = vld [vmem:[%s12015_s0 + $0x1dc] ss:$100 sps:$4 sm:$0xff]  }
 0x174   :  { %3248 = vmatmul.mubr.bf16.vlgmr.msra.gmra.mxu0 %v7797_v12  ;;  %v6288_v12 = vpop.f32.mrf.mxu1  ;;  %12127 = vst [vmem:[#allocation13_spill] sm:$0xff] %v9940_v3 }
 0x175   :  { %6616 = vmatpush3.bf16.msra.mxu0 %v9916_v36  ;;  %3255 = vmatprep.mubr.bf16.mxu0 %v7803_v63  ;;  %v2356_v18 = vadd.f32 %v6262_v38, %v9745_v57  ;;  %v8127_v57 = vld [vmem:[%s12014_s1 + $0x570] sm:$0xff]   ;;  %v6263_v63 = vpop.f32.mrf.mxu0  ;;  %v7808_v38 = vld [vmem:[%s12015_s0 + $0x298] ss:$100 sps:$4 sm:$0xff]  }
 0x176   :  { %6617 = vmatprep.subr.bf16.mxu0 %v9927_v0  ;;  %v6289_v36 = vpop.f32.mrf.mxu1  ;;  %6645 = vmatprep.subr.bf16.mxu1 %v8127_v57  ;;  %v9969_v57 = vld [vmem:[%s12014_s1 + $0x4a8] sm:$0xff]  }
 0x177   :  { %v6290_v58 = vadd.f32 %v6289_v36, %v6288_v12  ;;  %v9951_v36 = vld [vmem:[%s12014_s1 + $0x4e8] sm:$0xff]   ;;  %v6264_v32 = vpop.f32.mrf.mxu0  ;;  %v8129_v12 = vld [vmem:[%s12014_s1 + $0x530] sm:$0xff]   ;;  %12129 = vst [vmem:[#allocation15_spill] sm:$0xff] %v9969_v57 }
 0x178   :  { %12128 = vst [vmem:[#allocation14_spill] sm:$0xff] %v9951_v36  ;;  %6646 = vmatpush3.bf16.msra.mxu1 %v8129_v12  ;;  %v6291_v17 = vpop.f32.mrf.mxu1  ;;  %v8133_v0 = vld [vmem:[%s12014_s1 + $0x528] sm:$0xff]  }
 0x179   :  { %6618 = vmatpush3.bf16.msra.mxu0 %v9940_v3  ;;  %v9946_v9 = vadd.f32 %v6290_v58, %v2356_v18  ;;  %v6265_v18 = vadd.f32 %v6264_v32, %v6263_v63  ;;  %v7814_v58 = vld [vmem:[%s12015_s0 + $0x1e4] ss:$100 sps:$4 sm:$0xff]   ;;  %v6266_v12 = vpop.f32.mrf.mxu0 }
 0x17a   :  { %6619 = vmatprep.subr.bf16.mxu0 %v9951_v36  ;;  %v8131_v36 = vld [vmem:[%s12014_s1 + $0x568] sm:$0xff]   ;;  %v6292_v63 = vpop.f32.mrf.mxu1  ;;  %v9979_v32 = vld [vmem:[%s12014_s1 + $0x4e0] sm:$0xff]   ;;  %3305 = vmatmul.mubr.bf16.gmra.mxu1 %v7808_v38 }
 0x17b   :  { %6647 = vmatprep.subr.bf16.mxu1 %v8131_v36  ;;  %12130 = vst [vmem:[#allocation16_spill] sm:$0xff] %v9979_v32  ;;  %v6293_v3 = vadd.f32 %v6292_v63, %v6291_v17  ;;  %3394 = vmatprep.mubr.bf16.mxu1 %v7814_v58  ;;  %v8137_v58 = vld [vmem:[%s12014_s1 + $0x520] sm:$0xff]   ;;  %v10029_v63 = vld [vmem:[%s12014_s1 + $0x490] sm:$0xff]  }
 0x17c   :  { %3256 = vmatmul.mubr.bf16.gmra.mxu0 %v7805_v41  ;;  %v2361_v41 = vadd.f32 %v6265_v18, %v9784_v45  ;;  %6648 = vmatpush3.bf16.msra.mxu1 %v8133_v0  ;;  %v6294_v28 = vpop.f32.mrf.mxu1  ;;  %v9990_v18 = vld [vmem:[%s12014_s1 + $0x4a0] sm:$0xff]   ;;  %12135 = vst [vmem:[#allocation21_spill] sm:$0xff] %v10029_v63 }
 0x17d   :  { %6620 = vmatpush3.bf16.msra.mxu0 %v9969_v57  ;;  %3345 = vmatprep.mubr.bf16.mxu0 %v7811_v40  ;;  %v6267_v57 = vpop.f32.mrf.mxu0  ;;  %12131 = vst [vmem:[#allocation17_spill] sm:$0xff] %v9990_v18  ;;  %v8135_v40 = vld [vmem:[%s12014_s1 + $0x560] sm:$0xff]  }
 0x17e   :  { %6621 = vmatprep.subr.bf16.mxu0 %v9979_v32  ;;  %v6268_v36 = vadd.f32 %v6267_v57, %v6266_v12  ;;  %v9985_v45 = vadd.f32 %v6293_v3, %v2361_v41  ;;  %6649 = vmatprep.subr.bf16.mxu1 %v8135_v40  ;;  %v6295_v0 = vpop.f32.mrf.mxu1  ;;  %v10000_v3 = vld [vmem:[%s12014_s1 + $0x4d8] sm:$0xff]   ;;  %v10038_v40 = vld [vmem:[%s12014_s1 + $0x4c8] sm:$0xff]  }
 0x17f   :  { %12132 = vst [vmem:[#allocation18_spill] sm:$0xff] %v10000_v3  ;;  %v6296_v17 = vadd.f32 %v6295_v0, %v6294_v28  ;;  %v8139_v12 = vld [vmem:[%s12014_s1 + $0x558] sm:$0xff]   ;;  %v10020_v28 = vld [vmem:[%s12014_s1 + $0x4d0] sm:$0xff]   ;;  %12136 = vst [vmem:[#allocation22_spill] sm:$0xff] %v10038_v40 }
 0x180   :  { %v2364_v38 = vadd.f32 %v6268_v36, %v9808_v5  ;;  %6650 = vmatpush3.bf16.msra.mxu1 %v8137_v58  ;;  %v10011_v5 = vld [vmem:[%s12014_s1 + $0x498] sm:$0xff]   ;;  %12134 = vst [vmem:[#allocation20_spill] sm:$0xff] %v10020_v28  ;;  %v8143_v36 = vld [vmem:[%s12014_s1 + $0x550] sm:$0xff]   ;;  %v10047_v0 = vld [vmem:[%s12014_s1 + $0x488] sm:$0xff]  }
 0x181   :  { %6622 = vmatpush3.bf16.msra.mxu0 %v9990_v18  ;;  %12133 = vst [vmem:[#allocation19_spill] sm:$0xff] %v10011_v5  ;;  %6651 = vmatprep.subr.bf16.mxu1 %v8139_v12  ;;  %v8141_v41 = vld [vmem:[%s12014_s1 + $0x518] sm:$0xff]   ;;  %12137 = vst [vmem:[#allocation23_spill] sm:$0xff] %v10047_v0  ;;  %v10056_v58 = vld [vmem:[%s12014_s1 + $0x4c0] sm:$0xff]  }
 0x182   :  { %6623 = vmatprep.subr.bf16.mxu0 %v10000_v3  ;;  %v10006_v57 = vadd.f32 %v6296_v17, %v2364_v38  ;;  %v8145_v38 = vld [vmem:[%s12014_s1 + $0x510] sm:$0xff]   ;;  %v8147_v17 = vld [vmem:[%s12014_s1 + $0x548] sm:$0xff]   ;;  %12138 = vst [vmem:[#allocation24_spill] sm:$0xff] %v10056_v58  ;;  %v7817_v3 = vld [vmem:[%s12015_s0 + $0x2a0] ss:$100 sps:$4 sm:$0xff]  }
 0x183   :  { %v8149_v12 = vld [vmem:[%s12014_s1 + $0x508] sm:$0xff]  }
 0x184   :  { %6652 = vmatpush3.bf16.msra.mxu1 %v8141_v41  ;;  %v7809_v41 = vld [vmem:[%s12015_s0 + $0x1d8] ss:$100 sps:$4 sm:$0xff]   ;;  %v7820_v18 = vld [vmem:[%s12015_s0 + $0x2a8] ss:$100 sps:$4 sm:$0xff]  }
 0x185   :  { %6624 = vmatpush3.bf16.msra.mxu0 %v10011_v5  ;;  %6653 = vmatprep.subr.bf16.mxu1 %v8143_v36  ;;  %v10068_v36 = vld [vmem:[%s12014_s1 + $0x480] sm:$0xff]  }
 0x186   :  { %6625 = vmatprep.subr.bf16.mxu0 %v10020_v28  ;;  %12139 = vst [vmem:[#allocation25_spill] sm:$0xff] %v10068_v36 }
 0x188   :  { %6654 = vmatpush3.bf16.msra.mxu1 %v8145_v38  ;;  %v8151_v38 = vld [vmem:[%s12014_s1 + $0x540] sm:$0xff]  }
 0x189   :  { %6626 = vmatpush3.bf16.msra.mxu0 %v10029_v63  ;;  %6655 = vmatprep.subr.bf16.mxu1 %v8147_v17  ;;  %v10077_v17 = vld [vmem:[%s12014_s1 + $0x5f8] sm:$0xff]  }
 0x18a   :  { %6627 = vmatprep.subr.bf16.mxu0 %v10038_v40  ;;  %12140 = vst [vmem:[#allocation26_spill] sm:$0xff] %v10077_v17  ;;  %v8155_v63 = vld [vmem:[%s12014_s1 + $0x638] sm:$0xff]  }
 0x18c   :  { %6656 = vmatpush3.bf16.msra.mxu1 %v8149_v12  ;;  %v7815_v12 = vld [vmem:[%s12015_s0 + $0x2a4] ss:$100 sps:$4 sm:$0xff]  }
 0x18d   :  { %6628 = vmatpush3.bf16.msra.mxu0 %v10047_v0  ;;  %6657 = vmatprep.subr.bf16.mxu1 %v8151_v38  ;;  %v8153_v38 = vld [vmem:[%s12014_s1 + $0x500] sm:$0xff]   ;;  %v7818_v0 = vld [vmem:[%s12015_s0 + $0x2ac] ss:$100 sps:$4 sm:$0xff]  }
 0x18e   :  { %6629 = vmatprep.subr.bf16.mxu0 %v10056_v58  ;;  %v6313_v58 = vpop.f32.mrf.mxu0 }
 0x190   :  { %6658 = vmatpush3.bf16.msra.mxu1 %v8153_v38  ;;  %v6314_v40 = vpop.f32.mrf.mxu0  ;;  %v6341_v38 = vpop.f32.mrf.mxu1 }
 0x191   :  { %6630 = vmatpush3.bf16.msra.mxu0 %v10068_v36  ;;  %v7812_v36 = vld [vmem:[%s12015_s0 + $0x1e0] ss:$100 sps:$4 sm:$0xff]   ;;  %7421 = vmatprep.subr.bf16.mxu1 %v8155_v63  ;;  %v6315_v28 = vadd.f32 %v6314_v40, %v6313_v58  ;;  %v10114_v58 = vld [vmem:[%s12014_s1 + $0x5b0] sm:$0xff]  }
 0x192   :  { %6671 = vmatprep.subr.bf16.mxu0 %v10077_v17  ;;  %v10095_v17 = vld [vmem:[%s12014_s1 + $0x5b8] sm:$0xff]   ;;  %v6316_v5 = vpop.f32.mrf.mxu0  ;;  %v6342_v40 = vpop.f32.mrf.mxu1  ;;  %12143 = vst [vmem:[#allocation29_spill] sm:$0xff] %v10114_v58 }
 0x193   :  { %12141 = vst [vmem:[#allocation27_spill] sm:$0xff] %v10095_v17  ;;  %3395 = vmatmul.mubr.bf16.vlgmr.msra.gmra.mxu1 %v7812_v36  ;;  %v8158_v36 = vld [vmem:[%s12014_s1 + $0x630] sm:$0xff]  }
 0x194   :  { %3346 = vmatmul.mubr.bf16.vlgmr.msra.gmra.mxu0 %v7809_v41  ;;  %v10104_v41 = vld [vmem:[%s12014_s1 + $0x5f0] sm:$0xff]   ;;  %7422 = vmatpush3.bf16.msra.mxu1 %v8155_v63  ;;  %v10123_v63 = vld [vmem:[%s12014_s1 + $0x5e8] sm:$0xff]  }
 0x195   :  { %6672 = vmatpush3.bf16.msra.mxu0 %v10095_v17  ;;  %12142 = vst [vmem:[#allocation28_spill] sm:$0xff] %v10104_v41  ;;  %3353 = vmatprep.mubr.bf16.mxu0 %v7815_v12  ;;  %v2451_v17 = vadd.f32 %v6315_v28, %v9922_v49  ;;  %v6317_v12 = vpop.f32.mrf.mxu0  ;;  %v6343_v49 = vadd.f32 %v6342_v40, %v6341_v38  ;;  %12144 = vst [vmem:[#allocation30_spill] sm:$0xff] %v10123_v63  ;;  %v7824_v40 = vld [vmem:[%s12015_s0 + $0x1f0] ss:$100 sps:$4 sm:$0xff]  }
 0x196   :  { %6673 = vmatprep.subr.bf16.mxu0 %v10104_v41  ;;  %3402 = vmatprep.mubr.bf16.mxu1 %v7818_v0  ;;  %v6318_v28 = vadd.f32 %v6317_v12, %v6316_v5  ;;  %v7823_v0 = vld [vmem:[%s12015_s0 + $0x1ec] ss:$100 sps:$4 sm:$0xff]  }
 0x197   :  { %7423 = vmatprep.subr.bf16.mxu1 %v8158_v36  ;;  %v6319_v41 = vpop.f32.mrf.mxu0  ;;  %v10133_v5 = vadd.f32 %v6343_v49, %v2451_v17 }
 0x198   :  { %v2454_v38 = vadd.f32 %v6318_v28, %v9946_v9  ;;  %7424 = vmatpush3.bf16.msra.mxu1 %v8158_v36  ;;  %v8161_v9 = vld [vmem:[%s12014_s1 + $0x628] sm:$0xff]   ;;  %v10150_v36 = vld [vmem:[%s12014_s1 + $0x5e0] sm:$0xff]  }
 0x199   :  { %6674 = vmatpush3.bf16.msra.mxu0 %v10114_v58  ;;  %v6344_v58 = vpop.f32.mrf.mxu1  ;;  %v6320_v32 = vpop.f32.mrf.mxu0  ;;  %7425 = vmatprep.subr.bf16.mxu1 %v8161_v9 }
 0x19a   :  { %6675 = vmatprep.subr.bf16.mxu0 %v10123_v63  ;;  %v10141_v63 = vld [vmem:[%s12014_s1 + $0x5a8] sm:$0xff]   ;;  %v6321_v17 = vadd.f32 %v6320_v32, %v6319_v41  ;;  %v10159_v32 = vld [vmem:[%s12014_s1 + $0x5a0] sm:$0xff]  }
 0x19b   :  { %v6345_v12 = vpop.f32.mrf.mxu1  ;;  %12145 = vst [vmem:[#allocation31_spill] sm:$0xff] %v10141_v63  ;;  %3403 = vmatmul.mubr.bf16.gmra.mxu1 %v7820_v18  ;;  %v6322_v28 = vpop.f32.mrf.mxu0  ;;  %v8164_v18 = vld [vmem:[%s12014_s1 + $0x620] sm:$0xff]  }
 0x19c   :  { %3354 = vmatmul.mubr.bf16.gmra.mxu0 %v7817_v3  ;;  %v6346_v3 = vadd.f32 %v6345_v12, %v6344_v58  ;;  %7426 = vmatpush3.bf16.msra.mxu1 %v8161_v9 }
 0x19d   :  { %6676 = vmatpush3.bf16.msra.mxu0 %v10141_v63  ;;  %3443 = vmatprep.mubr.bf16.mxu0 %v7823_v0  ;;  %v6347_v49 = vpop.f32.mrf.mxu1  ;;  %v2459_v63 = vadd.f32 %v6321_v17, %v9985_v45  ;;  %v6323_v41 = vpop.f32.mrf.mxu0  ;;  %v10168_v0 = vld [vmem:[%s12014_s1 + $0x5d8] sm:$0xff]  }
 0x19e   :  { %6677 = vmatprep.subr.bf16.mxu0 %v10150_v36  ;;  %7437 = vmatprep.mubr.bf16.mxu1 %v7824_v40  ;;  %v10154_v23 = vadd.f32 %v6346_v3, %v2454_v38  ;;  %v6324_v45 = vadd.f32 %v6323_v41, %v6322_v28  ;;  %v10175_v3 = vld [vmem:[%s12014_s1 + $0x598] sm:$0xff]   ;;  %v8170_v28 = vld [vmem:[%s12014_s1 + $0x610] sm:$0xff]   ;;  %v10199_v41 = vld [vmem:[%s12014_s1 + $0x5c8] sm:$0xff]  }
 0x19f   :  { %v6348_v15 = vpop.f32.mrf.mxu1  ;;  %7427 = vmatprep.subr.bf16.mxu1 %v8164_v18  ;;  %12148 = vst [vmem:[#allocation34_spill] sm:$0xff] %v10199_v41 }
 0x1a0   :  { %12146 = vst [vmem:[#allocation32_spill] sm:$0xff] %v10154_v23  ;;  %v6349_v58 = vadd.f32 %v6348_v15, %v6347_v49  ;;  %v2462_v40 = vadd.f32 %v6324_v45, %v10006_v57  ;;  %7428 = vmatpush3.bf16.msra.mxu1 %v8164_v18  ;;  %v8167_v15 = vld [vmem:[%s12014_s1 + $0x618] sm:$0xff]   ;;  %v10184_v57 = vld [vmem:[%s12014_s1 + $0x5d0] sm:$0xff]   ;;  %v10205_v18 = vld [vmem:[%s12014_s1 + $0x588] sm:$0xff]  }
 0x1a1   :  { %6678 = vmatpush3.bf16.msra.mxu0 %v10159_v32  ;;  %v6350_v38 = vpop.f32.mrf.mxu1  ;;  %7429 = vmatprep.subr.bf16.mxu1 %v8167_v15  ;;  %v10190_v49 = vld [vmem:[%s12014_s1 + $0x590] sm:$0xff]   ;;  %12149 = vst [vmem:[#allocation35_spill] sm:$0xff] %v10205_v18  ;;  %v10214_v45 = vld [vmem:[%s12014_s1 + $0x5c0] sm:$0xff]  }
 0x1a2   :  { %6679 = vmatprep.subr.bf16.mxu0 %v10168_v0  ;;  %v2508_v12 = vadd.f32 %v6349_v58, %v2459_v63  ;;  %12147 = vst [vmem:[#allocation33_spill] sm:$0xff] %v10190_v49  ;;  %v8173_v58 = vld [vmem:[%s12014_s1 + $0x608] sm:$0xff]   ;;  %12150 = vst [vmem:[#allocation36_spill] sm:$0xff] %v10214_v45 }
 0x1a3   :  { %v6351_v9 = vpop.f32.mrf.mxu1  ;;  %v7834_v23 = vld [vmem:[%s12015_s0 + $0x32c] ss:$100 sps:$4 sm:$0xff]  }
 0x1a4   :  { %v6352_v17 = vadd.f32 %v6351_v9, %v6350_v38  ;;  %7430 = vmatpush3.bf16.msra.mxu1 %v8167_v15  ;;  %v7821_v38 = vld [vmem:[%s12015_s0 + $0x1e8] ss:$100 sps:$4 sm:$0xff]   ;;  %v8176_v9 = vld [vmem:[%s12014_s1 + $0x600] sm:$0xff]   ;;  %v10232_v15 = vld [vmem:[%s12014_s1 + $0x78] sm:$0xff]  }
 0x1a5   :  { %6680 = vmatpush3.bf16.msra.mxu0 %v10175_v3  ;;  %7431 = vmatprep.subr.bf16.mxu1 %v8170_v28  ;;  %12152 = vst [vmem:[#allocation38_spill] sm:$0xff] %v10232_v15 }
 0x1a6   :  { %6681 = vmatprep.subr.bf16.mxu0 %v10184_v57  ;;  %v2511_v63 = vadd.f32 %v6352_v17, %v2462_v40  ;;  %v10223_v40 = vld [vmem:[%s12014_s1 + $0x580] sm:$0xff]   ;;  %v7826_v17 = vld [vmem:[%s12015_s0 + $0x2b4] ss:$100 sps:$4 sm:$0xff]  }
 0x1a7   :  { %12151 = vst [vmem:[#allocation37_spill] sm:$0xff] %v10223_v40 }
 0x1a8   :  { %7432 = vmatpush3.bf16.msra.mxu1 %v8170_v28  ;;  %v7825_v28 = vld [vmem:[%s12015_s0 + $0x2b8] ss:$100 sps:$4 sm:$0xff]  }
 0x1a9   :  { %6682 = vmatpush3.bf16.msra.mxu0 %v10190_v49  ;;  %7433 = vmatprep.subr.bf16.mxu1 %v8173_v58 }
 0x1aa   :  { %6683 = vmatprep.subr.bf16.mxu0 %v10199_v41 }
 0x1ac   :  { %7434 = vmatpush3.bf16.msra.mxu1 %v8173_v58  ;;  %v7419_v58 = vpop.f32.mrf.mxu0 }
 0x1ad   :  { %6684 = vmatpush3.bf16.msra.mxu0 %v10205_v18  ;;  %7435 = vmatprep.subr.bf16.mxu1 %v8176_v9 }
 0x1ae   :  { %6685 = vmatprep.subr.bf16.mxu0 %v10214_v45  ;;  %v8179_v45 = vld [vmem:[%s12014_s1 + $0xf8] sm:$0xff]  }
 0x1b0   :  { %7436 = vmatpush3.bf16.msra.mxu1 %v8176_v9  ;;  %v2548_v9 = vpop.f32.mrf.mxu0 }
 0x1b1   :  { %6686 = vmatpush3.bf16.msra.mxu0 %v10223_v40  ;;  %v10244_v40 = vadd.f32 %v7419_v58, %v2508_v12  ;;  %6737 = vmatprep.subr.bf16.mxu1 %v8179_v45  ;;  %v10262_v12 = vadd.f32 %v2548_v9, %v10133_v5  ;;  %v6379_v58 = vpop.f32.mrf.mxu1  ;;  %v10275_v5 = vld [vmem:[%s12014_s1 + $0x30] sm:$0xff]  }
 0x1b2   :  { %6709 = vmatprep.subr.bf16.mxu0 %v10232_v15  ;;  %v10249_v15 = vld [vmem:[%s12014_s1 + $0x38] sm:$0xff]   ;;  %v7420_v45 = vpop.f32.mrf.mxu0  ;;  %12158 = vst [vmem:[#allocation44_spill] sm:$0xff] %v10275_v5 }
 0x1b3   :  { %12153 = vst [vmem:[#allocation39_spill] sm:$0xff] %v10244_v40  ;;  %12154 = vst [vmem:[#allocation40_spill] sm:$0xff] %v10249_v15  ;;  %7438 = vmatmul.mubr.bf16.vlgmr.msra.gmra.mxu1 %v7825_v28  ;;  %v8181_v40 = vld [vmem:[%s12014_s1 + $0xb8] sm:$0xff]   ;;  %v10270_v18 = vadd.f32 %v7420_v45, %v2511_v63  ;;  %v10284_v28 = vld [vmem:[%s12014_s1 + $0x68] sm:$0xff]  }
 0x1b4   :  { %3444 = vmatmul.mubr.bf16.vlgmr.msra.gmra.mxu0 %v7821_v38  ;;  %v10258_v38 = vld [vmem:[%s12014_s1 + $0x70] sm:$0xff]   ;;  %12156 = vst [vmem:[#allocation42_spill] sm:$0xff] %v10262_v12  ;;  %6738 = vmatpush3.bf16.msra.mxu1 %v8181_v40  ;;  %v6380_v40 = vpop.f32.mrf.mxu1  ;;  %12159 = vst [vmem:[#allocation45_spill] sm:$0xff] %v10284_v28  ;;  %v7831_v63 = vld [vmem:[%s12015_s0 + $0x324] ss:$100 sps:$4 sm:$0xff]  }
 0x1b5   :  { %6710 = vmatpush3.bf16.msra.mxu0 %v10249_v15  ;;  %12155 = vst [vmem:[#allocation41_spill] sm:$0xff] %v10258_v38  ;;  %3451 = vmatprep.mubr.bf16.mxu0 %v7826_v17  ;;  %v7828_v15 = vld [vmem:[%s12015_s0 + $0x2b0] ss:$100 sps:$4 sm:$0xff]   ;;  %12157 = vst [vmem:[#allocation43_spill] sm:$0xff] %v10270_v18  ;;  %v10311_v18 = vld [vmem:[%s12014_s1 + $0x60] sm:$0xff]  }
 0x1b6   :  { %6711 = vmatprep.subr.bf16.mxu0 %v10258_v38  ;;  %3903 = vmatprep.mubr.bf16.mxu1 %v7834_v23  ;;  %v8183_v17 = vld [vmem:[%s12014_s1 + $0xf0] sm:$0xff]   ;;  %v10287_v23 = vadd.f32 %v6380_v40, %v6379_v58  ;;  %v10292_v9 = vpop.f32.mrf.mxu1  ;;  %v8187_v58 = vld [vmem:[%s12014_s1 + $0xe8] sm:$0xff]   ;;  %12161 = vst [vmem:[#allocation47_spill] sm:$0xff] %v10311_v18 }
 0x1b7   :  { %6739 = vmatprep.subr.bf16.mxu1 %v8183_v17  ;;  %v8185_v45 = vld [vmem:[%s12014_s1 + $0xb0] sm:$0xff]   ;;  %v10300_v17 = vld [vmem:[%s12014_s1 + $0x28] sm:$0xff]  }
 0x1b8   :  { %6740 = vmatpush3.bf16.msra.mxu1 %v8185_v45  ;;  %12160 = vst [vmem:[#allocation46_spill] sm:$0xff] %v10300_v17  ;;  %v10306_v40 = vpop.f32.mrf.mxu1  ;;  %v8189_v45 = vld [vmem:[%s12014_s1 + $0xa8] sm:$0xff]  }
 0x1b9   :  { %6712 = vmatpush3.bf16.msra.mxu0 %v10275_v5  ;;  %6741 = vmatprep.subr.bf16.mxu1 %v8187_v58  ;;  %v10320_v58 = vld [vmem:[%s12014_s1 + $0x20] sm:$0xff]  }
 0x1ba   :  { %6713 = vmatprep.subr.bf16.mxu0 %v10284_v28  ;;  %12162 = vst [vmem:[#allocation48_spill] sm:$0xff] %v10320_v58  ;;  %v8193_v28 = vld [vmem:[%s12014_s1 + $0xa0] sm:$0xff]  }
 0x1bc   :  { %3452 = vmatmul.mubr.bf16.gmra.mxu0 %v7828_v15  ;;  %v6385_v15 = vpop.f32.mrf.mxu1  ;;  %6742 = vmatpush3.bf16.msra.mxu1 %v8189_v45 }
 0x1bd   :  { %6714 = vmatpush3.bf16.msra.mxu0 %v10300_v17  ;;  %3854 = vmatprep.mubr.bf16.mxu0 %v7831_v63  ;;  %v8191_v17 = vld [vmem:[%s12014_s1 + $0xe0] sm:$0xff]   ;;  %v10329_v63 = vld [vmem:[%s12014_s1 + $0x58] sm:$0xff]  }
 0x1be   :  { %6715 = vmatprep.subr.bf16.mxu0 %v10311_v18  ;;  %6743 = vmatprep.subr.bf16.mxu1 %v8191_v17  ;;  %v6386_v18 = vpop.f32.mrf.mxu1  ;;  %12163 = vst [vmem:[#allocation49_spill] sm:$0xff] %v10329_v63  ;;  %v8195_v17 = vld [vmem:[%s12014_s1 + $0xd8] sm:$0xff]  }
 0x1bf   :  { %v10332_v45 = vadd.f32 %v6386_v18, %v6385_v15  ;;  %v10349_v18 = vld [vmem:[%s12014_s1 + $0x50] sm:$0xff]  }
 0x1c0   :  { %6744 = vmatpush3.bf16.msra.mxu1 %v8193_v28  ;;  %12165 = vst [vmem:[#allocation51_spill] sm:$0xff] %v10349_v18  ;;  %v8197_v28 = vld [vmem:[%s12014_s1 + $0x98] sm:$0xff]   ;;  %v10358_v15 = vld [vmem:[%s12014_s1 + $0x10] sm:$0xff]  }
 0x1c1   :  { %6716 = vmatpush3.bf16.msra.mxu0 %v10320_v58  ;;  %v10340_v58 = vld [vmem:[%s12014_s1 + $0x18] sm:$0xff]   ;;  %6745 = vmatprep.subr.bf16.mxu1 %v8195_v17  ;;  %12166 = vst [vmem:[#allocation52_spill] sm:$0xff] %v10358_v15  ;;  %v8199_v17 = vld [vmem:[%s12014_s1 + $0xd0] sm:$0xff]  }
 0x1c2   :  { %6717 = vmatprep.subr.bf16.mxu0 %v10329_v63  ;;  %12164 = vst [vmem:[#allocation50_spill] sm:$0xff] %v10340_v58 }
 0x1c4   :  { %6746 = vmatpush3.bf16.msra.mxu1 %v8197_v28  ;;  %v8201_v28 = vld [vmem:[%s12014_s1 + $0x90] sm:$0xff]  }
 0x1c5   :  { %6718 = vmatpush3.bf16.msra.mxu0 %v10340_v58  ;;  %6747 = vmatprep.subr.bf16.mxu1 %v8199_v17  ;;  %v8203_v17 = vld [vmem:[%s12014_s1 + $0xc8] sm:$0xff]   ;;  %v10397_v58 = vld [vmem:[%s12014_s1] sm:$0xff]  }
 0x1c6   :  { %6719 = vmatprep.subr.bf16.mxu0 %v10349_v18  ;;  %v10367_v18 = vld [vmem:[%s12014_s1 + $0x48] sm:$0xff]   ;;  %12170 = vst [vmem:[#allocation56_spill] sm:$0xff] %v10397_v58 }
 0x1c7   :  { %12167 = vst [vmem:[#allocation53_spill] sm:$0xff] %v10367_v18 }
 0x1c8   :  { %6748 = vmatpush3.bf16.msra.mxu1 %v8201_v28  ;;  %v10388_v28 = vpop.f32.mrf.mxu1 }
 0x1c9   :  { %6720 = vmatpush3.bf16.msra.mxu0 %v10358_v15  ;;  %v10376_v15 = vld [vmem:[%s12014_s1 + $0x8] sm:$0xff]   ;;  %6749 = vmatprep.subr.bf16.mxu1 %v8203_v17  ;;  %v10401_v17 = vpop.f32.mrf.mxu0 }
 0x1ca   :  { %6721 = vmatprep.subr.bf16.mxu0 %v10367_v18  ;;  %12168 = vst [vmem:[#allocation54_spill] sm:$0xff] %v10376_v15  ;;  %v10385_v18 = vld [vmem:[%s12014_s1 + $0x40] sm:$0xff]   ;;  %12171 = vst [vmem:[#allocation57_spill] sm:$0xff] %v10401_v17  ;;  %v6389_v63 = vpop.f32.mrf.mxu1  ;;  %v7838_v17 = vld [vmem:[%s12015_s0 + $0x3f4] ss:$100 sps:$4 sm:$0xff]  }
 0x1cb   :  { %12169 = vst [vmem:[#allocation55_spill] sm:$0xff] %v10385_v18 }
 0x1cc   :  { %6750 = vmatpush3.bf16.msra.mxu1 %v9330_v30  ;;  %v7835_v30 = vld [vmem:[%s12015_s0 + $0x3ec] ss:$100 sps:$4 sm:$0xff]   ;;  %v6435_v38 = vpop.f32.mrf.mxu1 }
 0x1cd   :  { %6722 = vmatpush3.bf16.msra.mxu0 %v10376_v15  ;;  %v7829_v15 = vld [vmem:[%s12015_s0 + $0x320] ss:$100 sps:$4 sm:$0xff]   ;;  %6751 = vmatprep.subr.bf16.mxu1 %v9339_v33 }
 0x1ce   :  { %6723 = vmatprep.subr.bf16.mxu0 %v10385_v18  ;;  %v10406_v18 = vld [vmem:[%s12014_s1 + $0x178] sm:$0xff]   ;;  %v6436_v49 = vpop.f32.mrf.mxu1 }
 0x1cf   :  { %12172 = vst [vmem:[#allocation58_spill] sm:$0xff] %v10406_v18 }
 0x1d0   :  { %6752 = vmatpush3.bf16.msra.mxu1 %v9352_v42  ;;  %v10429_v42 = vld [vmem:[%s12014_s1 + $0x170] sm:$0xff]  }
 0x1d1   :  { %6724 = vmatpush3.bf16.msra.mxu0 %v10397_v58  ;;  %v7832_v58 = vld [vmem:[%s12015_s0 + $0x328] ss:$100 sps:$4 sm:$0xff]   ;;  %6793 = vmatprep.subr.bf16.mxu1 %v9369_v47  ;;  %12174 = vst [vmem:[#allocation60_spill] sm:$0xff] %v10429_v42  ;;  %v6384_v47 = vadd.f32 %v10306_v40, %v10292_v9 }
 0x1d2   :  { %6765 = vmatprep.subr.bf16.mxu0 %v10406_v18  ;;  %v10422_v18 = vld [vmem:[%s12014_s1 + $0x138] sm:$0xff]  }
 0x1d3   :  { %12173 = vst [vmem:[#allocation59_spill] sm:$0xff] %v10422_v18  ;;  %3904 = vmatmul.mubr.bf16.vlgmr.msra.gmra.mxu1 %v7832_v58 }
 0x1d4   :  { %v6407_v33 = vpop.f32.mrf.mxu0  ;;  %3855 = vmatmul.mubr.bf16.vlgmr.msra.gmra.mxu0 %v7829_v15  ;;  %v10435_v15 = vld [vmem:[%s12016_s2] ss:$0 sm:$0xff]  ;;  %6794 = vmatpush3.bf16.msra.mxu1 %v9382_v53  ;;  %v10455_v53 = vld [vmem:[%s12014_s1 + $0x168] sm:$0xff]  }
 0x1d5   :  { %6766 = vmatpush3.bf16.msra.mxu0 %v10422_v18  ;;  %3862 = vmatprep.mubr.bf16.mxu0 %v7835_v30  ;;  %v2907_v5 = vadd.f32 %v10435_v15, %v10287_v23  ;;  %v7837_v30 = vld [vmem:[%s12015_s0 + $0x3e8] ss:$100 sps:$4 sm:$0xff]   ;;  %v10448_v23 = vld [vmem:[%s12014_s1 + $0x130] sm:$0xff]   ;;  %12175 = vst [vmem:[#allocation61_spill] sm:$0xff] %v10455_v53  ;;  %v2910_v40 = vadd.f32 %v10435_v15, %v6384_v47 }
 0x1d6   :  { %v6408_v12 = vpop.f32.mrf.mxu0  ;;  %6767 = vmatprep.subr.bf16.mxu0 %v10429_v42  ;;  %3911 = vmatprep.mubr.bf16.mxu1 %v7838_v17  ;;  %v7846_v17 = vld [vmem:[%s12015_s0 + $0x33c] ss:$100 sps:$4 sm:$0xff]  }
 0x1d7   :  { %v6409_v18 = vadd.f32 %v6408_v12, %v6407_v33  ;;  %6795 = vmatprep.subr.bf16.mxu1 %v9393_v56  ;;  %v6437_v12 = vadd.f32 %v6436_v49, %v6435_v38  ;;  %v7840_v56 = vld [vmem:[%s12015_s0 + $0x3f0] ss:$100 sps:$4 sm:$0xff]  }
 0x1d8   :  { %v6410_v41 = vpop.f32.mrf.mxu0  ;;  %6796 = vmatpush3.bf16.msra.mxu1 %v9405_v59  ;;  %v10481_v59 = vld [vmem:[%s12014_s1 + $0x160] sm:$0xff]  }
 0x1d9   :  { %v2956_v42 = vadd.f32 %v6409_v18, %v2907_v5  ;;  %6768 = vmatpush3.bf16.msra.mxu0 %v10448_v23  ;;  %v7843_v5 = vld [vmem:[%s12015_s0 + $0x334] ss:$100 sps:$4 sm:$0xff]   ;;  %v6438_v18 = vpop.f32.mrf.mxu1  ;;  %6797 = vmatprep.subr.bf16.mxu1 %v9414_v61 }
 0x1da   :  { %v6411_v9 = vpop.f32.mrf.mxu0  ;;  %6769 = vmatprep.subr.bf16.mxu0 %v10455_v53 }
 0x1db   :  { %v6412_v58 = vadd.f32 %v6411_v9, %v6410_v41  ;;  %v10465_v49 = vadd.f32 %v6437_v12, %v2956_v42  ;;  %v6439_v53 = vpop.f32.mrf.mxu1  ;;  %v10474_v41 = vld [vmem:[%s12014_s1 + $0x128] sm:$0xff]   ;;  %v6390_v12 = vadd.f32 %v6389_v63, %v10388_v28  ;;  %3912 = vmatmul.mubr.bf16.gmra.mxu1 %v7840_v56  ;;  %v10500_v28 = vld [vmem:[%s12014_s1 + $0x158] sm:$0xff]  }
 0x1dc   :  { %v6413_v38 = vpop.f32.mrf.mxu0  ;;  %3863 = vmatmul.mubr.bf16.gmra.mxu0 %v7837_v30  ;;  %v6440_v42 = vadd.f32 %v6439_v53, %v6438_v18  ;;  %v2915_v30 = vadd.f32 %v10435_v15, %v10332_v45  ;;  %6798 = vmatpush3.bf16.msra.mxu1 %v9432_v2 }
 0x1dd   :  { %v2959_v33 = vadd.f32 %v6412_v58, %v2910_v40  ;;  %6770 = vmatpush3.bf16.msra.mxu0 %v10474_v41  ;;  %3952 = vmatprep.mubr.bf16.mxu0 %v7843_v5  ;;  %v6441_v40 = vpop.f32.mrf.mxu1  ;;  %v10493_v5 = vld [vmem:[%s12014_s1 + $0x120] sm:$0xff]   ;;  %v2918_v2 = vadd.f32 %v10435_v15, %v6390_v12  ;;  %v10526_v12 = vld [vmem:[%s12014_s1 + $0x110] sm:$0xff]  }
 0x1de   :  { %v6414_v47 = vpop.f32.mrf.mxu0  ;;  %6771 = vmatprep.subr.bf16.mxu0 %v10481_v59  ;;  %4001 = vmatprep.mubr.bf16.mxu1 %v7846_v17 }
 0x1df   :  { %v6415_v9 = vadd.f32 %v6414_v47, %v6413_v38  ;;  %v10487_v58 = vadd.f32 %v6440_v42, %v2959_v33  ;;  %v6442_v18 = vpop.f32.mrf.mxu1  ;;  %6799 = vmatprep.subr.bf16.mxu1 %v9441_v4  ;;  %v10510_v4 = vld [vmem:[%s12014_s1 + $0x118] sm:$0xff]  }
 0x1e0   :  { %v6416_v61 = vpop.f32.mrf.mxu0  ;;  %v6443_v63 = vadd.f32 %v6442_v18, %v6441_v40  ;;  %6800 = vmatpush3.bf16.msra.mxu1 %v9450_v6  ;;  %v7844_v40 = vld [vmem:[%s12015_s0 + $0x338] ss:$100 sps:$4 sm:$0xff]  }
 0x1e1   :  { %v2964_v53 = vadd.f32 %v6415_v9, %v2915_v30  ;;  %6772 = vmatpush3.bf16.msra.mxu0 %v10493_v5  ;;  %v6444_v38 = vpop.f32.mrf.mxu1  ;;  %6801 = vmatprep.subr.bf16.mxu1 %v9459_v8  ;;  %v10517_v30 = vld [vmem:[%s12014_s1 + $0x150] sm:$0xff]   ;;  %v10533_v8 = vld [vmem:[%s12014_s1 + $0x148] sm:$0xff]   ;;  %v10557_v9 = vld [vmem:[%s12014_s1 + $0x100] sm:$0xff]  }
 0x1e2   :  { %v6417_v45 = vpop.f32.mrf.mxu0  ;;  %6773 = vmatprep.subr.bf16.mxu0 %v10500_v28 }
 0x1e3   :  { %v6418_v56 = vadd.f32 %v6417_v45, %v6416_v61  ;;  %v10504_v17 = vadd.f32 %v6443_v63, %v2964_v53  ;;  %v6445_v42 = vpop.f32.mrf.mxu1  ;;  %v10580_v53 = vld [vmem:[%s12014_s1 + $0x238] sm:$0xff]  }
 0x1e4   :  { %v6446_v47 = vadd.f32 %v6445_v42, %v6444_v38  ;;  %6802 = vmatpush3.bf16.msra.mxu1 %v9468_v11  ;;  %v10540_v11 = vld [vmem:[%s12014_s1 + $0x108] sm:$0xff]  }
 0x1e5   :  { %v2967_v33 = vadd.f32 %v6418_v56, %v2918_v2  ;;  %6774 = vmatpush3.bf16.msra.mxu0 %v10510_v4  ;;  %6803 = vmatprep.subr.bf16.mxu1 %v9477_v13  ;;  %v10547_v13 = vld [vmem:[%s12014_s1 + $0x140] sm:$0xff]   ;;  %v6491_v45 = vpop.f32.mrf.mxu1  ;;  %v7847_v56 = vld [vmem:[%s12015_s0 + $0x3f8] ss:$100 sps:$4 sm:$0xff]  }
 0x1e6   :  { %6775 = vmatprep.subr.bf16.mxu0 %v10517_v30 }
 0x1e7   :  { %v10520_v6 = vadd.f32 %v6446_v47, %v2967_v33  ;;  %v6492_v38 = vpop.f32.mrf.mxu1  ;;  %v10598_v33 = vld [vmem:[%s12014_s1 + $0x230] sm:$0xff]   ;;  %v10605_v47 = vld [vmem:[%s12014_s1 + $0x268] sm:$0xff]  }
 0x1e8   :  { %6804 = vmatpush3.bf16.msra.mxu1 %v9487_v22  ;;  %v7841_v22 = vld [vmem:[%s12015_s0 + $0x330] ss:$100 sps:$4 sm:$0xff]   ;;  %v6493_v42 = vadd.f32 %v6492_v38, %v6491_v45  ;;  %v10624_v45 = vld [vmem:[%s12014_s1 + $0x228] sm:$0xff]  }
 0x1e9   :  { %6776 = vmatpush3.bf16.msra.mxu0 %v10526_v12  ;;  %6805 = vmatprep.subr.bf16.mxu1 %v9496_v26  ;;  %v10564_v26 = vld [vmem:[%s12014_s1 + $0x278] sm:$0xff]  }
 0x1ea   :  { %6777 = vmatprep.subr.bf16.mxu0 %v10533_v8 }
 0x1ec   :  { %6806 = vmatpush3.bf16.msra.mxu1 %v9508_v34  ;;  %v7849_v34 = vld [vmem:[%s12015_s0 + $0x3fc] ss:$100 sps:$4 sm:$0xff]  }
 0x1ed   :  { %6778 = vmatpush3.bf16.msra.mxu0 %v10540_v11  ;;  %6807 = vmatprep.subr.bf16.mxu1 %v9517_v37  ;;  %v7852_v37 = vld [vmem:[%s12015_s0 + $0x404] ss:$100 sps:$4 sm:$0xff]  }
 0x1ee   :  { %6779 = vmatprep.subr.bf16.mxu0 %v10547_v13 }
 0x1f0   :  { %6808 = vmatpush3.bf16.msra.mxu1 %v9531_v44  ;;  %v10587_v44 = vld [vmem:[%s12014_s1 + $0x270] sm:$0xff]  }
 0x1f1   :  { %6780 = vmatpush3.bf16.msra.mxu0 %v10557_v9  ;;  %6849 = vmatprep.subr.bf16.mxu1 %v9540_v50 }
 0x1f2   :  { %6821 = vmatprep.subr.bf16.mxu0 %v10564_v26 }
 0x1f3   :  { %4002 = vmatmul.mubr.bf16.vlgmr.msra.gmra.mxu1 %v7844_v40  ;;  %v7850_v40 = vld [vmem:[%s12015_s0 + $0x400] ss:$100 sps:$4 sm:$0xff]  }
 0x1f4   :  { %v6463_v61 = vpop.f32.mrf.mxu0  ;;  %3953 = vmatmul.mubr.bf16.vlgmr.msra.gmra.mxu0 %v7841_v22  ;;  %6850 = vmatpush3.bf16.msra.mxu1 %v9559_v1 }
 0x1f5   :  { %6822 = vmatpush3.bf16.msra.mxu0 %v10580_v53  ;;  %3960 = vmatprep.mubr.bf16.mxu0 %v7849_v34  ;;  %v6494_v34 = vpop.f32.mrf.mxu1 }
 0x1f6   :  { %v6464_v18 = vpop.f32.mrf.mxu0  ;;  %6823 = vmatprep.subr.bf16.mxu0 %v10587_v44  ;;  %4009 = vmatprep.mubr.bf16.mxu1 %v7852_v37  ;;  %v7858_v37 = vld [vmem:[%s12015_s0 + $0x34c] ss:$100 sps:$4 sm:$0xff]  }
 0x1f7   :  { %v6465_v63 = vadd.f32 %v6464_v18, %v6463_v61  ;;  %6851 = vmatprep.subr.bf16.mxu1 %v9568_v7 }
 0x1f8   :  { %v6466_v2 = vpop.f32.mrf.mxu0  ;;  %6852 = vmatpush3.bf16.msra.mxu1 %v9583_v19 }
 0x1f9   :  { %v3054_v50 = vadd.f32 %v6465_v63, %v10465_v49  ;;  %6824 = vmatpush3.bf16.msra.mxu0 %v10598_v33  ;;  %v7855_v49 = vld [vmem:[%s12015_s0 + $0x344] ss:$100 sps:$4 sm:$0xff]   ;;  %v6495_v63 = vpop.f32.mrf.mxu1  ;;  %6853 = vmatprep.subr.bf16.mxu1 %v9595_v20 }
 0x1fa   :  { %v6467_v1 = vpop.f32.mrf.mxu0  ;;  %6825 = vmatprep.subr.bf16.mxu0 %v10605_v47 }
 0x1fb   :  { %v6468_v22 = vadd.f32 %v6467_v1, %v6466_v2  ;;  %v10614_v7 = vadd.f32 %v6493_v42, %v3054_v50  ;;  %v6496_v2 = vadd.f32 %v6495_v63, %v6494_v34  ;;  %v6497_v50 = vpop.f32.mrf.mxu1  ;;  %4010 = vmatmul.mubr.bf16.gmra.mxu1 %v7850_v40 }
 0x1fc   :  { %v6469_v61 = vpop.f32.mrf.mxu0  ;;  %3961 = vmatmul.mubr.bf16.gmra.mxu0 %v7847_v56  ;;  %v10631_v56 = vld [vmem:[%s12014_s1 + $0x260] sm:$0xff]   ;;  %6854 = vmatpush3.bf16.msra.mxu1 %v9615_v27  ;;  %v10648_v27 = vld [vmem:[%s12014_s1 + $0x258] sm:$0xff]  }
 0x1fd   :  { %v3057_v18 = vadd.f32 %v6468_v22, %v10487_v58  ;;  %6826 = vmatpush3.bf16.msra.mxu0 %v10624_v45  ;;  %4050 = vmatprep.mubr.bf16.mxu0 %v7855_v49  ;;  %v6498_v1 = vpop.f32.mrf.mxu1  ;;  %v10641_v22 = vld [vmem:[%s12014_s1 + $0x220] sm:$0xff]  }
 0x1fe   :  { %v6470_v19 = vpop.f32.mrf.mxu0  ;;  %6827 = vmatprep.subr.bf16.mxu0 %v10631_v56  ;;  %4099 = vmatprep.mubr.bf16.mxu1 %v7858_v37  ;;  %v6499_v49 = vadd.f32 %v6498_v1, %v6497_v50 }
 0x1ff   :  { %v6471_v58 = vadd.f32 %v6470_v19, %v6469_v61  ;;  %v10634_v38 = vadd.f32 %v6496_v2, %v3057_v18  ;;  %6855 = vmatprep.subr.bf16.mxu1 %v9624_v29  ;;  %v6500_v40 = vpop.f32.mrf.mxu1  ;;  %v10658_v29 = vld [vmem:[%s12014_s1 + $0x218] sm:$0xff]   ;;  %v10665_v2 = vld [vmem:[%s12014_s1 + $0x250] sm:$0xff]   ;;  %v10705_v19 = vld [vmem:[%s12014_s1 + $0x200] sm:$0xff]  }
 0x200   :  { %v6472_v42 = vpop.f32.mrf.mxu0  ;;  %6856 = vmatpush3.bf16.msra.mxu1 %v9633_v35 }
 0x201   :  { %v3062_v20 = vadd.f32 %v6471_v58, %v10504_v17  ;;  %6828 = vmatpush3.bf16.msra.mxu0 %v10641_v22  ;;  %v6501_v18 = vpop.f32.mrf.mxu1  ;;  %6857 = vmatprep.subr.bf16.mxu1 %v9642_v25  ;;  %v10681_v25 = vld [vmem:[%s12014_s1 + $0x248] sm:$0xff]  }
 0x202   :  { %v6473_v34 = vpop.f32.mrf.mxu0  ;;  %6829 = vmatprep.subr.bf16.mxu0 %v10648_v27  ;;  %v6502_v63 = vadd.f32 %v6501_v18, %v6500_v40  ;;  %v7856_v58 = vld [vmem:[%s12015_s0 + $0x348] ss:$100 sps:$4 sm:$0xff]  }
 0x203   :  { %v6474_v17 = vadd.f32 %v6473_v34, %v6472_v42  ;;  %v10651_v61 = vadd.f32 %v6499_v49, %v3062_v20  ;;  %v10728_v42 = vld [vmem:[%s12014_s1 + $0x338] sm:$0xff]   ;;  %v7859_v34 = vld [vmem:[%s12015_s0 + $0x408] ss:$100 sps:$4 sm:$0xff]  }
 0x204   :  { %6858 = vmatpush3.bf16.msra.mxu1 %v9651_v39  ;;  %v10688_v39 = vld [vmem:[%s12014_s1 + $0x208] sm:$0xff]  }
 0x205   :  { %v3065_v37 = vadd.f32 %v6474_v17, %v10520_v6  ;;  %6830 = vmatpush3.bf16.msra.mxu0 %v10658_v29  ;;  %v10674_v6 = vld [vmem:[%s12014_s1 + $0x210] sm:$0xff]   ;;  %6859 = vmatprep.subr.bf16.mxu1 %v9660_v43  ;;  %v10695_v43 = vld [vmem:[%s12014_s1 + $0x240] sm:$0xff]  }
 0x206   :  { %6831 = vmatprep.subr.bf16.mxu0 %v10665_v2 }
 0x207   :  { %v10668_v35 = vadd.f32 %v6502_v63, %v3065_v37  ;;  %v10748_v37 = vld [vmem:[%s12014_s1 + $0x368] sm:$0xff]  }
 0x208   :  { %6860 = vmatpush3.bf16.msra.mxu1 %v9669_v48  ;;  %v7853_v48 = vld [vmem:[%s12015_s0 + $0x340] ss:$100 sps:$4 sm:$0xff]  }
 0x209   :  { %6832 = vmatpush3.bf16.msra.mxu0 %v10674_v6  ;;  %6861 = vmatprep.subr.bf16.mxu1 %v9678_v52  ;;  %v10712_v52 = vld [vmem:[%s12014_s1 + $0x378] sm:$0xff]  }
 0x20a   :  { %6833 = vmatprep.subr.bf16.mxu0 %v10681_v25 }
 0x20c   :  { %6862 = vmatpush3.bf16.msra.mxu1 %v9687_v62  ;;  %v7861_v62 = vld [vmem:[%s12015_s0 + $0x40c] ss:$100 sps:$4 sm:$0xff]  }
 0x20d   :  { %6834 = vmatpush3.bf16.msra.mxu0 %v10688_v39  ;;  %6863 = vmatprep.subr.bf16.mxu1 %v9696_v46  ;;  %v7864_v46 = vld [vmem:[%s12015_s0 + $0x414] ss:$100 sps:$4 sm:$0xff]  }
 0x20e   :  { %6835 = vmatprep.subr.bf16.mxu0 %v10695_v43 }
 0x210   :  { %6864 = vmatpush3.bf16.msra.mxu1 %v9709_v24 }
 0x211   :  { %6836 = vmatpush3.bf16.msra.mxu0 %v10705_v19  ;;  %6905 = vmatprep.subr.bf16.mxu1 %v9720_v16  ;;  %v10741_v16 = vld [vmem:[%s12014_s1 + $0x330] sm:$0xff]  }
 0x212   :  { %6877 = vmatprep.subr.bf16.mxu0 %v10712_v52  ;;  %v6547_v1 = vpop.f32.mrf.mxu1 }
 0x213   :  { %4100 = vmatmul.mubr.bf16.vlgmr.msra.gmra.mxu1 %v7856_v58  ;;  %v7870_v58 = vld [vmem:[%s12015_s0 + $0x35c] ss:$100 sps:$4 sm:$0xff]  }
 0x214   :  { %v6519_v50 = vpop.f32.mrf.mxu0  ;;  %4051 = vmatmul.mubr.bf16.vlgmr.msra.gmra.mxu0 %v7853_v48  ;;  %6906 = vmatpush3.bf16.msra.mxu1 %v9739_v51  ;;  %v6548_v40 = vpop.f32.mrf.mxu1  ;;  %v7862_v48 = vld [vmem:[%s12015_s0 + $0x410] ss:$100 sps:$4 sm:$0xff]  }
 0x215   :  { %6878 = vmatpush3.bf16.msra.mxu0 %v10728_v42  ;;  %4058 = vmatprep.mubr.bf16.mxu0 %v7861_v62 }
 0x216   :  { %v6520_v20 = vpop.f32.mrf.mxu0  ;;  %6879 = vmatprep.subr.bf16.mxu0 %v9589_v55  ;;  %4107 = vmatprep.mubr.bf16.mxu1 %v7864_v46  ;;  %v6549_v55 = vadd.f32 %v6548_v40, %v6547_v1  ;;  %v6550_v63 = vpop.f32.mrf.mxu1  ;;  %v10774_v1 = vld [vmem:[%s12014_s1 + $0x360] sm:$0xff]  }
 0x217   :  { %v6521_v24 = vadd.f32 %v6520_v20, %v6519_v50  ;;  %6907 = vmatprep.subr.bf16.mxu1 %v9750_v60  ;;  %v10767_v20 = vld [vmem:[%s12014_s1 + $0x328] sm:$0xff]  }
 0x218   :  { %v6522_v49 = vpop.f32.mrf.mxu0  ;;  %6908 = vmatpush3.bf16.msra.mxu1 %v9763_v14  ;;  %v6551_v46 = vpop.f32.mrf.mxu1 }
 0x219   :  { %v3152_v17 = vadd.f32 %v6521_v24, %v10614_v7  ;;  %6880 = vmatpush3.bf16.msra.mxu0 %v10741_v16  ;;  %v7867_v7 = vld [vmem:[%s12015_s0 + $0x354] ss:$100 sps:$4 sm:$0xff]   ;;  %6909 = vmatprep.subr.bf16.mxu1 %v9772_v31  ;;  %v6552_v24 = vadd.f32 %v6551_v46, %v6550_v63 }
 0x21a   :  { %v6523_v51 = vpop.f32.mrf.mxu0  ;;  %6881 = vmatprep.subr.bf16.mxu0 %v10748_v37  ;;  %v10808_v46 = vld [vmem:[%s12014_s1 + $0x350] sm:$0xff]  }
 0x21b   :  { %v6524_v18 = vadd.f32 %v6523_v51, %v6522_v49  ;;  %v10757_v60 = vadd.f32 %v6549_v55, %v3152_v17  ;;  %v6553_v49 = vpop.f32.mrf.mxu1  ;;  %4108 = vmatmul.mubr.bf16.gmra.mxu1 %v7862_v48  ;;  %v10784_v55 = vld [vmem:[%s12014_s1 + $0x320] sm:$0xff]  }
 0x21c   :  { %v6525_v62 = vpop.f32.mrf.mxu0  ;;  %4059 = vmatmul.mubr.bf16.gmra.mxu0 %v7859_v34  ;;  %6910 = vmatpush3.bf16.msra.mxu1 %v9793_v54  ;;  %v10791_v54 = vld [vmem:[%s12014_s1 + $0x358] sm:$0xff]  }
 0x21d   :  { %v3155_v50 = vadd.f32 %v6524_v18, %v10634_v38  ;;  %6882 = vmatpush3.bf16.msra.mxu0 %v10767_v20  ;;  %4148 = vmatprep.mubr.bf16.mxu0 %v7867_v7  ;;  %v6554_v40 = vpop.f32.mrf.mxu1 }
 0x21e   :  { %v6526_v14 = vpop.f32.mrf.mxu0  ;;  %6883 = vmatprep.subr.bf16.mxu0 %v10774_v1  ;;  %4197 = vmatprep.mubr.bf16.mxu1 %v7870_v58  ;;  %v6555_v51 = vadd.f32 %v6554_v40, %v6553_v49  ;;  %v12176_v58 = vld [vmem:[#allocation2_spill] sm:$0xff]  ;;  %v12181_v49 = vld [vmem:[#allocation5_spill] sm:$0xff] }
 0x21f   :  { %v6527_v38 = vadd.f32 %v6526_v14, %v6525_v62  ;;  %v10777_v34 = vadd.f32 %v6552_v24, %v3155_v50  ;;  %6911 = vmatprep.subr.bf16.mxu1 %v9802_v21  ;;  %v6556_v18 = vpop.f32.mrf.mxu1  ;;  %v10801_v21 = vld [vmem:[%s12014_s1 + $0x318] sm:$0xff]   ;;  %v10817_v24 = vld [vmem:[%s12014_s1 + $0x310] sm:$0xff]   ;;  %v10838_v40 = vld [vmem:[%s12014_s1 + $0x340] sm:$0xff]  }
 0x220   :  { %v6528_v17 = vpop.f32.mrf.mxu0  ;;  %6912 = vmatpush3.bf16.msra.mxu1 %v9813_v10  ;;  %12178 = vst [vmem:[#allocation2_spill] sm:$0xff] %v10817_v24  ;;  %v12179_v14 = vld [vmem:[#allocation4_spill] sm:$0xff]  ;;  %12184 = vst [vmem:[#allocation5_spill] sm:$0xff] %v10838_v40 }
 0x221   :  { %v3160_v31 = vadd.f32 %v6527_v38, %v10651_v61  ;;  %6884 = vmatpush3.bf16.msra.mxu0 %v10784_v55  ;;  %v6557_v62 = vpop.f32.mrf.mxu1  ;;  %6913 = vmatprep.subr.bf16.mxu1 %v12176_v58  ;;  %v10824_v38 = vld [vmem:[%s12014_s1 + $0x348] sm:$0xff]   ;;  %v7868_v58 = vld [vmem:[%s12015_s0 + $0x358] ss:$100 sps:$4 sm:$0xff]  }
 0x222   :  { %v6529_v7 = vpop.f32.mrf.mxu0  ;;  %6885 = vmatprep.subr.bf16.mxu0 %v10791_v54  ;;  %v6558_v50 = vadd.f32 %v6557_v62, %v6556_v18  ;;  %v12187_v18 = vld [vmem:[#allocation8_spill] sm:$0xff]  ;;  %v7873_v62 = vld [vmem:[%s12015_s0 + $0x41c] ss:$100 sps:$4 sm:$0xff]  }
 0x223   :  { %v6530_v61 = vadd.f32 %v6529_v7, %v6528_v17  ;;  %v10794_v63 = vadd.f32 %v6555_v51, %v3160_v31  ;;  %v10831_v17 = vld [vmem:[%s12014_s1 + $0x308] sm:$0xff]   ;;  %v12183_v31 = vld [vmem:[#allocation6_spill] sm:$0xff]  ;;  %v7865_v7 = vld [vmem:[%s12015_s0 + $0x350] ss:$100 sps:$4 sm:$0xff]  }
 0x224   :  { %12182 = vst [vmem:[#allocation4_spill] sm:$0xff] %v10831_v17  ;;  %v12185_v51 = vld [vmem:[#allocation7_spill] sm:$0xff] }
 0x225   :  { %v3163_v48 = vadd.f32 %v6530_v61, %v10668_v35  ;;  %6886 = vmatpush3.bf16.msra.mxu0 %v10801_v21  ;;  %v12177_v35 = vld [vmem:[#allocation3_spill] sm:$0xff]  ;;  %v10848_v61 = vld [vmem:[%s12014_s1 + $0x300] sm:$0xff]  }
 0x226   :  { %6887 = vmatprep.subr.bf16.mxu0 %v10808_v46  ;;  %6914 = vmatpush3.bf16.msra.mxu1 %v12177_v35  ;;  %12180 = vst [vmem:[#allocation3_spill] sm:$0xff] %v10824_v38  ;;  %12186 = vst [vmem:[#allocation6_spill] sm:$0xff] %v10848_v61 }
 0x227   :  { %v10811_v10 = vadd.f32 %v6558_v50, %v3163_v48  ;;  %6915 = vmatprep.subr.bf16.mxu1 %v12179_v14  ;;  %v10855_v48 = vld [vmem:[%s12014_s1 + $0x478] sm:$0xff]   ;;  %v7876_v14 = vld [vmem:[%s12015_s0 + $0x424] ss:$100 sps:$4 sm:$0xff]  }
 0x228   :  { %12188 = vst [vmem:[#allocation7_spill] sm:$0xff] %v10855_v48  ;;  %v12189_v50 = vld [vmem:[#allocation9_spill] sm:$0xff] }
 0x229   :  { %6888 = vmatpush3.bf16.msra.mxu0 %v10817_v24 }
 0x22a   :  { %6889 = vmatprep.subr.bf16.mxu0 %v10824_v38  ;;  %6916 = vmatpush3.bf16.msra.mxu1 %v12181_v49  ;;  %v10871_v49 = vld [vmem:[%s12014_s1 + $0x438] sm:$0xff]   ;;  %v12201_v38 = vld [vmem:[#allocation15_spill] sm:$0xff] }
 0x22b   :  { %6917 = vmatprep.subr.bf16.mxu1 %v12183_v31  ;;  %12190 = vst [vmem:[#allocation8_spill] sm:$0xff] %v10871_v49  ;;  %v12191_v31 = vld [vmem:[#allocation10_spill] sm:$0xff] }
 0x22d   :  { %6890 = vmatpush3.bf16.msra.mxu0 %v10831_v17  ;;  %v10889_v17 = vld [vmem:[%s12014_s1 + $0x430] sm:$0xff]  }
 0x22e   :  { %6891 = vmatprep.subr.bf16.mxu0 %v10838_v40  ;;  %6918 = vmatpush3.bf16.msra.mxu1 %v12185_v51  ;;  %12194 = vst [vmem:[#allocation10_spill] sm:$0xff] %v10889_v17 }
 0x22f   :  { %6919 = vmatprep.subr.bf16.mxu1 %v12187_v18  ;;  %v10878_v18 = vld [vmem:[%s12014_s1 + $0x470] sm:$0xff]  }
 0x230   :  { %12192 = vst [vmem:[#allocation9_spill] sm:$0xff] %v10878_v18 }
 0x231   :  { %6892 = vmatpush3.bf16.msra.mxu0 %v10848_v61 }
 0x232   :  { %6933 = vmatprep.subr.bf16.mxu0 %v10855_v48  ;;  %6920 = vmatpush3.bf16.msra.mxu1 %v12189_v50  ;;  %v6603_v50 = vpop.f32.mrf.mxu1  ;;  %v12193_v48 = vld [vmem:[#allocation11_spill] sm:$0xff] }
 0x233   :  { %6961 = vmatprep.subr.bf16.mxu1 %v12191_v31 }
 0x234   :  { %v6575_v35 = vpop.f32.mrf.mxu0  ;;  %4149 = vmatmul.mubr.bf16.vlgmr.msra.gmra.mxu0 %v7865_v7  ;;  %v6604_v40 = vpop.f32.mrf.mxu1 }
 0x235   :  { %6934 = vmatpush3.bf16.msra.mxu0 %v10871_v49  ;;  %4156 = vmatprep.mubr.bf16.mxu0 %v7873_v62  ;;  %v7871_v49 = vld [vmem:[%s12015_s0 + $0x418] ss:$100 sps:$4 sm:$0xff]   ;;  %v12195_v62 = vld [vmem:[#allocation12_spill] sm:$0xff] }
 0x236   :  { %v6576_v51 = vpop.f32.mrf.mxu0  ;;  %6935 = vmatprep.subr.bf16.mxu0 %v10878_v18  ;;  %4198 = vmatmul.mubr.bf16.vlgmr.msra.gmra.mxu1 %v7868_v58  ;;  %v6605_v58 = vadd.f32 %v6604_v40, %v6603_v50  ;;  %v12197_v40 = vld [vmem:[#allocation13_spill] sm:$0xff] }
 0x237   :  { %v6577_v7 = vadd.f32 %v6576_v51, %v6575_v35  ;;  %6962 = vmatpush3.bf16.msra.mxu1 %v12193_v48  ;;  %4205 = vmatprep.mubr.bf16.mxu1 %v7876_v14  ;;  %v10896_v35 = vld [vmem:[%s12014_s1 + $0x468] sm:$0xff]   ;;  %v6606_v51 = vpop.f32.mrf.mxu1 }
 0x238   :  { %v6578_v61 = vpop.f32.mrf.mxu0  ;;  %6963 = vmatprep.subr.bf16.mxu1 %v12195_v62  ;;  %12196 = vst [vmem:[#allocation11_spill] sm:$0xff] %v10896_v35 }
 0x239   :  { %v3250_v31 = vadd.f32 %v6577_v7, %v10757_v60  ;;  %6936 = vmatpush3.bf16.msra.mxu0 %v10889_v17  ;;  %v7879_v60 = vld [vmem:[%s12015_s0 + $0x364] ss:$100 sps:$4 sm:$0xff]   ;;  %v6607_v18 = vpop.f32.mrf.mxu1 }
 0x23a   :  { %v6579_v48 = vpop.f32.mrf.mxu0  ;;  %6937 = vmatprep.subr.bf16.mxu0 %v10896_v35  ;;  %v7874_v7 = vld [vmem:[%s12015_s0 + $0x420] ss:$100 sps:$4 sm:$0xff]   ;;  %v7882_v35 = vld [vmem:[%s12015_s0 + $0x36c] ss:$100 sps:$4 sm:$0xff]  }
 0x23b   :  { %v6580_v14 = vadd.f32 %v6579_v48, %v6578_v61  ;;  %v10905_v62 = vadd.f32 %v6605_v58, %v3250_v31  ;;  %6964 = vmatpush3.bf16.msra.mxu1 %v12197_v40  ;;  %v10915_v61 = vld [vmem:[%s12014_s1 + $0x428] sm:$0xff]   ;;  %v12199_v31 = vld [vmem:[#allocation14_spill] sm:$0xff]  ;;  %v6608_v58 = vadd.f32 %v6607_v18, %v6606_v51 }
 0x23c   :  { %v6581_v50 = vpop.f32.mrf.mxu0  ;;  %4157 = vmatmul.mubr.bf16.gmra.mxu0 %v7871_v49  ;;  %12198 = vst [vmem:[#allocation12_spill] sm:$0xff] %v10915_v61  ;;  %6965 = vmatprep.subr.bf16.mxu1 %v12199_v31  ;;  %v10922_v49 = vld [vmem:[%s12014_s1 + $0x460] sm:$0xff]  }
 0x23d   :  { %v3253_v17 = vadd.f32 %v6580_v14, %v10777_v34  ;;  %6938 = vmatpush3.bf16.msra.mxu0 %v10915_v61  ;;  %12200 = vst [vmem:[#allocation13_spill] sm:$0xff] %v10922_v49  ;;  %4246 = vmatprep.mubr.bf16.mxu0 %v7879_v60  ;;  %v6609_v14 = vpop.f32.mrf.mxu1  ;;  %v10932_v31 = vld [vmem:[%s12014_s1 + $0x420] sm:$0xff]   ;;  %v12203_v60 = vld [vmem:[#allocation16_spill] sm:$0xff] }
 0x23e   :  { %v6582_v48 = vpop.f32.mrf.mxu0  ;;  %6939 = vmatprep.subr.bf16.mxu0 %v10922_v49  ;;  %4206 = vmatmul.mubr.bf16.gmra.mxu1 %v7874_v7  ;;  %12202 = vst [vmem:[#allocation14_spill] sm:$0xff] %v10932_v31  ;;  %v12233_v49 = vld [vmem:[#allocation31_spill] sm:$0xff] }
 0x23f   :  { %v6583_v34 = vadd.f32 %v6582_v48, %v6581_v50  ;;  %v10925_v40 = vadd.f32 %v6608_v58, %v3253_v17  ;;  %6966 = vmatpush3.bf16.msra.mxu1 %v12201_v38  ;;  %4295 = vmatprep.mubr.bf16.mxu1 %v7882_v35  ;;  %v6610_v51 = vpop.f32.mrf.mxu1  ;;  %v10939_v38 = vld [vmem:[%s12014_s1 + $0x458] sm:$0xff]  }
 0x240   :  { %v6584_v61 = vpop.f32.mrf.mxu0  ;;  %6967 = vmatprep.subr.bf16.mxu1 %v12203_v60  ;;  %v6611_v50 = vadd.f32 %v6610_v51, %v6609_v14  ;;  %12204 = vst [vmem:[#allocation15_spill] sm:$0xff] %v10939_v38  ;;  %v12205_v58 = vld [vmem:[#allocation17_spill] sm:$0xff]  ;;  %v12207_v51 = vld [vmem:[#allocation18_spill] sm:$0xff] }
 0x241   :  { %v3258_v18 = vadd.f32 %v6583_v34, %v10794_v63  ;;  %6940 = vmatpush3.bf16.msra.mxu0 %v10932_v31  ;;  %v6612_v17 = vpop.f32.mrf.mxu1  ;;  %v10949_v14 = vld [vmem:[%s12014_s1 + $0x418] sm:$0xff]   ;;  %v11037_v31 = vld [vmem:[%s12014_s1 + $0x530] sm:$0xff]  }
 0x242   :  { %v6585_v7 = vpop.f32.mrf.mxu0  ;;  %6941 = vmatprep.subr.bf16.mxu0 %v10939_v38  ;;  %12206 = vst [vmem:[#allocation16_spill] sm:$0xff] %v10949_v14 }
 0x243   :  { %v6586_v63 = vadd.f32 %v6585_v7, %v6584_v61  ;;  %v10942_v35 = vadd.f32 %v6611_v50, %v3258_v18  ;;  %6968 = vmatpush3.bf16.msra.mxu1 %v12205_v58  ;;  %v6613_v34 = vpop.f32.mrf.mxu1  ;;  %v10956_v61 = vld [vmem:[%s12014_s1 + $0x450] sm:$0xff]   ;;  %v10979_v58 = vld [vmem:[%s12014_s1 + $0x408] sm:$0xff]  }
 0x244   :  { %6969 = vmatprep.subr.bf16.mxu1 %v12207_v51  ;;  %v6614_v60 = vadd.f32 %v6613_v34, %v6612_v17  ;;  %12208 = vst [vmem:[#allocation17_spill] sm:$0xff] %v10956_v61  ;;  %v10965_v50 = vld [vmem:[%s12014_s1 + $0x410] sm:$0xff]   ;;  %v12213_v17 = vld [vmem:[#allocation21_spill] sm:$0xff]  ;;  %v10986_v34 = vld [vmem:[%s12014_s1 + $0x440] sm:$0xff]  }
 0x245   :  { %v3261_v48 = vadd.f32 %v6586_v63, %v10811_v10  ;;  %6942 = vmatpush3.bf16.msra.mxu0 %v10949_v14  ;;  %v12209_v10 = vld [vmem:[#allocation19_spill] sm:$0xff]  ;;  %12210 = vst [vmem:[#allocation18_spill] sm:$0xff] %v10965_v50  ;;  %v12211_v7 = vld [vmem:[#allocation20_spill] sm:$0xff]  ;;  %12216 = vst [vmem:[#allocation21_spill] sm:$0xff] %v10986_v34 }
 0x246   :  { %6943 = vmatprep.subr.bf16.mxu0 %v10956_v61  ;;  %v10972_v63 = vld [vmem:[%s12014_s1 + $0x448] sm:$0xff]   ;;  %12214 = vst [vmem:[#allocation20_spill] sm:$0xff] %v10979_v58 }
 0x247   :  { %v10959_v18 = vadd.f32 %v6614_v60, %v3261_v48  ;;  %6970 = vmatpush3.bf16.msra.mxu1 %v12209_v10  ;;  %12212 = vst [vmem:[#allocation19_spill] sm:$0xff] %v10972_v63  ;;  %v12215_v48 = vld [vmem:[#allocation22_spill] sm:$0xff]  ;;  %v12217_v51 = vld [vmem:[#allocation23_spill] sm:$0xff] }
 0x248   :  { %6971 = vmatprep.subr.bf16.mxu1 %v12211_v7  ;;  %v7877_v60 = vld [vmem:[%s12015_s0 + $0x360] ss:$100 sps:$4 sm:$0xff]   ;;  %v12219_v7 = vld [vmem:[#allocation24_spill] sm:$0xff]  ;;  %v12225_v61 = vld [vmem:[#allocation27_spill] sm:$0xff] }
 0x249   :  { %6944 = vmatpush3.bf16.msra.mxu0 %v10965_v50  ;;  %v10996_v10 = vld [vmem:[%s12014_s1 + $0x400] sm:$0xff]  }
 0x24a   :  { %6945 = vmatprep.subr.bf16.mxu0 %v10972_v63  ;;  %12218 = vst [vmem:[#allocation22_spill] sm:$0xff] %v10996_v10 }
 0x24b   :  { %6972 = vmatpush3.bf16.msra.mxu1 %v12213_v17  ;;  %v11003_v17 = vld [vmem:[%s12014_s1 + $0x578] sm:$0xff]  }
 0x24c   :  { %6973 = vmatprep.subr.bf16.mxu1 %v12215_v48  ;;  %12220 = vst [vmem:[#allocation23_spill] sm:$0xff] %v11003_v17  ;;  %v7885_v48 = vld [vmem:[%s12015_s0 + $0x42c] ss:$100 sps:$4 sm:$0xff]  }
 0x24d   :  { %6946 = vmatpush3.bf16.msra.mxu0 %v10979_v58  ;;  %v12223_v58 = vld [vmem:[#allocation26_spill] sm:$0xff] }
 0x24e   :  { %6947 = vmatprep.subr.bf16.mxu0 %v10986_v34  ;;  %v12221_v34 = vld [vmem:[#allocation25_spill] sm:$0xff]  ;;  %12226 = vst [vmem:[#allocation26_spill] sm:$0xff] %v11037_v31 }
 0x24f   :  { %6974 = vmatpush3.bf16.msra.mxu1 %v12217_v51  ;;  %v7880_v51 = vld [vmem:[%s12015_s0 + $0x368] ss:$100 sps:$4 sm:$0xff]  }
 0x250   :  { %6975 = vmatprep.subr.bf16.mxu1 %v12219_v7  ;;  %v7888_v7 = vld [vmem:[%s12015_s0 + $0x434] ss:$100 sps:$4 sm:$0xff]  }
 0x251   :  { %6948 = vmatpush3.bf16.msra.mxu0 %v10996_v10 }
 0x252   :  { %6989 = vmatprep.subr.bf16.mxu0 %v11003_v17  ;;  %v11019_v17 = vld [vmem:[%s12014_s1 + $0x538] sm:$0xff]  }
 0x253   :  { %6976 = vmatpush3.bf16.msra.mxu1 %v12221_v34  ;;  %12222 = vst [vmem:[#allocation24_spill] sm:$0xff] %v11019_v17  ;;  %v11026_v34 = vld [vmem:[%s12014_s1 + $0x570] sm:$0xff]   ;;  %v6659_v50 = vpop.f32.mrf.mxu1 }
 0x254   :  { %v6631_v10 = vpop.f32.mrf.mxu0  ;;  %4247 = vmatmul.mubr.bf16.vlgmr.msra.gmra.mxu0 %v7877_v60  ;;  %7017 = vmatprep.subr.bf16.mxu1 %v12223_v58  ;;  %12224 = vst [vmem:[#allocation25_spill] sm:$0xff] %v11026_v34 }
 0x255   :  { %6990 = vmatpush3.bf16.msra.mxu0 %v11019_v17  ;;  %4254 = vmatprep.mubr.bf16.mxu0 %v7885_v48  ;;  %v7883_v17 = vld [vmem:[%s12015_s0 + $0x428] ss:$100 sps:$4 sm:$0xff]   ;;  %v6660_v38 = vpop.f32.mrf.mxu1 }
 0x256   :  { %v6632_v63 = vpop.f32.mrf.mxu0  ;;  %6991 = vmatprep.subr.bf16.mxu0 %v11026_v34  ;;  %4296 = vmatmul.mubr.bf16.vlgmr.msra.gmra.mxu1 %v7880_v51  ;;  %v11044_v48 = vld [vmem:[%s12014_s1 + $0x568] sm:$0xff]  }
 0x257   :  { %v6633_v60 = vadd.f32 %v6632_v63, %v6631_v10  ;;  %7018 = vmatpush3.bf16.msra.mxu1 %v12225_v61  ;;  %4303 = vmatprep.mubr.bf16.mxu1 %v7888_v7  ;;  %v12227_v63 = vld [vmem:[#allocation28_spill] sm:$0xff]  ;;  %v6661_v10 = vadd.f32 %v6660_v38, %v6659_v50  ;;  %12228 = vst [vmem:[#allocation27_spill] sm:$0xff] %v11044_v48  ;;  %v6662_v7 = vpop.f32.mrf.mxu1  ;;  %v12229_v38 = vld [vmem:[#allocation29_spill] sm:$0xff] }
 0x258   :  { %v6634_v14 = vpop.f32.mrf.mxu0  ;;  %7019 = vmatprep.subr.bf16.mxu1 %v12227_v63 }
 0x259   :  { %v3348_v58 = vadd.f32 %v6633_v60, %v10905_v62  ;;  %6992 = vmatpush3.bf16.msra.mxu0 %v11037_v31  ;;  %v7891_v62 = vld [vmem:[%s12015_s0 + $0x374] ss:$100 sps:$4 sm:$0xff]   ;;  %v6663_v34 = vpop.f32.mrf.mxu1 }
 0x25a   :  { %v6635_v61 = vpop.f32.mrf.mxu0  ;;  %6993 = vmatprep.subr.bf16.mxu0 %v11044_v48  ;;  %v7886_v60 = vld [vmem:[%s12015_s0 + $0x430] ss:$100 sps:$4 sm:$0xff]   ;;  %v7894_v48 = vld [vmem:[%s12015_s0 + $0x37c] ss:$100 sps:$4 sm:$0xff]  }
 0x25b   :  { %v6636_v51 = vadd.f32 %v6635_v61, %v6634_v14  ;;  %v11053_v63 = vadd.f32 %v6661_v10, %v3348_v58  ;;  %7020 = vmatpush3.bf16.msra.mxu1 %v12229_v38  ;;  %v11063_v14 = vld [vmem:[%s12014_s1 + $0x528] sm:$0xff]   ;;  %v12231_v58 = vld [vmem:[#allocation30_spill] sm:$0xff]  ;;  %v6664_v10 = vadd.f32 %v6663_v34, %v6662_v7 }
 0x25c   :  { %v6637_v50 = vpop.f32.mrf.mxu0  ;;  %4255 = vmatmul.mubr.bf16.gmra.mxu0 %v7883_v17  ;;  %12230 = vst [vmem:[#allocation28_spill] sm:$0xff] %v11063_v14  ;;  %7021 = vmatprep.subr.bf16.mxu1 %v12231_v58  ;;  %v11070_v17 = vld [vmem:[%s12014_s1 + $0x560] sm:$0xff]  }
 0x25d   :  { %v3351_v31 = vadd.f32 %v6636_v51, %v10925_v40  ;;  %6994 = vmatpush3.bf16.msra.mxu0 %v11063_v14  ;;  %12232 = vst [vmem:[#allocation29_spill] sm:$0xff] %v11070_v17  ;;  %4344 = vmatprep.mubr.bf16.mxu0 %v7891_v62  ;;  %v6665_v51 = vpop.f32.mrf.mxu1  ;;  %v11080_v58 = vld [vmem:[%s12014_s1 + $0x520] sm:$0xff]  }
 0x25e   :  { %v6638_v61 = vpop.f32.mrf.mxu0  ;;  %6995 = vmatprep.subr.bf16.mxu0 %v11070_v17  ;;  %4304 = vmatmul.mubr.bf16.gmra.mxu1 %v7886_v60  ;;  %12234 = vst [vmem:[#allocation30_spill] sm:$0xff] %v11080_v58  ;;  %v12261_v17 = vld [vmem:[#allocation47_spill] sm:$0xff] }
 0x25f   :  { %v6639_v40 = vadd.f32 %v6638_v61, %v6637_v50  ;;  %v11073_v38 = vadd.f32 %v6664_v10, %v3351_v31  ;;  %7022 = vmatpush3.bf16.msra.mxu1 %v12233_v49  ;;  %4393 = vmatprep.mubr.bf16.mxu1 %v7894_v48  ;;  %v6666_v7 = vpop.f32.mrf.mxu1  ;;  %v11087_v49 = vld [vmem:[%s12014_s1 + $0x558] sm:$0xff]  }
 0x260   :  { %v6640_v14 = vpop.f32.mrf.mxu0  ;;  %7023 = vmatprep.subr.bf16.mxu1 %v10150_v36  ;;  %v6667_v62 = vadd.f32 %v6666_v7, %v6665_v51  ;;  %12235 = vst [vmem:[#allocation31_spill] sm:$0xff] %v11087_v49  ;;  %v11097_v36 = vld [vmem:[%s12014_s1 + $0x518] sm:$0xff]   ;;  %v12242_v51 = vld [vmem:[#allocation34_spill] sm:$0xff]  ;;  %v7889_v7 = vld [vmem:[%s12015_s0 + $0x370] ss:$100 sps:$4 sm:$0xff]  }
 0x261   :  { %v3356_v34 = vadd.f32 %v6639_v40, %v10942_v35  ;;  %6996 = vmatpush3.bf16.msra.mxu0 %v11080_v58  ;;  %v6668_v35 = vpop.f32.mrf.mxu1  ;;  %12236 = vst [vmem:[#allocation62_spill] sm:$0xff] %v11097_v36  ;;  %v12240_v40 = vld [vmem:[#allocation33_spill] sm:$0xff] }
 0x262   :  { %v6641_v60 = vpop.f32.mrf.mxu0  ;;  %6997 = vmatprep.subr.bf16.mxu0 %v11087_v49  ;;  %v12257_v49 = vld [vmem:[#allocation57_spill] sm:$0xff] }
 0x263   :  { %v6642_v31 = vadd.f32 %v6641_v60, %v6640_v14  ;;  %v11090_v48 = vadd.f32 %v6667_v62, %v3356_v34  ;;  %7024 = vmatpush3.bf16.msra.mxu1 %v10159_v32  ;;  %v6669_v10 = vpop.f32.mrf.mxu1  ;;  %v11104_v14 = vld [vmem:[%s12014_s1 + $0x550] sm:$0xff]   ;;  %v12244_v34 = vld [vmem:[#allocation35_spill] sm:$0xff]  ;;  %v11144_v62 = vld [vmem:[%s12014_s1 + $0x500] sm:$0xff]  }
 0x264   :  { %7025 = vmatprep.subr.bf16.mxu1 %v10168_v0  ;;  %v6670_v61 = vadd.f32 %v6669_v10, %v6668_v35  ;;  %12237 = vst [vmem:[#allocation63_spill] sm:$0xff] %v11104_v14  ;;  %v11120_v0 = vld [vmem:[%s12014_s1 + $0x548] sm:$0xff]   ;;  %12245 = vst [vmem:[#allocation35_spill] sm:$0xff] %v11144_v62  ;;  %v12246_v60 = vld [vmem:[#allocation36_spill] sm:$0xff] }
 0x265   :  { %v3359_v50 = vadd.f32 %v6642_v31, %v10959_v18  ;;  %6998 = vmatpush3.bf16.msra.mxu0 %v11097_v36  ;;  %v11113_v18 = vld [vmem:[%s12014_s1 + $0x510] sm:$0xff]   ;;  %12239 = vst [vmem:[#allocation65_spill] sm:$0xff] %v11120_v0  ;;  %v11151_v31 = vld [vmem:[%s12014_s1 + $0x638] sm:$0xff]  }
 0x266   :  { %6999 = vmatprep.subr.bf16.mxu0 %v11104_v14  ;;  %12238 = vst [vmem:[#allocation64_spill] sm:$0xff] %v11113_v18  ;;  %12247 = vst [vmem:[#allocation36_spill] sm:$0xff] %v11151_v31  ;;  %v7897_v35 = vld [vmem:[%s12015_s0 + $0x43c] ss:$100 sps:$4 sm:$0xff]   ;;  %v12256_v36 = vld [vmem:[#allocation32_spill] sm:$0xff] }
 0x267   :  { %v11107_v32 = vadd.f32 %v6670_v61, %v3359_v50  ;;  %7026 = vmatpush3.bf16.msra.mxu1 %v10175_v3  ;;  %v11127_v3 = vld [vmem:[%s12014_s1 + $0x508] sm:$0xff]   ;;  %v7892_v50 = vld [vmem:[%s12015_s0 + $0x378] ss:$100 sps:$4 sm:$0xff]   ;;  %v2552_v58 = vadd.f32 %v12257_v49, %v12256_v36 }
 0x268   :  { %7027 = vmatprep.subr.bf16.mxu1 %v10184_v57  ;;  %12241 = vst [vmem:[#allocation33_spill] sm:$0xff] %v11127_v3  ;;  %v11134_v57 = vld [vmem:[%s12014_s1 + $0x540] sm:$0xff]   ;;  %v12248_v10 = vld [vmem:[#allocation37_spill] sm:$0xff] }
 0x269   :  { %7000 = vmatpush3.bf16.msra.mxu0 %v11113_v18  ;;  %12243 = vst [vmem:[#allocation34_spill] sm:$0xff] %v11134_v57 }
 0x26a   :  { %7001 = vmatprep.subr.bf16.mxu0 %v11120_v0  ;;  %v12252_v0 = vld [vmem:[#allocation41_spill] sm:$0xff] }
 0x26b   :  { %7028 = vmatpush3.bf16.msra.mxu1 %v12240_v40  ;;  %v7900_v40 = vld [vmem:[%s12015_s0 + $0x444] ss:$100 sps:$4 sm:$0xff]  }
 0x26c   :  { %7029 = vmatprep.subr.bf16.mxu1 %v12242_v51  ;;  %v12249_v51 = vld [vmem:[#allocation38_spill] sm:$0xff] }
 0x26d   :  { %7002 = vmatpush3.bf16.msra.mxu0 %v11127_v3 }
 0x26e   :  { %7003 = vmatprep.subr.bf16.mxu0 %v11134_v57 }
 0x26f   :  { %7030 = vmatpush3.bf16.msra.mxu1 %v12244_v34 }
 0x270   :  { %7031 = vmatprep.subr.bf16.mxu1 %v12246_v60  ;;  %v11169_v60 = vld [vmem:[%s12014_s1 + $0x630] sm:$0xff]  }
 0x271   :  { %7004 = vmatpush3.bf16.msra.mxu0 %v11144_v62  ;;  %12250 = vst [vmem:[#allocation37_spill] sm:$0xff] %v11169_v60  ;;  %v12251_v62 = vld [vmem:[#allocation40_spill] sm:$0xff] }
 0x272   :  { %7441 = vmatprep.subr.bf16.mxu0 %v11151_v31 }
 0x273   :  { %7032 = vmatpush3.bf16.msra.mxu1 %v12248_v10 }
 0x274   :  { %v6687_v61 = vpop.f32.mrf.mxu0  ;;  %4345 = vmatmul.mubr.bf16.vlgmr.msra.gmra.mxu0 %v7889_v7  ;;  %7055 = vmatprep.subr.bf16.mxu1 %v12249_v51  ;;  %v7439_v7 = vpop.f32.mrf.mxu1 }
 0x275   :  { %7442 = vmatpush3.bf16.msra.mxu0 %v11151_v31  ;;  %4352 = vmatprep.mubr.bf16.mxu0 %v7897_v35  ;;  %v7895_v31 = vld [vmem:[%s12015_s0 + $0x438] ss:$100 sps:$4 sm:$0xff]   ;;  %v11182_v35 = vld [vmem:[%s12014_s1 + $0x628] sm:$0xff]  }
 0x276   :  { %v6688_v34 = vpop.f32.mrf.mxu0  ;;  %7443 = vmatprep.subr.bf16.mxu0 %v11169_v60  ;;  %4394 = vmatmul.mubr.bf16.vlgmr.msra.gmra.mxu1 %v7892_v50  ;;  %v3494_v3 = vpop.f32.mrf.mxu1  ;;  %12253 = vst [vmem:[#allocation38_spill] sm:$0xff] %v11182_v35 }
 0x277   :  { %v6689_v10 = vadd.f32 %v6688_v34, %v6687_v61  ;;  %7056 = vmatpush3.bf16.msra.mxu1 %v12251_v62  ;;  %4401 = vmatprep.mubr.bf16.mxu1 %v7900_v40  ;;  %v7901_v62 = vld [vmem:[%s12015_s0 + $0x380] ss:$100 sps:$4 sm:$0xff]  }
 0x278   :  { %v6690_v57 = vpop.f32.mrf.mxu0  ;;  %7057 = vmatprep.subr.bf16.mxu1 %v12252_v0  ;;  %v7440_v40 = vpop.f32.mrf.mxu1  ;;  %v12254_v0 = vld [vmem:[#allocation44_spill] sm:$0xff] }
 0x279   :  { %7444 = vmatpush3.bf16.msra.mxu0 %v11169_v60  ;;  %v3446_v51 = vadd.f32 %v6689_v10, %v11053_v63  ;;  %v7898_v63 = vld [vmem:[%s12015_s0 + $0x440] ss:$100 sps:$4 sm:$0xff]   ;;  %v7905_v10 = vld [vmem:[%s12015_s0 + $0x4b4] ss:$100 sps:$4 sm:$0xff]  }
 0x27a   :  { %v6691_v18 = vpop.f32.mrf.mxu0  ;;  %7445 = vmatprep.subr.bf16.mxu0 %v11182_v35  ;;  %v12255_v60 = vld [vmem:[#allocation42_spill] sm:$0xff] }
 0x27b   :  { %v6692_v50 = vadd.f32 %v6691_v18, %v6690_v57  ;;  %v3495_v61 = vadd.f32 %v3494_v3, %v3446_v51  ;;  %7058 = vmatpush3.bf16.msra.mxu1 %v12254_v0  ;;  %v2563_v14 = vmax.f32 %v12255_v60, 0.0  ;;  %v3497_v57 = vpop.f32.mrf.mxu1  ;;  %v12258_v51 = vld [vmem:[#allocation45_spill] sm:$0xff] }
 0x27c   :  { %v6693_v34 = vpop.f32.mrf.mxu0  ;;  %4353 = vmatmul.mubr.bf16.gmra.mxu0 %v7895_v31  ;;  %7059 = vmatprep.subr.bf16.mxu1 %v12258_v51  ;;  %v11204_v31 = vld [vmem:[%s12014_s1 + $0x620] sm:$0xff]  }
 0x27d   :  { %v3509_v18 = vmax.f32 %v3495_v61, 0.0  ;;  %7446 = vmatpush3.bf16.msra.mxu0 %v11182_v35  ;;  %v3449_v3 = vadd.f32 %v6692_v50, %v11073_v38  ;;  %7457 = vmatprep.mubr.bf16.mxu0 %v7901_v62  ;;  %v12260_v61 = vld [vmem:[#allocation46_spill] sm:$0xff]  ;;  %v2564_v50 = vmax.f32 %v2552_v58, 0.0  ;;  %v12263_v58 = vld [vmem:[#allocation48_spill] sm:$0xff] }
 0x27e   :  { %v6694_v0 = vpop.f32.mrf.mxu0  ;;  %7447 = vmatprep.subr.bf16.mxu0 %v11204_v31  ;;  %4402 = vmatmul.mubr.bf16.gmra.mxu1 %v7898_v63 }
 0x27f   :  { %v11207_v60 = vmax.f32 %v2563_v14, %v3509_v18  ;;  %v6695_v49 = vadd.f32 %v6694_v0, %v6693_v34  ;;  %v3498_v36 = vadd.f32 %v3497_v57, %v3449_v3  ;;  %7060 = vmatpush3.bf16.msra.mxu1 %v12260_v61  ;;  %4800 = vmatprep.mubr.bf16.mxu1 %v7905_v10  ;;  %v11216_v14 = vld [vmem:[%s12014_s1 + $0x618] sm:$0xff]   ;;  %v11229_v57 = vld [vmem:[%s12014_s1 + $0x610] sm:$0xff]   ;;  %v12268_v0 = vld [vmem:[#allocation43_spill] sm:$0xff] }
 0x280   :  { %v6696_v38 = vpop.f32.mrf.mxu0  ;;  %7061 = vmatprep.subr.bf16.mxu1 %v12261_v17  ;;  %v12265_v17 = vld [vmem:[#allocation49_spill] sm:$0xff]  ;;  %v11241_v61 = vld [vmem:[%s12014_s1 + $0x608] sm:$0xff]  }
 0x281   :  { %12259 = vst [vmem:[#allocation40_spill] sm:$0xff] %v11207_v60  ;;  %v3454_v51 = vadd.f32 %v6695_v49, %v11090_v48  ;;  %v3510_v35 = vmax.f32 %v3498_v36, 0.0  ;;  %7448 = vmatpush3.bf16.msra.mxu0 %v11204_v31  ;;  %v12264_v48 = vld [vmem:[#allocation39_spill] sm:$0xff]  ;;  %v2566_v49 = vmax.f32 %v12268_v0, 0.0  ;;  %v12276_v0 = vld [vmem:[#allocation58_spill] sm:$0xff] }
 0x282   :  { %v6697_v24 = vpop.f32.mrf.mxu0  ;;  %7449 = vmatprep.subr.bf16.mxu0 %v11216_v14  ;;  %v2565_v10 = vmax.f32 %v12264_v48, 0.0  ;;  %v8294_v48 = vld [vmem:[%s12014_s1 + $0xf8] sm:$0xff]  }
 0x283   :  { %v3503_v62 = vadd.f32 %v7439_v7, %v3454_v51  ;;  %v11219_v63 = vmax.f32 %v2564_v50, %v3510_v35  ;;  %v6698_v34 = vadd.f32 %v6697_v24, %v6696_v38  ;;  %7062 = vmatpush3.bf16.msra.mxu1 %v12263_v58  ;;  %v12267_v35 = vld [vmem:[#allocation50_spill] sm:$0xff]  ;;  %v12271_v50 = vld [vmem:[#allocation52_spill] sm:$0xff]  ;;  %v12274_v58 = vld [vmem:[#allocation55_spill] sm:$0xff] }
 0x284   :  { %7063 = vmatprep.subr.bf16.mxu1 %v12265_v17  ;;  %v11252_v51 = vld [vmem:[%s12014_s1 + $0x600] sm:$0xff]  }
 0x285   :  { %12262 = vst [vmem:[#allocation41_spill] sm:$0xff] %v11219_v63  ;;  %v3511_v18 = vmax.f32 %v3503_v62, 0.0  ;;  %v3457_v3 = vadd.f32 %v6698_v34, %v11107_v32  ;;  %7450 = vmatpush3.bf16.msra.mxu0 %v11216_v14  ;;  %v12269_v32 = vld [vmem:[#allocation51_spill] sm:$0xff]  ;;  %v12273_v62 = vld [vmem:[#allocation54_spill] sm:$0xff] }
 0x286   :  { %7451 = vmatprep.subr.bf16.mxu0 %v11229_v57  ;;  %v7902_v34 = vld [vmem:[%s12015_s0 + $0x448] ss:$100 sps:$4 sm:$0xff]  }
 0x287   :  { %v11232_v7 = vmax.f32 %v2565_v10, %v3511_v18  ;;  %v3506_v24 = vadd.f32 %v7440_v40, %v3457_v3  ;;  %7064 = vmatpush3.bf16.msra.mxu1 %v12267_v35  ;;  %v12272_v40 = vld [vmem:[#allocation53_spill] sm:$0xff]  ;;  %v7903_v18 = vld [vmem:[%s12015_s0 + $0x4b0] ss:$100 sps:$4 sm:$0xff]  }
 0x288   :  { %7065 = vmatprep.subr.bf16.mxu1 %v12269_v32  ;;  %v7911_v10 = vld [vmem:[%s12015_s0 + $0x4bc] ss:$100 sps:$4 sm:$0xff]   ;;  %v12275_v3 = vld [vmem:[#allocation56_spill] sm:$0xff] }
 0x289   :  { %12266 = vst [vmem:[#allocation44_spill] sm:$0xff] %v11232_v7  ;;  %v3512_v36 = vmax.f32 %v3506_v24, 0.0  ;;  %7452 = vmatpush3.bf16.msra.mxu0 %v11229_v57  ;;  %v7908_v24 = vld [vmem:[%s12015_s0 + $0x57c] ss:$100 sps:$4 sm:$0xff]  }
 0x28a   :  { %7453 = vmatprep.subr.bf16.mxu0 %v11241_v61  ;;  %v8295_v35 = vld [vmem:[%s12014_s1 + $0xb8] sm:$0xff]  }
 0x28b   :  { %v11244_v38 = vmax.f32 %v2566_v49, %v3512_v36  ;;  %7066 = vmatpush3.bf16.msra.mxu1 %v12271_v50  ;;  %v8296_v36 = vld [vmem:[%s12014_s1 + $0xf0] sm:$0xff]  }
 0x28c   :  { %7067 = vmatprep.subr.bf16.mxu1 %v12272_v40  ;;  %v12277_v40 = vld [vmem:[#allocation59_spill] sm:$0xff] }
 0x28d   :  { %12270 = vst [vmem:[#allocation42_spill] sm:$0xff] %v11244_v38  ;;  %7454 = vmatpush3.bf16.msra.mxu0 %v11241_v61 }
 0x28e   :  { %7455 = vmatprep.subr.bf16.mxu0 %v11252_v51 }
 0x28f   :  { %7068 = vmatpush3.bf16.msra.mxu1 %v12273_v62 }
 0x290   :  { %7069 = vmatprep.subr.bf16.mxu1 %v12274_v58 }
 0x291   :  { %7456 = vmatpush3.bf16.msra.mxu0 %v11252_v51 }
 0x292   :  { %7083 = vmatprep.subr.bf16.mxu0 %v8294_v48  ;;  %v8297_v48 = vld [vmem:[%s12014_s1 + $0xb0] sm:$0xff]  }
 0x293   :  { %7070 = vmatpush3.bf16.msra.mxu1 %v12275_v3  ;;  %v6753_v50 = vpop.f32.mrf.mxu1  ;;  %v12278_v3 = vld [vmem:[#allocation60_spill] sm:$0xff] }
 0x294   :  { %v6725_v17 = vpop.f32.mrf.mxu0  ;;  %7458 = vmatmul.mubr.bf16.vlgmr.msra.gmra.mxu0 %v7902_v34  ;;  %7111 = vmatprep.subr.bf16.mxu1 %v12276_v0 }
 0x295   :  { %7084 = vmatpush3.bf16.msra.mxu0 %v8295_v35  ;;  %4849 = vmatprep.mubr.bf16.mxu0 %v7911_v10  ;;  %v6754_v58 = vpop.f32.mrf.mxu1  ;;  %v8298_v10 = vld [vmem:[%s12014_s1 + $0xe8] sm:$0xff]  }
 0x296   :  { %v6726_v49 = vpop.f32.mrf.mxu0  ;;  %7085 = vmatprep.subr.bf16.mxu0 %v8296_v36  ;;  %4801 = vmatmul.mubr.bf16.vlgmr.msra.gmra.mxu1 %v7903_v18  ;;  %v6755_v35 = vadd.f32 %v6754_v58, %v6753_v50  ;;  %v12279_v58 = vld [vmem:[#allocation61_spill] sm:$0xff] }
 0x297   :  { %v6727_v32 = vadd.f32 %v6726_v49, %v6725_v17  ;;  %7112 = vmatpush3.bf16.msra.mxu1 %v12277_v40  ;;  %4808 = vmatprep.mubr.bf16.mxu1 %v7908_v24  ;;  %v6756_v17 = vpop.f32.mrf.mxu1  ;;  %v7906_v24 = vld [vmem:[%s12015_s0 + $0x578] ss:$100 sps:$4 sm:$0xff]  }
 0x298   :  { %v6728_v62 = vpop.f32.mrf.mxu0  ;;  %7113 = vmatprep.subr.bf16.mxu1 %v12278_v3 }
 0x299   :  { %v3857_v34 = vadd.f32 %v10435_v15, %v6727_v32  ;;  %7086 = vmatpush3.bf16.msra.mxu0 %v8297_v48  ;;  %v7914_v32 = vld [vmem:[%s12015_s0 + $0x4c4] ss:$100 sps:$4 sm:$0xff]   ;;  %v6757_v40 = vpop.f32.mrf.mxu1 }
 0x29a   :  { %v6729_v0 = vpop.f32.mrf.mxu0  ;;  %7087 = vmatprep.subr.bf16.mxu0 %v8298_v10  ;;  %v6758_v48 = vadd.f32 %v6757_v40, %v6756_v17  ;;  %v8301_v10 = vld [vmem:[%s12014_s1 + $0xa0] sm:$0xff]  }
 0x29b   :  { %v6730_v18 = vadd.f32 %v6729_v0, %v6728_v62  ;;  %v11293_v49 = vadd.f32 %v6755_v35, %v3857_v34  ;;  %7114 = vmatpush3.bf16.msra.mxu1 %v10448_v23  ;;  %v8299_v62 = vld [vmem:[%s12014_s1 + $0xa8] sm:$0xff]   ;;  %v8300_v23 = vld [vmem:[%s12014_s1 + $0xe0] sm:$0xff]   ;;  %v6759_v35 = vpop.f32.mrf.mxu1 }
 0x29c   :  { %v6731_v36 = vpop.f32.mrf.mxu0  ;;  %7115 = vmatprep.subr.bf16.mxu1 %v12279_v58 }
 0x29d   :  { %v3860_v50 = vadd.f32 %v10435_v15, %v6730_v18  ;;  %7088 = vmatpush3.bf16.msra.mxu0 %v8299_v62  ;;  %v11317_v18 = vld [vmem:[%s12016_s2] ss:$0 sm:$0xff]  ;;  %v8304_v62 = vld [vmem:[%s12014_s1 + $0x98] sm:$0xff]  }
 0x29e   :  { %7089 = vmatprep.subr.bf16.mxu0 %v8300_v23  ;;  %v6732_v34 = vpop.f32.mrf.mxu0  ;;  %4809 = vmatmul.mubr.bf16.gmra.mxu1 %v7906_v24  ;;  %v6760_v24 = vpop.f32.mrf.mxu1  ;;  %v8305_v23 = vld [vmem:[%s12014_s1 + $0xd0] sm:$0xff]  }
 0x29f   :  { %v6733_v3 = vadd.f32 %v6732_v34, %v6731_v36  ;;  %v11307_v0 = vadd.f32 %v6758_v48, %v3860_v50  ;;  %7116 = vmatpush3.bf16.msra.mxu1 %v10474_v41  ;;  %4898 = vmatprep.mubr.bf16.mxu1 %v7914_v32  ;;  %v8303_v41 = vld [vmem:[%s12014_s1 + $0xd8] sm:$0xff]   ;;  %v6761_v36 = vadd.f32 %v6760_v24, %v6759_v35  ;;  %v8309_v35 = vld [vmem:[%s12014_s1 + $0xc0] sm:$0xff]  }
 0x2a0   :  { %v6734_v15 = vpop.f32.mrf.mxu0  ;;  %7117 = vmatprep.subr.bf16.mxu1 %v10481_v59  ;;  %v6762_v40 = vpop.f32.mrf.mxu1 }
 0x2a1   :  { %7090 = vmatpush3.bf16.msra.mxu0 %v8301_v10  ;;  %v3865_v17 = vadd.f32 %v11317_v18, %v6733_v3  ;;  %v8306_v3 = vld [vmem:[%s12014_s1 + $0x90] sm:$0xff]  }
 0x2a2   :  { %7091 = vmatprep.subr.bf16.mxu0 %v8303_v41  ;;  %v6735_v32 = vpop.f32.mrf.mxu0  ;;  %v6763_v48 = vpop.f32.mrf.mxu1  ;;  %v8313_v41 = vld [vmem:[%s12014_s1 + $0x1f0] sm:$0xff]  }
 0x2a3   :  { %v6736_v50 = vadd.f32 %v6735_v32, %v6734_v15  ;;  %7118 = vmatpush3.bf16.msra.mxu1 %v10493_v5  ;;  %v11324_v59 = vadd.f32 %v6761_v36, %v3865_v17  ;;  %v6764_v34 = vadd.f32 %v6763_v48, %v6762_v40  ;;  %v7912_v15 = vld [vmem:[%s12015_s0 + $0x4c0] ss:$100 sps:$4 sm:$0xff]   ;;  %v8312_v17 = vld [vmem:[%s12014_s1 + $0x1b8] sm:$0xff]  }
 0x2a4   :  { %7119 = vmatprep.subr.bf16.mxu1 %v10500_v28  ;;  %v8307_v28 = vld [vmem:[%s12014_s1 + $0xc8] sm:$0xff]  }
 0x2a5   :  { %7092 = vmatpush3.bf16.msra.mxu0 %v8304_v62  ;;  %v3868_v58 = vadd.f32 %v11317_v18, %v6736_v50  ;;  %v7915_v50 = vld [vmem:[%s12015_s0 + $0x580] ss:$100 sps:$4 sm:$0xff]   ;;  %v8314_v62 = vld [vmem:[%s12014_s1 + $0x1b0] sm:$0xff]  }
 0x2a6   :  { %7093 = vmatprep.subr.bf16.mxu0 %v8305_v23  ;;  %v7923_v23 = vld [vmem:[%s12015_s0 + $0x4cc] ss:$100 sps:$4 sm:$0xff]  }
 0x2a7   :  { %7120 = vmatpush3.bf16.msra.mxu1 %v10510_v4  ;;  %v11335_v5 = vadd.f32 %v6764_v34, %v3868_v58  ;;  %v8308_v4 = vld [vmem:[%s12014_s1 + $0x88] sm:$0xff]  }
 0x2a8   :  { %7121 = vmatprep.subr.bf16.mxu1 %v10517_v30  ;;  %v7909_v30 = vld [vmem:[%s12015_s0 + $0x4b8] ss:$100 sps:$4 sm:$0xff]  }
 0x2a9   :  { %7094 = vmatpush3.bf16.msra.mxu0 %v8306_v3  ;;  %v7918_v3 = vld [vmem:[%s12015_s0 + $0x588] ss:$100 sps:$4 sm:$0xff]  }
 0x2aa   :  { %7095 = vmatprep.subr.bf16.mxu0 %v8307_v28 }
 0x2ab   :  { %7122 = vmatpush3.bf16.msra.mxu1 %v10526_v12  ;;  %v8310_v12 = vld [vmem:[%s12014_s1 + $0x80] sm:$0xff]  }
 0x2ac   :  { %7123 = vmatprep.subr.bf16.mxu1 %v10533_v8  ;;  %v8311_v8 = vld [vmem:[%s12014_s1 + $0x1f8] sm:$0xff]  }
 0x2ad   :  { %7096 = vmatpush3.bf16.msra.mxu0 %v8308_v4  ;;  %v7926_v4 = vld [vmem:[%s12015_s0 + $0x4d4] ss:$100 sps:$4 sm:$0xff]  }
 0x2ae   :  { %7097 = vmatprep.subr.bf16.mxu0 %v8309_v35 }
 0x2af   :  { %7124 = vmatpush3.bf16.msra.mxu1 %v10540_v11  ;;  %v7917_v11 = vld [vmem:[%s12015_s0 + $0x584] ss:$100 sps:$4 sm:$0xff]  }
 0x2b0   :  { %7125 = vmatprep.subr.bf16.mxu1 %v10547_v13  ;;  %v7920_v13 = vld [vmem:[%s12015_s0 + $0x58c] ss:$100 sps:$4 sm:$0xff]  }
 0x2b1   :  { %7098 = vmatpush3.bf16.msra.mxu0 %v8310_v12  ;;  %v8316_v12 = vld [vmem:[%s12014_s1 + $0x1a8] sm:$0xff]  }
 0x2b2   :  { %7139 = vmatprep.subr.bf16.mxu0 %v8311_v8 }
 0x2b3   :  { %7126 = vmatpush3.bf16.msra.mxu1 %v10557_v9  ;;  %v6809_v36 = vpop.f32.mrf.mxu1 }
 0x2b4   :  { %v6781_v10 = vpop.f32.mrf.mxu0  ;;  %4850 = vmatmul.mubr.bf16.vlgmr.msra.gmra.mxu0 %v7909_v30  ;;  %7167 = vmatprep.subr.bf16.mxu1 %v10564_v26 }
 0x2b5   :  { %7140 = vmatpush3.bf16.msra.mxu0 %v8312_v17  ;;  %4857 = vmatprep.mubr.bf16.mxu0 %v7917_v11  ;;  %v6810_v40 = vpop.f32.mrf.mxu1 }
 0x2b6   :  { %v6782_v24 = vpop.f32.mrf.mxu0  ;;  %7141 = vmatprep.subr.bf16.mxu0 %v8313_v41  ;;  %4899 = vmatmul.mubr.bf16.vlgmr.msra.gmra.mxu1 %v7912_v15  ;;  %v6811_v58 = vadd.f32 %v6810_v40, %v6809_v36  ;;  %v8319_v36 = vld [vmem:[%s12014_s1 + $0x1d8] sm:$0xff]  }
 0x2b7   :  { %v6783_v9 = vadd.f32 %v6782_v24, %v6781_v10  ;;  %7168 = vmatpush3.bf16.msra.mxu1 %v10580_v53  ;;  %4906 = vmatprep.mubr.bf16.mxu1 %v7920_v13  ;;  %v8315_v53 = vld [vmem:[%s12014_s1 + $0x1e8] sm:$0xff]   ;;  %v6812_v34 = vpop.f32.mrf.mxu1  ;;  %v8318_v24 = vld [vmem:[%s12014_s1 + $0x1a0] sm:$0xff]  }
 0x2b8   :  { %v6784_v32 = vpop.f32.mrf.mxu0  ;;  %7169 = vmatprep.subr.bf16.mxu1 %v10587_v44 }
 0x2b9   :  { %v3955_v26 = vadd.f32 %v6783_v9, %v11293_v49  ;;  %7142 = vmatpush3.bf16.msra.mxu0 %v8314_v62  ;;  %v6813_v30 = vpop.f32.mrf.mxu1  ;;  %v8321_v62 = vld [vmem:[%s12014_s1 + $0x1d0] sm:$0xff]  }
 0x2ba   :  { %v6785_v48 = vpop.f32.mrf.mxu0  ;;  %7143 = vmatprep.subr.bf16.mxu0 %v8315_v53  ;;  %v6814_v8 = vadd.f32 %v6813_v30, %v6812_v34  ;;  %v8329_v34 = vld [vmem:[%s12014_s1 + $0x2f0] sm:$0xff]  }
 0x2bb   :  { %v6786_v49 = vadd.f32 %v6785_v48, %v6784_v32  ;;  %v11398_v28 = vadd.f32 %v6811_v58, %v3955_v26  ;;  %7170 = vmatpush3.bf16.msra.mxu1 %v10598_v33  ;;  %v8317_v33 = vld [vmem:[%s12014_s1 + $0x1e0] sm:$0xff]   ;;  %v6815_v10 = vpop.f32.mrf.mxu1  ;;  %v7924_v48 = vld [vmem:[%s12015_s0 + $0x4d0] ss:$100 sps:$4 sm:$0xff]  }
 0x2bc   :  { %v6787_v44 = vpop.f32.mrf.mxu0  ;;  %4858 = vmatmul.mubr.bf16.gmra.mxu0 %v7915_v50  ;;  %7171 = vmatprep.subr.bf16.mxu1 %v10605_v47  ;;  %v8330_v30 = vld [vmem:[%s12014_s1 + $0x2b0] sm:$0xff]  }
 0x2bd   :  { %v3958_v35 = vadd.f32 %v6786_v49, %v11307_v0  ;;  %7144 = vmatpush3.bf16.msra.mxu0 %v8316_v12  ;;  %4947 = vmatprep.mubr.bf16.mxu0 %v7923_v23  ;;  %v6816_v47 = vpop.f32.mrf.mxu1  ;;  %v8328_v23 = vld [vmem:[%s12014_s1 + $0x2b8] sm:$0xff]   ;;  %v8331_v12 = vld [vmem:[%s12014_s1 + $0x370] sm:$0xff]  }
 0x2be   :  { %v6788_v11 = vpop.f32.mrf.mxu0  ;;  %7145 = vmatprep.subr.bf16.mxu0 %v8317_v33  ;;  %4907 = vmatmul.mubr.bf16.gmra.mxu1 %v7918_v3  ;;  %v6817_v41 = vadd.f32 %v6816_v47, %v6815_v10  ;;  %v7930_v10 = vld [vmem:[%s12015_s0 + $0x598] ss:$100 sps:$4 sm:$0xff]   ;;  %v7938_v47 = vld [vmem:[%s12015_s0 + $0x4e4] ss:$100 sps:$4 sm:$0xff]  }
 0x2bf   :  { %v6789_v15 = vadd.f32 %v6788_v11, %v6787_v44  ;;  %v11412_v0 = vadd.f32 %v6814_v8, %v3958_v35  ;;  %7172 = vmatpush3.bf16.msra.mxu1 %v10624_v45  ;;  %4996 = vmatprep.mubr.bf16.mxu1 %v7926_v4  ;;  %v6818_v32 = vpop.f32.mrf.mxu1  ;;  %v7927_v4 = vld [vmem:[%s12015_s0 + $0x590] ss:$100 sps:$4 sm:$0xff]   ;;  %v8332_v11 = vld [vmem:[%s12014_s1 + $0x2e8] sm:$0xff]  }
 0x2c0   :  { %v6790_v13 = vpop.f32.mrf.mxu0  ;;  %7173 = vmatprep.subr.bf16.mxu1 %v10631_v56  ;;  %v8320_v56 = vld [vmem:[%s12014_s1 + $0x198] sm:$0xff]  }
 0x2c1   :  { %v3963_v17 = vadd.f32 %v6789_v15, %v11324_v59  ;;  %7146 = vmatpush3.bf16.msra.mxu0 %v8318_v24  ;;  %v6819_v26 = vpop.f32.mrf.mxu1 }
 0x2c2   :  { %v6791_v9 = vpop.f32.mrf.mxu0  ;;  %7147 = vmatprep.subr.bf16.mxu0 %v8319_v36  ;;  %v6820_v40 = vadd.f32 %v6819_v26, %v6818_v32 }
 0x2c3   :  { %v6792_v45 = vadd.f32 %v6791_v9, %v6790_v13  ;;  %v11423_v50 = vadd.f32 %v6817_v41, %v3963_v17  ;;  %7174 = vmatpush3.bf16.msra.mxu1 %v10641_v22  ;;  %v8322_v22 = vld [vmem:[%s12014_s1 + $0x190] sm:$0xff]   ;;  %v8333_v9 = vld [vmem:[%s12014_s1 + $0x2a8] sm:$0xff]  }
 0x2c4   :  { %7175 = vmatprep.subr.bf16.mxu1 %v10648_v27  ;;  %v8323_v27 = vld [vmem:[%s12014_s1 + $0x1c8] sm:$0xff]  }
 0x2c5   :  { %v3966_v59 = vadd.f32 %v6792_v45, %v11335_v5  ;;  %7148 = vmatpush3.bf16.msra.mxu0 %v8320_v56  ;;  %v8324_v5 = vld [vmem:[%s12014_s1 + $0x188] sm:$0xff]  }
 0x2c6   :  { %7149 = vmatprep.subr.bf16.mxu0 %v8321_v62 }
 0x2c7   :  { %v11434_v58 = vadd.f32 %v6820_v40, %v3966_v59  ;;  %7176 = vmatpush3.bf16.msra.mxu1 %v10658_v29  ;;  %v8325_v29 = vld [vmem:[%s12014_s1 + $0x1c0] sm:$0xff]  }
 0x2c8   :  { %7177 = vmatprep.subr.bf16.mxu1 %v10665_v2  ;;  %v7921_v2 = vld [vmem:[%s12015_s0 + $0x4c8] ss:$100 sps:$4 sm:$0xff]   ;;  %v8335_v40 = vld [vmem:[%s12014_s1 + $0x2a0] sm:$0xff]  }
 0x2c9   :  { %7150 = vmatpush3.bf16.msra.mxu0 %v8322_v22 }
 0x2ca   :  { %7151 = vmatprep.subr.bf16.mxu0 %v8323_v27  ;;  %v8336_v27 = vld [vmem:[%s12014_s1 + $0x2d8] sm:$0xff]  }
 0x2cb   :  { %7178 = vmatpush3.bf16.msra.mxu1 %v10674_v6  ;;  %v8326_v6 = vld [vmem:[%s12014_s1 + $0x180] sm:$0xff]  }
 0x2cc   :  { %7179 = vmatprep.subr.bf16.mxu1 %v10681_v25  ;;  %v8327_v25 = vld [vmem:[%s12014_s1 + $0x2f8] sm:$0xff]  }
 0x2cd   :  { %7152 = vmatpush3.bf16.msra.mxu0 %v8324_v5 }
 0x2ce   :  { %7153 = vmatprep.subr.bf16.mxu0 %v8325_v29 }
 0x2cf   :  { %7180 = vmatpush3.bf16.msra.mxu1 %v10688_v39  ;;  %v7929_v39 = vld [vmem:[%s12015_s0 + $0x594] ss:$100 sps:$4 sm:$0xff]  }
 0x2d0   :  { %7181 = vmatprep.subr.bf16.mxu1 %v10695_v43  ;;  %v7932_v43 = vld [vmem:[%s12015_s0 + $0x59c] ss:$100 sps:$4 sm:$0xff]  }
 0x2d1   :  { %7154 = vmatpush3.bf16.msra.mxu0 %v8326_v6 }
 0x2d2   :  { %7195 = vmatprep.subr.bf16.mxu0 %v8327_v25  ;;  %v8338_v25 = vld [vmem:[%s12014_s1 + $0x2d0] sm:$0xff]  }
 0x2d3   :  { %7182 = vmatpush3.bf16.msra.mxu1 %v10705_v19  ;;  %v6865_v3 = vpop.f32.mrf.mxu1 }
 0x2d4   :  { %v6837_v53 = vpop.f32.mrf.mxu0  ;;  %4948 = vmatmul.mubr.bf16.vlgmr.msra.gmra.mxu0 %v7921_v2  ;;  %7223 = vmatprep.subr.bf16.mxu1 %v10712_v52 }
 0x2d5   :  { %7196 = vmatpush3.bf16.msra.mxu0 %v8328_v23  ;;  %4955 = vmatprep.mubr.bf16.mxu0 %v7929_v39  ;;  %v6866_v35 = vpop.f32.mrf.mxu1  ;;  %v8343_v23 = vld [vmem:[%s12014_s1 + $0x280] sm:$0xff]  }
 0x2d6   :  { %v6838_v49 = vpop.f32.mrf.mxu0  ;;  %7197 = vmatprep.subr.bf16.mxu0 %v8329_v34  ;;  %4997 = vmatmul.mubr.bf16.vlgmr.msra.gmra.mxu1 %v7924_v48  ;;  %v8341_v48 = vld [vmem:[%s12014_s1 + $0x288] sm:$0xff]   ;;  %v8344_v34 = vld [vmem:[%s12014_s1 + $0x3f8] sm:$0xff]  }
 0x2d7   :  { %v6839_v19 = vadd.f32 %v6838_v49, %v6837_v53  ;;  %7224 = vmatpush3.bf16.msra.mxu1 %v10728_v42  ;;  %5004 = vmatprep.mubr.bf16.mxu1 %v7932_v43  ;;  %v6867_v42 = vadd.f32 %v6866_v35, %v6865_v3  ;;  %v6868_v15 = vpop.f32.mrf.mxu1  ;;  %v8342_v53 = vld [vmem:[%s12014_s1 + $0x2c0] sm:$0xff]   ;;  %v7933_v43 = vld [vmem:[%s12015_s0 + $0x4d8] ss:$100 sps:$4 sm:$0xff]  }
 0x2d8   :  { %v6840_v44 = vpop.f32.mrf.mxu0  ;;  %7225 = vmatprep.subr.bf16.mxu1 %v8331_v12  ;;  %v12283_v49 = vld [vmem:[#allocation5_spill] sm:$0xff]  ;;  %v7936_v3 = vld [vmem:[%s12015_s0 + $0x4e0] ss:$100 sps:$4 sm:$0xff]  }
 0x2d9   :  { %v4053_v52 = vadd.f32 %v6839_v19, %v11398_v28  ;;  %7198 = vmatpush3.bf16.msra.mxu0 %v8330_v30  ;;  %v7935_v28 = vld [vmem:[%s12015_s0 + $0x4dc] ss:$100 sps:$4 sm:$0xff]   ;;  %v6869_v41 = vpop.f32.mrf.mxu1  ;;  %v7941_v19 = vld [vmem:[%s12015_s0 + $0x5a4] ss:$100 sps:$4 sm:$0xff]  }
 0x2da   :  { %v6841_v8 = vpop.f32.mrf.mxu0  ;;  %7199 = vmatprep.subr.bf16.mxu0 %v8332_v11  ;;  %v6870_v36 = vadd.f32 %v6869_v41, %v6868_v15  ;;  %v8345_v35 = vld [vmem:[%s12014_s1 + $0x3b8] sm:$0xff]   ;;  %v12285_v30 = vld [vmem:[#allocation7_spill] sm:$0xff]  ;;  %v7939_v15 = vld [vmem:[%s12015_s0 + $0x5a0] ss:$100 sps:$4 sm:$0xff]  }
 0x2db   :  { %v6842_v33 = vadd.f32 %v6841_v8, %v6840_v44  ;;  %v11500_v13 = vadd.f32 %v6867_v42, %v4053_v52  ;;  %7226 = vmatpush3.bf16.msra.mxu1 %v10741_v16  ;;  %v8334_v16 = vld [vmem:[%s12014_s1 + $0x2e0] sm:$0xff]   ;;  %v6871_v59 = vpop.f32.mrf.mxu1  ;;  %v7944_v52 = vld [vmem:[%s12015_s0 + $0x5ac] ss:$100 sps:$4 sm:$0xff]  }
 0x2dc   :  { %v6843_v17 = vpop.f32.mrf.mxu0  ;;  %4956 = vmatmul.mubr.bf16.gmra.mxu0 %v7927_v4  ;;  %7227 = vmatprep.subr.bf16.mxu1 %v10748_v37  ;;  %v12284_v44 = vld [vmem:[#allocation6_spill] sm:$0xff]  ;;  %v8346_v42 = vld [vmem:[%s12014_s1 + $0x3f0] sm:$0xff]  }
 0x2dd   :  { %v4056_v24 = vadd.f32 %v6842_v33, %v11412_v0  ;;  %7200 = vmatpush3.bf16.msra.mxu0 %v8333_v9  ;;  %5045 = vmatprep.mubr.bf16.mxu0 %v7935_v28  ;;  %v6872_v37 = vpop.f32.mrf.mxu1  ;;  %v12286_v28 = vld [vmem:[#allocation8_spill] sm:$0xff] }
 0x2de   :  { %v6844_v45 = vpop.f32.mrf.mxu0  ;;  %7201 = vmatprep.subr.bf16.mxu0 %v8334_v16  ;;  %5005 = vmatmul.mubr.bf16.gmra.mxu1 %v7930_v10  ;;  %v6873_v62 = vadd.f32 %v6872_v37, %v6871_v59  ;;  %v7950_v37 = vld [vmem:[%s12015_s0 + $0x4f4] ss:$100 sps:$4 sm:$0xff]  }
 0x2df   :  { %v6845_v32 = vadd.f32 %v6844_v45, %v6843_v17  ;;  %v11514_v0 = vadd.f32 %v6870_v36, %v4056_v24  ;;  %7228 = vmatpush3.bf16.msra.mxu1 %v10767_v20  ;;  %5094 = vmatprep.mubr.bf16.mxu1 %v7938_v47  ;;  %v6874_v5 = vpop.f32.mrf.mxu1  ;;  %v8347_v47 = vld [vmem:[%s12014_s1 + $0x3b0] sm:$0xff]   ;;  %v12287_v24 = vld [vmem:[#allocation9_spill] sm:$0xff]  ;;  %v8348_v36 = vld [vmem:[%s12014_s1 + $0x3e8] sm:$0xff]  }
 0x2e0   :  { %v6846_v26 = vpop.f32.mrf.mxu0  ;;  %7229 = vmatprep.subr.bf16.mxu1 %v10774_v1  ;;  %v8337_v1 = vld [vmem:[%s12014_s1 + $0x298] sm:$0xff]   ;;  %v7947_v45 = vld [vmem:[%s12015_s0 + $0x4ec] ss:$100 sps:$4 sm:$0xff]  }
 0x2e1   :  { %v4061_v56 = vadd.f32 %v6845_v32, %v11423_v50  ;;  %7202 = vmatpush3.bf16.msra.mxu0 %v8335_v40  ;;  %v6875_v2 = vpop.f32.mrf.mxu1  ;;  %v7942_v32 = vld [vmem:[%s12015_s0 + $0x5a8] ss:$100 sps:$4 sm:$0xff]  }
 0x2e2   :  { %v6847_v22 = vpop.f32.mrf.mxu0  ;;  %7203 = vmatprep.subr.bf16.mxu0 %v8336_v27  ;;  %v6876_v6 = vadd.f32 %v6875_v2, %v6874_v5  ;;  %v12289_v27 = vld [vmem:[#allocation11_spill] sm:$0xff] }
 0x2e3   :  { %v6848_v20 = vadd.f32 %v6847_v22, %v6846_v26  ;;  %v11525_v29 = vadd.f32 %v6873_v62, %v4061_v56  ;;  %7230 = vmatpush3.bf16.msra.mxu1 %v10784_v55  ;;  %v8339_v55 = vld [vmem:[%s12014_s1 + $0x290] sm:$0xff]   ;;  %v12288_v26 = vld [vmem:[#allocation10_spill] sm:$0xff]  ;;  %v8349_v22 = vld [vmem:[%s12014_s1 + $0x3a8] sm:$0xff]  }
 0x2e4   :  { %7231 = vmatprep.subr.bf16.mxu1 %v10791_v54  ;;  %v8340_v54 = vld [vmem:[%s12014_s1 + $0x2c8] sm:$0xff]  }
 0x2e5   :  { %v4064_v50 = vadd.f32 %v6848_v20, %v11434_v58  ;;  %7204 = vmatpush3.bf16.msra.mxu0 %v8337_v1  ;;  %v12280_v58 = vld [vmem:[#allocation2_spill] sm:$0xff] }
 0x2e6   :  { %7205 = vmatprep.subr.bf16.mxu0 %v8338_v25 }
 0x2e7   :  { %v11536_v39 = vadd.f32 %v6876_v6, %v4064_v50  ;;  %7232 = vmatpush3.bf16.msra.mxu1 %v10801_v21  ;;  %v12281_v21 = vld [vmem:[#allocation3_spill] sm:$0xff]  ;;  %v8350_v50 = vld [vmem:[%s12014_s1 + $0x3e0] sm:$0xff]   ;;  %v12290_v6 = vld [vmem:[#allocation12_spill] sm:$0xff] }
 0x2e8   :  { %7233 = vmatprep.subr.bf16.mxu1 %v10808_v46  ;;  %v12282_v46 = vld [vmem:[#allocation4_spill] sm:$0xff] }
 0x2e9   :  { %7206 = vmatpush3.bf16.msra.mxu0 %v8339_v55 }
 0x2ea   :  { %7207 = vmatprep.subr.bf16.mxu0 %v8340_v54 }
 0x2eb   :  { %7234 = vmatpush3.bf16.msra.mxu1 %v12280_v58  ;;  %v8351_v58 = vld [vmem:[%s12014_s1 + $0x3a0] sm:$0xff]  }
 0x2ec   :  { %7235 = vmatprep.subr.bf16.mxu1 %v12281_v21 }
 0x2ed   :  { %7208 = vmatpush3.bf16.msra.mxu0 %v8341_v48  ;;  %v12291_v48 = vld [vmem:[#allocation13_spill] sm:$0xff] }
 0x2ee   :  { %7209 = vmatprep.subr.bf16.mxu0 %v8342_v53 }
 0x2ef   :  { %7236 = vmatpush3.bf16.msra.mxu1 %v12282_v46  ;;  %v8352_v46 = vld [vmem:[%s12014_s1 + $0x3d8] sm:$0xff]  }
 0x2f0   :  { %7237 = vmatprep.subr.bf16.mxu1 %v12283_v49 }
 0x2f1   :  { %7210 = vmatpush3.bf16.msra.mxu0 %v8343_v23 }
 0x2f2   :  { %7251 = vmatprep.subr.bf16.mxu0 %v8344_v34 }
 0x2f3   :  { %7238 = vmatpush3.bf16.msra.mxu1 %v12284_v44  ;;  %v12293_v44 = vld [vmem:[#allocation15_spill] sm:$0xff] }
 0x2f4   :  { %v6893_v4 = vpop.f32.mrf.mxu0  ;;  %5046 = vmatmul.mubr.bf16.vlgmr.msra.gmra.mxu0 %v7933_v43  ;;  %7279 = vmatprep.subr.bf16.mxu1 %v12285_v30  ;;  %v12294_v30 = vld [vmem:[#allocation16_spill] sm:$0xff] }
 0x2f5   :  { %7252 = vmatpush3.bf16.msra.mxu0 %v8345_v35  ;;  %5053 = vmatprep.mubr.bf16.mxu0 %v7941_v19 }
 0x2f6   :  { %v6894_v12 = vpop.f32.mrf.mxu0  ;;  %7253 = vmatprep.subr.bf16.mxu0 %v8346_v42  ;;  %v6921_v11 = vpop.f32.mrf.mxu1  ;;  %5095 = vmatmul.mubr.bf16.vlgmr.msra.gmra.mxu1 %v7936_v3  ;;  %v8353_v3 = vld [vmem:[%s12014_s1 + $0x398] sm:$0xff]   ;;  %v8356_v42 = vld [vmem:[%s12014_s1 + $0x3c8] sm:$0xff]  }
 0x2f7   :  { %v6895_v8 = vadd.f32 %v6894_v12, %v6893_v4  ;;  %7280 = vmatpush3.bf16.msra.mxu1 %v12286_v28  ;;  %5102 = vmatprep.mubr.bf16.mxu1 %v7944_v52  ;;  %v8354_v52 = vld [vmem:[%s12014_s1 + $0x3d0] sm:$0xff]   ;;  %v12295_v12 = vld [vmem:[#allocation17_spill] sm:$0xff]  ;;  %v12297_v28 = vld [vmem:[#allocation19_spill] sm:$0xff] }
 0x2f8   :  { %v6896_v33 = vpop.f32.mrf.mxu0  ;;  %v6922_v17 = vpop.f32.mrf.mxu1  ;;  %7281 = vmatprep.subr.bf16.mxu1 %v12287_v24  ;;  %v8360_v24 = vld [vmem:[%s12014_s1 + $0x4f8] sm:$0xff]  }
 0x2f9   :  { %v4151_v10 = vadd.f32 %v6895_v8, %v11500_v13  ;;  %7254 = vmatpush3.bf16.msra.mxu0 %v8347_v47  ;;  %v6923_v41 = vadd.f32 %v6922_v17, %v6921_v11  ;;  %v12296_v8 = vld [vmem:[#allocation18_spill] sm:$0xff]  ;;  %v8357_v11 = vld [vmem:[%s12014_s1 + $0x388] sm:$0xff]   ;;  %v12299_v47 = vld [vmem:[#allocation21_spill] sm:$0xff] }
 0x2fa   :  { %v6897_v9 = vpop.f32.mrf.mxu0  ;;  %7255 = vmatprep.subr.bf16.mxu0 %v8348_v36  ;;  %v6924_v16 = vpop.f32.mrf.mxu1  ;;  %v8359_v17 = vld [vmem:[%s12014_s1 + $0x380] sm:$0xff]  }
 0x2fb   :  { %v6898_v13 = vadd.f32 %v6897_v9, %v6896_v33  ;;  %v11600_v59 = vadd.f32 %v6923_v41, %v4151_v10  ;;  %7282 = vmatpush3.bf16.msra.mxu1 %v12288_v26  ;;  %v8358_v33 = vld [vmem:[%s12014_s1 + $0x3c0] sm:$0xff]   ;;  %v7945_v10 = vld [vmem:[%s12015_s0 + $0x4e8] ss:$100 sps:$4 sm:$0xff]   ;;  %v7953_v41 = vld [vmem:[%s12015_s0 + $0x5b4] ss:$100 sps:$4 sm:$0xff]  }
 0x2fc   :  { %v6899_v56 = vpop.f32.mrf.mxu0  ;;  %5054 = vmatmul.mubr.bf16.gmra.mxu0 %v7939_v15  ;;  %v6925_v62 = vpop.f32.mrf.mxu1  ;;  %7283 = vmatprep.subr.bf16.mxu1 %v12289_v27  ;;  %v12298_v15 = vld [vmem:[#allocation20_spill] sm:$0xff]  ;;  %v12300_v36 = vld [vmem:[#allocation22_spill] sm:$0xff] }
 0x2fd   :  { %v4154_v40 = vadd.f32 %v6898_v13, %v11514_v0  ;;  %7256 = vmatpush3.bf16.msra.mxu0 %v8349_v22  ;;  %v6926_v20 = vadd.f32 %v6925_v62, %v6924_v16  ;;  %5143 = vmatprep.mubr.bf16.mxu0 %v7947_v45  ;;  %v7948_v9 = vld [vmem:[%s12015_s0 + $0x4f0] ss:$100 sps:$4 sm:$0xff]   ;;  %v7956_v13 = vld [vmem:[%s12015_s0 + $0x5bc] ss:$100 sps:$4 sm:$0xff]  }
 0x2fe   :  { %v6900_v5 = vpop.f32.mrf.mxu0  ;;  %7257 = vmatprep.subr.bf16.mxu0 %v8350_v50  ;;  %v6927_v1 = vpop.f32.mrf.mxu1  ;;  %5103 = vmatmul.mubr.bf16.gmra.mxu1 %v7942_v32  ;;  %v8361_v16 = vld [vmem:[%s12014_s1 + $0x4b8] sm:$0xff]   ;;  %v12301_v32 = vld [vmem:[#allocation23_spill] sm:$0xff]  ;;  %v12302_v62 = vld [vmem:[#allocation24_spill] sm:$0xff] }
 0x2ff   :  { %v6901_v2 = vadd.f32 %v6900_v5, %v6899_v56  ;;  %v11614_v0 = vadd.f32 %v6926_v20, %v4154_v40  ;;  %7284 = vmatpush3.bf16.msra.mxu1 %v12290_v6  ;;  %5192 = vmatprep.mubr.bf16.mxu1 %v7950_v37  ;;  %v8362_v56 = vld [vmem:[%s12014_s1 + $0x4f0] sm:$0xff]  }
 0x300   :  { %v6902_v25 = vpop.f32.mrf.mxu0  ;;  %v6928_v54 = vpop.f32.mrf.mxu1  ;;  %7285 = vmatprep.subr.bf16.mxu1 %v12291_v48  ;;  %v7951_v27 = vld [vmem:[%s12015_s0 + $0x5b0] ss:$100 sps:$4 sm:$0xff]  }
 0x301   :  { %v4159_v55 = vadd.f32 %v6901_v2, %v11525_v29  ;;  %7258 = vmatpush3.bf16.msra.mxu0 %v8351_v58  ;;  %v6929_v21 = vadd.f32 %v6928_v54, %v6927_v1  ;;  %v12292_v29 = vld [vmem:[#allocation14_spill] sm:$0xff]  ;;  %v8363_v50 = vld [vmem:[%s12014_s1 + $0x4b0] sm:$0xff]   ;;  %v12303_v2 = vld [vmem:[#allocation25_spill] sm:$0xff] }
 0x302   :  { %v6903_v53 = vpop.f32.mrf.mxu0  ;;  %7259 = vmatprep.subr.bf16.mxu0 %v8352_v46  ;;  %v6930_v23 = vpop.f32.mrf.mxu1  ;;  %v7954_v58 = vld [vmem:[%s12015_s0 + $0x5b8] ss:$100 sps:$4 sm:$0xff]   ;;  %v7962_v46 = vld [vmem:[%s12015_s0 + $0x504] ss:$100 sps:$4 sm:$0xff]  }
 0x303   :  { %v6904_v43 = vadd.f32 %v6903_v53, %v6902_v25  ;;  %v11625_v49 = vadd.f32 %v6929_v21, %v4159_v55  ;;  %7286 = vmatpush3.bf16.msra.mxu1 %v12292_v29  ;;  %v8364_v25 = vld [vmem:[%s12014_s1 + $0x4e8] sm:$0xff]   ;;  %v7959_v55 = vld [vmem:[%s12015_s0 + $0x4fc] ss:$100 sps:$4 sm:$0xff]  }
 0x304   :  { %v6931_v19 = vpop.f32.mrf.mxu1  ;;  %7287 = vmatprep.subr.bf16.mxu1 %v12293_v44  ;;  %v12304_v21 = vld [vmem:[#allocation26_spill] sm:$0xff]  ;;  %v8365_v29 = vld [vmem:[%s12014_s1 + $0x4a8] sm:$0xff]  }
 0x305   :  { %v4162_v34 = vadd.f32 %v6904_v43, %v11536_v39  ;;  %7260 = vmatpush3.bf16.msra.mxu0 %v8353_v3  ;;  %v6932_v4 = vadd.f32 %v6931_v19, %v6930_v23  ;;  %v8355_v39 = vld [vmem:[%s12014_s1 + $0x390] sm:$0xff]   ;;  %v8366_v44 = vld [vmem:[%s12014_s1 + $0x4e0] sm:$0xff]  }
 0x306   :  { %7261 = vmatprep.subr.bf16.mxu0 %v8354_v52 }
 0x307   :  { %v11636_v35 = vadd.f32 %v6932_v4, %v4162_v34  ;;  %7288 = vmatpush3.bf16.msra.mxu1 %v12294_v30  ;;  %v12305_v34 = vld [vmem:[#allocation27_spill] sm:$0xff]  ;;  %v12306_v30 = vld [vmem:[#allocation28_spill] sm:$0xff] }
 0x308   :  { %7289 = vmatprep.subr.bf16.mxu1 %v12295_v12 }
 0x309   :  { %7262 = vmatpush3.bf16.msra.mxu0 %v8355_v39 }
 0x30a   :  { %7263 = vmatprep.subr.bf16.mxu0 %v8356_v42 }
 0x30b   :  { %7290 = vmatpush3.bf16.msra.mxu1 %v12296_v8  ;;  %v8367_v8 = vld [vmem:[%s12014_s1 + $0x4a0] sm:$0xff]  }
 0x30c   :  { %7291 = vmatprep.subr.bf16.mxu1 %v12297_v28 }
 0x30d   :  { %7264 = vmatpush3.bf16.msra.mxu0 %v8357_v11  ;;  %v12307_v11 = vld [vmem:[#allocation29_spill] sm:$0xff] }
 0x30e   :  { %7265 = vmatprep.subr.bf16.mxu0 %v8358_v33 }
 0x30f   :  { %7292 = vmatpush3.bf16.msra.mxu1 %v12298_v15  ;;  %v8368_v15 = vld [vmem:[%s12014_s1 + $0x4d8] sm:$0xff]  }
 0x310   :  { %7293 = vmatprep.subr.bf16.mxu1 %v12299_v47 }
 0x311   :  { %7266 = vmatpush3.bf16.msra.mxu0 %v8359_v17 }
 0x312   :  { %7307 = vmatprep.subr.bf16.mxu0 %v8360_v24 }
 0x313   :  { %7294 = vmatpush3.bf16.msra.mxu1 %v12300_v36  ;;  %v12309_v36 = vld [vmem:[#allocation31_spill] sm:$0xff] }
 0x314   :  { %v6949_v45 = vpop.f32.mrf.mxu0  ;;  %5144 = vmatmul.mubr.bf16.vlgmr.msra.gmra.mxu0 %v7945_v10  ;;  %7335 = vmatprep.subr.bf16.mxu1 %v12301_v32  ;;  %v12310_v32 = vld [vmem:[#allocation62_spill] sm:$0xff] }
 0x315   :  { %7308 = vmatpush3.bf16.msra.mxu0 %v8361_v16  ;;  %5151 = vmatprep.mubr.bf16.mxu0 %v7953_v41 }
 0x316   :  { %v6950_v26 = vpop.f32.mrf.mxu0  ;;  %7309 = vmatprep.subr.bf16.mxu0 %v8362_v56  ;;  %v6977_v40 = vpop.f32.mrf.mxu1  ;;  %5193 = vmatmul.mubr.bf16.vlgmr.msra.gmra.mxu1 %v7948_v9  ;;  %v8369_v9 = vld [vmem:[%s12014_s1 + $0x498] sm:$0xff]   ;;  %v8372_v56 = vld [vmem:[%s12014_s1 + $0x4c8] sm:$0xff]  }
 0x317   :  { %v6951_v37 = vadd.f32 %v6950_v26, %v6949_v45  ;;  %7336 = vmatpush3.bf16.msra.mxu1 %v12302_v62  ;;  %5200 = vmatprep.mubr.bf16.mxu1 %v7956_v13  ;;  %v8370_v13 = vld [vmem:[%s12014_s1 + $0x4d0] sm:$0xff]   ;;  %v12311_v26 = vld [vmem:[#allocation63_spill] sm:$0xff]  ;;  %v12313_v62 = vld [vmem:[#allocation65_spill] sm:$0xff] }
 0x318   :  { %v6952_v22 = vpop.f32.mrf.mxu0  ;;  %v6978_v5 = vpop.f32.mrf.mxu1  ;;  %7337 = vmatprep.subr.bf16.mxu1 %v12303_v2  ;;  %v8376_v2 = vld [vmem:[%s12014_s1 + $0x5f8] sm:$0xff]  }
 0x319   :  { %v4249_v20 = vadd.f32 %v6951_v37, %v11600_v59  ;;  %7310 = vmatpush3.bf16.msra.mxu0 %v8363_v50  ;;  %v6979_v1 = vadd.f32 %v6978_v5, %v6977_v40  ;;  %v12312_v37 = vld [vmem:[#allocation64_spill] sm:$0xff]  ;;  %v8373_v40 = vld [vmem:[%s12014_s1 + $0x488] sm:$0xff]   ;;  %v8375_v5 = vld [vmem:[%s12014_s1 + $0x480] sm:$0xff]  }
 0x31a   :  { %v6953_v6 = vpop.f32.mrf.mxu0  ;;  %7311 = vmatprep.subr.bf16.mxu0 %v8364_v25  ;;  %v6980_v54 = vpop.f32.mrf.mxu1  ;;  %v12315_v50 = vld [vmem:[#allocation34_spill] sm:$0xff]  ;;  %v12316_v25 = vld [vmem:[#allocation35_spill] sm:$0xff] }
 0x31b   :  { %v6954_v59 = vadd.f32 %v6953_v6, %v6952_v22  ;;  %v11700_v48 = vadd.f32 %v6979_v1, %v4249_v20  ;;  %7338 = vmatpush3.bf16.msra.mxu1 %v12304_v21  ;;  %v8374_v22 = vld [vmem:[%s12014_s1 + $0x4c0] sm:$0xff]   ;;  %v7957_v20 = vld [vmem:[%s12015_s0 + $0x4f8] ss:$100 sps:$4 sm:$0xff]  }
 0x31c   :  { %v6955_v53 = vpop.f32.mrf.mxu0  ;;  %5152 = vmatmul.mubr.bf16.gmra.mxu0 %v7951_v27  ;;  %v6981_v23 = vpop.f32.mrf.mxu1  ;;  %7339 = vmatprep.subr.bf16.mxu1 %v12305_v34  ;;  %v12314_v27 = vld [vmem:[#allocation33_spill] sm:$0xff]  ;;  %v7965_v1 = vld [vmem:[%s12015_s0 + $0x5c4] ss:$100 sps:$4 sm:$0xff]  }
 0x31d   :  { %v4252_v43 = vadd.f32 %v6954_v59, %v11614_v0  ;;  %7312 = vmatpush3.bf16.msra.mxu0 %v8365_v29  ;;  %v6982_v19 = vadd.f32 %v6981_v23, %v6980_v54  ;;  %5241 = vmatprep.mubr.bf16.mxu0 %v7959_v55  ;;  %v7960_v6 = vld [vmem:[%s12015_s0 + $0x500] ss:$100 sps:$4 sm:$0xff]   ;;  %v7968_v59 = vld [vmem:[%s12015_s0 + $0x5cc] ss:$100 sps:$4 sm:$0xff]   ;;  %v8377_v54 = vld [vmem:[%s12014_s1 + $0x5b8] sm:$0xff]  }
 0x31e   :  { %v6956_v3 = vpop.f32.mrf.mxu0  ;;  %7313 = vmatprep.subr.bf16.mxu0 %v8366_v44  ;;  %v6983_v52 = vpop.f32.mrf.mxu1  ;;  %5201 = vmatmul.mubr.bf16.gmra.mxu1 %v7954_v58  ;;  %v12317_v58 = vld [vmem:[#allocation36_spill] sm:$0xff]  ;;  %v7963_v29 = vld [vmem:[%s12015_s0 + $0x5c0] ss:$100 sps:$4 sm:$0xff]   ;;  %v12318_v44 = vld [vmem:[#allocation37_spill] sm:$0xff] }
 0x31f   :  { %v6957_v4 = vadd.f32 %v6956_v3, %v6955_v53  ;;  %v11714_v0 = vadd.f32 %v6982_v19, %v4252_v43  ;;  %7340 = vmatpush3.bf16.msra.mxu1 %v12306_v30  ;;  %5290 = vmatprep.mubr.bf16.mxu1 %v7962_v46  ;;  %v8378_v53 = vld [vmem:[%s12014_s1 + $0x5f0] sm:$0xff]   ;;  %v8380_v30 = vld [vmem:[%s12014_s1 + $0x5e8] sm:$0xff]  }
 0x320   :  { %v6958_v39 = vpop.f32.mrf.mxu0  ;;  %v6984_v42 = vpop.f32.mrf.mxu1  ;;  %7341 = vmatprep.subr.bf16.mxu1 %v12307_v11  ;;  %v8379_v3 = vld [vmem:[%s12014_s1 + $0x5b0] sm:$0xff]  }
 0x321   :  { %v4257_v12 = vadd.f32 %v6957_v4, %v11625_v49  ;;  %7314 = vmatpush3.bf16.msra.mxu0 %v8367_v8  ;;  %v6985_v28 = vadd.f32 %v6984_v42, %v6983_v52  ;;  %v12308_v49 = vld [vmem:[#allocation30_spill] sm:$0xff]  ;;  %v7966_v42 = vld [vmem:[%s12015_s0 + $0x5c8] ss:$100 sps:$4 sm:$0xff]  }
 0x322   :  { %v6959_v33 = vpop.f32.mrf.mxu0  ;;  %7315 = vmatprep.subr.bf16.mxu0 %v8368_v15  ;;  %v6986_v17 = vpop.f32.mrf.mxu1 }
 0x323   :  { %v6960_v10 = vadd.f32 %v6959_v33, %v6958_v39  ;;  %v11725_v47 = vadd.f32 %v6985_v28, %v4257_v12  ;;  %7342 = vmatpush3.bf16.msra.mxu1 %v12308_v49  ;;  %v7971_v39 = vld [vmem:[%s12015_s0 + $0x50c] ss:$100 sps:$4 sm:$0xff]  }
 0x324   :  { %v6987_v41 = vpop.f32.mrf.mxu1  ;;  %7343 = vmatprep.subr.bf16.mxu1 %v12309_v36  ;;  %v7972_v28 = vld [vmem:[%s12015_s0 + $0x510] ss:$100 sps:$4 sm:$0xff]  }
 0x325   :  { %v4260_v24 = vadd.f32 %v6960_v10, %v11636_v35  ;;  %7316 = vmatpush3.bf16.msra.mxu0 %v8369_v9  ;;  %v6988_v45 = vadd.f32 %v6987_v41, %v6986_v17  ;;  %v8371_v35 = vld [vmem:[%s12014_s1 + $0x490] sm:$0xff]   ;;  %v8381_v10 = vld [vmem:[%s12014_s1 + $0x5a8] sm:$0xff]   ;;  %v12319_v17 = vld [vmem:[#allocation38_spill] sm:$0xff] }
 0x326   :  { %7317 = vmatprep.subr.bf16.mxu0 %v8370_v13  ;;  %v8382_v41 = vld [vmem:[%s12014_s1 + $0x5e0] sm:$0xff]  }
 0x327   :  { %v11736_v16 = vadd.f32 %v6988_v45, %v4260_v24  ;;  %7344 = vmatpush3.bf16.msra.mxu1 %v12310_v32 }
 0x328   :  { %7345 = vmatprep.subr.bf16.mxu1 %v12311_v26 }
 0x329   :  { %7318 = vmatpush3.bf16.msra.mxu0 %v8371_v35  ;;  %v8383_v35 = vld [vmem:[%s12014_s1 + $0x5a0] sm:$0xff]  }
 0x32a   :  { %7319 = vmatprep.subr.bf16.mxu0 %v8372_v56 }
 0x32b   :  { %7346 = vmatpush3.bf16.msra.mxu1 %v12312_v37  ;;  %v8384_v37 = vld [vmem:[%s12014_s1 + $0x5d8] sm:$0xff]  }
 0x32c   :  { %7347 = vmatprep.subr.bf16.mxu1 %v12313_v62 }
 0x32d   :  { %7320 = vmatpush3.bf16.msra.mxu0 %v8373_v40 }
 0x32e   :  { %7321 = vmatprep.subr.bf16.mxu0 %v8374_v22 }
 0x32f   :  { %7348 = vmatpush3.bf16.msra.mxu1 %v12314_v27 }
 0x330   :  { %7349 = vmatprep.subr.bf16.mxu1 %v12315_v50  ;;  %v8386_v50 = vld [vmem:[%s12014_s1 + $0x5d0] sm:$0xff]  }
 0x331   :  { %7322 = vmatpush3.bf16.msra.mxu0 %v8375_v5 }
 0x332   :  { %7363 = vmatprep.subr.bf16.mxu0 %v8376_v2  ;;  %v8388_v2 = vld [vmem:[%s12014_s1 + $0x5c8] sm:$0xff]  }
 0x333   :  { %7350 = vmatpush3.bf16.msra.mxu1 %v12316_v25  ;;  %v7976_v25 = vld [vmem:[%s12015_s0 + $0x5d4] ss:$100 sps:$4 sm:$0xff]  }
 0x334   :  { %v7005_v55 = vpop.f32.mrf.mxu0  ;;  %5242 = vmatmul.mubr.bf16.vlgmr.msra.gmra.mxu0 %v7957_v20  ;;  %7461 = vmatprep.subr.bf16.mxu1 %v12317_v58  ;;  %v8385_v20 = vld [vmem:[%s12014_s1 + $0x598] sm:$0xff]  }
 0x335   :  { %7364 = vmatpush3.bf16.msra.mxu0 %v8377_v54  ;;  %5249 = vmatprep.mubr.bf16.mxu0 %v7965_v1  ;;  %v8389_v1 = vld [vmem:[%s12014_s1 + $0x588] sm:$0xff]  }
 0x336   :  { %v7006_v21 = vpop.f32.mrf.mxu0  ;;  %7365 = vmatprep.subr.bf16.mxu0 %v8378_v53  ;;  %v7033_v43 = vpop.f32.mrf.mxu1  ;;  %5291 = vmatmul.mubr.bf16.vlgmr.msra.gmra.mxu1 %v7960_v6  ;;  %v7969_v6 = vld [vmem:[%s12015_s0 + $0x508] ss:$100 sps:$4 sm:$0xff]  }
 0x337   :  { %v7007_v46 = vadd.f32 %v7006_v21, %v7005_v55  ;;  %7462 = vmatpush3.bf16.msra.mxu1 %v12317_v58  ;;  %5298 = vmatprep.mubr.bf16.mxu1 %v7968_v59  ;;  %v7973_v55 = vld [vmem:[%s12015_s0 + $0x5d8] ss:$100 sps:$4 sm:$0xff]  }
 0x338   :  { %v7008_v23 = vpop.f32.mrf.mxu0  ;;  %v7034_v19 = vpop.f32.mrf.mxu1  ;;  %7463 = vmatprep.subr.bf16.mxu1 %v12318_v44 }
 0x339   :  { %v4347_v34 = vadd.f32 %v7007_v46, %v11700_v48  ;;  %7366 = vmatpush3.bf16.msra.mxu0 %v8379_v3  ;;  %v7035_v4 = vadd.f32 %v7034_v19, %v7033_v43  ;;  %v7974_v46 = vld [vmem:[%s12015_s0 + $0x5d0] ss:$100 sps:$4 sm:$0xff]  }
 0x33a   :  { %v7009_v52 = vpop.f32.mrf.mxu0  ;;  %7367 = vmatprep.subr.bf16.mxu0 %v8380_v30  ;;  %v7036_v12 = vpop.f32.mrf.mxu1 }
 0x33b   :  { %v7010_v48 = vadd.f32 %v7009_v52, %v7008_v23  ;;  %7464 = vmatpush3.bf16.msra.mxu1 %v12318_v44  ;;  %v11801_v11 = vadd.f32 %v7035_v4, %v4347_v34 }
 0x33c   :  { %v7011_v8 = vpop.f32.mrf.mxu0  ;;  %5250 = vmatmul.mubr.bf16.gmra.mxu0 %v7963_v29  ;;  %v7037_v15 = vpop.f32.mrf.mxu1  ;;  %7465 = vmatprep.subr.bf16.mxu1 %v12319_v17 }
 0x33d   :  { %v4350_v33 = vadd.f32 %v7010_v48, %v11714_v0  ;;  %7368 = vmatpush3.bf16.msra.mxu0 %v8381_v10  ;;  %v7038_v49 = vadd.f32 %v7037_v15, %v7036_v12  ;;  %5339 = vmatprep.mubr.bf16.mxu0 %v7971_v39 }
 0x33e   :  { %v7012_v24 = vpop.f32.mrf.mxu0  ;;  %7369 = vmatprep.subr.bf16.mxu0 %v8382_v41  ;;  %v7039_v36 = vpop.f32.mrf.mxu1  ;;  %5299 = vmatmul.mubr.bf16.gmra.mxu1 %v7966_v42 }
 0x33f   :  { %v7013_v9 = vadd.f32 %v7012_v24, %v7011_v8  ;;  %7466 = vmatpush3.bf16.msra.mxu1 %v12319_v17  ;;  %7477 = vmatprep.mubr.bf16.mxu1 %v7972_v28  ;;  %v4399_v45 = vadd.f32 %v7038_v49, %v4350_v33 }
 0x340   :  { %v7014_v0 = vpop.f32.mrf.mxu0  ;;  %v7040_v32 = vpop.f32.mrf.mxu1  ;;  %7467 = vmatprep.subr.bf16.mxu1 %v11204_v31 }
 0x341   :  { %v4355_v13 = vadd.f32 %v7013_v9, %v11725_v47  ;;  %7370 = vmatpush3.bf16.msra.mxu0 %v8383_v35  ;;  %v7041_v26 = vadd.f32 %v7040_v32, %v7039_v36 }
 0x342   :  { %v7015_v56 = vpop.f32.mrf.mxu0  ;;  %7371 = vmatprep.subr.bf16.mxu0 %v8384_v37  ;;  %v7042_v62 = vpop.f32.mrf.mxu1 }
 0x343   :  { %v7016_v40 = vadd.f32 %v7015_v56, %v7014_v0  ;;  %7468 = vmatpush3.bf16.msra.mxu1 %v11204_v31  ;;  %v4404_v47 = vadd.f32 %v7041_v26, %v4355_v13 }
 0x344   :  { %v7043_v27 = vpop.f32.mrf.mxu1  ;;  %7469 = vmatprep.subr.bf16.mxu1 %v11216_v14 }
 0x345   :  { %v4358_v22 = vadd.f32 %v7016_v40, %v11736_v16  ;;  %7372 = vmatpush3.bf16.msra.mxu0 %v8385_v20  ;;  %v7044_v5 = vadd.f32 %v7043_v27, %v7042_v62  ;;  %v8387_v16 = vld [vmem:[%s12014_s1 + $0x590] sm:$0xff]  }
 0x346   :  { %7373 = vmatprep.subr.bf16.mxu0 %v8386_v50 }
 0x347   :  { %7470 = vmatpush3.bf16.msra.mxu1 %v11216_v14  ;;  %v4407_v31 = vadd.f32 %v7044_v5, %v4358_v22  ;;  %v8390_v14 = vld [vmem:[%s12014_s1 + $0x5c0] sm:$0xff]  }
 0x348   :  { %7471 = vmatprep.subr.bf16.mxu1 %v11229_v57 }
 0x349   :  { %7374 = vmatpush3.bf16.msra.mxu0 %v8387_v16 }
 0x34a   :  { %7375 = vmatprep.subr.bf16.mxu0 %v8388_v2 }
 0x34b   :  { %7472 = vmatpush3.bf16.msra.mxu1 %v11229_v57  ;;  %v8391_v57 = vld [vmem:[%s12014_s1 + $0x580] sm:$0xff]  }
 0x34c   :  { %7473 = vmatprep.subr.bf16.mxu1 %v11241_v61 }
 0x34d   :  { %7376 = vmatpush3.bf16.msra.mxu0 %v8389_v1 }
 0x34e   :  { %7377 = vmatprep.subr.bf16.mxu0 %v8390_v14 }
 0x34f   :  { %7474 = vmatpush3.bf16.msra.mxu1 %v11241_v61 }
 0x350   :  { %7475 = vmatprep.subr.bf16.mxu1 %v11252_v51 }
 0x351   :  { %7378 = vmatpush3.bf16.msra.mxu0 %v8391_v57 }
 0x353   :  { %7476 = vmatpush3.bf16.msra.mxu1 %v11252_v51 }
 0x354   :  { %v7459_v61 = vpop.f32.mrf.mxu0  ;;  %5340 = vmatmul.mubr.bf16.vlgmr.msra.gmra.mxu0 %v7969_v6 }
 0x355   :  { %v11863_v59 = vadd.f32 %v7459_v61, %v4404_v47  ;;  %5347 = vmatprep.mubr.bf16.mxu0 %v7976_v25 }
 0x356   :  { %v4444_v54 = vpop.f32.mrf.mxu0  ;;  %7478 = vmatmul.mubr.bf16.vlgmr.msra.gmra.mxu1 %v7973_v55  ;;  %v7071_v21 = vpop.f32.mrf.mxu1 }
 0x357   :  { %12320 = vst [vmem:[#allocation32_spill] sm:$0xff] %v11863_v59  ;;  %v11866_v58 = vadd.f32 %v4444_v54, %v11801_v11 }
 0x358   :  { %v7460_v53 = vpop.f32.mrf.mxu0  ;;  %v7072_v23 = vpop.f32.mrf.mxu1 }
 0x359   :  { %12321 = vst [vmem:[#allocation57_spill] sm:$0xff] %v11866_v58  ;;  %v11871_v43 = vadd.f32 %v7460_v53, %v4407_v31  ;;  %v7073_v34 = vadd.f32 %v7072_v23, %v7071_v21 }
 0x35a   :  { %v4447_v29 = vpop.f32.mrf.mxu0  ;;  %v7074_v19 = vpop.f32.mrf.mxu1 }
 0x35b   :  { %12322 = vst [vmem:[#allocation45_spill] sm:$0xff] %v11871_v43  ;;  %v11873_v51 = vadd.f32 %v4447_v29, %v4399_v45  ;;  %v4803_v11 = vadd.f32 %v11317_v18, %v7073_v34 }
 0x35c   :  { %5348 = vmatmul.mubr.bf16.gmra.mxu0 %v7974_v46  ;;  %v7075_v3 = vpop.f32.mrf.mxu1 }
 0x35d   :  { %12323 = vst [vmem:[#allocation46_spill] sm:$0xff] %v11873_v51  ;;  %v11875_v44 = vadd.f32 %v7075_v3, %v7074_v19 }
 0x35e   :  { %v7077_v4 = vpop.f32.mrf.mxu1 }
 0x360   :  { %v7078_v52 = vpop.f32.mrf.mxu1 }
 0x361   :  { %v7079_v30 = vadd.f32 %v7078_v52, %v7077_v4 }
 0x362   :  { %v7080_v39 = vpop.f32.mrf.mxu1 }
 0x363   :  { %v4811_v13 = vadd.f32 %v11317_v18, %v7079_v30 }
 0x364   :  { %v7081_v48 = vpop.f32.mrf.mxu1 }
 0x365   :  { %v11877_v12 = vadd.f32 %v7081_v48, %v7080_v39 }
 0x374   :  { %v7099_v42 = vpop.f32.mrf.mxu0 }
 0x376   :  { %v7100_v8 = vpop.f32.mrf.mxu0  ;;  %v7127_v33 = vpop.f32.mrf.mxu1 }
 0x377   :  { %v7101_v28 = vadd.f32 %v7100_v8, %v7099_v42 }
 0x378   :  { %v11880_v15 = vpop.f32.mrf.mxu0  ;;  %v7128_v17 = vpop.f32.mrf.mxu1 }
 0x379   :  { %v4852_v10 = vadd.f32 %v7101_v28, %v4803_v11  ;;  %v7129_v49 = vadd.f32 %v7128_v17, %v7127_v33 }
 0x37a   :  { %v11882_v24 = vpop.f32.mrf.mxu0  ;;  %v11884_v41 = vpop.f32.mrf.mxu1 }
 0x37b   :  { %v11886_v9 = vadd.f32 %v7129_v49, %v4852_v10  ;;  %v7104_v58 = vadd.f32 %v11882_v24, %v11880_v15 }
 0x37c   :  { %v7105_v36 = vpop.f32.mrf.mxu0  ;;  %v11888_v0 = vpop.f32.mrf.mxu1 }
 0x37e   :  { %v7106_v45 = vpop.f32.mrf.mxu0  ;;  %v7133_v35 = vpop.f32.mrf.mxu1 }
 0x37f   :  { %v7107_v32 = vadd.f32 %v7106_v45, %v7105_v36 }
 0x380   :  { %v7134_v56 = vpop.f32.mrf.mxu1  ;;  %v11893_v62 = vpop.f32.mrf.mxu0 }
 0x381   :  { %v4860_v26 = vadd.f32 %v7107_v32, %v4811_v13  ;;  %v7135_v37 = vadd.f32 %v7134_v56, %v7133_v35 }
 0x382   :  { %v11895_v47 = vpop.f32.mrf.mxu1  ;;  %v11897_v22 = vpop.f32.mrf.mxu0 }
 0x383   :  { %v11891_v40 = vadd.f32 %v7135_v37, %v4860_v26  ;;  %v7110_v15 = vadd.f32 %v11897_v22, %v11893_v62 }
 0x384   :  { %v11899_v20 = vpop.f32.mrf.mxu1 }
 0x394   :  { %v7155_v27 = vpop.f32.mrf.mxu0 }
 0x396   :  { %v7183_v5 = vpop.f32.mrf.mxu1  ;;  %v7156_v50 = vpop.f32.mrf.mxu0 }
 0x398   :  { %v7184_v31 = vpop.f32.mrf.mxu1  ;;  %v7158_v18 = vpop.f32.mrf.mxu0 }
 0x39a   :  { %v11901_v16 = vpop.f32.mrf.mxu1  ;;  %v7159_v2 = vpop.f32.mrf.mxu0 }
 0x39c   :  { %v11903_v1 = vpop.f32.mrf.mxu1  ;;  %v7161_v14 = vpop.f32.mrf.mxu0 }
 0x39e   :  { %v11905_v6 = vpop.f32.mrf.mxu1  ;;  %v7162_v57 = vpop.f32.mrf.mxu0 }
 0x3a0   :  { %v11907_v25 = vpop.f32.mrf.mxu1  ;;  %v11909_v55 = vpop.f32.mrf.mxu0 }
 0x3a2   :  { %v11911_v61 = vpop.f32.mrf.mxu1  ;;  %v11913_v54 = vpop.f32.mrf.mxu0 }
 0x3a4   :  { %v11915_v53 = vpop.f32.mrf.mxu1 }
 0x3b4   :  { %v7211_v21 = vpop.f32.mrf.mxu0 }
 0x3b6   :  { %v7239_v46 = vpop.f32.mrf.mxu1  ;;  %v7212_v23 = vpop.f32.mrf.mxu0 }
 0x3b8   :  { %v7240_v29 = vpop.f32.mrf.mxu1  ;;  %v7214_v34 = vpop.f32.mrf.mxu0 }
 0x3ba   :  { %v11917_v19 = vpop.f32.mrf.mxu1  ;;  %v7215_v3 = vpop.f32.mrf.mxu0 }
 0x3bb   :  { %v7216_v62 = vadd.f32 %v7215_v3, %v7214_v34 }
 0x3bc   :  { %v11919_v4 = vpop.f32.mrf.mxu1  ;;  %v7217_v52 = vpop.f32.mrf.mxu0 }
 0x3be   :  { %v11921_v30 = vpop.f32.mrf.mxu1  ;;  %v7218_v39 = vpop.f32.mrf.mxu0 }
 0x3c0   :  { %v11923_v48 = vpop.f32.mrf.mxu1  ;;  %v11925_v42 = vpop.f32.mrf.mxu0 }
 0x3c2   :  { %v11927_v8 = vpop.f32.mrf.mxu1  ;;  %v11929_v11 = vpop.f32.mrf.mxu0 }
 0x3c3   :  { %12324 = vst [vmem:[#allocation47_spill] sm:$0xff] %v11927_v8  ;;  %v7222_v34 = vadd.f32 %v11929_v11, %v11925_v42 }
 0x3c4   :  { %v11931_v33 = vpop.f32.mrf.mxu1 }
 0x3c5   :  { %12325 = vst [vmem:[#allocation48_spill] sm:$0xff] %v11931_v33 }
 0x3d4   :  { %v7267_v28 = vpop.f32.mrf.mxu0 }
 0x3d6   :  { %v7295_v10 = vpop.f32.mrf.mxu1  ;;  %v7268_v17 = vpop.f32.mrf.mxu0 }
 0x3d7   :  { %v7269_v22 = vadd.f32 %v7268_v17, %v7267_v28 }
 0x3d8   :  { %v7296_v49 = vpop.f32.mrf.mxu1  ;;  %v7270_v36 = vpop.f32.mrf.mxu0 }
 0x3da   :  { %v11933_v45 = vpop.f32.mrf.mxu1  ;;  %v7271_v13 = vpop.f32.mrf.mxu0 }
 0x3db   :  { %12326 = vst [vmem:[#allocation39_spill] sm:$0xff] %v11933_v45 }
 0x3dc   :  { %v11935_v32 = vpop.f32.mrf.mxu1  ;;  %v11937_v35 = vpop.f32.mrf.mxu0 }
 0x3dd   :  { %12327 = vst [vmem:[#allocation49_spill] sm:$0xff] %v11935_v32  ;;  %12328 = vst [vmem:[#allocation50_spill] sm:$0xff] %v11937_v35  ;;  %v7160_v32 = vadd.f32 %v7159_v2, %v7158_v18  ;;  %v7213_v35 = vadd.f32 %v7212_v23, %v7211_v21  ;;  %v7241_v18 = vadd.f32 %v7240_v29, %v7239_v46 }
 0x3de   :  { %v11939_v26 = vpop.f32.mrf.mxu1  ;;  %v11941_v56 = vpop.f32.mrf.mxu0  ;;  %v7272_v23 = vadd.f32 %v7271_v13, %v7270_v36  ;;  %v7247_v29 = vadd.f32 %v11923_v48, %v11921_v30  ;;  %v12342_v30 = vld [vmem:[#allocation48_spill] sm:$0xff] }
 0x3df   :  { %12329 = vst [vmem:[#allocation43_spill] sm:$0xff] %v11939_v26  ;;  %12330 = vst [vmem:[#allocation51_spill] sm:$0xff] %v11941_v56  ;;  %v8392_v26 = vld [vmem:[%s12016_s2] ss:$0 sm:$0xff] }
 0x3e0   :  { %v11943_v37 = vpop.f32.mrf.mxu1  ;;  %v11945_v38 = vpop.f32.mrf.mxu0 }
 0x3e1   :  { %12331 = vst [vmem:[#allocation52_spill] sm:$0xff] %v11943_v37  ;;  %12332 = vst [vmem:[#allocation53_spill] sm:$0xff] %v11945_v38  ;;  %v4806_v37 = vadd.f32 %v8392_v26, %v11875_v44  ;;  %v7157_v38 = vadd.f32 %v7156_v50, %v7155_v27  ;;  %v4814_v44 = vadd.f32 %v8392_v26, %v11877_v12 }
 0x3e2   :  { %v11947_v7 = vpop.f32.mrf.mxu1  ;;  %v11949_v43 = vpop.f32.mrf.mxu0  ;;  %v7163_v27 = vadd.f32 %v7162_v57, %v7161_v14  ;;  %v7191_v12 = vadd.f32 %v11907_v25, %v11905_v6  ;;  %v7297_v25 = vadd.f32 %v7296_v49, %v7295_v10 }
 0x3e3   :  { %12333 = vst [vmem:[#allocation54_spill] sm:$0xff] %v11947_v7  ;;  %12334 = vst [vmem:[#allocation55_spill] sm:$0xff] %v11949_v43  ;;  %v4855_v8 = vadd.f32 %v7104_v58, %v4806_v37  ;;  %v7132_v43 = vadd.f32 %v11888_v0, %v11884_v41  ;;  %v7188_v41 = vadd.f32 %v11903_v1, %v11901_v16 }
 0x3e4   :  { %v11951_v59 = vpop.f32.mrf.mxu1  ;;  %v7219_v1 = vadd.f32 %v7218_v39, %v7217_v52  ;;  %v12340_v10 = vld [vmem:[#allocation49_spill] sm:$0xff] }
 0x3e5   :  { %12335 = vst [vmem:[#allocation56_spill] sm:$0xff] %v11951_v59  ;;  %v4950_v59 = vadd.f32 %v7157_v38, %v11886_v9  ;;  %v4904_v56 = vadd.f32 %v7132_v43, %v4855_v8  ;;  %v4863_v38 = vadd.f32 %v7110_v15, %v4814_v44  ;;  %v7138_v9 = vadd.f32 %v11899_v20, %v11895_v47 }
 0x3e6   :  { %v4958_v43 = vadd.f32 %v7163_v27, %v11891_v40  ;;  %v7244_v20 = vadd.f32 %v11919_v4, %v11917_v19  ;;  %v7194_v40 = vadd.f32 %v11915_v53, %v11911_v61  ;;  %v12337_v4 = vld [vmem:[#allocation50_spill] sm:$0xff]  ;;  %v12338_v8 = vld [vmem:[#allocation51_spill] sm:$0xff] }
 0x3e7   :  { %v4953_v58 = vadd.f32 %v7160_v32, %v4904_v56  ;;  %v4912_v2 = vadd.f32 %v7138_v9, %v4863_v38  ;;  %v7275_v28 = vadd.f32 %v12338_v8, %v12337_v4  ;;  %v12339_v53 = vld [vmem:[#allocation39_spill] sm:$0xff] }
 0x3e8   :  { %v5007_v21 = vadd.f32 %v7191_v12, %v4958_v43  ;;  %v7300_v49 = vadd.f32 %v12340_v10, %v12339_v53  ;;  %v12344_v37 = vld [vmem:[#allocation43_spill] sm:$0xff]  ;;  %v12345_v15 = vld [vmem:[#allocation52_spill] sm:$0xff]  ;;  %v12346_v27 = vld [vmem:[#allocation53_spill] sm:$0xff] }
 0x3e9   :  { %v7303_v44 = vadd.f32 %v12345_v15, %v12344_v37  ;;  %v12352_v10 = vld [vmem:[#allocation40_spill] sm:$0xff] }
 0x3f4   :  { %v7323_v63 = vpop.f32.mrf.mxu0 }
 0x3f6   :  { %v11953_v60 = vpop.f32.mrf.mxu1  ;;  %v7324_v51 = vpop.f32.mrf.mxu0 }
 0x3f7   :  { %12336 = vst [vmem:[#allocation58_spill] sm:$0xff] %v11953_v60  ;;  %v7185_v60 = vadd.f32 %v7184_v31, %v7183_v5  ;;  %v7325_v39 = vadd.f32 %v7324_v51, %v7323_v63 }
 0x3f8   :  { %v7352_v33 = vpop.f32.mrf.mxu1  ;;  %v7326_v7 = vpop.f32.mrf.mxu0 }
 0x3f9   :  { %v4999_v50 = vadd.f32 %v7185_v60, %v4950_v59  ;;  %v7166_v60 = vadd.f32 %v11913_v54, %v11909_v55  ;;  %v5002_v59 = vadd.f32 %v7188_v41, %v4953_v58  ;;  %v5056_v54 = vadd.f32 %v7219_v1, %v5007_v21 }
 0x3fa   :  { %v11964_v45 = vpop.f32.mrf.mxu1  ;;  %v7327_v24 = vpop.f32.mrf.mxu0 }
 0x3fb   :  { %v5048_v31 = vadd.f32 %v7213_v35, %v4999_v50  ;;  %v5051_v47 = vadd.f32 %v7216_v62, %v5002_v59  ;;  %v4961_v46 = vadd.f32 %v7166_v60, %v4912_v2  ;;  %v5105_v13 = vadd.f32 %v7247_v29, %v5056_v54  ;;  %v12341_v35 = vld [vmem:[#allocation47_spill] sm:$0xff]  ;;  %v12349_v2 = vld [vmem:[#allocation56_spill] sm:$0xff] }
 0x3fc   :  { %v7355_v0 = vpop.f32.mrf.mxu1  ;;  %v7329_v5 = vpop.f32.mrf.mxu0  ;;  %v7250_v48 = vadd.f32 %v12342_v30, %v12341_v35  ;;  %v7328_v63 = vadd.f32 %v7327_v24, %v7326_v7  ;;  %v12347_v50 = vld [vmem:[#allocation55_spill] sm:$0xff] }
 0x3fd   :  { %v5097_v57 = vadd.f32 %v7241_v18, %v5048_v31  ;;  %v5100_v52 = vadd.f32 %v7244_v20, %v5051_v47  ;;  %v5010_v19 = vadd.f32 %v7194_v40, %v4961_v46  ;;  %v5154_v51 = vadd.f32 %v7275_v28, %v5105_v13 }
 0x3fe   :  { %v7357_v16 = vpop.f32.mrf.mxu1  ;;  %v7330_v14 = vpop.f32.mrf.mxu0  ;;  %v12343_v11 = vld [vmem:[#allocation58_spill] sm:$0xff]  ;;  %v7278_v58 = vadd.f32 %v12347_v50, %v12346_v27  ;;  %v7356_v60 = vadd.f32 %v7355_v0, %v11964_v45  ;;  %v12350_v0 = vld [vmem:[#allocation57_spill] sm:$0xff] }
 0x3ff   :  { %v5146_v6 = vadd.f32 %v7269_v22, %v5097_v57  ;;  %v5149_v61 = vadd.f32 %v7272_v23, %v5100_v52  ;;  %v5059_v32 = vadd.f32 %v7222_v34, %v5010_v19  ;;  %v7353_v56 = vadd.f32 %v7352_v33, %v12343_v11  ;;  %v12348_v22 = vld [vmem:[#allocation54_spill] sm:$0xff]  ;;  %v12353_v11 = vld [vmem:[#allocation32_spill] sm:$0xff]  ;;  %v12355_v50 = vld [vmem:[#allocation45_spill] sm:$0xff] }
 0x400   :  { %v7358_v55 = vpop.f32.mrf.mxu1  ;;  %v7332_v3 = vpop.f32.mrf.mxu0  ;;  %v7331_v18 = vadd.f32 %v7330_v14, %v7329_v5  ;;  %v5203_v7 = vadd.f32 %v7303_v44, %v5154_v51  ;;  %v7306_v1 = vadd.f32 %v12349_v2, %v12348_v22  ;;  %v4459_v29 = vmax.f32 %v12350_v0, 0.0  ;;  %v12354_v51 = vld [vmem:[#allocation41_spill] sm:$0xff] }
 0x401   :  { %v5195_v17 = vadd.f32 %v7297_v25, %v5146_v6  ;;  %v5198_v38 = vadd.f32 %v7300_v49, %v5149_v61  ;;  %v5108_v31 = vadd.f32 %v7250_v48, %v5059_v32  ;;  %v7359_v46 = vadd.f32 %v7358_v55, %v7357_v16 }
 0x402   :  { %v7360_v36 = vpop.f32.mrf.mxu1  ;;  %v7333_v26 = vpop.f32.mrf.mxu0  ;;  %v5252_v21 = vadd.f32 %v7331_v18, %v5203_v7  ;;  %v12357_v18 = vld [vmem:[#allocation42_spill] sm:$0xff] }
 0x403   :  { %v5244_v42 = vadd.f32 %v7325_v39, %v5195_v17  ;;  %v5247_v12 = vadd.f32 %v7328_v63, %v5198_v38  ;;  %v5157_v24 = vadd.f32 %v7278_v58, %v5108_v31  ;;  %v7334_v40 = vadd.f32 %v7333_v26, %v7332_v3  ;;  %v12351_v3 = vld [vmem:[#allocation46_spill] sm:$0xff] }
 0x404   :  { %v7361_v9 = vpop.f32.mrf.mxu1  ;;  %v5301_v19 = vadd.f32 %v7359_v46, %v5252_v21  ;;  %v4460_v53 = vmax.f32 %v12351_v3, 0.0  ;;  %v4462_v58 = vmax.f32 %v12355_v50, 0.0 }
 0x405   :  { %v5293_v43 = vadd.f32 %v7353_v56, %v5244_v42  ;;  %v5296_v5 = vadd.f32 %v7356_v60, %v5247_v12  ;;  %v5206_v54 = vadd.f32 %v7306_v1, %v5157_v24  ;;  %v7362_v28 = vadd.f32 %v7361_v9, %v7360_v36 }
 0x406   :  { %v4461_v56 = vmax.f32 %v12353_v11, 0.0 }
 0x407   :  { %v5255_v4 = vadd.f32 %v7334_v40, %v5206_v54 }
 0x409   :  { %v5304_v30 = vadd.f32 %v7362_v28, %v5255_v4 }
 0x414   :  { %v7379_v41 = vpop.f32.mrf.mxu0 }
 0x416   :  { %v7380_v62 = vpop.f32.mrf.mxu0  ;;  %v7479_v33 = vpop.f32.mrf.mxu1 }
 0x417   :  { %v7381_v59 = vadd.f32 %v7380_v62, %v7379_v41  ;;  %v12356_v41 = vld [vmem:[#allocation44_spill] sm:$0xff] }
 0x418   :  { %v7382_v57 = vpop.f32.mrf.mxu0  ;;  %v5390_v20 = vpop.f32.mrf.mxu1 }
 0x419   :  { %v5342_v47 = vadd.f32 %v7381_v59, %v5293_v43 }
 0x41a   :  { %v7383_v6 = vpop.f32.mrf.mxu0  ;;  %v7480_v23 = vpop.f32.mrf.mxu1 }
 0x41b   :  { %v7384_v14 = vadd.f32 %v7383_v6, %v7382_v57  ;;  %v5391_v25 = vadd.f32 %v5390_v20, %v5342_v47 }
 0x41c   :  { %v7385_v45 = vpop.f32.mrf.mxu0  ;;  %v5393_v39 = vpop.f32.mrf.mxu1 }
 0x41d   :  { %v5405_v34 = vmax.f32 %v5391_v25, 0.0  ;;  %v5345_v52 = vadd.f32 %v7384_v14, %v5296_v5 }
 0x41e   :  { %v7386_v8 = vpop.f32.mrf.mxu0 }
 0x41f   :  { %v5409_v17 = vmax.f32 %v4459_v29, %v5405_v34  ;;  %v7387_v61 = vadd.f32 %v7386_v8, %v7385_v45  ;;  %v5394_v16 = vadd.f32 %v5393_v39, %v5345_v52 }
 0x420   :  { %v7388_v55 = vpop.f32.mrf.mxu0 }
 0x421   :  { %v5413_v49 = vmax.f32 %v12352_v10, %v5409_v17  ;;  %v5350_v13 = vadd.f32 %v7387_v61, %v5301_v19  ;;  %v5406_v32 = vmax.f32 %v5394_v16, 0.0 }
 0x422   :  { %v7389_v35 = vpop.f32.mrf.mxu0 }
 0x423   :  { %v5399_v48 = vadd.f32 %v7479_v33, %v5350_v13  ;;  %v5410_v26 = vmax.f32 %v4460_v53, %v5406_v32  ;;  %v7390_v42 = vadd.f32 %v7389_v35, %v7388_v55 }
 0x425   :  { %v5407_v63 = vmax.f32 %v5399_v48, 0.0  ;;  %v5414_v36 = vmax.f32 %v12354_v51, %v5410_v26  ;;  %v5353_v37 = vadd.f32 %v7390_v42, %v5304_v30 }
 0x427   :  { %v5411_v15 = vmax.f32 %v4461_v56, %v5407_v63  ;;  %v6009_v44 = vpack.c.bf16 %v5414_v36, %v5413_v49  ;;  %v5402_v27 = vadd.f32 %v7480_v23, %v5353_v37 }
 0x429   :  { %v5415_v38 = vmax.f32 %v12356_v41, %v5411_v15  ;;  %6010 = vst [vmem:[%s12017_s3] sm:$0xff] %v6009_v44   ;;  %v5408_v9 = vmax.f32 %v5402_v27, 0.0 }
 0x42b   :  { %v5412_v31 = vmax.f32 %v4462_v58, %v5408_v9 }
 0x42d   :  { %v5416_v62 = vmax.f32 %v12357_v18, %v5412_v31 }
 0x42f   :  { %v6014_v43 = vpack.c.bf16 %v5416_v62, %v5415_v38 }
 0x431   :  { %6016 = vst [vmem:[%s12017_s3 + $0x8] sm:$0xff] %v6014_v43  }

</bundles_post_ra>
